<compile_context>
chip_gen: v7x
topology: tpu7x:2x2x1
jax: 0.10.0
libtpu: 0.0.40
codegen_flags: <defaults>
</compile_context>

<pallas_src>
import math

import jax
import jax.numpy as jnp
from jax import lax
from jax.experimental import pallas as pl
from jax.experimental.pallas import tpu as pltpu

# ----------------------------- configuration -------------------------------
B = 2              # batch
S = 8              # sequence length (power of two -> batch id via shift)
N_TOK = B * S      # 16 tokens total
EMB = 128          # stand-in BERT hidden size (embedding_dim)
D = 64             # d_model
H = 8              # nheads  (d_model % nheads == 0)
DH = D // H        # head_dim = 8
NUM_CLASSES = 2
NUM_LAYERS = 2     # num_transformers
VOCAB = 100
VOCAB_PAD = 128    # padded to a full lane width for the one-hot gather

GRID_SIZE = 5
SPLINE_ORDER = 3
NUM_BASES = GRID_SIZE + SPLINE_ORDER            # 8
KAN_IN = (1 + NUM_BASES) * D                    # 576 = [SiLU | 8 spline bases]
_H_STEP = (1.0 - (-1.0)) / GRID_SIZE            # 0.4
# grid knots: arange(-spline_order, grid_size+spline_order+1)*h + grid_range[0]
GRID_KNOTS = tuple(float(j * _H_STEP - 1.0)
                   for j in range(-SPLINE_ORDER, GRID_SIZE + SPLINE_ORDER + 1))
LN_EPS = 1e-5
LOG2_S = int(round(math.log2(S)))
assert (1 << LOG2_S) == S, "S must be a power of two"
assert H * DH == D

# Row layout of the packed bias / LN / fc "vecs" slab (shape (N_VEC_ROWS, D)).
ROW_RED_B = 0                                   # embedding_dim_reduction bias
ROW_FC_B = 1                                    # fc bias (first NUM_CLASSES lanes)
ROW_FC_W = 2                                    # fc weight, transposed: NUM_CLASSES rows
ROW_LAYER0 = ROW_FC_W + NUM_CLASSES             # per-layer rows start here
ROWS_PER_LAYER = 8                              # bq, bk, bv, bo, ln1g, ln1b, ln2g, ln2b
N_VEC_ROWS = ROW_LAYER0 + NUM_LAYERS * ROWS_PER_LAYER


# --------------------------- in-kernel helpers ------------------------------
def _add_layernorm(a, b, gamma, beta):
    """LayerNorm(a + b) over the last dim (gamma/beta are (1, D))."""
    x = a + b
    mu = jnp.mean(x, axis=-1, keepdims=True)
    xc = x - mu
    var = jnp.mean(xc * xc, axis=-1, keepdims=True)
    return xc * lax.rsqrt(var + LN_EPS) * gamma + beta


def _kan_forward(x, kan_w):
    """KANLinear as ONE matmul: [SiLU(x) | B_0(x) | ... | B_7(x)] @ kan_w.

    kan_w is (KAN_IN, D): rows [0:D] = base weight (SiLU branch), rows
    [D + j*D + i] = spline weight for basis j / in-feature i (basis-major).
    """
    silu = x * pl.reciprocal(1.0 + jnp.exp(-x), approx=True)

    knots = GRID_KNOTS
    # Degree-0 bases via step-function differences: 12 compares instead of
    # 11x (2 compares + AND).  ge[j] - ge[j+1] == indicator(knot_j <= x < knot_{j+1}).
    ge = [(x >= knots[j]).astype(jnp.float32) for j in range(len(knots))]
    bases = [ge[j] - ge[j + 1] for j in range(len(knots) - 1)]
    # Cox-de Boor recursion; knot-difference reciprocals are Python constants.
    for k in range(1, SPLINE_ORDER + 1):
        nxt = []
        for j in range(len(bases) - 1):
            inv_l = 1.0 / (knots[j + k] - knots[j])
            inv_r = 1.0 / (knots[j + k + 1] - knots[j + 1])
            nxt.append((x - knots[j]) * inv_l * bases[j]
                       + (knots[j + k + 1] - x) * inv_r * bases[j + 1])
        bases = nxt

    kan_in = jnp.concatenate([silu] + bases, axis=-1)       # (N, KAN_IN)
    return jnp.dot(kan_in, kan_w, preferred_element_type=jnp.float32)


# ------------------------------- fused kernel --------------------------------
def fused_kernel(ids_ref, emb_ref, red_wt_ref, attn_w_ref, kan_w_ref,
                 vecs_ref, o_ref):
    vecs = vecs_ref[...]                                     # (N_VEC_ROWS, D)

    # ---- token embedding gather (stand-in for BERT last_hidden_state) ------
    # One-hot MXU gather: compare ids against an iota over the padded vocab,
    # then a single (N, VOCAB_PAD) @ (VOCAB_PAD, EMB) matmul.
    ids = ids_ref[...]                                       # (N, 1) int32
    vocab_iota = lax.broadcasted_iota(jnp.int32, (N_TOK, VOCAB_PAD), 1)
    onehot = (vocab_iota == ids).astype(jnp.float32)         # (N, VOCAB_PAD)
    hidden = jnp.dot(onehot, emb_ref[...],
                     preferred_element_type=jnp.float32)     # (N, EMB)

    # ---- embedding_dim_reduction: Linear(EMB -> D) --------------------------
    red_b = vecs[ROW_RED_B:ROW_RED_B + 1, :]                 # (1, D)
    x = jnp.dot(hidden, red_wt_ref[...],
                preferred_element_type=jnp.float32) + red_b  # (N, D)

    # ---- cross-batch additive bias (block-diagonal attention trick) --------
    # Each head works on the flat (N, DH) slices for ALL batches at once; the
    # (N, N) score matrix gets -1e30 wherever row/col tokens belong to
    # different batch elements, so softmax stays per-batch.  Built ONCE.
    r = lax.broadcasted_iota(jnp.int32, (N_TOK, N_TOK), 0)
    c = lax.broadcasted_iota(jnp.int32, (N_TOK, N_TOK), 1)
    same_batch = jnp.right_shift(r, LOG2_S) == jnp.right_shift(c, LOG2_S)
    attn_bias = jnp.where(same_batch, jnp.float32(0.0), jnp.float32(-1e30))

    for l in range(NUM_LAYERS):
        w_all = attn_w_ref[l]                                # (D, 4D)
        wqkv = w_all[:, :3 * D]                              # (D, 3D), Wq pre-scaled
        wo = w_all[:, 3 * D:]                                # (D, D)
        base = ROW_LAYER0 + l * ROWS_PER_LAYER
        bq = vecs[base + 0:base + 1, :]                      # pre-scaled by 1/sqrt(DH)
        bk = vecs[base + 1:base + 2, :]
        bv = vecs[base + 2:base + 3, :]
        bo = vecs[base + 3:base + 4, :]
        ln1g = vecs[base + 4:base + 5, :]
        ln1b = vecs[base + 5:base + 6, :]
        ln2g = vecs[base + 6:base + 7, :]
        ln2b = vecs[base + 7:base + 8, :]

        # ---- multi-head self attention (key_padding_mask is a no-op;
        #      head_mask is all ones; dropout identity) ----------------------
        qkv = jnp.dot(x, wqkv, preferred_element_type=jnp.float32)  # (N, 3D)
        q = qkv[:, :D] + bq
        k = qkv[:, D:2 * D] + bk
        v = qkv[:, 2 * D:] + bv

        ctx_heads = []
        for h in range(H):
            sl = slice(h * DH, (h + 1) * DH)                 # static lane slice
            qh, kh, vh = q[:, sl], k[:, sl], v[:, sl]        # (N, DH) each
            s = jnp.einsum('sd,td->st', qh, kh,
                           preferred_element_type=jnp.float32) + attn_bias
            m = jnp.max(s, axis=-1, keepdims=True)
            e = jnp.exp(s - m)
            w = e * pl.reciprocal(jnp.sum(e, axis=-1, keepdims=True), approx=True)
            ctx_heads.append(jnp.dot(w, vh, preferred_element_type=jnp.float32))
        ctx = jnp.concatenate(ctx_heads, axis=-1)            # (N, D)
        attn = jnp.dot(ctx, wo, preferred_element_type=jnp.float32) + bo

        # ---- src = norm1(src + dropout(attn)) -------------------------------
        x = _add_layernorm(x, attn, ln1g, ln1b)
        # ---- src2 = KANLinear(src); src = norm2(src + dropout(src2)) --------
        kan = _kan_forward(x, kan_w_ref[l])
        x = _add_layernorm(x, kan, ln2g, ln2b)

    # ---- logits = fc(x.mean(dim=1)) : pooling as one constant-matrix matmul -
    rb = lax.broadcasted_iota(jnp.int32, (B, N_TOK), 0)
    cb = lax.broadcasted_iota(jnp.int32, (B, N_TOK), 1)
    pool = (jnp.right_shift(cb, LOG2_S) == rb).astype(jnp.float32) * (1.0 / S)
    feats = jnp.dot(pool, x, preferred_element_type=jnp.float32)    # (B, D)

    fc_wT = vecs[ROW_FC_W:ROW_FC_W + NUM_CLASSES, :]                # (C, D)
    fc_b = vecs[ROW_FC_B:ROW_FC_B + 1, :NUM_CLASSES]                # (1, C)
    o_ref[...] = jnp.einsum('bd,cd->bc', feats, fc_wT,
                            preferred_element_type=jnp.float32) + fc_b


# --------------------------------- wrapper -----------------------------------
def text_disease_predictor_forward(params, input_ids, attention_mask=None):
    # attention_mask is only consumed by the external BERT (not reproduced) and
    # by the post-softmax key_padding_mask no-op, so it is unused here.
    ids = input_ids.reshape(N_TOK, 1).astype(jnp.int32)

    args = [ids, params["emb"], params["red_wt"], params["attn_w"],
            params["kan_w"], params["vecs"]]
    vmem = pl.BlockSpec(memory_space=pltpu.MemorySpace.VMEM)

    return pl.pallas_call(
        fused_kernel,
        out_shape=jax.ShapeDtypeStruct((B, NUM_CLASSES), jnp.float32),
        in_specs=[vmem] * len(args),
        out_specs=vmem,
    )(*args)


forward_jit = jax.jit(text_disease_predictor_forward)


# ------------------------------ parameter init --------------------------------
def init_params(key):
    def nrm(k, shape, scale=0.05):
        return (scale * jax.random.normal(k, shape)).astype(jnp.float32)

    keys = jax.random.split(key, 16)
    L = NUM_LAYERS
    inv_sqrt_dh = 1.0 / math.sqrt(DH)

    # Embedding table padded to a full 128-row / 128-lane tile (2D, no (1,EMB)
    # middle axis -> 8x less VMEM padding than before).
    emb = jnp.zeros((VOCAB_PAD, EMB), jnp.float32)
    emb = emb.at[:VOCAB].set(nrm(keys[0], (VOCAB, EMB), 0.02))

    red_wt = nrm(keys[1], (EMB, D))
    red_b = nrm(keys[2], (D,))
    fc_wt = nrm(keys[3], (D, NUM_CLASSES))
    fc_b = nrm(keys[4], (NUM_CLASSES,))

    wq = nrm(keys[5], (L, D, D)); bq = nrm(keys[6], (L, D))
    wk = nrm(keys[7], (L, D, D)); bk = nrm(keys[8], (L, D))
    wv = nrm(keys[9], (L, D, D)); bv = nrm(keys[10], (L, D))
    wo = nrm(keys[11], (L, D, D)); bo = nrm(keys[12], (L, D))
    kan_base = nrm(keys[13], (L, D, D))
    kan_spline = nrm(keys[14], (L, NUM_BASES * D, D), 0.02)   # basis-major rows

    ln1_g = jnp.ones((L, D), jnp.float32); ln1_b = jnp.zeros((L, D), jnp.float32)
    ln2_g = jnp.ones((L, D), jnp.float32); ln2_b = jnp.zeros((L, D), jnp.float32)

    # ---- packed slabs --------------------------------------------------------
    # Attention weights: [Wq*inv_sqrt_dh | Wk | Wv | Wo] along lanes.
    attn_w = jnp.concatenate([wq * inv_sqrt_dh, wk, wv, wo], axis=2)  # (L, D, 4D)
    # KAN weights: [base | spline(basis-major)] along rows -> one K=576 matmul.
    kan_w = jnp.concatenate([kan_base, kan_spline], axis=1)           # (L, KAN_IN, D)

    # All bias / LN / fc vectors packed into one (N_VEC_ROWS, D) slab.
    fc_b_pad = jnp.zeros((D,), jnp.float32).at[:NUM_CLASSES].set(fc_b)
    rows = [red_b, fc_b_pad] + [fc_wt[:, cidx] for cidx in range(NUM_CLASSES)]
    for l in range(L):
        rows += [bq[l] * inv_sqrt_dh, bk[l], bv[l], bo[l],
                 ln1_g[l], ln1_b[l], ln2_g[l], ln2_b[l]]
    vecs = jnp.stack(rows, axis=0)                                    # (20, D)
    assert vecs.shape == (N_VEC_ROWS, D)

    return {"emb": emb, "red_wt": red_wt, "attn_w": attn_w,
            "kan_w": kan_w, "vecs": vecs}


# ----------------------------------- main -------------------------------------
if __name__ == "__main__":
    key = jax.random.PRNGKey(0)
    pkey, ikey = jax.random.split(key)
    params = init_params(pkey)
    input_ids = jax.random.randint(ikey, (B, S), 0, VOCAB)
    attention_mask = jnp.ones((B, S), jnp.int32)

    logits = forward_jit(params, input_ids, attention_mask)
    logits = jax.block_until_ready(logits)

    assert logits.shape == (B, NUM_CLASSES)
    assert bool(jnp.all(jnp.isfinite(logits)))
    print("KERNEL_OK")
</pallas_src>

<mosaic_0001>
module attributes {stable_mosaic.version = 11 : i64} {
  func.func @fused_kernel(%arg0: memref<16x1xi32, #tpu.memory_space<vmem>>, %arg1: memref<128x128xf32, #tpu.memory_space<vmem>>, %arg2: memref<128x64xf32, #tpu.memory_space<vmem>>, %arg3: memref<2x64x256xf32, #tpu.memory_space<vmem>>, %arg4: memref<2x576x64xf32, #tpu.memory_space<vmem>>, %arg5: memref<20x64xf32, #tpu.memory_space<vmem>>, %arg6: memref<2x2xf32, #tpu.memory_space<vmem>>) attributes {dimension_semantics = [], scalar_prefetch = 0 : i64, scratch_operands = 0 : i64, tpu.core_type = #tpu.core_type<tc>} {
    %c0 = arith.constant 0 : index
    %c0_0 = arith.constant 0 : index
    %0 = vector.load %arg5[%c0, %c0_0] : memref<20x64xf32, #tpu.memory_space<vmem>>, vector<20x64xf32>
    %c0_1 = arith.constant 0 : index
    %c0_2 = arith.constant 0 : index
    %1 = vector.load %arg0[%c0_1, %c0_2] : memref<16x1xi32, #tpu.memory_space<vmem>>, vector<16x1xi32>
    %2 = tpu.iota {dimensions = array<i32: 1>} : vector<16x128xi32>
    %3 = vector.broadcast %1 : vector<16x1xi32> to vector<16x128xi32>
    %4 = arith.cmpi eq, %2, %3 : vector<16x128xi32>
    %5 = arith.extui %4 : vector<16x128xi1> to vector<16x128xi32>
    %6 = arith.sitofp %5 : vector<16x128xi32> to vector<16x128xf32>
    %c0_3 = arith.constant 0 : index
    %c0_4 = arith.constant 0 : index
    %7 = vector.load %arg1[%c0_3, %c0_4] : memref<128x128xf32, #tpu.memory_space<vmem>>, vector<128x128xf32>
    %cst = arith.constant dense<0.000000e+00> : vector<16x128xf32>
    %8 = tpu.matmul %6, %7, %cst {dimension_numbers = #tpu.dot_dimension_numbers<[1], [0], [0], [1], [0, 0, 1, 1], [], []>} : vector<16x128xf32>, vector<128x128xf32>, vector<16x128xf32> -> vector<16x128xf32>
    %9 = vector.extract_strided_slice %0 {offsets = [0, 0], sizes = [1, 64], strides = [1, 1]} : vector<20x64xf32> to vector<1x64xf32>
    %c0_5 = arith.constant 0 : index
    %c0_6 = arith.constant 0 : index
    %10 = vector.load %arg2[%c0_5, %c0_6] : memref<128x64xf32, #tpu.memory_space<vmem>>, vector<128x64xf32>
    %cst_7 = arith.constant dense<0.000000e+00> : vector<16x64xf32>
    %11 = tpu.matmul %8, %10, %cst_7 {dimension_numbers = #tpu.dot_dimension_numbers<[1], [0], [0], [1], [0, 0, 1, 1], [], []>} : vector<16x128xf32>, vector<128x64xf32>, vector<16x64xf32> -> vector<16x64xf32>
    %12 = vector.broadcast %9 : vector<1x64xf32> to vector<16x64xf32>
    %13 = arith.addf %11, %12 : vector<16x64xf32>
    %14 = tpu.iota {dimensions = array<i32: 0>} : vector<16x16xi32>
    %15 = tpu.iota {dimensions = array<i32: 1>} : vector<16x16xi32>
    %c3_i32 = arith.constant 3 : i32
    %16 = vector.broadcast %c3_i32 : i32 to vector<16x16xi32>
    %17 = arith.shrsi %14, %16 : vector<16x16xi32>
    %c3_i32_8 = arith.constant 3 : i32
    %18 = vector.broadcast %c3_i32_8 : i32 to vector<16x16xi32>
    %19 = arith.shrsi %15, %18 : vector<16x16xi32>
    %20 = arith.cmpi eq, %17, %19 : vector<16x16xi32>
    %cst_9 = arith.constant 0.000000e+00 : f32
    %cst_10 = arith.constant -1.000000e+30 : f32
    %21 = vector.broadcast %cst_9 : f32 to vector<16x16xf32>
    %22 = vector.broadcast %cst_10 : f32 to vector<16x16xf32>
    %23 = arith.select %20, %21, %22 : vector<16x16xi1>, vector<16x16xf32>
    %c0_11 = arith.constant 0 : index
    %c0_12 = arith.constant 0 : index
    %c0_13 = arith.constant 0 : index
    %24 = vector.load %arg3[%c0_11, %c0_12, %c0_13] : memref<2x64x256xf32, #tpu.memory_space<vmem>>, vector<1x64x256xf32>
    %25 = vector.shape_cast %24 : vector<1x64x256xf32> to vector<64x256xf32>
    %26 = vector.extract_strided_slice %25 {offsets = [0, 0], sizes = [64, 192], strides = [1, 1]} : vector<64x256xf32> to vector<64x192xf32>
    %27 = vector.extract_strided_slice %25 {offsets = [0, 192], sizes = [64, 64], strides = [1, 1]} : vector<64x256xf32> to vector<64x64xf32>
    %28 = vector.extract_strided_slice %0 {offsets = [4, 0], sizes = [1, 64], strides = [1, 1]} : vector<20x64xf32> to vector<1x64xf32>
    %29 = vector.extract_strided_slice %0 {offsets = [5, 0], sizes = [1, 64], strides = [1, 1]} : vector<20x64xf32> to vector<1x64xf32>
    %30 = vector.extract_strided_slice %0 {offsets = [6, 0], sizes = [1, 64], strides = [1, 1]} : vector<20x64xf32> to vector<1x64xf32>
    %31 = vector.extract_strided_slice %0 {offsets = [7, 0], sizes = [1, 64], strides = [1, 1]} : vector<20x64xf32> to vector<1x64xf32>
    %32 = vector.extract_strided_slice %0 {offsets = [8, 0], sizes = [1, 64], strides = [1, 1]} : vector<20x64xf32> to vector<1x64xf32>
    %33 = vector.extract_strided_slice %0 {offsets = [9, 0], sizes = [1, 64], strides = [1, 1]} : vector<20x64xf32> to vector<1x64xf32>
    %34 = vector.extract_strided_slice %0 {offsets = [10, 0], sizes = [1, 64], strides = [1, 1]} : vector<20x64xf32> to vector<1x64xf32>
    %35 = vector.extract_strided_slice %0 {offsets = [11, 0], sizes = [1, 64], strides = [1, 1]} : vector<20x64xf32> to vector<1x64xf32>
    %cst_14 = arith.constant dense<0.000000e+00> : vector<16x192xf32>
    %36 = tpu.matmul %13, %26, %cst_14 {dimension_numbers = #tpu.dot_dimension_numbers<[1], [0], [0], [1], [0, 0, 1, 1], [], []>} : vector<16x64xf32>, vector<64x192xf32>, vector<16x192xf32> -> vector<16x192xf32>
    %37 = vector.extract_strided_slice %36 {offsets = [0, 0], sizes = [16, 64], strides = [1, 1]} : vector<16x192xf32> to vector<16x64xf32>
    %38 = vector.broadcast %28 : vector<1x64xf32> to vector<16x64xf32>
    %39 = arith.addf %37, %38 : vector<16x64xf32>
    %40 = vector.extract_strided_slice %36 {offsets = [0, 64], sizes = [16, 64], strides = [1, 1]} : vector<16x192xf32> to vector<16x64xf32>
    %41 = vector.broadcast %29 : vector<1x64xf32> to vector<16x64xf32>
    %42 = arith.addf %40, %41 : vector<16x64xf32>
    %43 = vector.extract_strided_slice %36 {offsets = [0, 128], sizes = [16, 64], strides = [1, 1]} : vector<16x192xf32> to vector<16x64xf32>
    %44 = vector.broadcast %30 : vector<1x64xf32> to vector<16x64xf32>
    %45 = arith.addf %43, %44 : vector<16x64xf32>
    %46 = vector.extract_strided_slice %39 {offsets = [0, 0], sizes = [16, 8], strides = [1, 1]} : vector<16x64xf32> to vector<16x8xf32>
    %47 = vector.extract_strided_slice %42 {offsets = [0, 0], sizes = [16, 8], strides = [1, 1]} : vector<16x64xf32> to vector<16x8xf32>
    %48 = vector.extract_strided_slice %45 {offsets = [0, 0], sizes = [16, 8], strides = [1, 1]} : vector<16x64xf32> to vector<16x8xf32>
    "tpu.trace_start"() <{level = 10 : i32, message = "sd,td->st"}> : () -> ()
    %cst_15 = arith.constant dense<0.000000e+00> : vector<16x16xf32>
    %49 = tpu.matmul %46, %47, %cst_15 {dimension_numbers = #tpu.dot_dimension_numbers<[1], [1], [0], [0], [0, 0, 1, 0], [], []>} : vector<16x8xf32>, vector<16x8xf32>, vector<16x16xf32> -> vector<16x16xf32>
    "tpu.trace_stop"() : () -> ()
    %50 = arith.addf %49, %23 : vector<16x16xf32>
    %cst_16 = arith.constant dense<0xFF800000> : vector<16xf32>
    %51 = vector.multi_reduction <maximumf>, %50, %cst_16 [1] : vector<16x16xf32> to vector<16xf32>
    %52 = vector.shape_cast %51 : vector<16xf32> to vector<16x1xf32>
    %53 = vector.broadcast %52 : vector<16x1xf32> to vector<16x16xf32>
    %54 = arith.subf %50, %53 : vector<16x16xf32>
    %55 = math.exp %54 : vector<16x16xf32>
    %cst_17 = arith.constant dense<0.000000e+00> : vector<16xf32>
    %56 = vector.multi_reduction <add>, %55, %cst_17 [1] : vector<16x16xf32> to vector<16xf32>
    %57 = vector.shape_cast %56 : vector<16xf32> to vector<16x1xf32>
    %58 = tpu.reciprocal %57 {approx = true} : vector<16x1xf32> -> vector<16x1xf32>
    %59 = vector.broadcast %58 : vector<16x1xf32> to vector<16x16xf32>
    %60 = arith.mulf %55, %59 : vector<16x16xf32>
    %cst_18 = arith.constant dense<0.000000e+00> : vector<16x8xf32>
    %61 = tpu.matmul %60, %48, %cst_18 {dimension_numbers = #tpu.dot_dimension_numbers<[1], [0], [0], [1], [0, 0, 1, 1], [], []>} : vector<16x16xf32>, vector<16x8xf32>, vector<16x8xf32> -> vector<16x8xf32>
    %62 = vector.extract_strided_slice %39 {offsets = [0, 8], sizes = [16, 8], strides = [1, 1]} : vector<16x64xf32> to vector<16x8xf32>
    %63 = vector.extract_strided_slice %42 {offsets = [0, 8], sizes = [16, 8], strides = [1, 1]} : vector<16x64xf32> to vector<16x8xf32>
    %64 = vector.extract_strided_slice %45 {offsets = [0, 8], sizes = [16, 8], strides = [1, 1]} : vector<16x64xf32> to vector<16x8xf32>
    "tpu.trace_start"() <{level = 10 : i32, message = "sd,td->st"}> : () -> ()
    %cst_19 = arith.constant dense<0.000000e+00> : vector<16x16xf32>
    %65 = tpu.matmul %62, %63, %cst_19 {dimension_numbers = #tpu.dot_dimension_numbers<[1], [1], [0], [0], [0, 0, 1, 0], [], []>} : vector<16x8xf32>, vector<16x8xf32>, vector<16x16xf32> -> vector<16x16xf32>
    "tpu.trace_stop"() : () -> ()
    %66 = arith.addf %65, %23 : vector<16x16xf32>
    %cst_20 = arith.constant dense<0xFF800000> : vector<16xf32>
    %67 = vector.multi_reduction <maximumf>, %66, %cst_20 [1] : vector<16x16xf32> to vector<16xf32>
    %68 = vector.shape_cast %67 : vector<16xf32> to vector<16x1xf32>
    %69 = vector.broadcast %68 : vector<16x1xf32> to vector<16x16xf32>
    %70 = arith.subf %66, %69 : vector<16x16xf32>
    %71 = math.exp %70 : vector<16x16xf32>
    %cst_21 = arith.constant dense<0.000000e+00> : vector<16xf32>
    %72 = vector.multi_reduction <add>, %71, %cst_21 [1] : vector<16x16xf32> to vector<16xf32>
    %73 = vector.shape_cast %72 : vector<16xf32> to vector<16x1xf32>
    %74 = tpu.reciprocal %73 {approx = true} : vector<16x1xf32> -> vector<16x1xf32>
    %75 = vector.broadcast %74 : vector<16x1xf32> to vector<16x16xf32>
    %76 = arith.mulf %71, %75 : vector<16x16xf32>
    %cst_22 = arith.constant dense<0.000000e+00> : vector<16x8xf32>
    %77 = tpu.matmul %76, %64, %cst_22 {dimension_numbers = #tpu.dot_dimension_numbers<[1], [0], [0], [1], [0, 0, 1, 1], [], []>} : vector<16x16xf32>, vector<16x8xf32>, vector<16x8xf32> -> vector<16x8xf32>
    %78 = vector.extract_strided_slice %39 {offsets = [0, 16], sizes = [16, 8], strides = [1, 1]} : vector<16x64xf32> to vector<16x8xf32>
    %79 = vector.extract_strided_slice %42 {offsets = [0, 16], sizes = [16, 8], strides = [1, 1]} : vector<16x64xf32> to vector<16x8xf32>
    %80 = vector.extract_strided_slice %45 {offsets = [0, 16], sizes = [16, 8], strides = [1, 1]} : vector<16x64xf32> to vector<16x8xf32>
    "tpu.trace_start"() <{level = 10 : i32, message = "sd,td->st"}> : () -> ()
    %cst_23 = arith.constant dense<0.000000e+00> : vector<16x16xf32>
    %81 = tpu.matmul %78, %79, %cst_23 {dimension_numbers = #tpu.dot_dimension_numbers<[1], [1], [0], [0], [0, 0, 1, 0], [], []>} : vector<16x8xf32>, vector<16x8xf32>, vector<16x16xf32> -> vector<16x16xf32>
    "tpu.trace_stop"() : () -> ()
    %82 = arith.addf %81, %23 : vector<16x16xf32>
    %cst_24 = arith.constant dense<0xFF800000> : vector<16xf32>
    %83 = vector.multi_reduction <maximumf>, %82, %cst_24 [1] : vector<16x16xf32> to vector<16xf32>
    %84 = vector.shape_cast %83 : vector<16xf32> to vector<16x1xf32>
    %85 = vector.broadcast %84 : vector<16x1xf32> to vector<16x16xf32>
    %86 = arith.subf %82, %85 : vector<16x16xf32>
    %87 = math.exp %86 : vector<16x16xf32>
    %cst_25 = arith.constant dense<0.000000e+00> : vector<16xf32>
    %88 = vector.multi_reduction <add>, %87, %cst_25 [1] : vector<16x16xf32> to vector<16xf32>
    %89 = vector.shape_cast %88 : vector<16xf32> to vector<16x1xf32>
    %90 = tpu.reciprocal %89 {approx = true} : vector<16x1xf32> -> vector<16x1xf32>
    %91 = vector.broadcast %90 : vector<16x1xf32> to vector<16x16xf32>
    %92 = arith.mulf %87, %91 : vector<16x16xf32>
    %cst_26 = arith.constant dense<0.000000e+00> : vector<16x8xf32>
    %93 = tpu.matmul %92, %80, %cst_26 {dimension_numbers = #tpu.dot_dimension_numbers<[1], [0], [0], [1], [0, 0, 1, 1], [], []>} : vector<16x16xf32>, vector<16x8xf32>, vector<16x8xf32> -> vector<16x8xf32>
    %94 = vector.extract_strided_slice %39 {offsets = [0, 24], sizes = [16, 8], strides = [1, 1]} : vector<16x64xf32> to vector<16x8xf32>
    %95 = vector.extract_strided_slice %42 {offsets = [0, 24], sizes = [16, 8], strides = [1, 1]} : vector<16x64xf32> to vector<16x8xf32>
    %96 = vector.extract_strided_slice %45 {offsets = [0, 24], sizes = [16, 8], strides = [1, 1]} : vector<16x64xf32> to vector<16x8xf32>
    "tpu.trace_start"() <{level = 10 : i32, message = "sd,td->st"}> : () -> ()
    %cst_27 = arith.constant dense<0.000000e+00> : vector<16x16xf32>
    %97 = tpu.matmul %94, %95, %cst_27 {dimension_numbers = #tpu.dot_dimension_numbers<[1], [1], [0], [0], [0, 0, 1, 0], [], []>} : vector<16x8xf32>, vector<16x8xf32>, vector<16x16xf32> -> vector<16x16xf32>
    "tpu.trace_stop"() : () -> ()
    %98 = arith.addf %97, %23 : vector<16x16xf32>
    %cst_28 = arith.constant dense<0xFF800000> : vector<16xf32>
    %99 = vector.multi_reduction <maximumf>, %98, %cst_28 [1] : vector<16x16xf32> to vector<16xf32>
    %100 = vector.shape_cast %99 : vector<16xf32> to vector<16x1xf32>
    %101 = vector.broadcast %100 : vector<16x1xf32> to vector<16x16xf32>
    %102 = arith.subf %98, %101 : vector<16x16xf32>
    %103 = math.exp %102 : vector<16x16xf32>
    %cst_29 = arith.constant dense<0.000000e+00> : vector<16xf32>
    %104 = vector.multi_reduction <add>, %103, %cst_29 [1] : vector<16x16xf32> to vector<16xf32>
    %105 = vector.shape_cast %104 : vector<16xf32> to vector<16x1xf32>
    %106 = tpu.reciprocal %105 {approx = true} : vector<16x1xf32> -> vector<16x1xf32>
    %107 = vector.broadcast %106 : vector<16x1xf32> to vector<16x16xf32>
    %108 = arith.mulf %103, %107 : vector<16x16xf32>
    %cst_30 = arith.constant dense<0.000000e+00> : vector<16x8xf32>
    %109 = tpu.matmul %108, %96, %cst_30 {dimension_numbers = #tpu.dot_dimension_numbers<[1], [0], [0], [1], [0, 0, 1, 1], [], []>} : vector<16x16xf32>, vector<16x8xf32>, vector<16x8xf32> -> vector<16x8xf32>
    %110 = vector.extract_strided_slice %39 {offsets = [0, 32], sizes = [16, 8], strides = [1, 1]} : vector<16x64xf32> to vector<16x8xf32>
    %111 = vector.extract_strided_slice %42 {offsets = [0, 32], sizes = [16, 8], strides = [1, 1]} : vector<16x64xf32> to vector<16x8xf32>
    %112 = vector.extract_strided_slice %45 {offsets = [0, 32], sizes = [16, 8], strides = [1, 1]} : vector<16x64xf32> to vector<16x8xf32>
    "tpu.trace_start"() <{level = 10 : i32, message = "sd,td->st"}> : () -> ()
    %cst_31 = arith.constant dense<0.000000e+00> : vector<16x16xf32>
    %113 = tpu.matmul %110, %111, %cst_31 {dimension_numbers = #tpu.dot_dimension_numbers<[1], [1], [0], [0], [0, 0, 1, 0], [], []>} : vector<16x8xf32>, vector<16x8xf32>, vector<16x16xf32> -> vector<16x16xf32>
    "tpu.trace_stop"() : () -> ()
    %114 = arith.addf %113, %23 : vector<16x16xf32>
    %cst_32 = arith.constant dense<0xFF800000> : vector<16xf32>
    %115 = vector.multi_reduction <maximumf>, %114, %cst_32 [1] : vector<16x16xf32> to vector<16xf32>
    %116 = vector.shape_cast %115 : vector<16xf32> to vector<16x1xf32>
    %117 = vector.broadcast %116 : vector<16x1xf32> to vector<16x16xf32>
    %118 = arith.subf %114, %117 : vector<16x16xf32>
    %119 = math.exp %118 : vector<16x16xf32>
    %cst_33 = arith.constant dense<0.000000e+00> : vector<16xf32>
    %120 = vector.multi_reduction <add>, %119, %cst_33 [1] : vector<16x16xf32> to vector<16xf32>
    %121 = vector.shape_cast %120 : vector<16xf32> to vector<16x1xf32>
    %122 = tpu.reciprocal %121 {approx = true} : vector<16x1xf32> -> vector<16x1xf32>
    %123 = vector.broadcast %122 : vector<16x1xf32> to vector<16x16xf32>
    %124 = arith.mulf %119, %123 : vector<16x16xf32>
    %cst_34 = arith.constant dense<0.000000e+00> : vector<16x8xf32>
    %125 = tpu.matmul %124, %112, %cst_34 {dimension_numbers = #tpu.dot_dimension_numbers<[1], [0], [0], [1], [0, 0, 1, 1], [], []>} : vector<16x16xf32>, vector<16x8xf32>, vector<16x8xf32> -> vector<16x8xf32>
    %126 = vector.extract_strided_slice %39 {offsets = [0, 40], sizes = [16, 8], strides = [1, 1]} : vector<16x64xf32> to vector<16x8xf32>
    %127 = vector.extract_strided_slice %42 {offsets = [0, 40], sizes = [16, 8], strides = [1, 1]} : vector<16x64xf32> to vector<16x8xf32>
    %128 = vector.extract_strided_slice %45 {offsets = [0, 40], sizes = [16, 8], strides = [1, 1]} : vector<16x64xf32> to vector<16x8xf32>
    "tpu.trace_start"() <{level = 10 : i32, message = "sd,td->st"}> : () -> ()
    %cst_35 = arith.constant dense<0.000000e+00> : vector<16x16xf32>
    %129 = tpu.matmul %126, %127, %cst_35 {dimension_numbers = #tpu.dot_dimension_numbers<[1], [1], [0], [0], [0, 0, 1, 0], [], []>} : vector<16x8xf32>, vector<16x8xf32>, vector<16x16xf32> -> vector<16x16xf32>
    "tpu.trace_stop"() : () -> ()
    %130 = arith.addf %129, %23 : vector<16x16xf32>
    %cst_36 = arith.constant dense<0xFF800000> : vector<16xf32>
    %131 = vector.multi_reduction <maximumf>, %130, %cst_36 [1] : vector<16x16xf32> to vector<16xf32>
    %132 = vector.shape_cast %131 : vector<16xf32> to vector<16x1xf32>
    %133 = vector.broadcast %132 : vector<16x1xf32> to vector<16x16xf32>
    %134 = arith.subf %130, %133 : vector<16x16xf32>
    %135 = math.exp %134 : vector<16x16xf32>
    %cst_37 = arith.constant dense<0.000000e+00> : vector<16xf32>
    %136 = vector.multi_reduction <add>, %135, %cst_37 [1] : vector<16x16xf32> to vector<16xf32>
    %137 = vector.shape_cast %136 : vector<16xf32> to vector<16x1xf32>
    %138 = tpu.reciprocal %137 {approx = true} : vector<16x1xf32> -> vector<16x1xf32>
    %139 = vector.broadcast %138 : vector<16x1xf32> to vector<16x16xf32>
    %140 = arith.mulf %135, %139 : vector<16x16xf32>
    %cst_38 = arith.constant dense<0.000000e+00> : vector<16x8xf32>
    %141 = tpu.matmul %140, %128, %cst_38 {dimension_numbers = #tpu.dot_dimension_numbers<[1], [0], [0], [1], [0, 0, 1, 1], [], []>} : vector<16x16xf32>, vector<16x8xf32>, vector<16x8xf32> -> vector<16x8xf32>
    %142 = vector.extract_strided_slice %39 {offsets = [0, 48], sizes = [16, 8], strides = [1, 1]} : vector<16x64xf32> to vector<16x8xf32>
    %143 = vector.extract_strided_slice %42 {offsets = [0, 48], sizes = [16, 8], strides = [1, 1]} : vector<16x64xf32> to vector<16x8xf32>
    %144 = vector.extract_strided_slice %45 {offsets = [0, 48], sizes = [16, 8], strides = [1, 1]} : vector<16x64xf32> to vector<16x8xf32>
    "tpu.trace_start"() <{level = 10 : i32, message = "sd,td->st"}> : () -> ()
    %cst_39 = arith.constant dense<0.000000e+00> : vector<16x16xf32>
    %145 = tpu.matmul %142, %143, %cst_39 {dimension_numbers = #tpu.dot_dimension_numbers<[1], [1], [0], [0], [0, 0, 1, 0], [], []>} : vector<16x8xf32>, vector<16x8xf32>, vector<16x16xf32> -> vector<16x16xf32>
    "tpu.trace_stop"() : () -> ()
    %146 = arith.addf %145, %23 : vector<16x16xf32>
    %cst_40 = arith.constant dense<0xFF800000> : vector<16xf32>
    %147 = vector.multi_reduction <maximumf>, %146, %cst_40 [1] : vector<16x16xf32> to vector<16xf32>
    %148 = vector.shape_cast %147 : vector<16xf32> to vector<16x1xf32>
    %149 = vector.broadcast %148 : vector<16x1xf32> to vector<16x16xf32>
    %150 = arith.subf %146, %149 : vector<16x16xf32>
    %151 = math.exp %150 : vector<16x16xf32>
    %cst_41 = arith.constant dense<0.000000e+00> : vector<16xf32>
    %152 = vector.multi_reduction <add>, %151, %cst_41 [1] : vector<16x16xf32> to vector<16xf32>
    %153 = vector.shape_cast %152 : vector<16xf32> to vector<16x1xf32>
    %154 = tpu.reciprocal %153 {approx = true} : vector<16x1xf32> -> vector<16x1xf32>
    %155 = vector.broadcast %154 : vector<16x1xf32> to vector<16x16xf32>
    %156 = arith.mulf %151, %155 : vector<16x16xf32>
    %cst_42 = arith.constant dense<0.000000e+00> : vector<16x8xf32>
    %157 = tpu.matmul %156, %144, %cst_42 {dimension_numbers = #tpu.dot_dimension_numbers<[1], [0], [0], [1], [0, 0, 1, 1], [], []>} : vector<16x16xf32>, vector<16x8xf32>, vector<16x8xf32> -> vector<16x8xf32>
    %158 = vector.extract_strided_slice %39 {offsets = [0, 56], sizes = [16, 8], strides = [1, 1]} : vector<16x64xf32> to vector<16x8xf32>
    %159 = vector.extract_strided_slice %42 {offsets = [0, 56], sizes = [16, 8], strides = [1, 1]} : vector<16x64xf32> to vector<16x8xf32>
    %160 = vector.extract_strided_slice %45 {offsets = [0, 56], sizes = [16, 8], strides = [1, 1]} : vector<16x64xf32> to vector<16x8xf32>
    "tpu.trace_start"() <{level = 10 : i32, message = "sd,td->st"}> : () -> ()
    %cst_43 = arith.constant dense<0.000000e+00> : vector<16x16xf32>
    %161 = tpu.matmul %158, %159, %cst_43 {dimension_numbers = #tpu.dot_dimension_numbers<[1], [1], [0], [0], [0, 0, 1, 0], [], []>} : vector<16x8xf32>, vector<16x8xf32>, vector<16x16xf32> -> vector<16x16xf32>
    "tpu.trace_stop"() : () -> ()
    %162 = arith.addf %161, %23 : vector<16x16xf32>
    %cst_44 = arith.constant dense<0xFF800000> : vector<16xf32>
    %163 = vector.multi_reduction <maximumf>, %162, %cst_44 [1] : vector<16x16xf32> to vector<16xf32>
    %164 = vector.shape_cast %163 : vector<16xf32> to vector<16x1xf32>
    %165 = vector.broadcast %164 : vector<16x1xf32> to vector<16x16xf32>
    %166 = arith.subf %162, %165 : vector<16x16xf32>
    %167 = math.exp %166 : vector<16x16xf32>
    %cst_45 = arith.constant dense<0.000000e+00> : vector<16xf32>
    %168 = vector.multi_reduction <add>, %167, %cst_45 [1] : vector<16x16xf32> to vector<16xf32>
    %169 = vector.shape_cast %168 : vector<16xf32> to vector<16x1xf32>
    %170 = tpu.reciprocal %169 {approx = true} : vector<16x1xf32> -> vector<16x1xf32>
    %171 = vector.broadcast %170 : vector<16x1xf32> to vector<16x16xf32>
    %172 = arith.mulf %167, %171 : vector<16x16xf32>
    %cst_46 = arith.constant dense<0.000000e+00> : vector<16x8xf32>
    %173 = tpu.matmul %172, %160, %cst_46 {dimension_numbers = #tpu.dot_dimension_numbers<[1], [0], [0], [1], [0, 0, 1, 1], [], []>} : vector<16x16xf32>, vector<16x8xf32>, vector<16x8xf32> -> vector<16x8xf32>
    %174 = tpu.concatenate %61, %77, %93, %109, %125, %141, %157, %173 in 1 : vector<16x8xf32>, vector<16x8xf32>, vector<16x8xf32>, vector<16x8xf32>, vector<16x8xf32>, vector<16x8xf32>, vector<16x8xf32>, vector<16x8xf32> -> vector<16x64xf32>
    %cst_47 = arith.constant dense<0.000000e+00> : vector<16x64xf32>
    %175 = tpu.matmul %174, %27, %cst_47 {dimension_numbers = #tpu.dot_dimension_numbers<[1], [0], [0], [1], [0, 0, 1, 1], [], []>} : vector<16x64xf32>, vector<64x64xf32>, vector<16x64xf32> -> vector<16x64xf32>
    %176 = vector.broadcast %31 : vector<1x64xf32> to vector<16x64xf32>
    %177 = arith.addf %175, %176 : vector<16x64xf32>
    %178 = arith.addf %13, %177 : vector<16x64xf32>
    %cst_48 = arith.constant dense<0.000000e+00> : vector<16xf32>
    %179 = vector.multi_reduction <add>, %178, %cst_48 [1] : vector<16x64xf32> to vector<16xf32>
    %180 = vector.shape_cast %179 : vector<16xf32> to vector<16x1xf32>
    %cst_49 = arith.constant 6.400000e+01 : f32
    %181 = vector.broadcast %cst_49 : f32 to vector<16x1xf32>
    %182 = arith.divf %180, %181 : vector<16x1xf32>
    %183 = vector.broadcast %182 : vector<16x1xf32> to vector<16x64xf32>
    %184 = arith.subf %178, %183 : vector<16x64xf32>
    %185 = arith.mulf %184, %184 : vector<16x64xf32>
    %cst_50 = arith.constant dense<0.000000e+00> : vector<16xf32>
    %186 = vector.multi_reduction <add>, %185, %cst_50 [1] : vector<16x64xf32> to vector<16xf32>
    %187 = vector.shape_cast %186 : vector<16xf32> to vector<16x1xf32>
    %cst_51 = arith.constant 6.400000e+01 : f32
    %188 = vector.broadcast %cst_51 : f32 to vector<16x1xf32>
    %189 = arith.divf %187, %188 : vector<16x1xf32>
    %cst_52 = arith.constant 9.99999974E-6 : f32
    %190 = vector.broadcast %cst_52 : f32 to vector<16x1xf32>
    %191 = arith.addf %189, %190 : vector<16x1xf32>
    %192 = math.rsqrt %191 : vector<16x1xf32>
    %193 = vector.broadcast %192 : vector<16x1xf32> to vector<16x64xf32>
    %194 = arith.mulf %184, %193 : vector<16x64xf32>
    %195 = vector.broadcast %32 : vector<1x64xf32> to vector<16x64xf32>
    %196 = arith.mulf %194, %195 : vector<16x64xf32>
    %197 = vector.broadcast %33 : vector<1x64xf32> to vector<16x64xf32>
    %198 = arith.addf %196, %197 : vector<16x64xf32>
    %c0_53 = arith.constant 0 : index
    %c0_54 = arith.constant 0 : index
    %c0_55 = arith.constant 0 : index
    %199 = vector.load %arg4[%c0_53, %c0_54, %c0_55] : memref<2x576x64xf32, #tpu.memory_space<vmem>>, vector<1x576x64xf32>
    %200 = vector.shape_cast %199 : vector<1x576x64xf32> to vector<576x64xf32>
    %cst_56 = arith.constant 0.000000e+00 : f32
    %201 = vector.broadcast %cst_56 : f32 to vector<16x64xf32>
    %202 = arith.subf %201, %198 : vector<16x64xf32>
    %203 = math.exp %202 : vector<16x64xf32>
    %cst_57 = arith.constant 1.000000e+00 : f32
    %204 = vector.broadcast %cst_57 : f32 to vector<16x64xf32>
    %205 = arith.addf %204, %203 : vector<16x64xf32>
    %206 = tpu.reciprocal %205 {approx = true} : vector<16x64xf32> -> vector<16x64xf32>
    %207 = arith.mulf %198, %206 : vector<16x64xf32>
    %cst_58 = arith.constant -2.200000e+00 : f32
    %208 = vector.broadcast %cst_58 : f32 to vector<16x64xf32>
    %209 = arith.cmpf oge, %198, %208 : vector<16x64xf32>
    %210 = arith.extui %209 : vector<16x64xi1> to vector<16x64xi32>
    %211 = arith.sitofp %210 : vector<16x64xi32> to vector<16x64xf32>
    %cst_59 = arith.constant -1.800000e+00 : f32
    %212 = vector.broadcast %cst_59 : f32 to vector<16x64xf32>
    %213 = arith.cmpf oge, %198, %212 : vector<16x64xf32>
    %214 = arith.extui %213 : vector<16x64xi1> to vector<16x64xi32>
    %215 = arith.sitofp %214 : vector<16x64xi32> to vector<16x64xf32>
    %cst_60 = arith.constant -1.400000e+00 : f32
    %216 = vector.broadcast %cst_60 : f32 to vector<16x64xf32>
    %217 = arith.cmpf oge, %198, %216 : vector<16x64xf32>
    %218 = arith.extui %217 : vector<16x64xi1> to vector<16x64xi32>
    %219 = arith.sitofp %218 : vector<16x64xi32> to vector<16x64xf32>
    %cst_61 = arith.constant -1.000000e+00 : f32
    %220 = vector.broadcast %cst_61 : f32 to vector<16x64xf32>
    %221 = arith.cmpf oge, %198, %220 : vector<16x64xf32>
    %222 = arith.extui %221 : vector<16x64xi1> to vector<16x64xi32>
    %223 = arith.sitofp %222 : vector<16x64xi32> to vector<16x64xf32>
    %cst_62 = arith.constant -6.000000e-01 : f32
    %224 = vector.broadcast %cst_62 : f32 to vector<16x64xf32>
    %225 = arith.cmpf oge, %198, %224 : vector<16x64xf32>
    %226 = arith.extui %225 : vector<16x64xi1> to vector<16x64xi32>
    %227 = arith.sitofp %226 : vector<16x64xi32> to vector<16x64xf32>
    %cst_63 = arith.constant -2.000000e-01 : f32
    %228 = vector.broadcast %cst_63 : f32 to vector<16x64xf32>
    %229 = arith.cmpf oge, %198, %228 : vector<16x64xf32>
    %230 = arith.extui %229 : vector<16x64xi1> to vector<16x64xi32>
    %231 = arith.sitofp %230 : vector<16x64xi32> to vector<16x64xf32>
    %cst_64 = arith.constant 2.000000e-01 : f32
    %232 = vector.broadcast %cst_64 : f32 to vector<16x64xf32>
    %233 = arith.cmpf oge, %198, %232 : vector<16x64xf32>
    %234 = arith.extui %233 : vector<16x64xi1> to vector<16x64xi32>
    %235 = arith.sitofp %234 : vector<16x64xi32> to vector<16x64xf32>
    %cst_65 = arith.constant 6.000000e-01 : f32
    %236 = vector.broadcast %cst_65 : f32 to vector<16x64xf32>
    %237 = arith.cmpf oge, %198, %236 : vector<16x64xf32>
    %238 = arith.extui %237 : vector<16x64xi1> to vector<16x64xi32>
    %239 = arith.sitofp %238 : vector<16x64xi32> to vector<16x64xf32>
    %cst_66 = arith.constant 1.000000e+00 : f32
    %240 = vector.broadcast %cst_66 : f32 to vector<16x64xf32>
    %241 = arith.cmpf oge, %198, %240 : vector<16x64xf32>
    %242 = arith.extui %241 : vector<16x64xi1> to vector<16x64xi32>
    %243 = arith.sitofp %242 : vector<16x64xi32> to vector<16x64xf32>
    %cst_67 = arith.constant 1.400000e+00 : f32
    %244 = vector.broadcast %cst_67 : f32 to vector<16x64xf32>
    %245 = arith.cmpf oge, %198, %244 : vector<16x64xf32>
    %246 = arith.extui %245 : vector<16x64xi1> to vector<16x64xi32>
    %247 = arith.sitofp %246 : vector<16x64xi32> to vector<16x64xf32>
    %cst_68 = arith.constant 1.800000e+00 : f32
    %248 = vector.broadcast %cst_68 : f32 to vector<16x64xf32>
    %249 = arith.cmpf oge, %198, %248 : vector<16x64xf32>
    %250 = arith.extui %249 : vector<16x64xi1> to vector<16x64xi32>
    %251 = arith.sitofp %250 : vector<16x64xi32> to vector<16x64xf32>
    %cst_69 = arith.constant 2.200000e+00 : f32
    %252 = vector.broadcast %cst_69 : f32 to vector<16x64xf32>
    %253 = arith.cmpf oge, %198, %252 : vector<16x64xf32>
    %254 = arith.extui %253 : vector<16x64xi1> to vector<16x64xi32>
    %255 = arith.sitofp %254 : vector<16x64xi32> to vector<16x64xf32>
    %256 = arith.subf %211, %215 : vector<16x64xf32>
    %257 = arith.subf %215, %219 : vector<16x64xf32>
    %258 = arith.subf %219, %223 : vector<16x64xf32>
    %259 = arith.subf %223, %227 : vector<16x64xf32>
    %260 = arith.subf %227, %231 : vector<16x64xf32>
    %261 = arith.subf %231, %235 : vector<16x64xf32>
    %262 = arith.subf %235, %239 : vector<16x64xf32>
    %263 = arith.subf %239, %243 : vector<16x64xf32>
    %264 = arith.subf %243, %247 : vector<16x64xf32>
    %265 = arith.subf %247, %251 : vector<16x64xf32>
    %266 = arith.subf %251, %255 : vector<16x64xf32>
    %cst_70 = arith.constant -2.200000e+00 : f32
    %267 = vector.broadcast %cst_70 : f32 to vector<16x64xf32>
    %268 = arith.subf %198, %267 : vector<16x64xf32>
    %cst_71 = arith.constant 2.500000e+00 : f32
    %269 = vector.broadcast %cst_71 : f32 to vector<16x64xf32>
    %270 = arith.mulf %268, %269 : vector<16x64xf32>
    %271 = arith.mulf %270, %256 : vector<16x64xf32>
    %cst_72 = arith.constant -1.400000e+00 : f32
    %272 = vector.broadcast %cst_72 : f32 to vector<16x64xf32>
    %273 = arith.subf %272, %198 : vector<16x64xf32>
    %cst_73 = arith.constant 2.500000e+00 : f32
    %274 = vector.broadcast %cst_73 : f32 to vector<16x64xf32>
    %275 = arith.mulf %273, %274 : vector<16x64xf32>
    %276 = arith.mulf %275, %257 : vector<16x64xf32>
    %277 = arith.addf %271, %276 : vector<16x64xf32>
    %cst_74 = arith.constant -1.800000e+00 : f32
    %278 = vector.broadcast %cst_74 : f32 to vector<16x64xf32>
    %279 = arith.subf %198, %278 : vector<16x64xf32>
    %cst_75 = arith.constant 2.500000e+00 : f32
    %280 = vector.broadcast %cst_75 : f32 to vector<16x64xf32>
    %281 = arith.mulf %279, %280 : vector<16x64xf32>
    %282 = arith.mulf %281, %257 : vector<16x64xf32>
    %cst_76 = arith.constant -1.000000e+00 : f32
    %283 = vector.broadcast %cst_76 : f32 to vector<16x64xf32>
    %284 = arith.subf %283, %198 : vector<16x64xf32>
    %cst_77 = arith.constant 2.500000e+00 : f32
    %285 = vector.broadcast %cst_77 : f32 to vector<16x64xf32>
    %286 = arith.mulf %284, %285 : vector<16x64xf32>
    %287 = arith.mulf %286, %258 : vector<16x64xf32>
    %288 = arith.addf %282, %287 : vector<16x64xf32>
    %cst_78 = arith.constant -1.400000e+00 : f32
    %289 = vector.broadcast %cst_78 : f32 to vector<16x64xf32>
    %290 = arith.subf %198, %289 : vector<16x64xf32>
    %cst_79 = arith.constant 2.500000e+00 : f32
    %291 = vector.broadcast %cst_79 : f32 to vector<16x64xf32>
    %292 = arith.mulf %290, %291 : vector<16x64xf32>
    %293 = arith.mulf %292, %258 : vector<16x64xf32>
    %cst_80 = arith.constant -6.000000e-01 : f32
    %294 = vector.broadcast %cst_80 : f32 to vector<16x64xf32>
    %295 = arith.subf %294, %198 : vector<16x64xf32>
    %cst_81 = arith.constant 2.500000e+00 : f32
    %296 = vector.broadcast %cst_81 : f32 to vector<16x64xf32>
    %297 = arith.mulf %295, %296 : vector<16x64xf32>
    %298 = arith.mulf %297, %259 : vector<16x64xf32>
    %299 = arith.addf %293, %298 : vector<16x64xf32>
    %cst_82 = arith.constant -1.000000e+00 : f32
    %300 = vector.broadcast %cst_82 : f32 to vector<16x64xf32>
    %301 = arith.subf %198, %300 : vector<16x64xf32>
    %cst_83 = arith.constant 2.500000e+00 : f32
    %302 = vector.broadcast %cst_83 : f32 to vector<16x64xf32>
    %303 = arith.mulf %301, %302 : vector<16x64xf32>
    %304 = arith.mulf %303, %259 : vector<16x64xf32>
    %cst_84 = arith.constant -2.000000e-01 : f32
    %305 = vector.broadcast %cst_84 : f32 to vector<16x64xf32>
    %306 = arith.subf %305, %198 : vector<16x64xf32>
    %cst_85 = arith.constant 2.500000e+00 : f32
    %307 = vector.broadcast %cst_85 : f32 to vector<16x64xf32>
    %308 = arith.mulf %306, %307 : vector<16x64xf32>
    %309 = arith.mulf %308, %260 : vector<16x64xf32>
    %310 = arith.addf %304, %309 : vector<16x64xf32>
    %cst_86 = arith.constant -6.000000e-01 : f32
    %311 = vector.broadcast %cst_86 : f32 to vector<16x64xf32>
    %312 = arith.subf %198, %311 : vector<16x64xf32>
    %cst_87 = arith.constant 2.500000e+00 : f32
    %313 = vector.broadcast %cst_87 : f32 to vector<16x64xf32>
    %314 = arith.mulf %312, %313 : vector<16x64xf32>
    %315 = arith.mulf %314, %260 : vector<16x64xf32>
    %cst_88 = arith.constant 2.000000e-01 : f32
    %316 = vector.broadcast %cst_88 : f32 to vector<16x64xf32>
    %317 = arith.subf %316, %198 : vector<16x64xf32>
    %cst_89 = arith.constant 2.500000e+00 : f32
    %318 = vector.broadcast %cst_89 : f32 to vector<16x64xf32>
    %319 = arith.mulf %317, %318 : vector<16x64xf32>
    %320 = arith.mulf %319, %261 : vector<16x64xf32>
    %321 = arith.addf %315, %320 : vector<16x64xf32>
    %cst_90 = arith.constant -2.000000e-01 : f32
    %322 = vector.broadcast %cst_90 : f32 to vector<16x64xf32>
    %323 = arith.subf %198, %322 : vector<16x64xf32>
    %cst_91 = arith.constant 2.500000e+00 : f32
    %324 = vector.broadcast %cst_91 : f32 to vector<16x64xf32>
    %325 = arith.mulf %323, %324 : vector<16x64xf32>
    %326 = arith.mulf %325, %261 : vector<16x64xf32>
    %cst_92 = arith.constant 6.000000e-01 : f32
    %327 = vector.broadcast %cst_92 : f32 to vector<16x64xf32>
    %328 = arith.subf %327, %198 : vector<16x64xf32>
    %cst_93 = arith.constant 2.500000e+00 : f32
    %329 = vector.broadcast %cst_93 : f32 to vector<16x64xf32>
    %330 = arith.mulf %328, %329 : vector<16x64xf32>
    %331 = arith.mulf %330, %262 : vector<16x64xf32>
    %332 = arith.addf %326, %331 : vector<16x64xf32>
    %cst_94 = arith.constant 2.000000e-01 : f32
    %333 = vector.broadcast %cst_94 : f32 to vector<16x64xf32>
    %334 = arith.subf %198, %333 : vector<16x64xf32>
    %cst_95 = arith.constant 2.500000e+00 : f32
    %335 = vector.broadcast %cst_95 : f32 to vector<16x64xf32>
    %336 = arith.mulf %334, %335 : vector<16x64xf32>
    %337 = arith.mulf %336, %262 : vector<16x64xf32>
    %cst_96 = arith.constant 1.000000e+00 : f32
    %338 = vector.broadcast %cst_96 : f32 to vector<16x64xf32>
    %339 = arith.subf %338, %198 : vector<16x64xf32>
    %cst_97 = arith.constant 2.500000e+00 : f32
    %340 = vector.broadcast %cst_97 : f32 to vector<16x64xf32>
    %341 = arith.mulf %339, %340 : vector<16x64xf32>
    %342 = arith.mulf %341, %263 : vector<16x64xf32>
    %343 = arith.addf %337, %342 : vector<16x64xf32>
    %cst_98 = arith.constant 6.000000e-01 : f32
    %344 = vector.broadcast %cst_98 : f32 to vector<16x64xf32>
    %345 = arith.subf %198, %344 : vector<16x64xf32>
    %cst_99 = arith.constant 2.500000e+00 : f32
    %346 = vector.broadcast %cst_99 : f32 to vector<16x64xf32>
    %347 = arith.mulf %345, %346 : vector<16x64xf32>
    %348 = arith.mulf %347, %263 : vector<16x64xf32>
    %cst_100 = arith.constant 1.400000e+00 : f32
    %349 = vector.broadcast %cst_100 : f32 to vector<16x64xf32>
    %350 = arith.subf %349, %198 : vector<16x64xf32>
    %cst_101 = arith.constant 2.500000e+00 : f32
    %351 = vector.broadcast %cst_101 : f32 to vector<16x64xf32>
    %352 = arith.mulf %350, %351 : vector<16x64xf32>
    %353 = arith.mulf %352, %264 : vector<16x64xf32>
    %354 = arith.addf %348, %353 : vector<16x64xf32>
    %cst_102 = arith.constant 1.000000e+00 : f32
    %355 = vector.broadcast %cst_102 : f32 to vector<16x64xf32>
    %356 = arith.subf %198, %355 : vector<16x64xf32>
    %cst_103 = arith.constant 2.500000e+00 : f32
    %357 = vector.broadcast %cst_103 : f32 to vector<16x64xf32>
    %358 = arith.mulf %356, %357 : vector<16x64xf32>
    %359 = arith.mulf %358, %264 : vector<16x64xf32>
    %cst_104 = arith.constant 1.800000e+00 : f32
    %360 = vector.broadcast %cst_104 : f32 to vector<16x64xf32>
    %361 = arith.subf %360, %198 : vector<16x64xf32>
    %cst_105 = arith.constant 2.500000e+00 : f32
    %362 = vector.broadcast %cst_105 : f32 to vector<16x64xf32>
    %363 = arith.mulf %361, %362 : vector<16x64xf32>
    %364 = arith.mulf %363, %265 : vector<16x64xf32>
    %365 = arith.addf %359, %364 : vector<16x64xf32>
    %cst_106 = arith.constant 1.400000e+00 : f32
    %366 = vector.broadcast %cst_106 : f32 to vector<16x64xf32>
    %367 = arith.subf %198, %366 : vector<16x64xf32>
    %cst_107 = arith.constant 2.500000e+00 : f32
    %368 = vector.broadcast %cst_107 : f32 to vector<16x64xf32>
    %369 = arith.mulf %367, %368 : vector<16x64xf32>
    %370 = arith.mulf %369, %265 : vector<16x64xf32>
    %cst_108 = arith.constant 2.200000e+00 : f32
    %371 = vector.broadcast %cst_108 : f32 to vector<16x64xf32>
    %372 = arith.subf %371, %198 : vector<16x64xf32>
    %cst_109 = arith.constant 2.500000e+00 : f32
    %373 = vector.broadcast %cst_109 : f32 to vector<16x64xf32>
    %374 = arith.mulf %372, %373 : vector<16x64xf32>
    %375 = arith.mulf %374, %266 : vector<16x64xf32>
    %376 = arith.addf %370, %375 : vector<16x64xf32>
    %cst_110 = arith.constant -2.200000e+00 : f32
    %377 = vector.broadcast %cst_110 : f32 to vector<16x64xf32>
    %378 = arith.subf %198, %377 : vector<16x64xf32>
    %cst_111 = arith.constant 1.250000e+00 : f32
    %379 = vector.broadcast %cst_111 : f32 to vector<16x64xf32>
    %380 = arith.mulf %378, %379 : vector<16x64xf32>
    %381 = arith.mulf %380, %277 : vector<16x64xf32>
    %cst_112 = arith.constant -1.000000e+00 : f32
    %382 = vector.broadcast %cst_112 : f32 to vector<16x64xf32>
    %383 = arith.subf %382, %198 : vector<16x64xf32>
    %cst_113 = arith.constant 1.250000e+00 : f32
    %384 = vector.broadcast %cst_113 : f32 to vector<16x64xf32>
    %385 = arith.mulf %383, %384 : vector<16x64xf32>
    %386 = arith.mulf %385, %288 : vector<16x64xf32>
    %387 = arith.addf %381, %386 : vector<16x64xf32>
    %cst_114 = arith.constant -1.800000e+00 : f32
    %388 = vector.broadcast %cst_114 : f32 to vector<16x64xf32>
    %389 = arith.subf %198, %388 : vector<16x64xf32>
    %cst_115 = arith.constant 1.250000e+00 : f32
    %390 = vector.broadcast %cst_115 : f32 to vector<16x64xf32>
    %391 = arith.mulf %389, %390 : vector<16x64xf32>
    %392 = arith.mulf %391, %288 : vector<16x64xf32>
    %cst_116 = arith.constant -6.000000e-01 : f32
    %393 = vector.broadcast %cst_116 : f32 to vector<16x64xf32>
    %394 = arith.subf %393, %198 : vector<16x64xf32>
    %cst_117 = arith.constant 1.250000e+00 : f32
    %395 = vector.broadcast %cst_117 : f32 to vector<16x64xf32>
    %396 = arith.mulf %394, %395 : vector<16x64xf32>
    %397 = arith.mulf %396, %299 : vector<16x64xf32>
    %398 = arith.addf %392, %397 : vector<16x64xf32>
    %cst_118 = arith.constant -1.400000e+00 : f32
    %399 = vector.broadcast %cst_118 : f32 to vector<16x64xf32>
    %400 = arith.subf %198, %399 : vector<16x64xf32>
    %cst_119 = arith.constant 1.250000e+00 : f32
    %401 = vector.broadcast %cst_119 : f32 to vector<16x64xf32>
    %402 = arith.mulf %400, %401 : vector<16x64xf32>
    %403 = arith.mulf %402, %299 : vector<16x64xf32>
    %cst_120 = arith.constant -2.000000e-01 : f32
    %404 = vector.broadcast %cst_120 : f32 to vector<16x64xf32>
    %405 = arith.subf %404, %198 : vector<16x64xf32>
    %cst_121 = arith.constant 1.250000e+00 : f32
    %406 = vector.broadcast %cst_121 : f32 to vector<16x64xf32>
    %407 = arith.mulf %405, %406 : vector<16x64xf32>
    %408 = arith.mulf %407, %310 : vector<16x64xf32>
    %409 = arith.addf %403, %408 : vector<16x64xf32>
    %cst_122 = arith.constant -1.000000e+00 : f32
    %410 = vector.broadcast %cst_122 : f32 to vector<16x64xf32>
    %411 = arith.subf %198, %410 : vector<16x64xf32>
    %cst_123 = arith.constant 1.250000e+00 : f32
    %412 = vector.broadcast %cst_123 : f32 to vector<16x64xf32>
    %413 = arith.mulf %411, %412 : vector<16x64xf32>
    %414 = arith.mulf %413, %310 : vector<16x64xf32>
    %cst_124 = arith.constant 2.000000e-01 : f32
    %415 = vector.broadcast %cst_124 : f32 to vector<16x64xf32>
    %416 = arith.subf %415, %198 : vector<16x64xf32>
    %cst_125 = arith.constant 1.250000e+00 : f32
    %417 = vector.broadcast %cst_125 : f32 to vector<16x64xf32>
    %418 = arith.mulf %416, %417 : vector<16x64xf32>
    %419 = arith.mulf %418, %321 : vector<16x64xf32>
    %420 = arith.addf %414, %419 : vector<16x64xf32>
    %cst_126 = arith.constant -6.000000e-01 : f32
    %421 = vector.broadcast %cst_126 : f32 to vector<16x64xf32>
    %422 = arith.subf %198, %421 : vector<16x64xf32>
    %cst_127 = arith.constant 1.250000e+00 : f32
    %423 = vector.broadcast %cst_127 : f32 to vector<16x64xf32>
    %424 = arith.mulf %422, %423 : vector<16x64xf32>
    %425 = arith.mulf %424, %321 : vector<16x64xf32>
    %cst_128 = arith.constant 6.000000e-01 : f32
    %426 = vector.broadcast %cst_128 : f32 to vector<16x64xf32>
    %427 = arith.subf %426, %198 : vector<16x64xf32>
    %cst_129 = arith.constant 1.250000e+00 : f32
    %428 = vector.broadcast %cst_129 : f32 to vector<16x64xf32>
    %429 = arith.mulf %427, %428 : vector<16x64xf32>
    %430 = arith.mulf %429, %332 : vector<16x64xf32>
    %431 = arith.addf %425, %430 : vector<16x64xf32>
    %cst_130 = arith.constant -2.000000e-01 : f32
    %432 = vector.broadcast %cst_130 : f32 to vector<16x64xf32>
    %433 = arith.subf %198, %432 : vector<16x64xf32>
    %cst_131 = arith.constant 1.250000e+00 : f32
    %434 = vector.broadcast %cst_131 : f32 to vector<16x64xf32>
    %435 = arith.mulf %433, %434 : vector<16x64xf32>
    %436 = arith.mulf %435, %332 : vector<16x64xf32>
    %cst_132 = arith.constant 1.000000e+00 : f32
    %437 = vector.broadcast %cst_132 : f32 to vector<16x64xf32>
    %438 = arith.subf %437, %198 : vector<16x64xf32>
    %cst_133 = arith.constant 1.250000e+00 : f32
    %439 = vector.broadcast %cst_133 : f32 to vector<16x64xf32>
    %440 = arith.mulf %438, %439 : vector<16x64xf32>
    %441 = arith.mulf %440, %343 : vector<16x64xf32>
    %442 = arith.addf %436, %441 : vector<16x64xf32>
    %cst_134 = arith.constant 2.000000e-01 : f32
    %443 = vector.broadcast %cst_134 : f32 to vector<16x64xf32>
    %444 = arith.subf %198, %443 : vector<16x64xf32>
    %cst_135 = arith.constant 1.250000e+00 : f32
    %445 = vector.broadcast %cst_135 : f32 to vector<16x64xf32>
    %446 = arith.mulf %444, %445 : vector<16x64xf32>
    %447 = arith.mulf %446, %343 : vector<16x64xf32>
    %cst_136 = arith.constant 1.400000e+00 : f32
    %448 = vector.broadcast %cst_136 : f32 to vector<16x64xf32>
    %449 = arith.subf %448, %198 : vector<16x64xf32>
    %cst_137 = arith.constant 1.250000e+00 : f32
    %450 = vector.broadcast %cst_137 : f32 to vector<16x64xf32>
    %451 = arith.mulf %449, %450 : vector<16x64xf32>
    %452 = arith.mulf %451, %354 : vector<16x64xf32>
    %453 = arith.addf %447, %452 : vector<16x64xf32>
    %cst_138 = arith.constant 6.000000e-01 : f32
    %454 = vector.broadcast %cst_138 : f32 to vector<16x64xf32>
    %455 = arith.subf %198, %454 : vector<16x64xf32>
    %cst_139 = arith.constant 1.250000e+00 : f32
    %456 = vector.broadcast %cst_139 : f32 to vector<16x64xf32>
    %457 = arith.mulf %455, %456 : vector<16x64xf32>
    %458 = arith.mulf %457, %354 : vector<16x64xf32>
    %cst_140 = arith.constant 1.800000e+00 : f32
    %459 = vector.broadcast %cst_140 : f32 to vector<16x64xf32>
    %460 = arith.subf %459, %198 : vector<16x64xf32>
    %cst_141 = arith.constant 1.250000e+00 : f32
    %461 = vector.broadcast %cst_141 : f32 to vector<16x64xf32>
    %462 = arith.mulf %460, %461 : vector<16x64xf32>
    %463 = arith.mulf %462, %365 : vector<16x64xf32>
    %464 = arith.addf %458, %463 : vector<16x64xf32>
    %cst_142 = arith.constant 1.000000e+00 : f32
    %465 = vector.broadcast %cst_142 : f32 to vector<16x64xf32>
    %466 = arith.subf %198, %465 : vector<16x64xf32>
    %cst_143 = arith.constant 1.250000e+00 : f32
    %467 = vector.broadcast %cst_143 : f32 to vector<16x64xf32>
    %468 = arith.mulf %466, %467 : vector<16x64xf32>
    %469 = arith.mulf %468, %365 : vector<16x64xf32>
    %cst_144 = arith.constant 2.200000e+00 : f32
    %470 = vector.broadcast %cst_144 : f32 to vector<16x64xf32>
    %471 = arith.subf %470, %198 : vector<16x64xf32>
    %cst_145 = arith.constant 1.250000e+00 : f32
    %472 = vector.broadcast %cst_145 : f32 to vector<16x64xf32>
    %473 = arith.mulf %471, %472 : vector<16x64xf32>
    %474 = arith.mulf %473, %376 : vector<16x64xf32>
    %475 = arith.addf %469, %474 : vector<16x64xf32>
    %cst_146 = arith.constant -2.200000e+00 : f32
    %476 = vector.broadcast %cst_146 : f32 to vector<16x64xf32>
    %477 = arith.subf %198, %476 : vector<16x64xf32>
    %cst_147 = arith.constant 0.833333313 : f32
    %478 = vector.broadcast %cst_147 : f32 to vector<16x64xf32>
    %479 = arith.mulf %477, %478 : vector<16x64xf32>
    %480 = arith.mulf %479, %387 : vector<16x64xf32>
    %cst_148 = arith.constant -6.000000e-01 : f32
    %481 = vector.broadcast %cst_148 : f32 to vector<16x64xf32>
    %482 = arith.subf %481, %198 : vector<16x64xf32>
    %cst_149 = arith.constant 0.833333313 : f32
    %483 = vector.broadcast %cst_149 : f32 to vector<16x64xf32>
    %484 = arith.mulf %482, %483 : vector<16x64xf32>
    %485 = arith.mulf %484, %398 : vector<16x64xf32>
    %486 = arith.addf %480, %485 : vector<16x64xf32>
    %cst_150 = arith.constant -1.800000e+00 : f32
    %487 = vector.broadcast %cst_150 : f32 to vector<16x64xf32>
    %488 = arith.subf %198, %487 : vector<16x64xf32>
    %cst_151 = arith.constant 0.833333313 : f32
    %489 = vector.broadcast %cst_151 : f32 to vector<16x64xf32>
    %490 = arith.mulf %488, %489 : vector<16x64xf32>
    %491 = arith.mulf %490, %398 : vector<16x64xf32>
    %cst_152 = arith.constant -2.000000e-01 : f32
    %492 = vector.broadcast %cst_152 : f32 to vector<16x64xf32>
    %493 = arith.subf %492, %198 : vector<16x64xf32>
    %cst_153 = arith.constant 0.833333313 : f32
    %494 = vector.broadcast %cst_153 : f32 to vector<16x64xf32>
    %495 = arith.mulf %493, %494 : vector<16x64xf32>
    %496 = arith.mulf %495, %409 : vector<16x64xf32>
    %497 = arith.addf %491, %496 : vector<16x64xf32>
    %cst_154 = arith.constant -1.400000e+00 : f32
    %498 = vector.broadcast %cst_154 : f32 to vector<16x64xf32>
    %499 = arith.subf %198, %498 : vector<16x64xf32>
    %cst_155 = arith.constant 0.833333313 : f32
    %500 = vector.broadcast %cst_155 : f32 to vector<16x64xf32>
    %501 = arith.mulf %499, %500 : vector<16x64xf32>
    %502 = arith.mulf %501, %409 : vector<16x64xf32>
    %cst_156 = arith.constant 2.000000e-01 : f32
    %503 = vector.broadcast %cst_156 : f32 to vector<16x64xf32>
    %504 = arith.subf %503, %198 : vector<16x64xf32>
    %cst_157 = arith.constant 0.833333313 : f32
    %505 = vector.broadcast %cst_157 : f32 to vector<16x64xf32>
    %506 = arith.mulf %504, %505 : vector<16x64xf32>
    %507 = arith.mulf %506, %420 : vector<16x64xf32>
    %508 = arith.addf %502, %507 : vector<16x64xf32>
    %cst_158 = arith.constant -1.000000e+00 : f32
    %509 = vector.broadcast %cst_158 : f32 to vector<16x64xf32>
    %510 = arith.subf %198, %509 : vector<16x64xf32>
    %cst_159 = arith.constant 0.833333313 : f32
    %511 = vector.broadcast %cst_159 : f32 to vector<16x64xf32>
    %512 = arith.mulf %510, %511 : vector<16x64xf32>
    %513 = arith.mulf %512, %420 : vector<16x64xf32>
    %cst_160 = arith.constant 6.000000e-01 : f32
    %514 = vector.broadcast %cst_160 : f32 to vector<16x64xf32>
    %515 = arith.subf %514, %198 : vector<16x64xf32>
    %cst_161 = arith.constant 0.833333313 : f32
    %516 = vector.broadcast %cst_161 : f32 to vector<16x64xf32>
    %517 = arith.mulf %515, %516 : vector<16x64xf32>
    %518 = arith.mulf %517, %431 : vector<16x64xf32>
    %519 = arith.addf %513, %518 : vector<16x64xf32>
    %cst_162 = arith.constant -6.000000e-01 : f32
    %520 = vector.broadcast %cst_162 : f32 to vector<16x64xf32>
    %521 = arith.subf %198, %520 : vector<16x64xf32>
    %cst_163 = arith.constant 0.833333313 : f32
    %522 = vector.broadcast %cst_163 : f32 to vector<16x64xf32>
    %523 = arith.mulf %521, %522 : vector<16x64xf32>
    %524 = arith.mulf %523, %431 : vector<16x64xf32>
    %cst_164 = arith.constant 1.000000e+00 : f32
    %525 = vector.broadcast %cst_164 : f32 to vector<16x64xf32>
    %526 = arith.subf %525, %198 : vector<16x64xf32>
    %cst_165 = arith.constant 0.833333313 : f32
    %527 = vector.broadcast %cst_165 : f32 to vector<16x64xf32>
    %528 = arith.mulf %526, %527 : vector<16x64xf32>
    %529 = arith.mulf %528, %442 : vector<16x64xf32>
    %530 = arith.addf %524, %529 : vector<16x64xf32>
    %cst_166 = arith.constant -2.000000e-01 : f32
    %531 = vector.broadcast %cst_166 : f32 to vector<16x64xf32>
    %532 = arith.subf %198, %531 : vector<16x64xf32>
    %cst_167 = arith.constant 0.833333313 : f32
    %533 = vector.broadcast %cst_167 : f32 to vector<16x64xf32>
    %534 = arith.mulf %532, %533 : vector<16x64xf32>
    %535 = arith.mulf %534, %442 : vector<16x64xf32>
    %cst_168 = arith.constant 1.400000e+00 : f32
    %536 = vector.broadcast %cst_168 : f32 to vector<16x64xf32>
    %537 = arith.subf %536, %198 : vector<16x64xf32>
    %cst_169 = arith.constant 0.833333313 : f32
    %538 = vector.broadcast %cst_169 : f32 to vector<16x64xf32>
    %539 = arith.mulf %537, %538 : vector<16x64xf32>
    %540 = arith.mulf %539, %453 : vector<16x64xf32>
    %541 = arith.addf %535, %540 : vector<16x64xf32>
    %cst_170 = arith.constant 2.000000e-01 : f32
    %542 = vector.broadcast %cst_170 : f32 to vector<16x64xf32>
    %543 = arith.subf %198, %542 : vector<16x64xf32>
    %cst_171 = arith.constant 0.833333313 : f32
    %544 = vector.broadcast %cst_171 : f32 to vector<16x64xf32>
    %545 = arith.mulf %543, %544 : vector<16x64xf32>
    %546 = arith.mulf %545, %453 : vector<16x64xf32>
    %cst_172 = arith.constant 1.800000e+00 : f32
    %547 = vector.broadcast %cst_172 : f32 to vector<16x64xf32>
    %548 = arith.subf %547, %198 : vector<16x64xf32>
    %cst_173 = arith.constant 0.833333313 : f32
    %549 = vector.broadcast %cst_173 : f32 to vector<16x64xf32>
    %550 = arith.mulf %548, %549 : vector<16x64xf32>
    %551 = arith.mulf %550, %464 : vector<16x64xf32>
    %552 = arith.addf %546, %551 : vector<16x64xf32>
    %cst_174 = arith.constant 6.000000e-01 : f32
    %553 = vector.broadcast %cst_174 : f32 to vector<16x64xf32>
    %554 = arith.subf %198, %553 : vector<16x64xf32>
    %cst_175 = arith.constant 0.833333313 : f32
    %555 = vector.broadcast %cst_175 : f32 to vector<16x64xf32>
    %556 = arith.mulf %554, %555 : vector<16x64xf32>
    %557 = arith.mulf %556, %464 : vector<16x64xf32>
    %cst_176 = arith.constant 2.200000e+00 : f32
    %558 = vector.broadcast %cst_176 : f32 to vector<16x64xf32>
    %559 = arith.subf %558, %198 : vector<16x64xf32>
    %cst_177 = arith.constant 0.833333313 : f32
    %560 = vector.broadcast %cst_177 : f32 to vector<16x64xf32>
    %561 = arith.mulf %559, %560 : vector<16x64xf32>
    %562 = arith.mulf %561, %475 : vector<16x64xf32>
    %563 = arith.addf %557, %562 : vector<16x64xf32>
    %564 = tpu.concatenate %207, %486, %497, %508, %519, %530, %541, %552, %563 in 1 : vector<16x64xf32>, vector<16x64xf32>, vector<16x64xf32>, vector<16x64xf32>, vector<16x64xf32>, vector<16x64xf32>, vector<16x64xf32>, vector<16x64xf32>, vector<16x64xf32> -> vector<16x576xf32>
    %cst_178 = arith.constant dense<0.000000e+00> : vector<16x64xf32>
    %565 = tpu.matmul %564, %200, %cst_178 {dimension_numbers = #tpu.dot_dimension_numbers<[1], [0], [0], [1], [0, 0, 1, 1], [], []>} : vector<16x576xf32>, vector<576x64xf32>, vector<16x64xf32> -> vector<16x64xf32>
    %566 = arith.addf %198, %565 : vector<16x64xf32>
    %cst_179 = arith.constant dense<0.000000e+00> : vector<16xf32>
    %567 = vector.multi_reduction <add>, %566, %cst_179 [1] : vector<16x64xf32> to vector<16xf32>
    %568 = vector.shape_cast %567 : vector<16xf32> to vector<16x1xf32>
    %cst_180 = arith.constant 6.400000e+01 : f32
    %569 = vector.broadcast %cst_180 : f32 to vector<16x1xf32>
    %570 = arith.divf %568, %569 : vector<16x1xf32>
    %571 = vector.broadcast %570 : vector<16x1xf32> to vector<16x64xf32>
    %572 = arith.subf %566, %571 : vector<16x64xf32>
    %573 = arith.mulf %572, %572 : vector<16x64xf32>
    %cst_181 = arith.constant dense<0.000000e+00> : vector<16xf32>
    %574 = vector.multi_reduction <add>, %573, %cst_181 [1] : vector<16x64xf32> to vector<16xf32>
    %575 = vector.shape_cast %574 : vector<16xf32> to vector<16x1xf32>
    %cst_182 = arith.constant 6.400000e+01 : f32
    %576 = vector.broadcast %cst_182 : f32 to vector<16x1xf32>
    %577 = arith.divf %575, %576 : vector<16x1xf32>
    %cst_183 = arith.constant 9.99999974E-6 : f32
    %578 = vector.broadcast %cst_183 : f32 to vector<16x1xf32>
    %579 = arith.addf %577, %578 : vector<16x1xf32>
    %580 = math.rsqrt %579 : vector<16x1xf32>
    %581 = vector.broadcast %580 : vector<16x1xf32> to vector<16x64xf32>
    %582 = arith.mulf %572, %581 : vector<16x64xf32>
    %583 = vector.broadcast %34 : vector<1x64xf32> to vector<16x64xf32>
    %584 = arith.mulf %582, %583 : vector<16x64xf32>
    %585 = vector.broadcast %35 : vector<1x64xf32> to vector<16x64xf32>
    %586 = arith.addf %584, %585 : vector<16x64xf32>
    %c1 = arith.constant 1 : index
    %c0_184 = arith.constant 0 : index
    %c0_185 = arith.constant 0 : index
    %587 = vector.load %arg3[%c1, %c0_184, %c0_185] : memref<2x64x256xf32, #tpu.memory_space<vmem>>, vector<1x64x256xf32>
    %588 = vector.shape_cast %587 : vector<1x64x256xf32> to vector<64x256xf32>
    %589 = vector.extract_strided_slice %588 {offsets = [0, 0], sizes = [64, 192], strides = [1, 1]} : vector<64x256xf32> to vector<64x192xf32>
    %590 = vector.extract_strided_slice %588 {offsets = [0, 192], sizes = [64, 64], strides = [1, 1]} : vector<64x256xf32> to vector<64x64xf32>
    %591 = vector.extract_strided_slice %0 {offsets = [12, 0], sizes = [1, 64], strides = [1, 1]} : vector<20x64xf32> to vector<1x64xf32>
    %592 = vector.extract_strided_slice %0 {offsets = [13, 0], sizes = [1, 64], strides = [1, 1]} : vector<20x64xf32> to vector<1x64xf32>
    %593 = vector.extract_strided_slice %0 {offsets = [14, 0], sizes = [1, 64], strides = [1, 1]} : vector<20x64xf32> to vector<1x64xf32>
    %594 = vector.extract_strided_slice %0 {offsets = [15, 0], sizes = [1, 64], strides = [1, 1]} : vector<20x64xf32> to vector<1x64xf32>
    %595 = vector.extract_strided_slice %0 {offsets = [16, 0], sizes = [1, 64], strides = [1, 1]} : vector<20x64xf32> to vector<1x64xf32>
    %596 = vector.extract_strided_slice %0 {offsets = [17, 0], sizes = [1, 64], strides = [1, 1]} : vector<20x64xf32> to vector<1x64xf32>
    %597 = vector.extract_strided_slice %0 {offsets = [18, 0], sizes = [1, 64], strides = [1, 1]} : vector<20x64xf32> to vector<1x64xf32>
    %598 = vector.extract_strided_slice %0 {offsets = [19, 0], sizes = [1, 64], strides = [1, 1]} : vector<20x64xf32> to vector<1x64xf32>
    %cst_186 = arith.constant dense<0.000000e+00> : vector<16x192xf32>
    %599 = tpu.matmul %586, %589, %cst_186 {dimension_numbers = #tpu.dot_dimension_numbers<[1], [0], [0], [1], [0, 0, 1, 1], [], []>} : vector<16x64xf32>, vector<64x192xf32>, vector<16x192xf32> -> vector<16x192xf32>
    %600 = vector.extract_strided_slice %599 {offsets = [0, 0], sizes = [16, 64], strides = [1, 1]} : vector<16x192xf32> to vector<16x64xf32>
    %601 = vector.broadcast %591 : vector<1x64xf32> to vector<16x64xf32>
    %602 = arith.addf %600, %601 : vector<16x64xf32>
    %603 = vector.extract_strided_slice %599 {offsets = [0, 64], sizes = [16, 64], strides = [1, 1]} : vector<16x192xf32> to vector<16x64xf32>
    %604 = vector.broadcast %592 : vector<1x64xf32> to vector<16x64xf32>
    %605 = arith.addf %603, %604 : vector<16x64xf32>
    %606 = vector.extract_strided_slice %599 {offsets = [0, 128], sizes = [16, 64], strides = [1, 1]} : vector<16x192xf32> to vector<16x64xf32>
    %607 = vector.broadcast %593 : vector<1x64xf32> to vector<16x64xf32>
    %608 = arith.addf %606, %607 : vector<16x64xf32>
    %609 = vector.extract_strided_slice %602 {offsets = [0, 0], sizes = [16, 8], strides = [1, 1]} : vector<16x64xf32> to vector<16x8xf32>
    %610 = vector.extract_strided_slice %605 {offsets = [0, 0], sizes = [16, 8], strides = [1, 1]} : vector<16x64xf32> to vector<16x8xf32>
    %611 = vector.extract_strided_slice %608 {offsets = [0, 0], sizes = [16, 8], strides = [1, 1]} : vector<16x64xf32> to vector<16x8xf32>
    "tpu.trace_start"() <{level = 10 : i32, message = "sd,td->st"}> : () -> ()
    %cst_187 = arith.constant dense<0.000000e+00> : vector<16x16xf32>
    %612 = tpu.matmul %609, %610, %cst_187 {dimension_numbers = #tpu.dot_dimension_numbers<[1], [1], [0], [0], [0, 0, 1, 0], [], []>} : vector<16x8xf32>, vector<16x8xf32>, vector<16x16xf32> -> vector<16x16xf32>
    "tpu.trace_stop"() : () -> ()
    %613 = arith.addf %612, %23 : vector<16x16xf32>
    %cst_188 = arith.constant dense<0xFF800000> : vector<16xf32>
    %614 = vector.multi_reduction <maximumf>, %613, %cst_188 [1] : vector<16x16xf32> to vector<16xf32>
    %615 = vector.shape_cast %614 : vector<16xf32> to vector<16x1xf32>
    %616 = vector.broadcast %615 : vector<16x1xf32> to vector<16x16xf32>
    %617 = arith.subf %613, %616 : vector<16x16xf32>
    %618 = math.exp %617 : vector<16x16xf32>
    %cst_189 = arith.constant dense<0.000000e+00> : vector<16xf32>
    %619 = vector.multi_reduction <add>, %618, %cst_189 [1] : vector<16x16xf32> to vector<16xf32>
    %620 = vector.shape_cast %619 : vector<16xf32> to vector<16x1xf32>
    %621 = tpu.reciprocal %620 {approx = true} : vector<16x1xf32> -> vector<16x1xf32>
    %622 = vector.broadcast %621 : vector<16x1xf32> to vector<16x16xf32>
    %623 = arith.mulf %618, %622 : vector<16x16xf32>
    %cst_190 = arith.constant dense<0.000000e+00> : vector<16x8xf32>
    %624 = tpu.matmul %623, %611, %cst_190 {dimension_numbers = #tpu.dot_dimension_numbers<[1], [0], [0], [1], [0, 0, 1, 1], [], []>} : vector<16x16xf32>, vector<16x8xf32>, vector<16x8xf32> -> vector<16x8xf32>
    %625 = vector.extract_strided_slice %602 {offsets = [0, 8], sizes = [16, 8], strides = [1, 1]} : vector<16x64xf32> to vector<16x8xf32>
    %626 = vector.extract_strided_slice %605 {offsets = [0, 8], sizes = [16, 8], strides = [1, 1]} : vector<16x64xf32> to vector<16x8xf32>
    %627 = vector.extract_strided_slice %608 {offsets = [0, 8], sizes = [16, 8], strides = [1, 1]} : vector<16x64xf32> to vector<16x8xf32>
    "tpu.trace_start"() <{level = 10 : i32, message = "sd,td->st"}> : () -> ()
    %cst_191 = arith.constant dense<0.000000e+00> : vector<16x16xf32>
    %628 = tpu.matmul %625, %626, %cst_191 {dimension_numbers = #tpu.dot_dimension_numbers<[1], [1], [0], [0], [0, 0, 1, 0], [], []>} : vector<16x8xf32>, vector<16x8xf32>, vector<16x16xf32> -> vector<16x16xf32>
    "tpu.trace_stop"() : () -> ()
    %629 = arith.addf %628, %23 : vector<16x16xf32>
    %cst_192 = arith.constant dense<0xFF800000> : vector<16xf32>
    %630 = vector.multi_reduction <maximumf>, %629, %cst_192 [1] : vector<16x16xf32> to vector<16xf32>
    %631 = vector.shape_cast %630 : vector<16xf32> to vector<16x1xf32>
    %632 = vector.broadcast %631 : vector<16x1xf32> to vector<16x16xf32>
    %633 = arith.subf %629, %632 : vector<16x16xf32>
    %634 = math.exp %633 : vector<16x16xf32>
    %cst_193 = arith.constant dense<0.000000e+00> : vector<16xf32>
    %635 = vector.multi_reduction <add>, %634, %cst_193 [1] : vector<16x16xf32> to vector<16xf32>
    %636 = vector.shape_cast %635 : vector<16xf32> to vector<16x1xf32>
    %637 = tpu.reciprocal %636 {approx = true} : vector<16x1xf32> -> vector<16x1xf32>
    %638 = vector.broadcast %637 : vector<16x1xf32> to vector<16x16xf32>
    %639 = arith.mulf %634, %638 : vector<16x16xf32>
    %cst_194 = arith.constant dense<0.000000e+00> : vector<16x8xf32>
    %640 = tpu.matmul %639, %627, %cst_194 {dimension_numbers = #tpu.dot_dimension_numbers<[1], [0], [0], [1], [0, 0, 1, 1], [], []>} : vector<16x16xf32>, vector<16x8xf32>, vector<16x8xf32> -> vector<16x8xf32>
    %641 = vector.extract_strided_slice %602 {offsets = [0, 16], sizes = [16, 8], strides = [1, 1]} : vector<16x64xf32> to vector<16x8xf32>
    %642 = vector.extract_strided_slice %605 {offsets = [0, 16], sizes = [16, 8], strides = [1, 1]} : vector<16x64xf32> to vector<16x8xf32>
    %643 = vector.extract_strided_slice %608 {offsets = [0, 16], sizes = [16, 8], strides = [1, 1]} : vector<16x64xf32> to vector<16x8xf32>
    "tpu.trace_start"() <{level = 10 : i32, message = "sd,td->st"}> : () -> ()
    %cst_195 = arith.constant dense<0.000000e+00> : vector<16x16xf32>
    %644 = tpu.matmul %641, %642, %cst_195 {dimension_numbers = #tpu.dot_dimension_numbers<[1], [1], [0], [0], [0, 0, 1, 0], [], []>} : vector<16x8xf32>, vector<16x8xf32>, vector<16x16xf32> -> vector<16x16xf32>
    "tpu.trace_stop"() : () -> ()
    %645 = arith.addf %644, %23 : vector<16x16xf32>
    %cst_196 = arith.constant dense<0xFF800000> : vector<16xf32>
    %646 = vector.multi_reduction <maximumf>, %645, %cst_196 [1] : vector<16x16xf32> to vector<16xf32>
    %647 = vector.shape_cast %646 : vector<16xf32> to vector<16x1xf32>
    %648 = vector.broadcast %647 : vector<16x1xf32> to vector<16x16xf32>
    %649 = arith.subf %645, %648 : vector<16x16xf32>
    %650 = math.exp %649 : vector<16x16xf32>
    %cst_197 = arith.constant dense<0.000000e+00> : vector<16xf32>
    %651 = vector.multi_reduction <add>, %650, %cst_197 [1] : vector<16x16xf32> to vector<16xf32>
    %652 = vector.shape_cast %651 : vector<16xf32> to vector<16x1xf32>
    %653 = tpu.reciprocal %652 {approx = true} : vector<16x1xf32> -> vector<16x1xf32>
    %654 = vector.broadcast %653 : vector<16x1xf32> to vector<16x16xf32>
    %655 = arith.mulf %650, %654 : vector<16x16xf32>
    %cst_198 = arith.constant dense<0.000000e+00> : vector<16x8xf32>
    %656 = tpu.matmul %655, %643, %cst_198 {dimension_numbers = #tpu.dot_dimension_numbers<[1], [0], [0], [1], [0, 0, 1, 1], [], []>} : vector<16x16xf32>, vector<16x8xf32>, vector<16x8xf32> -> vector<16x8xf32>
    %657 = vector.extract_strided_slice %602 {offsets = [0, 24], sizes = [16, 8], strides = [1, 1]} : vector<16x64xf32> to vector<16x8xf32>
    %658 = vector.extract_strided_slice %605 {offsets = [0, 24], sizes = [16, 8], strides = [1, 1]} : vector<16x64xf32> to vector<16x8xf32>
    %659 = vector.extract_strided_slice %608 {offsets = [0, 24], sizes = [16, 8], strides = [1, 1]} : vector<16x64xf32> to vector<16x8xf32>
    "tpu.trace_start"() <{level = 10 : i32, message = "sd,td->st"}> : () -> ()
    %cst_199 = arith.constant dense<0.000000e+00> : vector<16x16xf32>
    %660 = tpu.matmul %657, %658, %cst_199 {dimension_numbers = #tpu.dot_dimension_numbers<[1], [1], [0], [0], [0, 0, 1, 0], [], []>} : vector<16x8xf32>, vector<16x8xf32>, vector<16x16xf32> -> vector<16x16xf32>
    "tpu.trace_stop"() : () -> ()
    %661 = arith.addf %660, %23 : vector<16x16xf32>
    %cst_200 = arith.constant dense<0xFF800000> : vector<16xf32>
    %662 = vector.multi_reduction <maximumf>, %661, %cst_200 [1] : vector<16x16xf32> to vector<16xf32>
    %663 = vector.shape_cast %662 : vector<16xf32> to vector<16x1xf32>
    %664 = vector.broadcast %663 : vector<16x1xf32> to vector<16x16xf32>
    %665 = arith.subf %661, %664 : vector<16x16xf32>
    %666 = math.exp %665 : vector<16x16xf32>
    %cst_201 = arith.constant dense<0.000000e+00> : vector<16xf32>
    %667 = vector.multi_reduction <add>, %666, %cst_201 [1] : vector<16x16xf32> to vector<16xf32>
    %668 = vector.shape_cast %667 : vector<16xf32> to vector<16x1xf32>
    %669 = tpu.reciprocal %668 {approx = true} : vector<16x1xf32> -> vector<16x1xf32>
    %670 = vector.broadcast %669 : vector<16x1xf32> to vector<16x16xf32>
    %671 = arith.mulf %666, %670 : vector<16x16xf32>
    %cst_202 = arith.constant dense<0.000000e+00> : vector<16x8xf32>
    %672 = tpu.matmul %671, %659, %cst_202 {dimension_numbers = #tpu.dot_dimension_numbers<[1], [0], [0], [1], [0, 0, 1, 1], [], []>} : vector<16x16xf32>, vector<16x8xf32>, vector<16x8xf32> -> vector<16x8xf32>
    %673 = vector.extract_strided_slice %602 {offsets = [0, 32], sizes = [16, 8], strides = [1, 1]} : vector<16x64xf32> to vector<16x8xf32>
    %674 = vector.extract_strided_slice %605 {offsets = [0, 32], sizes = [16, 8], strides = [1, 1]} : vector<16x64xf32> to vector<16x8xf32>
    %675 = vector.extract_strided_slice %608 {offsets = [0, 32], sizes = [16, 8], strides = [1, 1]} : vector<16x64xf32> to vector<16x8xf32>
    "tpu.trace_start"() <{level = 10 : i32, message = "sd,td->st"}> : () -> ()
    %cst_203 = arith.constant dense<0.000000e+00> : vector<16x16xf32>
    %676 = tpu.matmul %673, %674, %cst_203 {dimension_numbers = #tpu.dot_dimension_numbers<[1], [1], [0], [0], [0, 0, 1, 0], [], []>} : vector<16x8xf32>, vector<16x8xf32>, vector<16x16xf32> -> vector<16x16xf32>
    "tpu.trace_stop"() : () -> ()
    %677 = arith.addf %676, %23 : vector<16x16xf32>
    %cst_204 = arith.constant dense<0xFF800000> : vector<16xf32>
    %678 = vector.multi_reduction <maximumf>, %677, %cst_204 [1] : vector<16x16xf32> to vector<16xf32>
    %679 = vector.shape_cast %678 : vector<16xf32> to vector<16x1xf32>
    %680 = vector.broadcast %679 : vector<16x1xf32> to vector<16x16xf32>
    %681 = arith.subf %677, %680 : vector<16x16xf32>
    %682 = math.exp %681 : vector<16x16xf32>
    %cst_205 = arith.constant dense<0.000000e+00> : vector<16xf32>
    %683 = vector.multi_reduction <add>, %682, %cst_205 [1] : vector<16x16xf32> to vector<16xf32>
    %684 = vector.shape_cast %683 : vector<16xf32> to vector<16x1xf32>
    %685 = tpu.reciprocal %684 {approx = true} : vector<16x1xf32> -> vector<16x1xf32>
    %686 = vector.broadcast %685 : vector<16x1xf32> to vector<16x16xf32>
    %687 = arith.mulf %682, %686 : vector<16x16xf32>
    %cst_206 = arith.constant dense<0.000000e+00> : vector<16x8xf32>
    %688 = tpu.matmul %687, %675, %cst_206 {dimension_numbers = #tpu.dot_dimension_numbers<[1], [0], [0], [1], [0, 0, 1, 1], [], []>} : vector<16x16xf32>, vector<16x8xf32>, vector<16x8xf32> -> vector<16x8xf32>
    %689 = vector.extract_strided_slice %602 {offsets = [0, 40], sizes = [16, 8], strides = [1, 1]} : vector<16x64xf32> to vector<16x8xf32>
    %690 = vector.extract_strided_slice %605 {offsets = [0, 40], sizes = [16, 8], strides = [1, 1]} : vector<16x64xf32> to vector<16x8xf32>
    %691 = vector.extract_strided_slice %608 {offsets = [0, 40], sizes = [16, 8], strides = [1, 1]} : vector<16x64xf32> to vector<16x8xf32>
    "tpu.trace_start"() <{level = 10 : i32, message = "sd,td->st"}> : () -> ()
    %cst_207 = arith.constant dense<0.000000e+00> : vector<16x16xf32>
    %692 = tpu.matmul %689, %690, %cst_207 {dimension_numbers = #tpu.dot_dimension_numbers<[1], [1], [0], [0], [0, 0, 1, 0], [], []>} : vector<16x8xf32>, vector<16x8xf32>, vector<16x16xf32> -> vector<16x16xf32>
    "tpu.trace_stop"() : () -> ()
    %693 = arith.addf %692, %23 : vector<16x16xf32>
    %cst_208 = arith.constant dense<0xFF800000> : vector<16xf32>
    %694 = vector.multi_reduction <maximumf>, %693, %cst_208 [1] : vector<16x16xf32> to vector<16xf32>
    %695 = vector.shape_cast %694 : vector<16xf32> to vector<16x1xf32>
    %696 = vector.broadcast %695 : vector<16x1xf32> to vector<16x16xf32>
    %697 = arith.subf %693, %696 : vector<16x16xf32>
    %698 = math.exp %697 : vector<16x16xf32>
    %cst_209 = arith.constant dense<0.000000e+00> : vector<16xf32>
    %699 = vector.multi_reduction <add>, %698, %cst_209 [1] : vector<16x16xf32> to vector<16xf32>
    %700 = vector.shape_cast %699 : vector<16xf32> to vector<16x1xf32>
    %701 = tpu.reciprocal %700 {approx = true} : vector<16x1xf32> -> vector<16x1xf32>
    %702 = vector.broadcast %701 : vector<16x1xf32> to vector<16x16xf32>
    %703 = arith.mulf %698, %702 : vector<16x16xf32>
    %cst_210 = arith.constant dense<0.000000e+00> : vector<16x8xf32>
    %704 = tpu.matmul %703, %691, %cst_210 {dimension_numbers = #tpu.dot_dimension_numbers<[1], [0], [0], [1], [0, 0, 1, 1], [], []>} : vector<16x16xf32>, vector<16x8xf32>, vector<16x8xf32> -> vector<16x8xf32>
    %705 = vector.extract_strided_slice %602 {offsets = [0, 48], sizes = [16, 8], strides = [1, 1]} : vector<16x64xf32> to vector<16x8xf32>
    %706 = vector.extract_strided_slice %605 {offsets = [0, 48], sizes = [16, 8], strides = [1, 1]} : vector<16x64xf32> to vector<16x8xf32>
    %707 = vector.extract_strided_slice %608 {offsets = [0, 48], sizes = [16, 8], strides = [1, 1]} : vector<16x64xf32> to vector<16x8xf32>
    "tpu.trace_start"() <{level = 10 : i32, message = "sd,td->st"}> : () -> ()
    %cst_211 = arith.constant dense<0.000000e+00> : vector<16x16xf32>
    %708 = tpu.matmul %705, %706, %cst_211 {dimension_numbers = #tpu.dot_dimension_numbers<[1], [1], [0], [0], [0, 0, 1, 0], [], []>} : vector<16x8xf32>, vector<16x8xf32>, vector<16x16xf32> -> vector<16x16xf32>
    "tpu.trace_stop"() : () -> ()
    %709 = arith.addf %708, %23 : vector<16x16xf32>
    %cst_212 = arith.constant dense<0xFF800000> : vector<16xf32>
    %710 = vector.multi_reduction <maximumf>, %709, %cst_212 [1] : vector<16x16xf32> to vector<16xf32>
    %711 = vector.shape_cast %710 : vector<16xf32> to vector<16x1xf32>
    %712 = vector.broadcast %711 : vector<16x1xf32> to vector<16x16xf32>
    %713 = arith.subf %709, %712 : vector<16x16xf32>
    %714 = math.exp %713 : vector<16x16xf32>
    %cst_213 = arith.constant dense<0.000000e+00> : vector<16xf32>
    %715 = vector.multi_reduction <add>, %714, %cst_213 [1] : vector<16x16xf32> to vector<16xf32>
    %716 = vector.shape_cast %715 : vector<16xf32> to vector<16x1xf32>
    %717 = tpu.reciprocal %716 {approx = true} : vector<16x1xf32> -> vector<16x1xf32>
    %718 = vector.broadcast %717 : vector<16x1xf32> to vector<16x16xf32>
    %719 = arith.mulf %714, %718 : vector<16x16xf32>
    %cst_214 = arith.constant dense<0.000000e+00> : vector<16x8xf32>
    %720 = tpu.matmul %719, %707, %cst_214 {dimension_numbers = #tpu.dot_dimension_numbers<[1], [0], [0], [1], [0, 0, 1, 1], [], []>} : vector<16x16xf32>, vector<16x8xf32>, vector<16x8xf32> -> vector<16x8xf32>
    %721 = vector.extract_strided_slice %602 {offsets = [0, 56], sizes = [16, 8], strides = [1, 1]} : vector<16x64xf32> to vector<16x8xf32>
    %722 = vector.extract_strided_slice %605 {offsets = [0, 56], sizes = [16, 8], strides = [1, 1]} : vector<16x64xf32> to vector<16x8xf32>
    %723 = vector.extract_strided_slice %608 {offsets = [0, 56], sizes = [16, 8], strides = [1, 1]} : vector<16x64xf32> to vector<16x8xf32>
    "tpu.trace_start"() <{level = 10 : i32, message = "sd,td->st"}> : () -> ()
    %cst_215 = arith.constant dense<0.000000e+00> : vector<16x16xf32>
    %724 = tpu.matmul %721, %722, %cst_215 {dimension_numbers = #tpu.dot_dimension_numbers<[1], [1], [0], [0], [0, 0, 1, 0], [], []>} : vector<16x8xf32>, vector<16x8xf32>, vector<16x16xf32> -> vector<16x16xf32>
    "tpu.trace_stop"() : () -> ()
    %725 = arith.addf %724, %23 : vector<16x16xf32>
    %cst_216 = arith.constant dense<0xFF800000> : vector<16xf32>
    %726 = vector.multi_reduction <maximumf>, %725, %cst_216 [1] : vector<16x16xf32> to vector<16xf32>
    %727 = vector.shape_cast %726 : vector<16xf32> to vector<16x1xf32>
    %728 = vector.broadcast %727 : vector<16x1xf32> to vector<16x16xf32>
    %729 = arith.subf %725, %728 : vector<16x16xf32>
    %730 = math.exp %729 : vector<16x16xf32>
    %cst_217 = arith.constant dense<0.000000e+00> : vector<16xf32>
    %731 = vector.multi_reduction <add>, %730, %cst_217 [1] : vector<16x16xf32> to vector<16xf32>
    %732 = vector.shape_cast %731 : vector<16xf32> to vector<16x1xf32>
    %733 = tpu.reciprocal %732 {approx = true} : vector<16x1xf32> -> vector<16x1xf32>
    %734 = vector.broadcast %733 : vector<16x1xf32> to vector<16x16xf32>
    %735 = arith.mulf %730, %734 : vector<16x16xf32>
    %cst_218 = arith.constant dense<0.000000e+00> : vector<16x8xf32>
    %736 = tpu.matmul %735, %723, %cst_218 {dimension_numbers = #tpu.dot_dimension_numbers<[1], [0], [0], [1], [0, 0, 1, 1], [], []>} : vector<16x16xf32>, vector<16x8xf32>, vector<16x8xf32> -> vector<16x8xf32>
    %737 = tpu.concatenate %624, %640, %656, %672, %688, %704, %720, %736 in 1 : vector<16x8xf32>, vector<16x8xf32>, vector<16x8xf32>, vector<16x8xf32>, vector<16x8xf32>, vector<16x8xf32>, vector<16x8xf32>, vector<16x8xf32> -> vector<16x64xf32>
    %cst_219 = arith.constant dense<0.000000e+00> : vector<16x64xf32>
    %738 = tpu.matmul %737, %590, %cst_219 {dimension_numbers = #tpu.dot_dimension_numbers<[1], [0], [0], [1], [0, 0, 1, 1], [], []>} : vector<16x64xf32>, vector<64x64xf32>, vector<16x64xf32> -> vector<16x64xf32>
    %739 = vector.broadcast %594 : vector<1x64xf32> to vector<16x64xf32>
    %740 = arith.addf %738, %739 : vector<16x64xf32>
    %741 = arith.addf %586, %740 : vector<16x64xf32>
    %cst_220 = arith.constant dense<0.000000e+00> : vector<16xf32>
    %742 = vector.multi_reduction <add>, %741, %cst_220 [1] : vector<16x64xf32> to vector<16xf32>
    %743 = vector.shape_cast %742 : vector<16xf32> to vector<16x1xf32>
    %cst_221 = arith.constant 6.400000e+01 : f32
    %744 = vector.broadcast %cst_221 : f32 to vector<16x1xf32>
    %745 = arith.divf %743, %744 : vector<16x1xf32>
    %746 = vector.broadcast %745 : vector<16x1xf32> to vector<16x64xf32>
    %747 = arith.subf %741, %746 : vector<16x64xf32>
    %748 = arith.mulf %747, %747 : vector<16x64xf32>
    %cst_222 = arith.constant dense<0.000000e+00> : vector<16xf32>
    %749 = vector.multi_reduction <add>, %748, %cst_222 [1] : vector<16x64xf32> to vector<16xf32>
    %750 = vector.shape_cast %749 : vector<16xf32> to vector<16x1xf32>
    %cst_223 = arith.constant 6.400000e+01 : f32
    %751 = vector.broadcast %cst_223 : f32 to vector<16x1xf32>
    %752 = arith.divf %750, %751 : vector<16x1xf32>
    %cst_224 = arith.constant 9.99999974E-6 : f32
    %753 = vector.broadcast %cst_224 : f32 to vector<16x1xf32>
    %754 = arith.addf %752, %753 : vector<16x1xf32>
    %755 = math.rsqrt %754 : vector<16x1xf32>
    %756 = vector.broadcast %755 : vector<16x1xf32> to vector<16x64xf32>
    %757 = arith.mulf %747, %756 : vector<16x64xf32>
    %758 = vector.broadcast %595 : vector<1x64xf32> to vector<16x64xf32>
    %759 = arith.mulf %757, %758 : vector<16x64xf32>
    %760 = vector.broadcast %596 : vector<1x64xf32> to vector<16x64xf32>
    %761 = arith.addf %759, %760 : vector<16x64xf32>
    %c1_225 = arith.constant 1 : index
    %c0_226 = arith.constant 0 : index
    %c0_227 = arith.constant 0 : index
    %762 = vector.load %arg4[%c1_225, %c0_226, %c0_227] : memref<2x576x64xf32, #tpu.memory_space<vmem>>, vector<1x576x64xf32>
    %763 = vector.shape_cast %762 : vector<1x576x64xf32> to vector<576x64xf32>
    %cst_228 = arith.constant 0.000000e+00 : f32
    %764 = vector.broadcast %cst_228 : f32 to vector<16x64xf32>
    %765 = arith.subf %764, %761 : vector<16x64xf32>
    %766 = math.exp %765 : vector<16x64xf32>
    %cst_229 = arith.constant 1.000000e+00 : f32
    %767 = vector.broadcast %cst_229 : f32 to vector<16x64xf32>
    %768 = arith.addf %767, %766 : vector<16x64xf32>
    %769 = tpu.reciprocal %768 {approx = true} : vector<16x64xf32> -> vector<16x64xf32>
    %770 = arith.mulf %761, %769 : vector<16x64xf32>
    %cst_230 = arith.constant -2.200000e+00 : f32
    %771 = vector.broadcast %cst_230 : f32 to vector<16x64xf32>
    %772 = arith.cmpf oge, %761, %771 : vector<16x64xf32>
    %773 = arith.extui %772 : vector<16x64xi1> to vector<16x64xi32>
    %774 = arith.sitofp %773 : vector<16x64xi32> to vector<16x64xf32>
    %cst_231 = arith.constant -1.800000e+00 : f32
    %775 = vector.broadcast %cst_231 : f32 to vector<16x64xf32>
    %776 = arith.cmpf oge, %761, %775 : vector<16x64xf32>
    %777 = arith.extui %776 : vector<16x64xi1> to vector<16x64xi32>
    %778 = arith.sitofp %777 : vector<16x64xi32> to vector<16x64xf32>
    %cst_232 = arith.constant -1.400000e+00 : f32
    %779 = vector.broadcast %cst_232 : f32 to vector<16x64xf32>
    %780 = arith.cmpf oge, %761, %779 : vector<16x64xf32>
    %781 = arith.extui %780 : vector<16x64xi1> to vector<16x64xi32>
    %782 = arith.sitofp %781 : vector<16x64xi32> to vector<16x64xf32>
    %cst_233 = arith.constant -1.000000e+00 : f32
    %783 = vector.broadcast %cst_233 : f32 to vector<16x64xf32>
    %784 = arith.cmpf oge, %761, %783 : vector<16x64xf32>
    %785 = arith.extui %784 : vector<16x64xi1> to vector<16x64xi32>
    %786 = arith.sitofp %785 : vector<16x64xi32> to vector<16x64xf32>
    %cst_234 = arith.constant -6.000000e-01 : f32
    %787 = vector.broadcast %cst_234 : f32 to vector<16x64xf32>
    %788 = arith.cmpf oge, %761, %787 : vector<16x64xf32>
    %789 = arith.extui %788 : vector<16x64xi1> to vector<16x64xi32>
    %790 = arith.sitofp %789 : vector<16x64xi32> to vector<16x64xf32>
    %cst_235 = arith.constant -2.000000e-01 : f32
    %791 = vector.broadcast %cst_235 : f32 to vector<16x64xf32>
    %792 = arith.cmpf oge, %761, %791 : vector<16x64xf32>
    %793 = arith.extui %792 : vector<16x64xi1> to vector<16x64xi32>
    %794 = arith.sitofp %793 : vector<16x64xi32> to vector<16x64xf32>
    %cst_236 = arith.constant 2.000000e-01 : f32
    %795 = vector.broadcast %cst_236 : f32 to vector<16x64xf32>
    %796 = arith.cmpf oge, %761, %795 : vector<16x64xf32>
    %797 = arith.extui %796 : vector<16x64xi1> to vector<16x64xi32>
    %798 = arith.sitofp %797 : vector<16x64xi32> to vector<16x64xf32>
    %cst_237 = arith.constant 6.000000e-01 : f32
    %799 = vector.broadcast %cst_237 : f32 to vector<16x64xf32>
    %800 = arith.cmpf oge, %761, %799 : vector<16x64xf32>
    %801 = arith.extui %800 : vector<16x64xi1> to vector<16x64xi32>
    %802 = arith.sitofp %801 : vector<16x64xi32> to vector<16x64xf32>
    %cst_238 = arith.constant 1.000000e+00 : f32
    %803 = vector.broadcast %cst_238 : f32 to vector<16x64xf32>
    %804 = arith.cmpf oge, %761, %803 : vector<16x64xf32>
    %805 = arith.extui %804 : vector<16x64xi1> to vector<16x64xi32>
    %806 = arith.sitofp %805 : vector<16x64xi32> to vector<16x64xf32>
    %cst_239 = arith.constant 1.400000e+00 : f32
    %807 = vector.broadcast %cst_239 : f32 to vector<16x64xf32>
    %808 = arith.cmpf oge, %761, %807 : vector<16x64xf32>
    %809 = arith.extui %808 : vector<16x64xi1> to vector<16x64xi32>
    %810 = arith.sitofp %809 : vector<16x64xi32> to vector<16x64xf32>
    %cst_240 = arith.constant 1.800000e+00 : f32
    %811 = vector.broadcast %cst_240 : f32 to vector<16x64xf32>
    %812 = arith.cmpf oge, %761, %811 : vector<16x64xf32>
    %813 = arith.extui %812 : vector<16x64xi1> to vector<16x64xi32>
    %814 = arith.sitofp %813 : vector<16x64xi32> to vector<16x64xf32>
    %cst_241 = arith.constant 2.200000e+00 : f32
    %815 = vector.broadcast %cst_241 : f32 to vector<16x64xf32>
    %816 = arith.cmpf oge, %761, %815 : vector<16x64xf32>
    %817 = arith.extui %816 : vector<16x64xi1> to vector<16x64xi32>
    %818 = arith.sitofp %817 : vector<16x64xi32> to vector<16x64xf32>
    %819 = arith.subf %774, %778 : vector<16x64xf32>
    %820 = arith.subf %778, %782 : vector<16x64xf32>
    %821 = arith.subf %782, %786 : vector<16x64xf32>
    %822 = arith.subf %786, %790 : vector<16x64xf32>
    %823 = arith.subf %790, %794 : vector<16x64xf32>
    %824 = arith.subf %794, %798 : vector<16x64xf32>
    %825 = arith.subf %798, %802 : vector<16x64xf32>
    %826 = arith.subf %802, %806 : vector<16x64xf32>
    %827 = arith.subf %806, %810 : vector<16x64xf32>
    %828 = arith.subf %810, %814 : vector<16x64xf32>
    %829 = arith.subf %814, %818 : vector<16x64xf32>
    %cst_242 = arith.constant -2.200000e+00 : f32
    %830 = vector.broadcast %cst_242 : f32 to vector<16x64xf32>
    %831 = arith.subf %761, %830 : vector<16x64xf32>
    %cst_243 = arith.constant 2.500000e+00 : f32
    %832 = vector.broadcast %cst_243 : f32 to vector<16x64xf32>
    %833 = arith.mulf %831, %832 : vector<16x64xf32>
    %834 = arith.mulf %833, %819 : vector<16x64xf32>
    %cst_244 = arith.constant -1.400000e+00 : f32
    %835 = vector.broadcast %cst_244 : f32 to vector<16x64xf32>
    %836 = arith.subf %835, %761 : vector<16x64xf32>
    %cst_245 = arith.constant 2.500000e+00 : f32
    %837 = vector.broadcast %cst_245 : f32 to vector<16x64xf32>
    %838 = arith.mulf %836, %837 : vector<16x64xf32>
    %839 = arith.mulf %838, %820 : vector<16x64xf32>
    %840 = arith.addf %834, %839 : vector<16x64xf32>
    %cst_246 = arith.constant -1.800000e+00 : f32
    %841 = vector.broadcast %cst_246 : f32 to vector<16x64xf32>
    %842 = arith.subf %761, %841 : vector<16x64xf32>
    %cst_247 = arith.constant 2.500000e+00 : f32
    %843 = vector.broadcast %cst_247 : f32 to vector<16x64xf32>
    %844 = arith.mulf %842, %843 : vector<16x64xf32>
    %845 = arith.mulf %844, %820 : vector<16x64xf32>
    %cst_248 = arith.constant -1.000000e+00 : f32
    %846 = vector.broadcast %cst_248 : f32 to vector<16x64xf32>
    %847 = arith.subf %846, %761 : vector<16x64xf32>
    %cst_249 = arith.constant 2.500000e+00 : f32
    %848 = vector.broadcast %cst_249 : f32 to vector<16x64xf32>
    %849 = arith.mulf %847, %848 : vector<16x64xf32>
    %850 = arith.mulf %849, %821 : vector<16x64xf32>
    %851 = arith.addf %845, %850 : vector<16x64xf32>
    %cst_250 = arith.constant -1.400000e+00 : f32
    %852 = vector.broadcast %cst_250 : f32 to vector<16x64xf32>
    %853 = arith.subf %761, %852 : vector<16x64xf32>
    %cst_251 = arith.constant 2.500000e+00 : f32
    %854 = vector.broadcast %cst_251 : f32 to vector<16x64xf32>
    %855 = arith.mulf %853, %854 : vector<16x64xf32>
    %856 = arith.mulf %855, %821 : vector<16x64xf32>
    %cst_252 = arith.constant -6.000000e-01 : f32
    %857 = vector.broadcast %cst_252 : f32 to vector<16x64xf32>
    %858 = arith.subf %857, %761 : vector<16x64xf32>
    %cst_253 = arith.constant 2.500000e+00 : f32
    %859 = vector.broadcast %cst_253 : f32 to vector<16x64xf32>
    %860 = arith.mulf %858, %859 : vector<16x64xf32>
    %861 = arith.mulf %860, %822 : vector<16x64xf32>
    %862 = arith.addf %856, %861 : vector<16x64xf32>
    %cst_254 = arith.constant -1.000000e+00 : f32
    %863 = vector.broadcast %cst_254 : f32 to vector<16x64xf32>
    %864 = arith.subf %761, %863 : vector<16x64xf32>
    %cst_255 = arith.constant 2.500000e+00 : f32
    %865 = vector.broadcast %cst_255 : f32 to vector<16x64xf32>
    %866 = arith.mulf %864, %865 : vector<16x64xf32>
    %867 = arith.mulf %866, %822 : vector<16x64xf32>
    %cst_256 = arith.constant -2.000000e-01 : f32
    %868 = vector.broadcast %cst_256 : f32 to vector<16x64xf32>
    %869 = arith.subf %868, %761 : vector<16x64xf32>
    %cst_257 = arith.constant 2.500000e+00 : f32
    %870 = vector.broadcast %cst_257 : f32 to vector<16x64xf32>
    %871 = arith.mulf %869, %870 : vector<16x64xf32>
    %872 = arith.mulf %871, %823 : vector<16x64xf32>
    %873 = arith.addf %867, %872 : vector<16x64xf32>
    %cst_258 = arith.constant -6.000000e-01 : f32
    %874 = vector.broadcast %cst_258 : f32 to vector<16x64xf32>
    %875 = arith.subf %761, %874 : vector<16x64xf32>
    %cst_259 = arith.constant 2.500000e+00 : f32
    %876 = vector.broadcast %cst_259 : f32 to vector<16x64xf32>
    %877 = arith.mulf %875, %876 : vector<16x64xf32>
    %878 = arith.mulf %877, %823 : vector<16x64xf32>
    %cst_260 = arith.constant 2.000000e-01 : f32
    %879 = vector.broadcast %cst_260 : f32 to vector<16x64xf32>
    %880 = arith.subf %879, %761 : vector<16x64xf32>
    %cst_261 = arith.constant 2.500000e+00 : f32
    %881 = vector.broadcast %cst_261 : f32 to vector<16x64xf32>
    %882 = arith.mulf %880, %881 : vector<16x64xf32>
    %883 = arith.mulf %882, %824 : vector<16x64xf32>
    %884 = arith.addf %878, %883 : vector<16x64xf32>
    %cst_262 = arith.constant -2.000000e-01 : f32
    %885 = vector.broadcast %cst_262 : f32 to vector<16x64xf32>
    %886 = arith.subf %761, %885 : vector<16x64xf32>
    %cst_263 = arith.constant 2.500000e+00 : f32
    %887 = vector.broadcast %cst_263 : f32 to vector<16x64xf32>
    %888 = arith.mulf %886, %887 : vector<16x64xf32>
    %889 = arith.mulf %888, %824 : vector<16x64xf32>
    %cst_264 = arith.constant 6.000000e-01 : f32
    %890 = vector.broadcast %cst_264 : f32 to vector<16x64xf32>
    %891 = arith.subf %890, %761 : vector<16x64xf32>
    %cst_265 = arith.constant 2.500000e+00 : f32
    %892 = vector.broadcast %cst_265 : f32 to vector<16x64xf32>
    %893 = arith.mulf %891, %892 : vector<16x64xf32>
    %894 = arith.mulf %893, %825 : vector<16x64xf32>
    %895 = arith.addf %889, %894 : vector<16x64xf32>
    %cst_266 = arith.constant 2.000000e-01 : f32
    %896 = vector.broadcast %cst_266 : f32 to vector<16x64xf32>
    %897 = arith.subf %761, %896 : vector<16x64xf32>
    %cst_267 = arith.constant 2.500000e+00 : f32
    %898 = vector.broadcast %cst_267 : f32 to vector<16x64xf32>
    %899 = arith.mulf %897, %898 : vector<16x64xf32>
    %900 = arith.mulf %899, %825 : vector<16x64xf32>
    %cst_268 = arith.constant 1.000000e+00 : f32
    %901 = vector.broadcast %cst_268 : f32 to vector<16x64xf32>
    %902 = arith.subf %901, %761 : vector<16x64xf32>
    %cst_269 = arith.constant 2.500000e+00 : f32
    %903 = vector.broadcast %cst_269 : f32 to vector<16x64xf32>
    %904 = arith.mulf %902, %903 : vector<16x64xf32>
    %905 = arith.mulf %904, %826 : vector<16x64xf32>
    %906 = arith.addf %900, %905 : vector<16x64xf32>
    %cst_270 = arith.constant 6.000000e-01 : f32
    %907 = vector.broadcast %cst_270 : f32 to vector<16x64xf32>
    %908 = arith.subf %761, %907 : vector<16x64xf32>
    %cst_271 = arith.constant 2.500000e+00 : f32
    %909 = vector.broadcast %cst_271 : f32 to vector<16x64xf32>
    %910 = arith.mulf %908, %909 : vector<16x64xf32>
    %911 = arith.mulf %910, %826 : vector<16x64xf32>
    %cst_272 = arith.constant 1.400000e+00 : f32
    %912 = vector.broadcast %cst_272 : f32 to vector<16x64xf32>
    %913 = arith.subf %912, %761 : vector<16x64xf32>
    %cst_273 = arith.constant 2.500000e+00 : f32
    %914 = vector.broadcast %cst_273 : f32 to vector<16x64xf32>
    %915 = arith.mulf %913, %914 : vector<16x64xf32>
    %916 = arith.mulf %915, %827 : vector<16x64xf32>
    %917 = arith.addf %911, %916 : vector<16x64xf32>
    %cst_274 = arith.constant 1.000000e+00 : f32
    %918 = vector.broadcast %cst_274 : f32 to vector<16x64xf32>
    %919 = arith.subf %761, %918 : vector<16x64xf32>
    %cst_275 = arith.constant 2.500000e+00 : f32
    %920 = vector.broadcast %cst_275 : f32 to vector<16x64xf32>
    %921 = arith.mulf %919, %920 : vector<16x64xf32>
    %922 = arith.mulf %921, %827 : vector<16x64xf32>
    %cst_276 = arith.constant 1.800000e+00 : f32
    %923 = vector.broadcast %cst_276 : f32 to vector<16x64xf32>
    %924 = arith.subf %923, %761 : vector<16x64xf32>
    %cst_277 = arith.constant 2.500000e+00 : f32
    %925 = vector.broadcast %cst_277 : f32 to vector<16x64xf32>
    %926 = arith.mulf %924, %925 : vector<16x64xf32>
    %927 = arith.mulf %926, %828 : vector<16x64xf32>
    %928 = arith.addf %922, %927 : vector<16x64xf32>
    %cst_278 = arith.constant 1.400000e+00 : f32
    %929 = vector.broadcast %cst_278 : f32 to vector<16x64xf32>
    %930 = arith.subf %761, %929 : vector<16x64xf32>
    %cst_279 = arith.constant 2.500000e+00 : f32
    %931 = vector.broadcast %cst_279 : f32 to vector<16x64xf32>
    %932 = arith.mulf %930, %931 : vector<16x64xf32>
    %933 = arith.mulf %932, %828 : vector<16x64xf32>
    %cst_280 = arith.constant 2.200000e+00 : f32
    %934 = vector.broadcast %cst_280 : f32 to vector<16x64xf32>
    %935 = arith.subf %934, %761 : vector<16x64xf32>
    %cst_281 = arith.constant 2.500000e+00 : f32
    %936 = vector.broadcast %cst_281 : f32 to vector<16x64xf32>
    %937 = arith.mulf %935, %936 : vector<16x64xf32>
    %938 = arith.mulf %937, %829 : vector<16x64xf32>
    %939 = arith.addf %933, %938 : vector<16x64xf32>
    %cst_282 = arith.constant -2.200000e+00 : f32
    %940 = vector.broadcast %cst_282 : f32 to vector<16x64xf32>
    %941 = arith.subf %761, %940 : vector<16x64xf32>
    %cst_283 = arith.constant 1.250000e+00 : f32
    %942 = vector.broadcast %cst_283 : f32 to vector<16x64xf32>
    %943 = arith.mulf %941, %942 : vector<16x64xf32>
    %944 = arith.mulf %943, %840 : vector<16x64xf32>
    %cst_284 = arith.constant -1.000000e+00 : f32
    %945 = vector.broadcast %cst_284 : f32 to vector<16x64xf32>
    %946 = arith.subf %945, %761 : vector<16x64xf32>
    %cst_285 = arith.constant 1.250000e+00 : f32
    %947 = vector.broadcast %cst_285 : f32 to vector<16x64xf32>
    %948 = arith.mulf %946, %947 : vector<16x64xf32>
    %949 = arith.mulf %948, %851 : vector<16x64xf32>
    %950 = arith.addf %944, %949 : vector<16x64xf32>
    %cst_286 = arith.constant -1.800000e+00 : f32
    %951 = vector.broadcast %cst_286 : f32 to vector<16x64xf32>
    %952 = arith.subf %761, %951 : vector<16x64xf32>
    %cst_287 = arith.constant 1.250000e+00 : f32
    %953 = vector.broadcast %cst_287 : f32 to vector<16x64xf32>
    %954 = arith.mulf %952, %953 : vector<16x64xf32>
    %955 = arith.mulf %954, %851 : vector<16x64xf32>
    %cst_288 = arith.constant -6.000000e-01 : f32
    %956 = vector.broadcast %cst_288 : f32 to vector<16x64xf32>
    %957 = arith.subf %956, %761 : vector<16x64xf32>
    %cst_289 = arith.constant 1.250000e+00 : f32
    %958 = vector.broadcast %cst_289 : f32 to vector<16x64xf32>
    %959 = arith.mulf %957, %958 : vector<16x64xf32>
    %960 = arith.mulf %959, %862 : vector<16x64xf32>
    %961 = arith.addf %955, %960 : vector<16x64xf32>
    %cst_290 = arith.constant -1.400000e+00 : f32
    %962 = vector.broadcast %cst_290 : f32 to vector<16x64xf32>
    %963 = arith.subf %761, %962 : vector<16x64xf32>
    %cst_291 = arith.constant 1.250000e+00 : f32
    %964 = vector.broadcast %cst_291 : f32 to vector<16x64xf32>
    %965 = arith.mulf %963, %964 : vector<16x64xf32>
    %966 = arith.mulf %965, %862 : vector<16x64xf32>
    %cst_292 = arith.constant -2.000000e-01 : f32
    %967 = vector.broadcast %cst_292 : f32 to vector<16x64xf32>
    %968 = arith.subf %967, %761 : vector<16x64xf32>
    %cst_293 = arith.constant 1.250000e+00 : f32
    %969 = vector.broadcast %cst_293 : f32 to vector<16x64xf32>
    %970 = arith.mulf %968, %969 : vector<16x64xf32>
    %971 = arith.mulf %970, %873 : vector<16x64xf32>
    %972 = arith.addf %966, %971 : vector<16x64xf32>
    %cst_294 = arith.constant -1.000000e+00 : f32
    %973 = vector.broadcast %cst_294 : f32 to vector<16x64xf32>
    %974 = arith.subf %761, %973 : vector<16x64xf32>
    %cst_295 = arith.constant 1.250000e+00 : f32
    %975 = vector.broadcast %cst_295 : f32 to vector<16x64xf32>
    %976 = arith.mulf %974, %975 : vector<16x64xf32>
    %977 = arith.mulf %976, %873 : vector<16x64xf32>
    %cst_296 = arith.constant 2.000000e-01 : f32
    %978 = vector.broadcast %cst_296 : f32 to vector<16x64xf32>
    %979 = arith.subf %978, %761 : vector<16x64xf32>
    %cst_297 = arith.constant 1.250000e+00 : f32
    %980 = vector.broadcast %cst_297 : f32 to vector<16x64xf32>
    %981 = arith.mulf %979, %980 : vector<16x64xf32>
    %982 = arith.mulf %981, %884 : vector<16x64xf32>
    %983 = arith.addf %977, %982 : vector<16x64xf32>
    %cst_298 = arith.constant -6.000000e-01 : f32
    %984 = vector.broadcast %cst_298 : f32 to vector<16x64xf32>
    %985 = arith.subf %761, %984 : vector<16x64xf32>
    %cst_299 = arith.constant 1.250000e+00 : f32
    %986 = vector.broadcast %cst_299 : f32 to vector<16x64xf32>
    %987 = arith.mulf %985, %986 : vector<16x64xf32>
    %988 = arith.mulf %987, %884 : vector<16x64xf32>
    %cst_300 = arith.constant 6.000000e-01 : f32
    %989 = vector.broadcast %cst_300 : f32 to vector<16x64xf32>
    %990 = arith.subf %989, %761 : vector<16x64xf32>
    %cst_301 = arith.constant 1.250000e+00 : f32
    %991 = vector.broadcast %cst_301 : f32 to vector<16x64xf32>
    %992 = arith.mulf %990, %991 : vector<16x64xf32>
    %993 = arith.mulf %992, %895 : vector<16x64xf32>
    %994 = arith.addf %988, %993 : vector<16x64xf32>
    %cst_302 = arith.constant -2.000000e-01 : f32
    %995 = vector.broadcast %cst_302 : f32 to vector<16x64xf32>
    %996 = arith.subf %761, %995 : vector<16x64xf32>
    %cst_303 = arith.constant 1.250000e+00 : f32
    %997 = vector.broadcast %cst_303 : f32 to vector<16x64xf32>
    %998 = arith.mulf %996, %997 : vector<16x64xf32>
    %999 = arith.mulf %998, %895 : vector<16x64xf32>
    %cst_304 = arith.constant 1.000000e+00 : f32
    %1000 = vector.broadcast %cst_304 : f32 to vector<16x64xf32>
    %1001 = arith.subf %1000, %761 : vector<16x64xf32>
    %cst_305 = arith.constant 1.250000e+00 : f32
    %1002 = vector.broadcast %cst_305 : f32 to vector<16x64xf32>
    %1003 = arith.mulf %1001, %1002 : vector<16x64xf32>
    %1004 = arith.mulf %1003, %906 : vector<16x64xf32>
    %1005 = arith.addf %999, %1004 : vector<16x64xf32>
    %cst_306 = arith.constant 2.000000e-01 : f32
    %1006 = vector.broadcast %cst_306 : f32 to vector<16x64xf32>
    %1007 = arith.subf %761, %1006 : vector<16x64xf32>
    %cst_307 = arith.constant 1.250000e+00 : f32
    %1008 = vector.broadcast %cst_307 : f32 to vector<16x64xf32>
    %1009 = arith.mulf %1007, %1008 : vector<16x64xf32>
    %1010 = arith.mulf %1009, %906 : vector<16x64xf32>
    %cst_308 = arith.constant 1.400000e+00 : f32
    %1011 = vector.broadcast %cst_308 : f32 to vector<16x64xf32>
    %1012 = arith.subf %1011, %761 : vector<16x64xf32>
    %cst_309 = arith.constant 1.250000e+00 : f32
    %1013 = vector.broadcast %cst_309 : f32 to vector<16x64xf32>
    %1014 = arith.mulf %1012, %1013 : vector<16x64xf32>
    %1015 = arith.mulf %1014, %917 : vector<16x64xf32>
    %1016 = arith.addf %1010, %1015 : vector<16x64xf32>
    %cst_310 = arith.constant 6.000000e-01 : f32
    %1017 = vector.broadcast %cst_310 : f32 to vector<16x64xf32>
    %1018 = arith.subf %761, %1017 : vector<16x64xf32>
    %cst_311 = arith.constant 1.250000e+00 : f32
    %1019 = vector.broadcast %cst_311 : f32 to vector<16x64xf32>
    %1020 = arith.mulf %1018, %1019 : vector<16x64xf32>
    %1021 = arith.mulf %1020, %917 : vector<16x64xf32>
    %cst_312 = arith.constant 1.800000e+00 : f32
    %1022 = vector.broadcast %cst_312 : f32 to vector<16x64xf32>
    %1023 = arith.subf %1022, %761 : vector<16x64xf32>
    %cst_313 = arith.constant 1.250000e+00 : f32
    %1024 = vector.broadcast %cst_313 : f32 to vector<16x64xf32>
    %1025 = arith.mulf %1023, %1024 : vector<16x64xf32>
    %1026 = arith.mulf %1025, %928 : vector<16x64xf32>
    %1027 = arith.addf %1021, %1026 : vector<16x64xf32>
    %cst_314 = arith.constant 1.000000e+00 : f32
    %1028 = vector.broadcast %cst_314 : f32 to vector<16x64xf32>
    %1029 = arith.subf %761, %1028 : vector<16x64xf32>
    %cst_315 = arith.constant 1.250000e+00 : f32
    %1030 = vector.broadcast %cst_315 : f32 to vector<16x64xf32>
    %1031 = arith.mulf %1029, %1030 : vector<16x64xf32>
    %1032 = arith.mulf %1031, %928 : vector<16x64xf32>
    %cst_316 = arith.constant 2.200000e+00 : f32
    %1033 = vector.broadcast %cst_316 : f32 to vector<16x64xf32>
    %1034 = arith.subf %1033, %761 : vector<16x64xf32>
    %cst_317 = arith.constant 1.250000e+00 : f32
    %1035 = vector.broadcast %cst_317 : f32 to vector<16x64xf32>
    %1036 = arith.mulf %1034, %1035 : vector<16x64xf32>
    %1037 = arith.mulf %1036, %939 : vector<16x64xf32>
    %1038 = arith.addf %1032, %1037 : vector<16x64xf32>
    %cst_318 = arith.constant -2.200000e+00 : f32
    %1039 = vector.broadcast %cst_318 : f32 to vector<16x64xf32>
    %1040 = arith.subf %761, %1039 : vector<16x64xf32>
    %cst_319 = arith.constant 0.833333313 : f32
    %1041 = vector.broadcast %cst_319 : f32 to vector<16x64xf32>
    %1042 = arith.mulf %1040, %1041 : vector<16x64xf32>
    %1043 = arith.mulf %1042, %950 : vector<16x64xf32>
    %cst_320 = arith.constant -6.000000e-01 : f32
    %1044 = vector.broadcast %cst_320 : f32 to vector<16x64xf32>
    %1045 = arith.subf %1044, %761 : vector<16x64xf32>
    %cst_321 = arith.constant 0.833333313 : f32
    %1046 = vector.broadcast %cst_321 : f32 to vector<16x64xf32>
    %1047 = arith.mulf %1045, %1046 : vector<16x64xf32>
    %1048 = arith.mulf %1047, %961 : vector<16x64xf32>
    %1049 = arith.addf %1043, %1048 : vector<16x64xf32>
    %cst_322 = arith.constant -1.800000e+00 : f32
    %1050 = vector.broadcast %cst_322 : f32 to vector<16x64xf32>
    %1051 = arith.subf %761, %1050 : vector<16x64xf32>
    %cst_323 = arith.constant 0.833333313 : f32
    %1052 = vector.broadcast %cst_323 : f32 to vector<16x64xf32>
    %1053 = arith.mulf %1051, %1052 : vector<16x64xf32>
    %1054 = arith.mulf %1053, %961 : vector<16x64xf32>
    %cst_324 = arith.constant -2.000000e-01 : f32
    %1055 = vector.broadcast %cst_324 : f32 to vector<16x64xf32>
    %1056 = arith.subf %1055, %761 : vector<16x64xf32>
    %cst_325 = arith.constant 0.833333313 : f32
    %1057 = vector.broadcast %cst_325 : f32 to vector<16x64xf32>
    %1058 = arith.mulf %1056, %1057 : vector<16x64xf32>
    %1059 = arith.mulf %1058, %972 : vector<16x64xf32>
    %1060 = arith.addf %1054, %1059 : vector<16x64xf32>
    %cst_326 = arith.constant -1.400000e+00 : f32
    %1061 = vector.broadcast %cst_326 : f32 to vector<16x64xf32>
    %1062 = arith.subf %761, %1061 : vector<16x64xf32>
    %cst_327 = arith.constant 0.833333313 : f32
    %1063 = vector.broadcast %cst_327 : f32 to vector<16x64xf32>
    %1064 = arith.mulf %1062, %1063 : vector<16x64xf32>
    %1065 = arith.mulf %1064, %972 : vector<16x64xf32>
    %cst_328 = arith.constant 2.000000e-01 : f32
    %1066 = vector.broadcast %cst_328 : f32 to vector<16x64xf32>
    %1067 = arith.subf %1066, %761 : vector<16x64xf32>
    %cst_329 = arith.constant 0.833333313 : f32
    %1068 = vector.broadcast %cst_329 : f32 to vector<16x64xf32>
    %1069 = arith.mulf %1067, %1068 : vector<16x64xf32>
    %1070 = arith.mulf %1069, %983 : vector<16x64xf32>
    %1071 = arith.addf %1065, %1070 : vector<16x64xf32>
    %cst_330 = arith.constant -1.000000e+00 : f32
    %1072 = vector.broadcast %cst_330 : f32 to vector<16x64xf32>
    %1073 = arith.subf %761, %1072 : vector<16x64xf32>
    %cst_331 = arith.constant 0.833333313 : f32
    %1074 = vector.broadcast %cst_331 : f32 to vector<16x64xf32>
    %1075 = arith.mulf %1073, %1074 : vector<16x64xf32>
    %1076 = arith.mulf %1075, %983 : vector<16x64xf32>
    %cst_332 = arith.constant 6.000000e-01 : f32
    %1077 = vector.broadcast %cst_332 : f32 to vector<16x64xf32>
    %1078 = arith.subf %1077, %761 : vector<16x64xf32>
    %cst_333 = arith.constant 0.833333313 : f32
    %1079 = vector.broadcast %cst_333 : f32 to vector<16x64xf32>
    %1080 = arith.mulf %1078, %1079 : vector<16x64xf32>
    %1081 = arith.mulf %1080, %994 : vector<16x64xf32>
    %1082 = arith.addf %1076, %1081 : vector<16x64xf32>
    %cst_334 = arith.constant -6.000000e-01 : f32
    %1083 = vector.broadcast %cst_334 : f32 to vector<16x64xf32>
    %1084 = arith.subf %761, %1083 : vector<16x64xf32>
    %cst_335 = arith.constant 0.833333313 : f32
    %1085 = vector.broadcast %cst_335 : f32 to vector<16x64xf32>
    %1086 = arith.mulf %1084, %1085 : vector<16x64xf32>
    %1087 = arith.mulf %1086, %994 : vector<16x64xf32>
    %cst_336 = arith.constant 1.000000e+00 : f32
    %1088 = vector.broadcast %cst_336 : f32 to vector<16x64xf32>
    %1089 = arith.subf %1088, %761 : vector<16x64xf32>
    %cst_337 = arith.constant 0.833333313 : f32
    %1090 = vector.broadcast %cst_337 : f32 to vector<16x64xf32>
    %1091 = arith.mulf %1089, %1090 : vector<16x64xf32>
    %1092 = arith.mulf %1091, %1005 : vector<16x64xf32>
    %1093 = arith.addf %1087, %1092 : vector<16x64xf32>
    %cst_338 = arith.constant -2.000000e-01 : f32
    %1094 = vector.broadcast %cst_338 : f32 to vector<16x64xf32>
    %1095 = arith.subf %761, %1094 : vector<16x64xf32>
    %cst_339 = arith.constant 0.833333313 : f32
    %1096 = vector.broadcast %cst_339 : f32 to vector<16x64xf32>
    %1097 = arith.mulf %1095, %1096 : vector<16x64xf32>
    %1098 = arith.mulf %1097, %1005 : vector<16x64xf32>
    %cst_340 = arith.constant 1.400000e+00 : f32
    %1099 = vector.broadcast %cst_340 : f32 to vector<16x64xf32>
    %1100 = arith.subf %1099, %761 : vector<16x64xf32>
    %cst_341 = arith.constant 0.833333313 : f32
    %1101 = vector.broadcast %cst_341 : f32 to vector<16x64xf32>
    %1102 = arith.mulf %1100, %1101 : vector<16x64xf32>
    %1103 = arith.mulf %1102, %1016 : vector<16x64xf32>
    %1104 = arith.addf %1098, %1103 : vector<16x64xf32>
    %cst_342 = arith.constant 2.000000e-01 : f32
    %1105 = vector.broadcast %cst_342 : f32 to vector<16x64xf32>
    %1106 = arith.subf %761, %1105 : vector<16x64xf32>
    %cst_343 = arith.constant 0.833333313 : f32
    %1107 = vector.broadcast %cst_343 : f32 to vector<16x64xf32>
    %1108 = arith.mulf %1106, %1107 : vector<16x64xf32>
    %1109 = arith.mulf %1108, %1016 : vector<16x64xf32>
    %cst_344 = arith.constant 1.800000e+00 : f32
    %1110 = vector.broadcast %cst_344 : f32 to vector<16x64xf32>
    %1111 = arith.subf %1110, %761 : vector<16x64xf32>
    %cst_345 = arith.constant 0.833333313 : f32
    %1112 = vector.broadcast %cst_345 : f32 to vector<16x64xf32>
    %1113 = arith.mulf %1111, %1112 : vector<16x64xf32>
    %1114 = arith.mulf %1113, %1027 : vector<16x64xf32>
    %1115 = arith.addf %1109, %1114 : vector<16x64xf32>
    %cst_346 = arith.constant 6.000000e-01 : f32
    %1116 = vector.broadcast %cst_346 : f32 to vector<16x64xf32>
    %1117 = arith.subf %761, %1116 : vector<16x64xf32>
    %cst_347 = arith.constant 0.833333313 : f32
    %1118 = vector.broadcast %cst_347 : f32 to vector<16x64xf32>
    %1119 = arith.mulf %1117, %1118 : vector<16x64xf32>
    %1120 = arith.mulf %1119, %1027 : vector<16x64xf32>
    %cst_348 = arith.constant 2.200000e+00 : f32
    %1121 = vector.broadcast %cst_348 : f32 to vector<16x64xf32>
    %1122 = arith.subf %1121, %761 : vector<16x64xf32>
    %cst_349 = arith.constant 0.833333313 : f32
    %1123 = vector.broadcast %cst_349 : f32 to vector<16x64xf32>
    %1124 = arith.mulf %1122, %1123 : vector<16x64xf32>
    %1125 = arith.mulf %1124, %1038 : vector<16x64xf32>
    %1126 = arith.addf %1120, %1125 : vector<16x64xf32>
    %1127 = tpu.concatenate %770, %1049, %1060, %1071, %1082, %1093, %1104, %1115, %1126 in 1 : vector<16x64xf32>, vector<16x64xf32>, vector<16x64xf32>, vector<16x64xf32>, vector<16x64xf32>, vector<16x64xf32>, vector<16x64xf32>, vector<16x64xf32>, vector<16x64xf32> -> vector<16x576xf32>
    %cst_350 = arith.constant dense<0.000000e+00> : vector<16x64xf32>
    %1128 = tpu.matmul %1127, %763, %cst_350 {dimension_numbers = #tpu.dot_dimension_numbers<[1], [0], [0], [1], [0, 0, 1, 1], [], []>} : vector<16x576xf32>, vector<576x64xf32>, vector<16x64xf32> -> vector<16x64xf32>
    %1129 = arith.addf %761, %1128 : vector<16x64xf32>
    %cst_351 = arith.constant dense<0.000000e+00> : vector<16xf32>
    %1130 = vector.multi_reduction <add>, %1129, %cst_351 [1] : vector<16x64xf32> to vector<16xf32>
    %1131 = vector.shape_cast %1130 : vector<16xf32> to vector<16x1xf32>
    %cst_352 = arith.constant 6.400000e+01 : f32
    %1132 = vector.broadcast %cst_352 : f32 to vector<16x1xf32>
    %1133 = arith.divf %1131, %1132 : vector<16x1xf32>
    %1134 = vector.broadcast %1133 : vector<16x1xf32> to vector<16x64xf32>
    %1135 = arith.subf %1129, %1134 : vector<16x64xf32>
    %1136 = arith.mulf %1135, %1135 : vector<16x64xf32>
    %cst_353 = arith.constant dense<0.000000e+00> : vector<16xf32>
    %1137 = vector.multi_reduction <add>, %1136, %cst_353 [1] : vector<16x64xf32> to vector<16xf32>
    %1138 = vector.shape_cast %1137 : vector<16xf32> to vector<16x1xf32>
    %cst_354 = arith.constant 6.400000e+01 : f32
    %1139 = vector.broadcast %cst_354 : f32 to vector<16x1xf32>
    %1140 = arith.divf %1138, %1139 : vector<16x1xf32>
    %cst_355 = arith.constant 9.99999974E-6 : f32
    %1141 = vector.broadcast %cst_355 : f32 to vector<16x1xf32>
    %1142 = arith.addf %1140, %1141 : vector<16x1xf32>
    %1143 = math.rsqrt %1142 : vector<16x1xf32>
    %1144 = vector.broadcast %1143 : vector<16x1xf32> to vector<16x64xf32>
    %1145 = arith.mulf %1135, %1144 : vector<16x64xf32>
    %1146 = vector.broadcast %597 : vector<1x64xf32> to vector<16x64xf32>
    %1147 = arith.mulf %1145, %1146 : vector<16x64xf32>
    %1148 = vector.broadcast %598 : vector<1x64xf32> to vector<16x64xf32>
    %1149 = arith.addf %1147, %1148 : vector<16x64xf32>
    %1150 = tpu.iota {dimensions = array<i32: 0>} : vector<2x16xi32>
    %1151 = tpu.iota {dimensions = array<i32: 1>} : vector<2x16xi32>
    %c3_i32_356 = arith.constant 3 : i32
    %1152 = vector.broadcast %c3_i32_356 : i32 to vector<2x16xi32>
    %1153 = arith.shrsi %1151, %1152 : vector<2x16xi32>
    %1154 = arith.cmpi eq, %1153, %1150 : vector<2x16xi32>
    %1155 = arith.extui %1154 : vector<2x16xi1> to vector<2x16xi32>
    %1156 = arith.sitofp %1155 : vector<2x16xi32> to vector<2x16xf32>
    %cst_357 = arith.constant 1.250000e-01 : f32
    %1157 = vector.broadcast %cst_357 : f32 to vector<2x16xf32>
    %1158 = arith.mulf %1156, %1157 : vector<2x16xf32>
    %cst_358 = arith.constant dense<0.000000e+00> : vector<2x64xf32>
    %1159 = tpu.matmul %1158, %1149, %cst_358 {dimension_numbers = #tpu.dot_dimension_numbers<[1], [0], [0], [1], [0, 0, 1, 1], [], []>} : vector<2x16xf32>, vector<16x64xf32>, vector<2x64xf32> -> vector<2x64xf32>
    %1160 = vector.extract_strided_slice %0 {offsets = [2, 0], sizes = [2, 64], strides = [1, 1]} : vector<20x64xf32> to vector<2x64xf32>
    %1161 = vector.extract_strided_slice %0 {offsets = [1, 0], sizes = [1, 2], strides = [1, 1]} : vector<20x64xf32> to vector<1x2xf32>
    "tpu.trace_start"() <{level = 10 : i32, message = "bd,cd->bc"}> : () -> ()
    %cst_359 = arith.constant dense<0.000000e+00> : vector<2x2xf32>
    %1162 = tpu.matmul %1159, %1160, %cst_359 {dimension_numbers = #tpu.dot_dimension_numbers<[1], [1], [0], [0], [0, 0, 1, 0], [], []>} : vector<2x64xf32>, vector<2x64xf32>, vector<2x2xf32> -> vector<2x2xf32>
    "tpu.trace_stop"() : () -> ()
    %1163 = vector.broadcast %1161 : vector<1x2xf32> to vector<2x2xf32>
    %1164 = arith.addf %1162, %1163 : vector<2x2xf32>
    %c0_360 = arith.constant 0 : index
    %c0_361 = arith.constant 0 : index
    %1165 = vector.load %arg6[%c0_360, %c0_361] : memref<2x2xf32, #tpu.memory_space<vmem>>, vector<2x2xf32>
    tpu.vector_store %arg6[%c0_360, %c0_361], %1164 {strides = array<i32>} : memref<2x2xf32, #tpu.memory_space<vmem>>, vector<2x2xf32>,
    return
  }
}

</mosaic_0001>

<bundles_post_ra>
// kernel: text_disease_predictor_forward.1
= control target key start
LH: loop header
LB: loop body
LE: loop exit
PB: predicated region body
PF: predicated region fallthrough
CT: control target
= control target key end

     0   :  { %v7841_v2 = vmov 0   ;;  %s9957_s0 = inlined_call_operand.vmem [shape: s32[16,1], index: 0, kind: input, shape index: {}]   ;;  %s9958_s1 = inlined_call_operand.vmem [shape: f32[128,128], index: 1, kind: input, shape index: {}]   ;;  %s9959_s2 = inlined_call_operand.vmem [shape: f32[128,64], index: 2, kind: input, shape index: {}]   ;;  %s9960_s3 = inlined_call_operand.vmem [shape: f32[2,64,256], index: 3, kind: input, shape index: {}]   ;;  %s9961_s4 = inlined_call_operand.vmem [shape: f32[2,576,64], index: 4, kind: input, shape index: {}]   ;;  %s9962_s5 = inlined_call_operand.vmem [shape: f32[20,64], index: 5, kind: input, shape index: {}]   ;;  %s9963_s6 = inlined_call_operand.hbm [shape: f32[2,2], index: 6, kind: output, shape index: {}]  }
   0x1   :  { %v27_v0 = vld [vmem:[%s9957_s0] sm:$0xff]  ;;  %7418 = vset.pattern.permute.xlu0 %v7841_v2  ;;  %v44_v3 = vld [vmem:[%s9958_s1 + $0x8] sm:$0xff]  ;;  %v45_v4 = vld [vmem:[%s9958_s1 + $0x10] sm:$0xff] }
   0x2   :  { %v43_v1 = vld [vmem:[%s9958_s1] sm:$0xff]  ;;  %v46_v5 = vld [vmem:[%s9958_s1 + $0x18] sm:$0xff]  ;;  %32 = vperm.xlu0 %7418, %v27_v0   ;;  %v28_v8 = vld [vmem:[%s9957_s0 + $0x8] sm:$0xff] }
   0x3   :  { %v6945_v6 = vpack.c.bf16 %v44_v3, %v43_v1  ;;  %v6949_v7 = vpack.c.bf16 %v46_v5, %v45_v4  ;;  %v47_v9 = vld [vmem:[%s9958_s1 + $0x20] sm:$0xff]  ;;  %v48_v10 = vld [vmem:[%s9958_s1 + $0x28] sm:$0xff]  ;;  %v49_v12 = vld [vmem:[%s9958_s1 + $0x30] sm:$0xff] }
   0x4   :  { %v6953_v11 = vpack.c.bf16 %v48_v10, %v47_v9  ;;  %v50_v13 = vld [vmem:[%s9958_s1 + $0x38] sm:$0xff] }
   0x5   :  { %6946 = vmatprep.subr.bf16.mxu0 %v6945_v6 }
   0x6   :  { %6948 = vmatpush3.bf16.msra.mxu0 %v6945_v6  ;;  %35 = vperm.xlu0 %7418, %v28_v8  }
   0x7   :  { %6950 = vmatprep.subr.bf16.mxu0 %v6949_v7 }
   0x8   :  { %11 = vsyncpa [#allocation3], 0  ;;  %v134_v14 = vld [vmem:[%s9959_s2] sm:$0xff]  ;;  %v135_v15 = vld [vmem:[%s9959_s2 + $0x8] sm:$0xff]  ;;  %v6957_v22 = vpack.c.bf16 %v50_v13, %v49_v12  ;;  %v29_v51 = vlaneseq  ;;  %v7842_v54 = vmov 1.0   ;;  %s7844_s19 = smov 64  }
   0x9   :  { %v136_v16 = vld [vmem:[%s9959_s2 + $0x10] sm:$0xff]  ;;  %v6977_v17 = vpack.c.bf16 %v135_v15, %v134_v14  ;;  %v137_v18 = vld [vmem:[%s9959_s2 + $0x18] sm:$0xff]  ;;  %v138_v20 = vld [vmem:[%s9959_s2 + $0x20] sm:$0xff]  ;;  %vm255_vm2 = vcmask 523264   ;;  %vm367_vm3 = vcmask 64512   ;;  %vm453_vm7 = vcmask 130048  }
   0xa   :  { %6952 = vmatpush3.bf16.msra.mxu0 %v6949_v7  ;;  %v6981_v19 = vpack.c.bf16 %v137_v18, %v136_v16  ;;  %v139_v21 = vld [vmem:[%s9959_s2 + $0x28] sm:$0xff]  ;;  %v51_v23 = vld [vmem:[%s9958_s1 + $0x40] sm:$0xff]  ;;  %v140_v26 = vld [vmem:[%s9959_s2 + $0x30] sm:$0xff]  ;;  %v8000_v52 = vand.u32 127, %v29_v51  ;;  %v9968_v18 = vmov 0.0   ;;  %s7846_s20 = smov 56  }
   0xb   :  { %6954 = vmatprep.subr.bf16.mxu0 %v6953_v11  ;;  %6978 = vmatprep.subr.bf16.mxu1 %v6977_v17  ;;  %v52_v24 = vld [vmem:[%s9958_s1 + $0x48] sm:$0xff]  ;;  %v6985_v25 = vpack.c.bf16 %v139_v21, %v138_v20  ;;  %v141_v27 = vld [vmem:[%s9959_s2 + $0x38] sm:$0xff]  ;;  %v53_v29 = vld [vmem:[%s9958_s1 + $0x50] sm:$0xff]  ;;  %s7847_s21 = smov 48   ;;  %s7848_s22 = smov 120   ;;  %vm2019_vm8 = vcmask 195584  }
   0xc   :  { %6980 = vmatpush3.bf16.msra.mxu1 %v6977_v17  ;;  %v6961_v28 = vpack.c.bf16 %v52_v24, %v51_v23  ;;  %v54_v30 = vld [vmem:[%s9958_s1 + $0x58] sm:$0xff]  ;;  %v6989_v31 = vpack.c.bf16 %v141_v27, %v140_v26  ;;  %v142_v32 = vld [vmem:[%s9959_s2 + $0x40] sm:$0xff]  ;;  %v143_v33 = vld [vmem:[%s9959_s2 + $0x48] sm:$0xff]  ;;  %s7849_s23 = smov 112   ;;  %s7850_s24 = smov 40   ;;  %vm2022_vm9 = vcmask 261120  }
   0xd   :  { %6982 = vmatprep.subr.bf16.mxu1 %v6981_v19  ;;  %v6965_v34 = vpack.c.bf16 %v54_v30, %v53_v29  ;;  %v55_v35 = vld [vmem:[%s9958_s1 + $0x60] sm:$0xff]  ;;  %v56_v36 = vld [vmem:[%s9958_s1 + $0x68] sm:$0xff]  ;;  %v6993_v37 = vpack.c.bf16 %v143_v33, %v142_v32  ;;  %v144_v38 = vld [vmem:[%s9959_s2 + $0x50] sm:$0xff]  ;;  %s7851_s25 = smov 104   ;;  %s7852_s26 = smov 32   ;;  %vm2025_vm10 = vcmask 326656  }
   0xe   :  { %6956 = vmatpush3.bf16.msra.mxu0 %v6953_v11  ;;  %v145_v39 = vld [vmem:[%s9959_s2 + $0x58] sm:$0xff]  ;;  %v6969_v40 = vpack.c.bf16 %v56_v36, %v55_v35  ;;  %v57_v41 = vld [vmem:[%s9958_s1 + $0x70] sm:$0xff]  ;;  %v146_v44 = vld [vmem:[%s9959_s2 + $0x60] sm:$0xff]  ;;  %s7853_s27 = smov 96   ;;  %s7854_s28 = smov 24   ;;  %vm2028_vm11 = vcmask 392192  }
   0xf   :  { %6958 = vmatprep.subr.bf16.mxu0 %v6957_v22  ;;  %v58_v42 = vld [vmem:[%s9958_s1 + $0x78] sm:$0xff]  ;;  %v6997_v43 = vpack.c.bf16 %v145_v39, %v144_v38  ;;  %v147_v45 = vld [vmem:[%s9959_s2 + $0x68] sm:$0xff]  ;;  %v148_v48 = vld [vmem:[%s9959_s2 + $0x70] sm:$0xff]  ;;  %s7855_s29 = smov 88   ;;  %s7856_s30 = smov 16   ;;  %vm2031_vm12 = vcmask 457728  }
  0x10   :  { %6984 = vmatpush3.bf16.msra.mxu1 %v6981_v19  ;;  %v6973_v46 = vpack.c.bf16 %v58_v42, %v57_v41  ;;  %v7001_v47 = vpack.c.bf16 %v147_v45, %v146_v44  ;;  %v149_v49 = vld [vmem:[%s9959_s2 + $0x78] sm:$0xff]  ;;  %v240_v56 = vld [vmem:[%s9960_s3 + $0x8] sm:$0xff]  ;;  %v239_v58 = vld [vmem:[%s9960_s3] sm:$0xff]  ;;  %v8068_v19 = vshrl.u32 %v29_v51, 7  ;;  %s7857_s7 = smov 80   ;;  %s7858_s8 = smov 8  }
  0x11   :  { %6986 = vmatprep.subr.bf16.mxu1 %v6985_v25  ;;  %v7005_v50 = vpack.c.bf16 %v149_v49, %v148_v48  ;;  %v242_v57 = vld [vmem:[%s9960_s3 + $0x18] sm:$0xff]  ;;  %v241_v60 = vld [vmem:[%s9960_s3 + $0x10] sm:$0xff]  ;;  %v244_v61 = vld [vmem:[%s9960_s3 + $0x28] sm:$0xff]  ;;  %s7859_s9 = smov 72  }
  0x12   :  { %6960 = vmatpush3.bf16.msra.mxu0 %v6957_v22  ;;  %v7009_v59 = vpack.c.bf16 %v242_v57, %v240_v56  ;;  %v8022_v62 = vld [vmem:[%s9960_s3 + $0x38] sm:$0xff]  ;;  %v7011_v63 = vpack.c.bf16 %v241_v60, %v239_v58  ;;  %v243_v1 = vld [vmem:[%s9960_s3 + $0x20] sm:$0xff]  ;;  %v245_v2 = vld [vmem:[%s9960_s3 + $0x30] sm:$0xff]  ;;  %9991 = vst [vmem:[#allocation5_spill] sm:$0xff] %v8068_v19  ;;  %v9967_v20 = vsub.s32 5, %v8068_v19  ;;  %v8078_v23 = vsub.s32 0, %v8068_v19 }
  0x13   :  { %6962 = vmatprep.subr.bf16.mxu0 %v6961_v28  ;;  %v7013_v0 = vpack.c.bf16 %v8022_v62, %v244_v61  ;;  %v8034_v3 = vld [vmem:[%s9960_s3 + $0x48] sm:$0xff]  ;;  %v8039_v4 = vld [vmem:[%s9960_s3 + $0x58] sm:$0xff]  ;;  %v7015_v5 = vpack.c.bf16 %v245_v2, %v243_v1  ;;  %v247_v7 = vld [vmem:[%s9960_s3 + $0x40] sm:$0xff]  ;;  %v9966_v29 = vsub.s32 4, %v8068_v19  ;;  %v232_v56 = vshra.s32 %v8068_v19, 3 }
  0x14   :  { %6988 = vmatpush3.bf16.msra.mxu1 %v6985_v25  ;;  %v7017_v6 = vpack.c.bf16 %v8039_v4, %v8034_v3  ;;  %v249_v8 = vld [vmem:[%s9960_s3 + $0x50] sm:$0xff]  ;;  %v8052_v12 = vld [vmem:[%s9960_s3 + $0x68] sm:$0xff]  ;;  %v8057_v13 = vld [vmem:[%s9960_s3 + $0x78] sm:$0xff]  ;;  %9992 = vst [vmem:[#allocation6_spill] sm:$0xff] %v8078_v23  ;;  %v7845_v57 = vmov -1e+30  }
  0x15   :  { %6990 = vmatprep.subr.bf16.mxu1 %v6989_v31  ;;  %v7019_v9 = vpack.c.bf16 %v249_v8, %v247_v7  ;;  %v7021_v14 = vpack.c.bf16 %v8057_v13, %v8052_v12  ;;  %v251_v15 = vld [vmem:[%s9960_s3 + $0x60] sm:$0xff]  ;;  %v253_v16 = vld [vmem:[%s9960_s3 + $0x70] sm:$0xff]  ;;  %vm8110_vm4 = vmpackc.low %vm367_vm3, %vm367_vm3 }
  0x16   :  { %6964 = vmatpush3.bf16.msra.mxu0 %v6961_v28  ;;  %v7023_v17 = vpack.c.bf16 %v253_v16, %v251_v15  ;;  %v24_v21 = vld [vmem:[%s9962_s5] sm:$0xff] }
  0x17   :  { %6966 = vmatprep.subr.bf16.mxu0 %v6965_v34  ;;  %v348_v22 = vrot.slane %v24_v21, %v9967_v20  ;;  %v153_v24 = vrot.slane %v24_v21, %v8078_v23  ;;  %v342_v30 = vrot.slane %v24_v21, %v9966_v29 }
  0x18   :  { %6992 = vmatpush3.bf16.msra.mxu1 %v6989_v31  ;;  %v9965_v31 = vsub.s32 6, %v8068_v19 }
  0x19   :  { %6994 = vmatprep.subr.bf16.mxu1 %v6993_v37  ;;  %350 = vrot.lane.b32.xlu1 %v348_v22, %s7844_s19 }
  0x1a   :  { %6968 = vmatpush3.bf16.msra.mxu0 %v6965_v34  ;;  %v358_v36 = vrot.slane %v24_v21, %v9965_v31 }
  0x1b   :  { %6970 = vmatprep.subr.bf16.mxu0 %v6969_v40 }
  0x1c   :  { %6996 = vmatpush3.bf16.msra.mxu1 %v6993_v37 }
  0x1d   :  { %6998 = vmatprep.subr.bf16.mxu1 %v6997_v43 }
  0x1e   :  { %6972 = vmatpush3.bf16.msra.mxu0 %v6969_v40 }
  0x1f   :  { %6974 = vmatprep.subr.bf16.mxu0 %v6973_v46 }
  0x20   :  { %7000 = vmatpush3.bf16.msra.mxu1 %v6997_v43 }
  0x21   :  { %7002 = vmatprep.subr.bf16.mxu1 %v7001_v47 }
  0x22   :  { %6976 = vmatpush3.bf16.msra.mxu0 %v6973_v46 }
  0x23   :  { %7010 = vmatprep.subr.bf16.mxu0 %v7009_v59 }
  0x24   :  { %7004 = vmatpush3.bf16.msra.mxu1 %v7001_v47 }
  0x25   :  { %7006 = vmatprep.subr.bf16.mxu1 %v7005_v50 }
  0x28   :  { %7008 = vmatpush3.bf16.msra.mxu1 %v7005_v50  ;;  %v9993_v50 = vmov 0 }
  0x29   :  { %v9994_v50 = vsel %vm8110_vm4, 4294967295, %v9993_v50 }
  0x2a   :  { %9995 = vst [vmem:[#allocation7_spill] sm:$0xff] %v9994_v50 }
  0x81   :  { %v33_v53 = vpop.permute.xlu0 %32 }
  0x82   :  { %vm37_vm0 = vcmp.eq.s32.totalorder %v8000_v52, %v33_v53  ;;  %v231_v53 = vadd.s32 8, %v8068_v19 }
  0x83   :  { %6595 = vmatprep.mubr.msk.f32.mxu0 %vm37_vm0, %v7842_v54 }
  0x85   :  { %v36_v55 = vpop.permute.xlu0 %35 }
  0x86   :  { %vm38_vm1 = vcmp.eq.s32.totalorder %v8000_v52, %v36_v55  ;;  %v8122_v55 = vshra.s32 %v8000_v52, 3 }
  0x87   :  { %6596 = vmatmul.mubr.msk.f32.vlgmr.msra.gmra.mrb[0].mxu0 %vm38_vm1, %v7842_v54  ;;  %v233_v54 = vshra.s32 %v231_v53, 3 }
  0x88   :  { %7012 = vmatpush1.bf16.msra.mxu0 %v7011_v63  ;;  %326 = vmatprep.mubr.f32.mxu0 %v9968_v18  ;;  %9996 = vst [vmem:[#allocation8_spill] sm:$0xff] %v8122_v55  ;;  %vm235_vm6 = vcmp.eq.s32.totalorder %v232_v56, %v8122_v55 }
  0x89   :  { %7014 = vmatprep.subr.bf16.mxu0 %v7013_v0  ;;  %vm236_vm5 = vcmp.eq.s32.totalorder %v233_v54, %v8122_v55  ;;  %v8129_v59 = vsel %vm235_vm6, 0.0, %v7845_v57 }
  0x8a   :  { %v8127_v58 = vsel %vm236_vm5, 0.0, %v7845_v57  ;;  %9998 = vst [vmem:[#allocation10_spill] sm:$0xff] %v8129_v59 }
  0x8b   :  { %v351_v35 = vpop.permute.xlu1 %350  ;;  %9997 = vst [vmem:[#allocation9_spill] sm:$0xff] %v8127_v58 }
  0x8c   :  { %7016 = vmatpush1.bf16.msra.mxu0 %v7015_v5 }
  0x8d   :  { %7018 = vmatprep.subr.bf16.mxu0 %v7017_v6 }
  0x90   :  { %7020 = vmatpush1.bf16.msra.mxu0 %v7019_v9 }
  0x91   :  { %7022 = vmatprep.subr.bf16.mxu0 %v7021_v14 }
  0x94   :  { %7024 = vmatpush1.bf16.msra.mxu0 %v7023_v17 }
 0x15a   :  { %v6597_v10 = vpop.f32.mrb[0].mxu0 }
 0x15b   :  { %v125_v11 = vpop.f32.mrb[1].mxu0 }
 0x15c   :  { %6630 = vmatprep.mubr.f32.mxu1 %v125_v11 }
 0x15d   :  { %6631 = vmatmul.mubr.f32.vlgmr.msra.gmra.mrb[0].mxu1 %v6597_v10 }
 0x230   :  { %v6632_v25 = vpop.f32.mrb[0].mxu1 }
 0x231   :  { %v220_v26 = vpop.f32.mrb[1].mxu1  ;;  %v8086_v28 = vadd.f32 %v6632_v25, %v153_v24 }
 0x232   :  { %v8081_v27 = vadd.f32 %v220_v26, %v153_v24 }
 0x234   :  { %5914 = vmatmul.mubr.msk.f32.vlgmr.msra.gmra.mrb[2].mxu0 %vm255_vm2, %v8081_v27 }
 0x235   :  { %332 = vmatprep.mubr.f32.mxu0 %v9968_v18 }
 0x238   :  { %5915 = vmatmul.mubr.msk.f32.gmra.mrb[4].mxu0 %vm255_vm2, %v8086_v28 }
 0x307   :  { %v328_v32 = vpop.f32.mrb[2].mxu0 }
 0x308   :  { %v8094_v33 = vadd.f32 %v342_v30, %v328_v32  ;;  %v330_v34 = vpop.f32.mrb[3].mxu0  ;;  %v353_v38 = vadd.f32 %v351_v35, %v328_v32 }
 0x309   :  { %v359_v42 = vadd.f32 %v358_v36, %v330_v34 }
 0x30a   :  { %6637 = vmatprep.mubr.msk.f32.mxu1 %vm367_vm3, %v8094_v33 }
 0x30b   :  { %v334_v37 = vpop.f32.mrb[4].mxu0 }
 0x30c   :  { %v8100_v39 = vadd.f32 %v342_v30, %v334_v37  ;;  %v354_v40 = vadd.f32 %v351_v35, %v334_v37  ;;  %v336_v41 = vpop.f32.mrb[5].mxu0 }
 0x30d   :  { %v360_v43 = vadd.f32 %v358_v36, %v336_v41 }
 0x30e   :  { %v8102_v44 = vpack.i.bf16 %v354_v40, %v353_v38 }
 0x30f   :  { %v7031_v45 = vpack.c.bf16 %v360_v43, %v359_v42  ;;  %v8104_v46 = vpack.i.bf16 %v360_v43, %v359_v42 }
 0x310   :  { %7420 = vrot.lane.b32.xlu1 %v8102_v44, %s7844_s19 }
 0x382   :  { %v7421_v47 = vpop.permute.xlu1 %7420 }
 0x383   :  { %v7423_v48 = vunpack.i.h.bf16 %v7421_v47  ;;  %v7422_v49 = vunpack.i.l.bf16 %v7421_v47 }
 0x385   :  { %v7025_v51 = vpack.c.bf16 %v7423_v48, %v7422_v49 }
 0x387   :  { %7027 = vmatprep.subr.msk.bf16.mxu1 %vm8110_vm4, %v7025_v51 }
 0x388   :  { %7030 = vmatpush3.bf16.xpose.msk.msra.mxu1 %vm8110_vm4, %v7025_v51 }
 0x389   :  { %7032 = vmatprep.subr.bf16.mxu1 %v7031_v45 }
 0x38f   :  { %6638 = vmatmul.mubr.msk.f32.vlgmr.msra.gmra.mrb[2].mxu1 %vm367_vm3, %v8100_v39 }
 0x390   :  { %7034 = vmatpush3.bf16.msra.mxu1 %v7031_v45 }
 0x462   :  { %v6639_v60 = vpop.f32.mrb[2].mxu1 }
 0x463   :  { %v450_v61 = vadd.f32 %v6639_v60, %v8127_v58  ;;  %v444_v63 = vpop.f32.mrb[3].mxu1 }
 0x464   :  { %v445_v0 = vadd.f32 %v444_v63, %v8129_v59 }
 0x465   :  { %v457_v52 = vsel %vm453_vm7, %v450_v61, -inf }
 0x466   :  { %458 = vmax.xlane.f32.xlu1 %v457_v52  ;;  %v454_v1 = vsel %vm453_vm7, %v445_v0, -inf }
 0x467   :  { %455 = vmax.xlane.f32.xlu0 %v454_v1 }
 0x477   :  { %7425 = vrot.lane.b32.xlu1 %v8102_v44, %s7846_s20 }
 0x47b   :  { %7430 = vrot.lane.b32.xlu1 %v8102_v44, %s7847_s21 }
 0x47f   :  { %559 = vrot.lane.b32.xlu1 %v8100_v39, %s7848_s22 }
 0x483   :  { %761 = vrot.lane.b32.xlu1 %v8100_v39, %s7849_s23 }
 0x4f3   :  { %v459_v2 = vpop.xlane.xlu1 %458 }
 0x4f4   :  { %v461_v5 = vsub.f32 %v450_v61, %v459_v2  ;;  %v456_v6 = vpop.xlane.xlu0 %455 }
 0x4f5   :  { %v460_v7 = vsub.f32 %v445_v0, %v456_v6 }
 0x4f6   :  { %v464_v8 = vmul.f32 1.442695, %v461_v5 }
 0x4f7   :  { %v462_v9 = vmul.f32 1.442695, %v460_v7  ;;  %v7426_v10 = vpop.permute.xlu1 %7425 }
 0x4f8   :  { %v7428_v11 = vunpack.i.h.bf16 %v7426_v10  ;;  %v7427_v14 = vunpack.i.l.bf16 %v7426_v10 }
 0x4f9   :  { %7649 = vpow2.f32 %v462_v9 }
 0x4fa   :  { %v7035_v15 = vpack.c.bf16 %v7428_v11, %v7427_v14  ;;  %7651 = vpow2.f32 %v464_v8 }
 0x4fb   :  { %v7431_v30 = vpop.permute.xlu1 %7430 }
 0x4fc   :  { %7037 = vmatprep.subr.msk.bf16.mxu1 %vm8110_vm4, %v7035_v15  ;;  %v7433_v34 = vunpack.i.h.bf16 %v7431_v30  ;;  %v7432_v35 = vunpack.i.l.bf16 %v7431_v30 }
 0x4fe   :  { %v7045_v38 = vpack.c.bf16 %v7433_v34, %v7432_v35 }
 0x4ff   :  { %v560_v41 = vpop.permute.xlu1 %559 }
 0x503   :  { %v7650_v16 = vpop.eup %7649  ;;  %v762_v43 = vpop.permute.xlu1 %761 }
 0x504   :  { %v466_v17 = vsel %vm453_vm7, %v7650_v16, 0.0  ;;  %v7652_v21 = vpop.eup %7651 }
 0x505   :  { %467 = vadd.xlane.f32.xlu0 %v466_v17  ;;  %v469_v22 = vsel %vm453_vm7, %v7652_v21, 0.0 }
 0x509   :  { %470 = vadd.xlane.f32.xlu0 %v469_v22 }
 0x51f   :  { %557 = vrot.lane.b32.xlu0 %v8094_v33, %s7848_s22 }
 0x523   :  { %759 = vrot.lane.b32.xlu0 %v8094_v33, %s7849_s23 }
 0x592   :  { %v468_v24 = vpop.xlane.xlu0 %467 }
 0x593   :  { %7653 = vrcp.f32 %v468_v24 }
 0x596   :  { %v471_v25 = vpop.xlane.xlu0 %470 }
 0x597   :  { %7655 = vrcp.f32 %v471_v25 }
 0x59a   :  { %v558_v40 = vpop.permute.xlu0 %557 }
 0x59d   :  { %v7654_v26 = vpop.eup %7653 }
 0x59e   :  { %v474_v32 = vmul.f32 %v7654_v26, %v7650_v16  ;;  %v760_v42 = vpop.permute.xlu0 %759 }
 0x5a0   :  { %6644 = vmatprep.mubr.msk.f32.mxu1 %vm453_vm7, %v474_v32 }
 0x5a1   :  { %v7656_v36 = vpop.eup %7655 }
 0x5a2   :  { %v475_v37 = vmul.f32 %v7656_v36, %v7652_v21 }
 0x5a4   :  { %6645 = vmatmul.mubr.msk.f32.vlgmr.msra.gmra.mrb[4].mxu1 %vm453_vm7, %v475_v37 }
 0x5a5   :  { %7040 = vmatpush3.bf16.xpose.msk.msra.mxu1 %vm8110_vm4, %v7035_v15  ;;  %6651 = vmatprep.mubr.msk.f32.mxu1 %vm367_vm3, %v558_v40 }
 0x5a6   :  { %7047 = vmatprep.subr.msk.bf16.mxu1 %vm8110_vm4, %v7045_v38 }
 0x5ac   :  { %6652 = vmatmul.mubr.msk.f32.vlgmr.msra.gmra.mrb[6].mxu1 %vm367_vm3, %v560_v41 }
 0x5ad   :  { %7050 = vmatpush3.bf16.xpose.msk.msra.mxu1 %vm8110_vm4, %v7045_v38  ;;  %6665 = vmatprep.mubr.msk.f32.mxu1 %vm367_vm3, %v760_v42 }
 0x5b4   :  { %6666 = vmatmul.mubr.msk.f32.vlgmr.msra.gmra.mrb[8].mxu1 %vm367_vm3, %v762_v43 }
 0x677   :  { %v8163_v45 = vpop.f32.mrb[4].mxu1 }
 0x678   :  { %v8165_v47 = vpop.f32.mrb[5].mxu1 }
 0x67f   :  { %v6653_v48 = vpop.f32.mrb[6].mxu1 }
 0x680   :  { %v645_v49 = vadd.f32 %v6653_v48, %v8127_v58  ;;  %v639_v51 = vpop.f32.mrb[7].mxu1 }
 0x681   :  { %v640_v53 = vadd.f32 %v639_v51, %v8129_v59 }
 0x682   :  { %v651_v54 = vsel %vm453_vm7, %v645_v49, -inf }
 0x683   :  { %652 = vmax.xlane.f32.xlu1 %v651_v54  ;;  %v648_v56 = vsel %vm453_vm7, %v640_v53, -inf }
 0x684   :  { %649 = vmax.xlane.f32.xlu0 %v648_v56 }
 0x687   :  { %v6667_v57 = vpop.f32.mrb[8].mxu1 }
 0x688   :  { %v841_v60 = vpop.f32.mrb[9].mxu1  ;;  %v847_v63 = vadd.f32 %v6667_v57, %v8127_v58 }
 0x689   :  { %v842_v61 = vadd.f32 %v841_v60, %v8129_v59 }
 0x68a   :  { %v853_v52 = vsel %vm453_vm7, %v847_v63, -inf }
 0x68b   :  { %v850_v0 = vsel %vm453_vm7, %v842_v61, -inf }
 0x68c   :  { %851 = vmax.xlane.f32.xlu0 %v850_v0 }
 0x690   :  { %854 = vmax.xlane.f32.xlu0 %v853_v52 }
 0x694   :  { %7435 = vrot.lane.b32.xlu1 %v8104_v46, %s7848_s22 }
 0x710   :  { %v653_v1 = vpop.xlane.xlu1 %652 }
 0x711   :  { %v655_v2 = vsub.f32 %v645_v49, %v653_v1  ;;  %v650_v5 = vpop.xlane.xlu0 %649 }
 0x712   :  { %v654_v6 = vsub.f32 %v640_v53, %v650_v5 }
 0x713   :  { %v658_v7 = vmul.f32 1.442695, %v655_v2 }
 0x714   :  { %v656_v8 = vmul.f32 1.442695, %v654_v6  ;;  %v7436_v9 = vpop.permute.xlu1 %7435 }
 0x715   :  { %7657 = vpow2.f32 %v658_v7  ;;  %v7438_v10 = vunpack.i.h.bf16 %v7436_v9  ;;  %v7437_v11 = vunpack.i.l.bf16 %v7436_v9 }
 0x716   :  { %7659 = vpow2.f32 %v656_v8 }
 0x717   :  { %v7041_v14 = vpack.c.bf16 %v7438_v10, %v7437_v11 }
 0x719   :  { %7042 = vmatprep.subr.bf16.mxu0 %v7041_v14  ;;  %v852_v15 = vpop.xlane.xlu0 %851 }
 0x71a   :  { %7044 = vmatpush3.bf16.msra.mxu0 %v7041_v14  ;;  %v856_v34 = vsub.f32 %v842_v61, %v852_v15 }
 0x71c   :  { %v858_v35 = vmul.f32 1.442695, %v856_v34 }
 0x71d   :  { %v855_v16 = vpop.xlane.xlu0 %854 }
 0x71e   :  { %v857_v17 = vsub.f32 %v847_v63, %v855_v16 }
 0x71f   :  { %v7658_v21 = vpop.eup %7657 }
 0x720   :  { %v7660_v22 = vpop.eup %7659  ;;  %v860_v24 = vmul.f32 1.442695, %v857_v17  ;;  %v663_v25 = vsel %vm453_vm7, %v7658_v21, 0.0 }
 0x721   :  { %664 = vadd.xlane.f32.xlu0 %v663_v25  ;;  %v660_v26 = vsel %vm453_vm7, %v7660_v22, 0.0 }
 0x722   :  { %7661 = vpow2.f32 %v860_v24  ;;  %661 = vadd.xlane.f32.xlu1 %v660_v26 }
 0x723   :  { %7663 = vpow2.f32 %v858_v35 }
 0x72c   :  { %v7662_v30 = vpop.eup %7661 }
 0x72d   :  { %v865_v32 = vsel %vm453_vm7, %v7662_v30, 0.0  ;;  %v7664_v36 = vpop.eup %7663 }
 0x72e   :  { %866 = vadd.xlane.f32.xlu0 %v865_v32  ;;  %v862_v37 = vsel %vm453_vm7, %v7664_v36, 0.0 }
 0x733   :  { %7445 = vrot.lane.b32.xlu1 %v8102_v44, %s7850_s24 }
 0x744   :  { %7440 = vrot.lane.b32.xlu0 %v8104_v46, %s7849_s23 }
 0x748   :  { %961 = vrot.lane.b32.xlu0 %v8100_v39, %s7851_s25 }
 0x757   :  { %863 = vadd.xlane.f32.xlu1 %v862_v37 }
 0x768   :  { %959 = vrot.lane.b32.xlu1 %v8094_v33, %s7851_s25 }
 0x7ae   :  { %v665_v38 = vpop.xlane.xlu0 %664 }
 0x7af   :  { %7665 = vrcp.f32 %v665_v38  ;;  %v662_v40 = vpop.xlane.xlu1 %661 }
 0x7b0   :  { %7667 = vrcp.f32 %v662_v40 }
 0x7b3   :  { %v7446_v51 = vpop.permute.xlu1 %7445 }
 0x7b4   :  { %v7448_v54 = vunpack.i.h.bf16 %v7446_v51  ;;  %v7447_v56 = vunpack.i.l.bf16 %v7446_v51 }
 0x7b6   :  { %v7055_v63 = vpack.c.bf16 %v7448_v54, %v7447_v56 }
 0x7b9   :  { %v7666_v41 = vpop.eup %7665 }
 0x7ba   :  { %v7668_v42 = vpop.eup %7667  ;;  %v669_v49 = vmul.f32 %v7666_v41, %v7658_v21 }
 0x7bb   :  { %v867_v43 = vpop.xlane.xlu0 %866  ;;  %v668_v48 = vmul.f32 %v7668_v42, %v7660_v22 }
 0x7bc   :  { %7669 = vrcp.f32 %v867_v43 }
 0x7bd   :  { %6658 = vmatprep.mubr.msk.f32.mxu0 %vm453_vm7, %v668_v48 }
 0x7be   :  { %6659 = vmatmul.mubr.msk.f32.vlgmr.msra.gmra.mrb[6].mxu0 %vm453_vm7, %v669_v49 }
 0x7bf   :  { %v7441_v53 = vpop.permute.xlu0 %7440 }
 0x7c0   :  { %v7443_v57 = vunpack.i.h.bf16 %v7441_v53  ;;  %v7442_v60 = vunpack.i.l.bf16 %v7441_v53 }
 0x7c2   :  { %v7051_v61 = vpack.c.bf16 %v7443_v57, %v7442_v60 }
 0x7c3   :  { %v962_v7 = vpop.permute.xlu0 %961 }
 0x7c4   :  { %7052 = vmatprep.subr.bf16.mxu0 %v7051_v61 }
 0x7c5   :  { %7054 = vmatpush3.bf16.msra.mxu0 %v7051_v61 }
 0x7c6   :  { %7057 = vmatprep.subr.msk.bf16.mxu0 %vm8110_vm4, %v7055_v63  ;;  %v7670_v52 = vpop.eup %7669 }
 0x7c7   :  { %v871_v5 = vmul.f32 %v7670_v52, %v7662_v30 }
 0x7e4   :  { %v864_v0 = vpop.xlane.xlu1 %863 }
 0x7e5   :  { %7671 = vrcp.f32 %v864_v0 }
 0x7e8   :  { %v960_v6 = vpop.permute.xlu1 %959 }
 0x7ef   :  { %v7672_v1 = vpop.eup %7671 }
 0x7f0   :  { %v870_v2 = vmul.f32 %v7672_v1, %v7664_v36 }
 0x7f2   :  { %6672 = vmatprep.mubr.msk.f32.mxu0 %vm453_vm7, %v870_v2 }
 0x7f3   :  { %6673 = vmatmul.mubr.msk.f32.vlgmr.msra.gmra.mrb[8].mxu0 %vm453_vm7, %v871_v5 }
 0x7f4   :  { %7060 = vmatpush3.bf16.xpose.msk.msra.mxu0 %vm8110_vm4, %v7055_v63  ;;  %6679 = vmatprep.mubr.msk.f32.mxu0 %vm367_vm3, %v960_v6 }
 0x7fb   :  { %6680 = vmatmul.mubr.msk.f32.vlgmr.msra.gmra.mrb[10].mxu0 %vm367_vm3, %v962_v7 }
 0x891   :  { %v8199_v8 = vpop.f32.mrb[6].mxu0 }
 0x892   :  { %v8201_v9 = vpop.f32.mrb[7].mxu0 }
 0x8c6   :  { %v8203_v10 = vpop.f32.mrb[8].mxu0 }
 0x8c7   :  { %v8205_v11 = vpop.f32.mrb[9].mxu0 }
 0x8ce   :  { %v6681_v14 = vpop.f32.mrb[10].mxu0 }
 0x8cf   :  { %v1047_v15 = vadd.f32 %v6681_v14, %v8127_v58  ;;  %v1041_v16 = vpop.f32.mrb[11].mxu0 }
 0x8d0   :  { %v1042_v17 = vadd.f32 %v1041_v16, %v8129_v59 }
 0x8d1   :  { %v1053_v21 = vsel %vm453_vm7, %v1047_v15, -inf }
 0x8d2   :  { %1054 = vmax.xlane.f32.xlu0 %v1053_v21  ;;  %v1050_v22 = vsel %vm453_vm7, %v1042_v17, -inf }
 0x8d3   :  { %1051 = vmax.xlane.f32.xlu1 %v1050_v22 }
 0x95f   :  { %v1055_v24 = vpop.xlane.xlu0 %1054 }
 0x960   :  { %v1057_v25 = vsub.f32 %v1047_v15, %v1055_v24  ;;  %v1052_v26 = vpop.xlane.xlu1 %1051 }
 0x961   :  { %v1056_v30 = vsub.f32 %v1042_v17, %v1052_v26 }
 0x962   :  { %v1060_v32 = vmul.f32 1.442695, %v1057_v25 }
 0x963   :  { %v1058_v34 = vmul.f32 1.442695, %v1056_v30 }
 0x964   :  { %7673 = vpow2.f32 %v1060_v32 }
 0x965   :  { %7675 = vpow2.f32 %v1058_v34 }
 0x96e   :  { %v7674_v35 = vpop.eup %7673 }
 0x96f   :  { %v7676_v36 = vpop.eup %7675  ;;  %v1065_v37 = vsel %vm453_vm7, %v7674_v35, 0.0 }
 0x970   :  { %1066 = vadd.xlane.f32.xlu1 %v1065_v37  ;;  %v1062_v38 = vsel %vm453_vm7, %v7676_v36, 0.0 }
 0x971   :  { %1063 = vadd.xlane.f32.xlu0 %v1062_v38 }
 0x981   :  { %7455 = vrot.lane.b32.xlu1 %v8102_v44, %s7852_s26 }
 0x985   :  { %1159 = vrot.lane.b32.xlu1 %v8094_v33, %s7853_s27 }
 0x987   :  { %7450 = vrot.lane.b32.xlu0 %v8104_v46, %s7851_s25 }
 0x98b   :  { %1161 = vrot.lane.b32.xlu0 %v8100_v39, %s7853_s27 }
 0x9fd   :  { %v1067_v40 = vpop.xlane.xlu1 %1066 }
 0x9fe   :  { %7677 = vrcp.f32 %v1067_v40  ;;  %v1064_v41 = vpop.xlane.xlu0 %1063 }
 0x9ff   :  { %7679 = vrcp.f32 %v1064_v41 }
 0xa01   :  { %v7456_v42 = vpop.permute.xlu1 %7455 }
 0xa02   :  { %v7451_v43 = vpop.permute.xlu0 %7450  ;;  %v7458_v48 = vunpack.i.h.bf16 %v7456_v42  ;;  %v7457_v49 = vunpack.i.l.bf16 %v7456_v42 }
 0xa03   :  { %v7453_v51 = vunpack.i.h.bf16 %v7451_v43  ;;  %v7452_v53 = vunpack.i.l.bf16 %v7451_v43 }
 0xa04   :  { %v7065_v56 = vpack.c.bf16 %v7458_v48, %v7457_v49 }
 0xa05   :  { %v7061_v54 = vpack.c.bf16 %v7453_v51, %v7452_v53  ;;  %v1160_v0 = vpop.permute.xlu1 %1159 }
 0xa06   :  { %v1162_v52 = vpop.permute.xlu0 %1161 }
 0xa07   :  { %7062 = vmatprep.subr.bf16.mxu1 %v7061_v54 }
 0xa08   :  { %v7678_v57 = vpop.eup %7677  ;;  %7064 = vmatpush3.bf16.msra.mxu1 %v7061_v54 }
 0xa09   :  { %v7680_v60 = vpop.eup %7679  ;;  %7067 = vmatprep.subr.msk.bf16.mxu1 %vm8110_vm4, %v7065_v56  ;;  %v1071_v63 = vmul.f32 %v7678_v57, %v7674_v35 }
 0xa0a   :  { %v1070_v61 = vmul.f32 %v7680_v60, %v7676_v36 }
 0xa0c   :  { %6686 = vmatprep.mubr.msk.f32.mxu1 %vm453_vm7, %v1070_v61 }
 0xa0d   :  { %6687 = vmatmul.mubr.msk.f32.vlgmr.msra.gmra.mrb[10].mxu1 %vm453_vm7, %v1071_v63 }
 0xa0e   :  { %6693 = vmatprep.mubr.msk.f32.mxu1 %vm367_vm3, %v1160_v0 }
 0xa11   :  { %7070 = vmatpush3.bf16.xpose.msk.msra.mxu1 %vm8110_vm4, %v7065_v56 }
 0xa18   :  { %6694 = vmatmul.mubr.msk.f32.vlgmr.msra.gmra.mrb[12].mxu1 %vm367_vm3, %v1162_v52 }
 0xae0   :  { %v8229_v1 = vpop.f32.mrb[10].mxu1 }
 0xae1   :  { %v8231_v2 = vpop.f32.mrb[11].mxu1 }
 0xaeb   :  { %v6695_v5 = vpop.f32.mrb[12].mxu1 }
 0xaec   :  { %v1247_v6 = vadd.f32 %v6695_v5, %v8127_v58  ;;  %v1241_v7 = vpop.f32.mrb[13].mxu1 }
 0xaed   :  { %v1242_v14 = vadd.f32 %v1241_v7, %v8129_v59 }
 0xaee   :  { %v1253_v15 = vsel %vm453_vm7, %v1247_v6, -inf }
 0xaef   :  { %1254 = vmax.xlane.f32.xlu0 %v1253_v15  ;;  %v1250_v16 = vsel %vm453_vm7, %v1242_v14, -inf }
 0xaf0   :  { %1251 = vmax.xlane.f32.xlu1 %v1250_v16 }
 0xb7c   :  { %v1255_v17 = vpop.xlane.xlu0 %1254 }
 0xb7d   :  { %v1257_v21 = vsub.f32 %v1247_v6, %v1255_v17  ;;  %v1252_v22 = vpop.xlane.xlu1 %1251 }
 0xb7e   :  { %v1256_v24 = vsub.f32 %v1242_v14, %v1252_v22 }
 0xb7f   :  { %v1260_v25 = vmul.f32 1.442695, %v1257_v21 }
 0xb80   :  { %v1258_v26 = vmul.f32 1.442695, %v1256_v24 }
 0xb81   :  { %7681 = vpow2.f32 %v1260_v25 }
 0xb82   :  { %7683 = vpow2.f32 %v1258_v26 }
 0xb8b   :  { %v7682_v30 = vpop.eup %7681 }
 0xb8c   :  { %v7684_v32 = vpop.eup %7683  ;;  %v1265_v34 = vsel %vm453_vm7, %v7682_v30, 0.0 }
 0xb8d   :  { %1266 = vadd.xlane.f32.xlu1 %v1265_v34  ;;  %v1262_v35 = vsel %vm453_vm7, %v7684_v32, 0.0 }
 0xb8e   :  { %1263 = vadd.xlane.f32.xlu0 %v1262_v35 }
 0xb9e   :  { %7465 = vrot.lane.b32.xlu1 %v8102_v44, %s7854_s28 }
 0xba2   :  { %1359 = vrot.lane.b32.xlu1 %v8094_v33, %s7855_s29 }
 0xba4   :  { %7460 = vrot.lane.b32.xlu0 %v8104_v46, %s7853_s27 }
 0xba8   :  { %1361 = vrot.lane.b32.xlu0 %v8100_v39, %s7855_s29 }
 0xc1a   :  { %v1267_v36 = vpop.xlane.xlu1 %1266 }
 0xc1b   :  { %7685 = vrcp.f32 %v1267_v36  ;;  %v1264_v37 = vpop.xlane.xlu0 %1263 }
 0xc1c   :  { %7687 = vrcp.f32 %v1264_v37 }
 0xc1e   :  { %v7466_v38 = vpop.permute.xlu1 %7465 }
 0xc1f   :  { %v7461_v40 = vpop.permute.xlu0 %7460  ;;  %v7468_v41 = vunpack.i.h.bf16 %v7466_v38  ;;  %v7467_v42 = vunpack.i.l.bf16 %v7466_v38 }
 0xc20   :  { %v7463_v43 = vunpack.i.h.bf16 %v7461_v40  ;;  %v7462_v48 = vunpack.i.l.bf16 %v7461_v40 }
 0xc21   :  { %v7075_v51 = vpack.c.bf16 %v7468_v41, %v7467_v42 }
 0xc22   :  { %v7071_v49 = vpack.c.bf16 %v7463_v43, %v7462_v48  ;;  %v1360_v60 = vpop.permute.xlu1 %1359 }
 0xc23   :  { %v1362_v61 = vpop.permute.xlu0 %1361 }
 0xc24   :  { %7072 = vmatprep.subr.bf16.mxu0 %v7071_v49 }
 0xc25   :  { %v7686_v53 = vpop.eup %7685  ;;  %7074 = vmatpush3.bf16.msra.mxu0 %v7071_v49 }
 0xc26   :  { %v7688_v54 = vpop.eup %7687  ;;  %7077 = vmatprep.subr.msk.bf16.mxu0 %vm8110_vm4, %v7075_v51  ;;  %v1271_v57 = vmul.f32 %v7686_v53, %v7682_v30 }
 0xc27   :  { %v1270_v56 = vmul.f32 %v7688_v54, %v7684_v32 }
 0xc29   :  { %6700 = vmatprep.mubr.msk.f32.mxu0 %vm453_vm7, %v1270_v56 }
 0xc2a   :  { %6701 = vmatmul.mubr.msk.f32.vlgmr.msra.gmra.mrb[12].mxu0 %vm453_vm7, %v1271_v57 }
 0xc2b   :  { %6707 = vmatprep.mubr.msk.f32.mxu0 %vm367_vm3, %v1360_v60 }
 0xc2e   :  { %7080 = vmatpush3.bf16.xpose.msk.msra.mxu0 %vm8110_vm4, %v7075_v51 }
 0xc35   :  { %6708 = vmatmul.mubr.msk.f32.vlgmr.msra.gmra.mrb[14].mxu0 %vm367_vm3, %v1362_v61 }
 0xcfd   :  { %v8255_v63 = vpop.f32.mrb[12].mxu0 }
 0xcfe   :  { %v8257_v0 = vpop.f32.mrb[13].mxu0 }
 0xd08   :  { %v6709_v52 = vpop.f32.mrb[14].mxu0 }
 0xd09   :  { %v1447_v5 = vadd.f32 %v6709_v52, %v8127_v58  ;;  %v1441_v6 = vpop.f32.mrb[15].mxu0 }
 0xd0a   :  { %v1442_v7 = vadd.f32 %v1441_v6, %v8129_v59 }
 0xd0b   :  { %v1453_v14 = vsel %vm453_vm7, %v1447_v5, -inf }
 0xd0c   :  { %1454 = vmax.xlane.f32.xlu0 %v1453_v14  ;;  %v1450_v15 = vsel %vm453_vm7, %v1442_v7, -inf }
 0xd0d   :  { %1451 = vmax.xlane.f32.xlu1 %v1450_v15 }
 0xd99   :  { %v1455_v16 = vpop.xlane.xlu0 %1454 }
 0xd9a   :  { %v1457_v17 = vsub.f32 %v1447_v5, %v1455_v16  ;;  %v1452_v21 = vpop.xlane.xlu1 %1451 }
 0xd9b   :  { %v1456_v22 = vsub.f32 %v1442_v7, %v1452_v21 }
 0xd9c   :  { %v1460_v24 = vmul.f32 1.442695, %v1457_v17 }
 0xd9d   :  { %v1458_v25 = vmul.f32 1.442695, %v1456_v22 }
 0xd9e   :  { %7689 = vpow2.f32 %v1460_v24 }
 0xd9f   :  { %7691 = vpow2.f32 %v1458_v25 }
 0xda8   :  { %v7690_v26 = vpop.eup %7689 }
 0xda9   :  { %v7692_v30 = vpop.eup %7691  ;;  %v1465_v32 = vsel %vm453_vm7, %v7690_v26, 0.0 }
 0xdaa   :  { %1466 = vadd.xlane.f32.xlu1 %v1465_v32  ;;  %v1462_v34 = vsel %vm453_vm7, %v7692_v30, 0.0 }
 0xdab   :  { %1463 = vadd.xlane.f32.xlu0 %v1462_v34 }
 0xdbb   :  { %7475 = vrot.lane.b32.xlu1 %v8102_v44, %s7856_s30 }
 0xdbf   :  { %1559 = vrot.lane.b32.xlu1 %v8094_v33, %s7857_s7 }
 0xdc1   :  { %7470 = vrot.lane.b32.xlu0 %v8104_v46, %s7855_s29 }
 0xdc5   :  { %1561 = vrot.lane.b32.xlu0 %v8100_v39, %s7857_s7 }
 0xe37   :  { %v1467_v35 = vpop.xlane.xlu1 %1466 }
 0xe38   :  { %7693 = vrcp.f32 %v1467_v35  ;;  %v1464_v36 = vpop.xlane.xlu0 %1463 }
 0xe39   :  { %7695 = vrcp.f32 %v1464_v36 }
 0xe3b   :  { %v7476_v37 = vpop.permute.xlu1 %7475 }
 0xe3c   :  { %v7471_v38 = vpop.permute.xlu0 %7470  ;;  %v7478_v40 = vunpack.i.h.bf16 %v7476_v37  ;;  %v7477_v41 = vunpack.i.l.bf16 %v7476_v37 }
 0xe3d   :  { %v7473_v42 = vunpack.i.h.bf16 %v7471_v38  ;;  %v7472_v43 = vunpack.i.l.bf16 %v7471_v38 }
 0xe3e   :  { %v7085_v49 = vpack.c.bf16 %v7478_v40, %v7477_v41 }
 0xe3f   :  { %v7081_v48 = vpack.c.bf16 %v7473_v42, %v7472_v43  ;;  %v1560_v57 = vpop.permute.xlu1 %1559 }
 0xe40   :  { %v1562_v60 = vpop.permute.xlu0 %1561 }
 0xe41   :  { %7082 = vmatprep.subr.bf16.mxu1 %v7081_v48 }
 0xe42   :  { %v7694_v51 = vpop.eup %7693  ;;  %7084 = vmatpush3.bf16.msra.mxu1 %v7081_v48 }
 0xe43   :  { %v7696_v53 = vpop.eup %7695  ;;  %7087 = vmatprep.subr.msk.bf16.mxu1 %vm8110_vm4, %v7085_v49  ;;  %v1471_v56 = vmul.f32 %v7694_v51, %v7690_v26 }
 0xe44   :  { %v1470_v54 = vmul.f32 %v7696_v53, %v7692_v30 }
 0xe46   :  { %6714 = vmatprep.mubr.msk.f32.mxu1 %vm453_vm7, %v1470_v54 }
 0xe47   :  { %6715 = vmatmul.mubr.msk.f32.vlgmr.msra.gmra.mrb[14].mxu1 %vm453_vm7, %v1471_v56 }
 0xe48   :  { %6721 = vmatprep.mubr.msk.f32.mxu1 %vm367_vm3, %v1560_v57 }
 0xe4b   :  { %7090 = vmatpush3.bf16.xpose.msk.msra.mxu1 %vm8110_vm4, %v7085_v49 }
 0xe52   :  { %6722 = vmatmul.mubr.msk.f32.vlgmr.msra.gmra.mrb[16].mxu1 %vm367_vm3, %v1562_v60 }
 0xf1a   :  { %v8281_v61 = vpop.f32.mrb[14].mxu1 }
 0xf1b   :  { %v8283_v52 = vpop.f32.mrb[15].mxu1 }
 0xf25   :  { %v6723_v5 = vpop.f32.mrb[16].mxu1 }
 0xf26   :  { %v1647_v6 = vadd.f32 %v6723_v5, %v8127_v58  ;;  %v1641_v7 = vpop.f32.mrb[17].mxu1 }
 0xf27   :  { %v1642_v14 = vadd.f32 %v1641_v7, %v8129_v59 }
 0xf28   :  { %v1653_v15 = vsel %vm453_vm7, %v1647_v6, -inf }
 0xf29   :  { %1654 = vmax.xlane.f32.xlu0 %v1653_v15  ;;  %v1650_v16 = vsel %vm453_vm7, %v1642_v14, -inf }
 0xf2a   :  { %1651 = vmax.xlane.f32.xlu1 %v1650_v16 }
 0xfb6   :  { %v1655_v17 = vpop.xlane.xlu0 %1654 }
 0xfb7   :  { %v1657_v21 = vsub.f32 %v1647_v6, %v1655_v17  ;;  %v1652_v22 = vpop.xlane.xlu1 %1651 }
 0xfb8   :  { %v1656_v24 = vsub.f32 %v1642_v14, %v1652_v22 }
 0xfb9   :  { %v1660_v25 = vmul.f32 1.442695, %v1657_v21 }
 0xfba   :  { %v1658_v26 = vmul.f32 1.442695, %v1656_v24 }
 0xfbb   :  { %7697 = vpow2.f32 %v1660_v25 }
 0xfbc   :  { %7699 = vpow2.f32 %v1658_v26 }
 0xfc5   :  { %v7698_v30 = vpop.eup %7697 }
 0xfc6   :  { %v7700_v32 = vpop.eup %7699  ;;  %v1665_v34 = vsel %vm453_vm7, %v7698_v30, 0.0 }
 0xfc7   :  { %1666 = vadd.xlane.f32.xlu1 %v1665_v34  ;;  %v1662_v35 = vsel %vm453_vm7, %v7700_v32, 0.0 }
 0xfc8   :  { %1663 = vadd.xlane.f32.xlu0 %v1662_v35 }
 0xfd8   :  { %7485 = vrot.lane.b32.xlu1 %v8102_v44, %s7858_s8 }
 0xfdc   :  { %1759 = vrot.lane.b32.xlu1 %v8094_v33, %s7859_s9 }
 0xfde   :  { %7480 = vrot.lane.b32.xlu0 %v8104_v46, %s7857_s7 }
 0xfe2   :  { %1761 = vrot.lane.b32.xlu0 %v8100_v39, %s7859_s9 }
0x1054   :  { %v1667_v36 = vpop.xlane.xlu1 %1666 }
0x1055   :  { %7701 = vrcp.f32 %v1667_v36  ;;  %v1664_v37 = vpop.xlane.xlu0 %1663  ;;  %v7809_v36 = vld [vmem:[%s9960_s3 + $0x8] sm:$0xff] }
0x1056   :  { %7703 = vrcp.f32 %v1664_v37  ;;  %v7810_v37 = vld [vmem:[%s9960_s3 + $0x18] sm:$0xff] }
0x1058   :  { %v7486_v38 = vpop.permute.xlu1 %7485 }
0x1059   :  { %v7481_v40 = vpop.permute.xlu0 %7480  ;;  %v7488_v41 = vunpack.i.h.bf16 %v7486_v38  ;;  %v7487_v42 = vunpack.i.l.bf16 %v7486_v38  ;;  %v7494_v38 = vpack.i.bf16 %v7810_v37, %v7809_v36 }
0x105a   :  { %v7483_v43 = vunpack.i.h.bf16 %v7481_v40  ;;  %v7482_v44 = vunpack.i.l.bf16 %v7481_v40  ;;  %v7811_v40 = vld [vmem:[%s9960_s3 + $0x28] sm:$0xff] }
0x105b   :  { %v7095_v49 = vpack.c.bf16 %v7488_v41, %v7487_v42  ;;  %v7499_v41 = vpack.i.bf16 %v8022_v62, %v7811_v40  ;;  %v7504_v42 = vpack.i.bf16 %v8039_v4, %v8034_v3  ;;  %v7509_v62 = vpack.i.bf16 %v8057_v13, %v8052_v12 }
0x105c   :  { %v7091_v48 = vpack.c.bf16 %v7483_v43, %v7482_v44  ;;  %v1760_v54 = vpop.permute.xlu1 %1759 }
0x105d   :  { %v1762_v56 = vpop.permute.xlu0 %1761 }
0x105e   :  { %7092 = vmatprep.subr.bf16.mxu0 %v7091_v48 }
0x105f   :  { %v7702_v33 = vpop.eup %7701  ;;  %7094 = vmatpush3.bf16.msra.mxu0 %v7091_v48 }
0x1060   :  { %v7704_v51 = vpop.eup %7703  ;;  %7097 = vmatprep.subr.msk.bf16.mxu0 %vm8110_vm4, %v7095_v49  ;;  %v1671_v53 = vmul.f32 %v7702_v33, %v7698_v30 }
0x1061   :  { %v1670_v39 = vmul.f32 %v7704_v51, %v7700_v32 }
0x1063   :  { %6728 = vmatprep.mubr.msk.f32.mxu0 %vm453_vm7, %v1670_v39 }
0x1064   :  { %6729 = vmatmul.mubr.msk.f32.vlgmr.msra.gmra.mrb[16].mxu0 %vm453_vm7, %v1671_v53 }
0x1065   :  { %6735 = vmatprep.mubr.msk.f32.mxu0 %vm367_vm3, %v1760_v54 }
0x1068   :  { %7100 = vmatpush3.bf16.xpose.msk.msra.mxu0 %vm8110_vm4, %v7095_v49 }
0x106f   :  { %6736 = vmatmul.mubr.msk.f32.vlgmr.msra.gmra.mrb[18].mxu0 %vm367_vm3, %v1762_v56 }
0x1137   :  { %v6730_v57 = vpop.f32.mrb[16].mxu0 }
0x1138   :  { %v1750_v60 = vpop.f32.mrb[17].mxu0 }
0x1142   :  { %v6737_v5 = vpop.f32.mrb[18].mxu0 }
0x1143   :  { %v1847_v6 = vadd.f32 %v6737_v5, %v8127_v58  ;;  %v1841_v7 = vpop.f32.mrb[19].mxu0 }
0x1144   :  { %v1842_v14 = vadd.f32 %v1841_v7, %v8129_v59 }
0x1145   :  { %v1853_v15 = vsel %vm453_vm7, %v1847_v6, -inf }
0x1146   :  { %1854 = vmax.xlane.f32.xlu0 %v1853_v15  ;;  %v1850_v16 = vsel %vm453_vm7, %v1842_v14, -inf }
0x1147   :  { %1851 = vmax.xlane.f32.xlu1 %v1850_v16 }
0x11d3   :  { %v1855_v17 = vpop.xlane.xlu0 %1854 }
0x11d4   :  { %v1857_v21 = vsub.f32 %v1847_v6, %v1855_v17  ;;  %v1852_v22 = vpop.xlane.xlu1 %1851 }
0x11d5   :  { %v1856_v24 = vsub.f32 %v1842_v14, %v1852_v22 }
0x11d6   :  { %v1860_v25 = vmul.f32 1.442695, %v1857_v21 }
0x11d7   :  { %v1858_v26 = vmul.f32 1.442695, %v1856_v24 }
0x11d8   :  { %7705 = vpow2.f32 %v1860_v25 }
0x11d9   :  { %7707 = vpow2.f32 %v1858_v26 }
0x11e2   :  { %v7706_v30 = vpop.eup %7705 }
0x11e3   :  { %v7708_v32 = vpop.eup %7707  ;;  %v1865_v34 = vsel %vm453_vm7, %v7706_v30, 0.0 }
0x11e4   :  { %1866 = vadd.xlane.f32.xlu1 %v1865_v34  ;;  %v1862_v35 = vsel %vm453_vm7, %v7708_v32, 0.0 }
0x11e5   :  { %1863 = vadd.xlane.f32.xlu0 %v1862_v35 }
0x11f5   :  { %7495 = vrot.lane.b32.xlu1 %v7494_v38, %s7844_s19 }
0x11f9   :  { %7500 = vrot.lane.b32.xlu1 %v7499_v41, %s7844_s19 }
0x11fb   :  { %7490 = vrot.lane.b32.xlu0 %v8104_v46, %s7859_s9 }
0x11fd   :  { %1961 = vrot.lane.b32.xlu1 %v8201_v9, %s7858_s8 }
0x11ff   :  { %7505 = vrot.lane.b32.xlu0 %v7504_v42, %s7844_s19 }
0x1201   :  { %1969 = vrot.lane.b32.xlu1 %v8205_v11, %s7856_s30 }
0x1203   :  { %1963 = vrot.lane.b32.xlu0 %v8199_v8, %s7858_s8 }
0x1205   :  { %1977 = vrot.lane.b32.xlu1 %v8231_v2, %s7854_s28 }
0x1207   :  { %1971 = vrot.lane.b32.xlu0 %v8203_v10, %s7856_s30 }
0x1209   :  { %1979 = vrot.lane.b32.xlu1 %v8229_v1, %s7854_s28 }
0x120b   :  { %7510 = vrot.lane.b32.xlu0 %v7509_v62, %s7844_s19 }
0x120d   :  { %1987 = vrot.lane.b32.xlu1 %v8255_v63, %s7852_s26 }
0x120f   :  { %1985 = vrot.lane.b32.xlu0 %v8257_v0, %s7852_s26 }
0x1211   :  { %1995 = vrot.lane.b32.xlu1 %v8281_v61, %s7850_s24 }
0x1213   :  { %1993 = vrot.lane.b32.xlu0 %v8283_v52, %s7850_s24 }
0x1215   :  { %2003 = vrot.lane.b32.xlu1 %v6730_v57, %s7847_s21 }
0x1217   :  { %2001 = vrot.lane.b32.xlu0 %v1750_v60, %s7847_s21 }
0x1271   :  { %v1867_v3 = vpop.xlane.xlu1 %1866 }
0x1272   :  { %7709 = vrcp.f32 %v1867_v3  ;;  %v1864_v4 = vpop.xlane.xlu0 %1863 }
0x1273   :  { %7711 = vrcp.f32 %v1864_v4 }
0x1275   :  { %v7496_v63 = vpop.permute.xlu1 %7495 }
0x1276   :  { %v7491_v12 = vpop.permute.xlu0 %7490  ;;  %v7498_v52 = vunpack.i.h.bf16 %v7496_v63  ;;  %v7497_v43 = vunpack.i.l.bf16 %v7496_v63 }
0x1277   :  { %v7493_v13 = vunpack.i.h.bf16 %v7491_v12  ;;  %v7492_v46 = vunpack.i.l.bf16 %v7491_v12 }
0x1278   :  { %v7105_v39 = vpack.c.bf16 %v7498_v52, %v7497_v43 }
0x1279   :  { %v7101_v8 = vpack.c.bf16 %v7493_v13, %v7492_v46  ;;  %v7501_v61 = vpop.permute.xlu1 %7500  ;;  %v9964_v46 = vsub.s32 7, %v8068_v19 }
0x127a   :  { %v7506_v2 = vpop.permute.xlu0 %7505  ;;  %v7503_v44 = vunpack.i.h.bf16 %v7501_v61  ;;  %v7502_v48 = vunpack.i.l.bf16 %v7501_v61 }
0x127b   :  { %7102 = vmatprep.subr.bf16.mxu1 %v7101_v8  ;;  %v7508_v33 = vunpack.i.h.bf16 %v7506_v2  ;;  %v7507_v51 = vunpack.i.l.bf16 %v7506_v2 }
0x127c   :  { %v7710_v9 = vpop.eup %7709  ;;  %7104 = vmatpush3.bf16.msra.mxu1 %v7101_v8  ;;  %v7109_v53 = vpack.c.bf16 %v7503_v44, %v7502_v48  ;;  %v7812_v8 = vld [vmem:[%s9962_s5] sm:$0xff] }
0x127d   :  { %v7712_v10 = vpop.eup %7711  ;;  %v1871_v1 = vmul.f32 %v7710_v9, %v7706_v30  ;;  %7106 = vmatprep.subr.bf16.mxu1 %v7105_v39  ;;  %v7113_v60 = vpack.c.bf16 %v7508_v33, %v7507_v51  ;;  %v1962_v14 = vpop.permute.xlu1 %1961  ;;  %v2037_v9 = vrot.slane %v7812_v8, %v9964_v46  ;;  %v2245_v8 = vld [vmem:[%s9961_s4 + $0x1a8] sm:$0xff] }
0x127e   :  { %v1870_v11 = vmul.f32 %v7712_v10, %v7708_v32  ;;  %v1964_v0 = vpop.permute.xlu0 %1963  ;;  %v2015_v26 = vsel %vm367_vm3, %v8165_v47, %v1962_v14 }
0x127f   :  { %v2016_v32 = vsel %vm367_vm3, %v8163_v45, %v1964_v0 }
0x1280   :  { %6742 = vmatprep.mubr.msk.f32.mxu1 %vm453_vm7, %v1870_v11 }
0x1281   :  { %6743 = vmatmul.mubr.msk.f32.vlgmr.msra.gmra.mrb[18].mxu1 %vm453_vm7, %v1871_v1  ;;  %v1970_v15 = vpop.permute.xlu1 %1969 }
0x1282   :  { %v1972_v49 = vpop.permute.xlu0 %1971  ;;  %7108 = vmatpush3.bf16.msra.mxu1 %v7105_v39  ;;  %v2017_v34 = vsel %vm453_vm7, %v2015_v26, %v1970_v15 }
0x1283   :  { %7110 = vmatprep.subr.bf16.mxu1 %v7109_v53  ;;  %v2018_v36 = vsel %vm453_vm7, %v2016_v32, %v1972_v49 }
0x1285   :  { %v1978_v16 = vpop.permute.xlu1 %1977 }
0x1286   :  { %v7511_v54 = vpop.permute.xlu0 %7510  ;;  %7112 = vmatpush3.bf16.msra.mxu1 %v7109_v53  ;;  %v2020_v37 = vsel %vm2019_vm8, %v2017_v34, %v1978_v16  ;;  %v2194_v16 = vld [vmem:[%s9961_s4 + $0x10] sm:$0xff]  ;;  %v2212_v34 = vld [vmem:[%s9961_s4 + $0xa0] sm:$0xff] }
0x1287   :  { %v7513_v56 = vunpack.i.h.bf16 %v7511_v54  ;;  %v7512_v57 = vunpack.i.l.bf16 %v7511_v54  ;;  %7114 = vmatprep.subr.bf16.mxu1 %v7113_v60  ;;  %v2208_v54 = vld [vmem:[%s9961_s4 + $0x80] sm:$0xff] }
0x1289   :  { %v7117_v5 = vpack.c.bf16 %v7513_v56, %v7512_v57  ;;  %v1980_v17 = vpop.permute.xlu1 %1979  ;;  %v2209_v56 = vld [vmem:[%s9961_s4 + $0x88] sm:$0xff]  ;;  %v2192_v57 = vld [vmem:[%s9961_s4] sm:$0xff] }
0x128a   :  { %7116 = vmatpush3.bf16.msra.mxu1 %v7113_v60  ;;  %v1986_v22 = vpop.permute.xlu0 %1985  ;;  %v2021_v38 = vsel %vm2019_vm8, %v2018_v36, %v1980_v17  ;;  %v7121_v60 = vpack.c.bf16 %v2209_v56, %v2208_v54  ;;  %v2195_v17 = vld [vmem:[%s9961_s4 + $0x18] sm:$0xff]  ;;  %v2196_v36 = vld [vmem:[%s9961_s4 + $0x20] sm:$0xff]  ;;  %v2201_v54 = vld [vmem:[%s9961_s4 + $0x48] sm:$0xff] }
0x128b   :  { %7118 = vmatprep.subr.bf16.mxu1 %v7117_v5  ;;  %v2023_v40 = vsel %vm2022_vm9, %v2020_v37, %v1986_v22  ;;  %v2241_v22 = vld [vmem:[%s9961_s4 + $0x188] sm:$0xff]  ;;  %v7127_v26 = vpack.c.bf16 %v2195_v17, %v2194_v16  ;;  %v2248_v56 = vld [vmem:[%s9961_s4 + $0x1c0] sm:$0xff] }
0x128c   :  { %7122 = vmatprep.subr.bf16.mxu0 %v7121_v60  ;;  %v2218_v60 = vld [vmem:[%s9961_s4 + $0xd0] sm:$0xff]  ;;  %v2232_v16 = vld [vmem:[%s9961_s4 + $0x140] sm:$0xff]  ;;  %v2233_v17 = vld [vmem:[%s9961_s4 + $0x148] sm:$0xff] }
0x128d   :  { %v1988_v21 = vpop.permute.xlu1 %1987 }
0x128e   :  { %7120 = vmatpush3.bf16.msra.mxu1 %v7117_v5  ;;  %v1994_v25 = vpop.permute.xlu0 %1993  ;;  %v2024_v47 = vsel %vm2022_vm9, %v2021_v38, %v1988_v21  ;;  %v2193_v5 = vld [vmem:[%s9961_s4 + $0x8] sm:$0xff]  ;;  %v2240_v21 = vld [vmem:[%s9961_s4 + $0x180] sm:$0xff] }
0x128f   :  { %v2026_v41 = vsel %vm2025_vm10, %v2023_v40, %v1994_v25  ;;  %v7123_v14 = vpack.c.bf16 %v2193_v5, %v2192_v57  ;;  %v2225_v25 = vld [vmem:[%s9961_s4 + $0x108] sm:$0xff]  ;;  %v2242_v40 = vld [vmem:[%s9961_s4 + $0x190] sm:$0xff]  ;;  %v2219_v5 = vld [vmem:[%s9961_s4 + $0xd8] sm:$0xff] }
0x1290   :  { %v2197_v38 = vld [vmem:[%s9961_s4 + $0x28] sm:$0xff] }
0x1291   :  { %v1996_v24 = vpop.permute.xlu1 %1995  ;;  %7124 = vmatpush3.bf16.msra.mxu0 %v7123_v14  ;;  %v2249_v57 = vld [vmem:[%s9961_s4 + $0x1c8] sm:$0xff]  ;;  %v2202_v14 = vld [vmem:[%s9961_s4 + $0x50] sm:$0xff] }
0x1292   :  { %v2002_v35 = vpop.permute.xlu0 %2001  ;;  %v2027_v45 = vsel %vm2025_vm10, %v2024_v47, %v1996_v24  ;;  %v2224_v24 = vld [vmem:[%s9961_s4 + $0x100] sm:$0xff]  ;;  %v2243_v47 = vld [vmem:[%s9961_s4 + $0x198] sm:$0xff] }
0x1293   :  { %v2029_v62 = vsel %vm2028_vm11, %v2026_v41, %v2002_v35  ;;  %v7155_v32 = vpack.c.bf16 %v2225_v25, %v2224_v24  ;;  %v2213_v35 = vld [vmem:[%s9961_s4 + $0xa8] sm:$0xff]  ;;  %v7157_v41 = vpack.c.bf16 %v2243_v47, %v2242_v40  ;;  %v2250_v24 = vld [vmem:[%s9961_s4 + $0x1d0] sm:$0xff]  ;;  %v2251_v25 = vld [vmem:[%s9961_s4 + $0x1d8] sm:$0xff] }
0x1294   :  { %v7129_v37 = vpack.c.bf16 %v2213_v35, %v2212_v34  ;;  %v7171_v35 = vpack.c.bf16 %v2233_v17, %v2232_v16  ;;  %v2235_v40 = vld [vmem:[%s9961_s4 + $0x158] sm:$0xff] }
0x1295   :  { %v2004_v30 = vpop.permute.xlu1 %2003 }
0x1296   :  { %v2030_v4 = vsel %vm2028_vm11, %v2027_v45, %v2004_v30  ;;  %v7153_v30 = vpack.c.bf16 %v2241_v22, %v2240_v21  ;;  %v2227_v45 = vld [vmem:[%s9961_s4 + $0x118] sm:$0xff]  ;;  %v7141_v21 = vpack.c.bf16 %v2219_v5, %v2218_v60 }
0x1297   :  { %v2203_v22 = vld [vmem:[%s9961_s4 + $0x58] sm:$0xff] }
0x1298   :  { %7154 = vmatprep.subr.bf16.mxu1 %v7153_v30  ;;  %v2220_v30 = vld [vmem:[%s9961_s4 + $0xe0] sm:$0xff] }
0x1354   :  { %v6744_v6 = vpop.f32.mrb[18].mxu1 }
0x1355   :  { %2011 = vrot.lane.b32.xlu1 %v6744_v6, %s7846_s20  ;;  %v1950_v7 = vpop.f32.mrb[19].mxu1  ;;  %v2210_v6 = vld [vmem:[%s9961_s4 + $0x90] sm:$0xff] }
0x1356   :  { %2009 = vrot.lane.b32.xlu0 %v1950_v7, %s7846_s20  ;;  %v2211_v7 = vld [vmem:[%s9961_s4 + $0x98] sm:$0xff] }
0x1357   :  { %v7125_v15 = vpack.c.bf16 %v2211_v7, %v2210_v6 }
0x1359   :  { %7126 = vmatprep.subr.bf16.mxu0 %v7125_v15  ;;  %v7169_v15 = vpack.c.bf16 %v2249_v57, %v2248_v56 }
0x135a   :  { %7128 = vmatpush3.bf16.msra.mxu0 %v7127_v26 }
0x135b   :  { %7130 = vmatprep.subr.bf16.mxu0 %v7129_v37  ;;  %v7173_v37 = vpack.c.bf16 %v2251_v25, %v2250_v24 }
0x13c7   :  { %v2012_v42 = vpop.permute.xlu1 %2011 }
0x13c8   :  { %v2010_v3 = vpop.permute.xlu0 %2009  ;;  %v2033_v13 = vsel %vm2031_vm12, %v2030_v4, %v2012_v42  ;;  %v2226_v42 = vld [vmem:[%s9961_s4 + $0x110] sm:$0xff]  ;;  %v2215_v4 = vld [vmem:[%s9961_s4 + $0xb8] sm:$0xff] }
0x13c9   :  { %v2032_v12 = vsel %vm2031_vm12, %v2029_v62, %v2010_v3  ;;  %v2214_v62 = vld [vmem:[%s9961_s4 + $0xb0] sm:$0xff]  ;;  %v7159_v3 = vpack.c.bf16 %v2227_v45, %v2226_v42  ;;  %v2204_v42 = vld [vmem:[%s9961_s4 + $0x60] sm:$0xff]  ;;  %v2205_v45 = vld [vmem:[%s9961_s4 + $0x68] sm:$0xff] }
0x13ca   :  { %6761 = vmatprep.mubr.msk.f32.mxu1 %vm255_vm2, %v2032_v12  ;;  %v7131_v12 = vpack.c.bf16 %v2197_v38, %v2196_v36  ;;  %v7143_v36 = vpack.c.bf16 %v2203_v22, %v2202_v14  ;;  %v2234_v38 = vld [vmem:[%s9961_s4 + $0x150] sm:$0xff] }
0x13cb   :  { %6762 = vmatmul.mubr.msk.f32.vlgmr.msra.gmra.mrb[20].mxu1 %vm255_vm2, %v2033_v13  ;;  %v2244_v13 = vld [vmem:[%s9961_s4 + $0x1a0] sm:$0xff] }
0x13cc   :  { %7156 = vmatpush3.bf16.msra.mxu1 %v7155_v32  ;;  %7132 = vmatpush3.bf16.msra.mxu0 %v7131_v12  ;;  %v2221_v32 = vld [vmem:[%s9961_s4 + $0xe8] sm:$0xff] }
0x13cd   :  { %7158 = vmatprep.subr.bf16.mxu1 %v7157_v41  ;;  %v7145_v41 = vpack.c.bf16 %v2221_v32, %v2220_v30 }
0x13d0   :  { %7160 = vmatpush3.bf16.msra.mxu1 %v7159_v3  ;;  %v2222_v3 = vld [vmem:[%s9961_s4 + $0xf0] sm:$0xff] }
0x149e   :  { %v6763_v10 = vpop.f32.mrb[20].mxu1 }
0x149f   :  { %v2148_v11 = vadd.f32 %v6763_v10, %v2037_v9  ;;  %v2142_v1 = vpop.f32.mrb[21].mxu1  ;;  %v7133_v10 = vpack.c.bf16 %v2215_v4, %v2214_v62  ;;  %v2223_v4 = vld [vmem:[%s9961_s4 + $0xf8] sm:$0xff] }
0x14a0   :  { %v2143_v2 = vadd.f32 %v2142_v1, %v2037_v9  ;;  %v2228_v9 = vld [vmem:[%s9961_s4 + $0x120] sm:$0xff]  ;;  %v2199_v1 = vld [vmem:[%s9961_s4 + $0x38] sm:$0xff] }
0x14a1   :  { %v2152_v63 = vadd.f32 %v2148_v11, %v8086_v28  ;;  %v2198_v11 = vld [vmem:[%s9961_s4 + $0x30] sm:$0xff]  ;;  %7134 = vmatprep.subr.bf16.mxu0 %v7133_v10  ;;  %v7149_v10 = vpack.c.bf16 %v2223_v4, %v2222_v3 }
0x14a2   :  { %v2151_v0 = vadd.f32 %v2143_v2, %v8081_v27  ;;  %v7161_v2 = vpack.c.bf16 %v2245_v8, %v2244_v13  ;;  %v7175_v13 = vpack.c.bf16 %v2235_v40, %v2234_v38  ;;  %v7147_v8 = vpack.c.bf16 %v2205_v45, %v2204_v42 }
0x14a3   :  { %v2156_v61 = vsel %vm255_vm2, %v2152_v63, 0.0 }
0x14a4   :  { %2157 = vadd.xlane.f32.xlu1 %v2156_v61  ;;  %v2153_v52 = vsel %vm255_vm2, %v2151_v0, 0.0  ;;  %v2217_v61 = vld [vmem:[%s9961_s4 + $0xc8] sm:$0xff]  ;;  %7162 = vmatprep.subr.bf16.mxu1 %v7161_v2 }
0x14a5   :  { %2154 = vadd.xlane.f32.xlu0 %v2153_v52  ;;  %v2246_v52 = vld [vmem:[%s9961_s4 + $0x1b0] sm:$0xff] }
0x1531   :  { %v2158_v43 = vpop.xlane.xlu1 %2157 }
0x1532   :  { %v2161_v44 = vmul.f32 0.015625, %v2158_v43  ;;  %v2155_v48 = vpop.xlane.xlu0 %2154 }
0x1533   :  { %v2160_v49 = vmul.f32 0.015625, %v2155_v48  ;;  %v7135_v48 = vpack.c.bf16 %v2199_v1, %v2198_v11  ;;  %v25_v11 = vld [vmem:[%s9962_s5 + $0x8] sm:$0xff]  ;;  %v8563_v1 = vsub.s32 1, %v8068_v19 }
0x1534   :  { %v8387_v33 = vsub.f32 %v2152_v63, %v2161_v44  ;;  %v2229_v63 = vld [vmem:[%s9961_s4 + $0x128] sm:$0xff]  ;;  %v2247_v44 = vld [vmem:[%s9961_s4 + $0x1b8] sm:$0xff]  ;;  %v2183_v2 = vrot.slane %v25_v11, %v8078_v23 }
0x1535   :  { %v8389_v51 = vsub.f32 %v2151_v0, %v2160_v49  ;;  %v2216_v0 = vld [vmem:[%s9961_s4 + $0xc0] sm:$0xff]  ;;  %v7163_v43 = vpack.c.bf16 %v2229_v63, %v2228_v9  ;;  %7136 = vmatpush3.bf16.msra.mxu0 %v7135_v48  ;;  %9999 = vst [vmem:[#allocation11_spill] sm:$0xff] %v8563_v1 }
0x1536   :  { %v2165_v27 = vmul.f32 %v8387_v33, %v8387_v33  ;;  %v2200_v49 = vld [vmem:[%s9961_s4 + $0x40] sm:$0xff] }
0x1537   :  { %v2164_v39 = vmul.f32 %v8389_v51, %v8389_v51  ;;  %7164 = vmatpush3.bf16.msra.mxu1 %v7163_v43  ;;  %v7139_v7 = vpack.c.bf16 %v2201_v54, %v2200_v49 }
0x1538   :  { %v2169_v53 = vsel %vm255_vm2, %v2165_v27, 0.0  ;;  %v2231_v27 = vld [vmem:[%s9961_s4 + $0x138] sm:$0xff] }
0x1539   :  { %v2166_v28 = vsel %vm255_vm2, %v2164_v39, 0.0  ;;  %v7165_v39 = vpack.c.bf16 %v2247_v44, %v2246_v52 }
0x153a   :  { %2167 = vadd.xlane.f32.xlu0 %v2166_v28  ;;  %v2230_v28 = vld [vmem:[%s9961_s4 + $0x130] sm:$0xff] }
0x153b   :  { %v7167_v6 = vpack.c.bf16 %v2231_v27, %v2230_v28  ;;  %7166 = vmatprep.subr.bf16.mxu1 %v7165_v39 }
0x153d   :  { %7168 = vmatpush3.bf16.msra.mxu1 %v7167_v6 }
0x153e   :  { %2170 = vadd.xlane.f32.xlu0 %v2169_v53  ;;  %v7137_v53 = vpack.c.bf16 %v2217_v61, %v2216_v0  ;;  %7170 = vmatprep.subr.bf16.mxu1 %v7169_v15  ;;  %v2189_v0 = vrot.slane %v25_v11, %v8563_v1 }
0x1540   :  { %7138 = vmatprep.subr.bf16.mxu0 %v7137_v53 }
0x1541   :  { %7140 = vmatpush3.bf16.msra.mxu0 %v7139_v7  ;;  %7172 = vmatpush3.bf16.msra.mxu1 %v7171_v35 }
0x1542   :  { %7142 = vmatprep.subr.bf16.mxu0 %v7141_v21  ;;  %7174 = vmatprep.subr.bf16.mxu1 %v7173_v37 }
0x1545   :  { %7144 = vmatpush3.bf16.msra.mxu0 %v7143_v36  ;;  %7176 = vmatpush3.bf16.msra.mxu1 %v7175_v13 }
0x1546   :  { %7146 = vmatprep.subr.bf16.mxu0 %v7145_v41 }
0x1549   :  { %7148 = vmatpush3.bf16.msra.mxu0 %v7147_v8 }
0x154a   :  { %7150 = vmatprep.subr.bf16.mxu0 %v7149_v10 }
0x15c7   :  { %v2168_v26 = vpop.xlane.xlu0 %2167 }
0x15c8   :  { %v2172_v34 = vmul.f32 0.015625, %v2168_v26 }
0x15ca   :  { %v2174_v47 = vadd.f32 1e-05, %v2172_v34 }
0x15cb   :  { %v2171_v62 = vpop.xlane.xlu0 %2170 }
0x15cc   :  { %7713 = vrsqrt.f32 %v2174_v47  ;;  %v2173_v12 = vmul.f32 0.015625, %v2171_v62 }
0x15ce   :  { %v2175_v9 = vadd.f32 1e-05, %v2173_v12 }
0x15d0   :  { %7715 = vrsqrt.f32 %v2175_v9 }
0x15d6   :  { %v7714_v63 = vpop.eup %7713 }
0x15d7   :  { %v2178_v61 = vmul.f32 %v7714_v63, %v8389_v51 }
0x15d9   :  { %v2184_v52 = vmul.f32 %v2183_v2, %v2178_v61 }
0x15da   :  { %v7716_v43 = vpop.eup %7715 }
0x15db   :  { %v8568_v44 = vadd.f32 %v2189_v0, %v2184_v52  ;;  %v2179_v48 = vmul.f32 %v7716_v43, %v8387_v33 }
0x15dd   :  { %v2185_v49 = vmul.f32 %v2183_v2, %v2179_v48  ;;  %vm2276_vm13 = vcmp.ge.f32.partialorder %v8568_v44, -2.2  ;;  %vm2282_vm14 = vcmp.ge.f32.partialorder %v8568_v44, -1.8  ;;  %vm2288_vm15 = vcmp.ge.f32.partialorder %v8568_v44, -1.4 }
0x15de   :  { %v5966_v39 = vsel %vm2276_vm13, 1.0, %v9968_v18  ;;  %v5968_v28 = vsel %vm2282_vm14, 1.0, %v9968_v18  ;;  %v5970_v27 = vsel %vm2288_vm15, 1.0, %v9968_v18  ;;  %vm2294_vm0 = vcmp.ge.f32.partialorder %v8568_v44, -1.0 }
0x15df   :  { %v8578_v51 = vadd.f32 %v2189_v0, %v2185_v49  ;;  %v5972_v53 = vsel %vm2294_vm0, 1.0, %v9968_v18  ;;  %vm2300_vm1 = vcmp.ge.f32.partialorder %v8568_v44, -0.6  ;;  %vm2306_vm5 = vcmp.ge.f32.partialorder %v8568_v44, -0.2 }
0x15e0   :  { %v5974_v33 = vsel %vm2300_vm1, 1.0, %v9968_v18  ;;  %v5976_v54 = vsel %vm2306_vm5, 1.0, %v9968_v18  ;;  %vm2312_vm6 = vcmp.ge.f32.partialorder %v8568_v44, 0.2  ;;  %v2348_v56 = vsub.f32 %v5966_v39, %v5968_v28 }
0x15e1   :  { %v8587_v57 = vsel %vm2312_vm6, 1.0, %v9968_v18  ;;  %v2350_v60 = vsub.f32 %v5968_v28, %v5970_v27  ;;  %v2352_v5 = vsub.f32 %v5970_v27, %v5972_v53  ;;  %v2354_v6 = vsub.f32 %v5972_v53, %v5974_v33 }
0x15e2   :  { %v2356_v7 = vsub.f32 %v5974_v33, %v5976_v54  ;;  %v8590_v14 = vsub.f32 %v5976_v54, %v8587_v57  ;;  %v5990_v15 = vadd.f32 2.2, %v8568_v44  ;;  %v2376_v16 = vsub.f32 -1.4, %v8568_v44 }
0x15e3   :  { %v8595_v17 = vadd.f32 1.8, %v8568_v44  ;;  %v2390_v21 = vsub.f32 -1.0, %v8568_v44  ;;  %v5994_v22 = vadd.f32 1.4, %v8568_v44  ;;  %v8600_v24 = vadd.f32 1.0, %v8568_v44 }
0x15e4   :  { %v2372_v25 = vmul.f32 2.5, %v5990_v15  ;;  %v2378_v26 = vmul.f32 2.5, %v2376_v16  ;;  %v2404_v30 = vsub.f32 -0.6, %v8568_v44  ;;  %v8604_v32 = vsub.f32 -0.2, %v8568_v44 }
0x15e5   :  { %10000 = vst [vmem:[#allocation12_spill] sm:$0xff] %v8600_v24  ;;  %v2386_v34 = vmul.f32 2.5, %v8595_v17  ;;  %v2392_v35 = vmul.f32 2.5, %v2390_v21  ;;  %v2400_v36 = vmul.f32 2.5, %v5994_v22  ;;  %v2414_v37 = vmul.f32 2.5, %v8600_v24 }
0x15e6   :  { %v2374_v38 = vmul.f32 %v2372_v25, %v2348_v56  ;;  %v2380_v40 = vmul.f32 %v2378_v26, %v2350_v60  ;;  %v2406_v47 = vmul.f32 2.5, %v2404_v30  ;;  %v2420_v41 = vmul.f32 2.5, %v8604_v32 }
0x15e7   :  { %v2388_v42 = vmul.f32 %v2386_v34, %v2350_v60  ;;  %v2394_v45 = vmul.f32 %v2392_v35, %v2352_v5  ;;  %v2402_v62 = vmul.f32 %v2400_v36, %v2352_v5  ;;  %v2416_v3 = vmul.f32 %v2414_v37, %v2354_v6 }
0x15e8   :  { %v2382_v4 = vadd.f32 %v2380_v40, %v2374_v38  ;;  %v2408_v12 = vmul.f32 %v2406_v47, %v2354_v6  ;;  %v2422_v13 = vmul.f32 %v2420_v41, %v2356_v7  ;;  %v8610_v8 = vadd.f32 0.6, %v8568_v44 }
0x15e9   :  { %v2396_v9 = vadd.f32 %v2394_v45, %v2388_v42  ;;  %v2432_v10 = vsub.f32 0.2, %v8568_v44  ;;  %v2510_v11 = vmul.f32 1.25, %v5990_v15  ;;  %v2514_v2 = vmul.f32 1.25, %v2390_v21 }
0x15ea   :  { %v2410_v63 = vadd.f32 %v2408_v12, %v2402_v62  ;;  %v2424_v0 = vadd.f32 %v2422_v13, %v2416_v3  ;;  %v2428_v61 = vmul.f32 2.5, %v8610_v8  ;;  %v2520_v52 = vmul.f32 1.25, %v8595_v17 }
0x15eb   :  { %v2434_v43 = vmul.f32 2.5, %v2432_v10  ;;  %v2512_v48 = vmul.f32 %v2510_v11, %v2382_v4  ;;  %v2516_v49 = vmul.f32 %v2514_v2, %v2396_v9  ;;  %v2524_v39 = vmul.f32 1.25, %v2404_v30 }
0x15ec   :  { %v2430_v28 = vmul.f32 %v2428_v61, %v2356_v7  ;;  %v2522_v27 = vmul.f32 %v2520_v52, %v2396_v9  ;;  %v2530_v53 = vmul.f32 1.25, %v5994_v22  ;;  %v2534_v33 = vmul.f32 1.25, %v8604_v32 }
0x15ed   :  { %v2436_v54 = vmul.f32 %v2434_v43, %v8590_v14  ;;  %v2518_v56 = vadd.f32 %v2516_v49, %v2512_v48  ;;  %v2526_v60 = vmul.f32 %v2524_v39, %v2410_v63  ;;  %v2540_v5 = vmul.f32 1.25, %v8600_v24 }
0x15ee   :  { %v2532_v6 = vmul.f32 %v2530_v53, %v2410_v63  ;;  %v2536_v16 = vmul.f32 %v2534_v33, %v2424_v0  ;;  %v2544_v21 = vmul.f32 1.25, %v2432_v10  ;;  %v2600_v25 = vmul.f32 0.8333333, %v5990_v15 }
0x15ef   :  { %v8618_v26 = vadd.f32 %v2436_v54, %v2430_v28  ;;  %v8620_v34 = vadd.f32 %v2526_v60, %v2522_v27  ;;  %v2542_v35 = vmul.f32 %v2540_v5, %v2424_v0  ;;  %v2604_v7 = vmul.f32 0.8333333, %v2404_v30 }
0x15f0   :  { %v8622_v36 = vadd.f32 %v2536_v16, %v2532_v6  ;;  %v2602_v37 = vmul.f32 %v2600_v25, %v2518_v56  ;;  %v2620_v38 = vmul.f32 0.8333333, %v5994_v22  ;;  %v2624_v40 = vmul.f32 0.8333333, %v2432_v10 }
0x15f1   :  { %v2546_v47 = vmul.f32 %v2544_v21, %v8618_v26  ;;  %v2606_v41 = vmul.f32 %v2604_v7, %v8620_v34  ;;  %vm2289_vm13 = vcmp.ge.f32.partialorder %v8578_v51, -1.4  ;;  %vm2295_vm14 = vcmp.ge.f32.partialorder %v8578_v51, -1.0 }
0x15f2   :  { %v2622_v15 = vmul.f32 %v2620_v38, %v8622_v36  ;;  %v8630_v42 = vsel %vm2289_vm13, 1.0, %v9968_v18  ;;  %v5973_v30 = vsel %vm2295_vm14, 1.0, %v9968_v18  ;;  %vm2301_vm15 = vcmp.ge.f32.partialorder %v8578_v51, -0.6 }
0x15f3   :  { %v8634_v45 = vadd.f32 %v2546_v47, %v2542_v35  ;;  %v2608_v22 = vadd.f32 %v2606_v41, %v2602_v37  ;;  %v5975_v62 = vsel %vm2301_vm15, 1.0, %v9968_v18  ;;  %vm2307_vm0 = vcmp.ge.f32.partialorder %v8578_v51, -0.2 }
0x15f4   :  { %v5977_v3 = vsel %vm2307_vm0, 1.0, %v9968_v18  ;;  %vm2313_vm1 = vcmp.ge.f32.partialorder %v8578_v51, 0.2  ;;  %vm2318_vm5 = vcmp.ge.f32.partialorder %v8568_v44, 0.6  ;;  %vm2324_vm6 = vcmp.ge.f32.partialorder %v8568_v44, 1.0 }
0x15f5   :  { %10001 = vst [vmem:[#allocation13_spill] sm:$0xff] %v8634_v45  ;;  %v2626_v4 = vmul.f32 %v2624_v40, %v8634_v45  ;;  %v8644_v12 = vsel %vm2313_vm1, 1.0, %v9968_v18  ;;  %v5980_v13 = vsel %vm2318_vm5, 1.0, %v9968_v18  ;;  %v5982_v9 = vsel %vm2324_vm6, 1.0, %v9968_v18 }
0x15f6   :  { %vm2330_vm13 = vcmp.ge.f32.partialorder %v8568_v44, 1.4  ;;  %vm2336_vm14 = vcmp.ge.f32.partialorder %v8568_v44, 1.8  ;;  %v8651_v10 = vsub.f32 %v8630_v42, %v5973_v30  ;;  %v2355_v11 = vsub.f32 %v5973_v30, %v5975_v62 }
0x15f7   :  { %v2628_v2 = vadd.f32 %v2626_v4, %v2622_v15  ;;  %v5984_v63 = vsel %vm2330_vm13, 1.0, %v9968_v18  ;;  %v8655_v0 = vsel %vm2336_vm14, 1.0, %v9968_v18  ;;  %v2357_v61 = vsub.f32 %v5975_v62, %v5977_v3 }
0x15f8   :  { %v8658_v52 = vsub.f32 %v5977_v3, %v8644_v12  ;;  %v8661_v43 = vsub.f32 %v8587_v57, %v5980_v13  ;;  %v2362_v48 = vsub.f32 %v5980_v13, %v5982_v9  ;;  %v2364_v49 = vsub.f32 %v5982_v9, %v5984_v63 }
0x15f9   :  { %v7514_v39 = vpack.i.bf16 %v2608_v22, %v2628_v2  ;;  %v8664_v28 = vsub.f32 %v5984_v63, %v8655_v0  ;;  %v5995_v27 = vadd.f32 1.4, %v8578_v51  ;;  %v8668_v53 = vsub.f32 -0.6, %v8578_v51 }
0x15fa   :  { %v8671_v33 = vadd.f32 1.0, %v8578_v51  ;;  %v8674_v54 = vsub.f32 -0.2, %v8578_v51  ;;  %v8677_v57 = vadd.f32 0.6, %v8578_v51  ;;  %v8680_v56 = vsub.f32 1.0, %v8568_v44 }
0x15fb   :  { %7515 = vrot.lane.b32.xlu1 %v7514_v39, %s7844_s19  ;;  %v2401_v60 = vmul.f32 2.5, %v5995_v27  ;;  %v2407_v5 = vmul.f32 2.5, %v8668_v53  ;;  %v2433_v6 = vsub.f32 0.2, %v8578_v51  ;;  %v6002_v16 = vadd.f32 -0.2, %v8568_v44 }
0x15fc   :  { %v2415_v21 = vmul.f32 2.5, %v8671_v33  ;;  %v2421_v25 = vmul.f32 2.5, %v8674_v54  ;;  %v2429_v35 = vmul.f32 2.5, %v8677_v57  ;;  %v2462_v7 = vmul.f32 2.5, %v8680_v56 }
0x15fd   :  { %v2403_v37 = vmul.f32 %v2401_v60, %v8651_v10  ;;  %v2409_v38 = vmul.f32 %v2407_v5, %v2355_v11  ;;  %v2435_v40 = vmul.f32 2.5, %v2433_v6  ;;  %v2456_v47 = vmul.f32 2.5, %v6002_v16 }
0x15fe   :  { %v2417_v41 = vmul.f32 %v2415_v21, %v2355_v11  ;;  %v2423_v15 = vmul.f32 %v2421_v25, %v2357_v61  ;;  %v2431_v30 = vmul.f32 %v2429_v35, %v2357_v61  ;;  %v2464_v22 = vmul.f32 %v2462_v7, %v2362_v48 }
0x15ff   :  { %v8691_v62 = vadd.f32 %v2409_v38, %v2403_v37  ;;  %v2437_v3 = vmul.f32 %v2435_v40, %v8658_v52  ;;  %v2458_v4 = vmul.f32 %v2456_v47, %v8661_v43  ;;  %v8696_v13 = vadd.f32 -0.6, %v8568_v44 }
0x1600   :  { %v2425_v9 = vadd.f32 %v2423_v15, %v2417_v41  ;;  %v8699_v2 = vsub.f32 1.4, %v8568_v44  ;;  %v8702_v63 = vadd.f32 -1.0, %v8568_v44  ;;  %v2488_v11 = vsub.f32 1.8, %v8568_v44 }
0x1601   :  { %v8705_v61 = vadd.f32 %v2437_v3, %v2431_v30  ;;  %v8707_v39 = vadd.f32 %v2464_v22, %v2458_v4  ;;  %v2470_v60 = vmul.f32 2.5, %v8696_v13  ;;  %v2531_v5 = vmul.f32 1.25, %v5995_v27 }
0x1602   :  { %v2476_v21 = vmul.f32 2.5, %v8699_v2  ;;  %v2484_v25 = vmul.f32 2.5, %v8702_v63  ;;  %v2490_v35 = vmul.f32 2.5, %v2488_v11  ;;  %v2535_v7 = vmul.f32 1.25, %v8674_v54 }
0x1603   :  { %v2472_v37 = vmul.f32 %v2470_v60, %v2362_v48  ;;  %v2533_v38 = vmul.f32 %v2531_v5, %v8691_v62  ;;  %v2541_v40 = vmul.f32 1.25, %v8671_v33  ;;  %v2545_v47 = vmul.f32 1.25, %v2433_v6 }
0x1604   :  { %v2478_v41 = vmul.f32 %v2476_v21, %v2364_v49  ;;  %v2486_v15 = vmul.f32 %v2484_v25, %v2364_v49  ;;  %v2492_v30 = vmul.f32 %v2490_v35, %v8664_v28  ;;  %v2537_v22 = vmul.f32 %v2535_v7, %v2425_v9 }
0x1605   :  { %v2543_v3 = vmul.f32 %v2541_v40, %v2425_v9  ;;  %v2547_v4 = vmul.f32 %v2545_v47, %v8705_v61  ;;  %v2570_v46 = vmul.f32 1.25, %v6002_v16  ;;  %v2574_v31 = vmul.f32 1.25, %v8699_v2 }
0x1606   :  { %v2480_v29 = vadd.f32 %v2478_v41, %v2472_v37  ;;  %v8718_v20 = vadd.f32 %v2492_v30, %v2486_v15  ;;  %v8720_v48 = vadd.f32 %v2537_v22, %v2533_v38  ;;  %v2580_v60 = vmul.f32 1.25, %v8696_v13 }
0x1607   :  { %v8723_v5 = vadd.f32 %v2547_v4, %v2543_v3  ;;  %v2572_v49 = vmul.f32 %v2570_v46, %v8707_v39  ;;  %v2584_v21 = vmul.f32 1.25, %v2488_v11  ;;  %v2621_v25 = vmul.f32 0.8333333, %v5995_v27 }
0x1608   :  { %v2576_v35 = vmul.f32 %v2574_v31, %v2480_v29  ;;  %v2582_v9 = vmul.f32 %v2580_v60, %v2480_v29  ;;  %v2625_v7 = vmul.f32 0.8333333, %v2433_v6  ;;  %v2660_v40 = vmul.f32 0.8333333, %v6002_v16 }
0x1609   :  { %v2586_v47 = vmul.f32 %v2584_v21, %v8718_v20  ;;  %v2623_v37 = vmul.f32 %v2621_v25, %v8720_v48  ;;  %v2664_v41 = vmul.f32 0.8333333, %v2488_v11  ;;  %vm2277_vm15 = vcmp.ge.f32.partialorder %v8578_v51, -2.2 }
0x160a   :  { %v8729_v38 = vadd.f32 %v2576_v35, %v2572_v49  ;;  %v2627_v15 = vmul.f32 %v2625_v7, %v8723_v5  ;;  %v5967_v30 = vsel %vm2277_vm15, 1.0, %v9968_v18  ;;  %vm2283_vm0 = vcmp.ge.f32.partialorder %v8578_v51, -1.8 }
0x160b   :  { %v8734_v46 = vadd.f32 %v2586_v47, %v2582_v9  ;;  %v5969_v29 = vsel %vm2283_vm0, 1.0, %v9968_v18  ;;  %v5991_v31 = vadd.f32 2.2, %v8578_v51  ;;  %v2377_v27 = vsub.f32 -1.4, %v8578_v51 }
0x160c   :  { %v2629_v6 = vadd.f32 %v2627_v15, %v2623_v37  ;;  %v2662_v16 = vmul.f32 %v2660_v40, %v8729_v38  ;;  %v2349_v11 = vsub.f32 %v5967_v30, %v5969_v29  ;;  %v2351_v22 = vsub.f32 %v5969_v29, %v8630_v42 }
0x160d   :  { %v2666_v3 = vmul.f32 %v2664_v41, %v8734_v46  ;;  %v2373_v4 = vmul.f32 2.5, %v5991_v31  ;;  %v2379_v60 = vmul.f32 2.5, %v2377_v27  ;;  %v8743_v49 = vadd.f32 1.8, %v8578_v51 }
0x160e   :  { %v2391_v21 = vsub.f32 -1.0, %v8578_v51  ;;  %v8747_v25 = vadd.f32 0.2, %v8568_v44  ;;  %v8750_v35 = vsub.f32 0.6, %v8568_v44  ;;  %v2511_v9 = vmul.f32 1.25, %v5991_v31 }
0x160f   :  { %v2668_v7 = vadd.f32 %v2666_v3, %v2662_v16  ;;  %v2375_v40 = vmul.f32 %v2373_v4, %v2349_v11  ;;  %v2381_v47 = vmul.f32 %v2379_v60, %v2351_v22  ;;  %v2387_v42 = vmul.f32 2.5, %v8743_v49 }
0x1610   :  { %v2393_v37 = vmul.f32 2.5, %v2391_v21  ;;  %v2442_v41 = vmul.f32 2.5, %v8747_v25  ;;  %v2448_v15 = vmul.f32 2.5, %v8750_v35  ;;  %v2515_v30 = vmul.f32 1.25, %v2391_v21 }
0x1611   :  { %v7519_v29 = vpack.i.bf16 %v2668_v7, %v2629_v6  ;;  %v2383_v27 = vadd.f32 %v2381_v47, %v2375_v40  ;;  %v2389_v18 = vmul.f32 %v2387_v42, %v2351_v22  ;;  %v2521_v55 = vmul.f32 1.25, %v8743_v49 }
0x1612   :  { %v2395_v1 = vmul.f32 %v2393_v37, %v8651_v10  ;;  %v2444_v23 = vmul.f32 %v2442_v41, %v8590_v14  ;;  %v2450_v16 = vmul.f32 %v2448_v15, %v8661_v43  ;;  %v2525_v11 = vmul.f32 1.25, %v8668_v53 }
0x1613   :  { %7520 = vrot.lane.b32.xlu0 %v7519_v29, %s7844_s19  ;;  %v2513_v3 = vmul.f32 %v2511_v9, %v2383_v27  ;;  %v2550_v4 = vmul.f32 1.25, %v8610_v8  ;;  %v2554_v60 = vmul.f32 1.25, %v8750_v35  ;;  %v2560_v6 = vmul.f32 1.25, %v8747_v25 }
0x1614   :  { %v2397_v22 = vadd.f32 %v2395_v1, %v2389_v18  ;;  %v2452_v21 = vadd.f32 %v2450_v16, %v2444_v23  ;;  %v2527_v7 = vmul.f32 %v2525_v11, %v8691_v62  ;;  %v2564_v10 = vmul.f32 1.25, %v8680_v56 }
0x1615   :  { %v2552_v14 = vmul.f32 %v2550_v4, %v8618_v26  ;;  %v2601_v43 = vmul.f32 0.8333333, %v5991_v31  ;;  %v2605_v40 = vmul.f32 0.8333333, %v8668_v53  ;;  %v2640_v47 = vmul.f32 0.8333333, %v8610_v8 }
0x1616   :  { %v2517_v9 = vmul.f32 %v2515_v30, %v2397_v22  ;;  %v2523_v42 = vmul.f32 %v2521_v55, %v2397_v22  ;;  %v2556_v37 = vmul.f32 %v2554_v60, %v2452_v21  ;;  %v2562_v41 = vmul.f32 %v2560_v6, %v2452_v21 }
0x1617   :  { %v2566_v15 = vmul.f32 %v2564_v10, %v8707_v39  ;;  %v2644_v18 = vmul.f32 0.8333333, %v8680_v56  ;;  %vm2319_vm1 = vcmp.ge.f32.partialorder %v8578_v51, 0.6  ;;  %vm2325_vm5 = vcmp.ge.f32.partialorder %v8578_v51, 1.0 }
0x1618   :  { %v2519_v23 = vadd.f32 %v2517_v9, %v2513_v3  ;;  %v8773_v1 = vadd.f32 %v2527_v7, %v2523_v42  ;;  %v8775_v26 = vadd.f32 %v2556_v37, %v2552_v14  ;;  %v10002_v53 = vmov 0.0  }
0x1619   :  { %v5981_v62 = vsel %vm2319_vm1, 1.0, %v10002_v53  ;;  %v8778_v8 = vadd.f32 %v2566_v15, %v2562_v41  ;;  %v5983_v55 = vsel %vm2325_vm5, 1.0, %v10002_v53  ;;  %vm2331_vm6 = vcmp.ge.f32.partialorder %v8578_v51, 1.4 }
0x161a   :  { %vm2337_vm13 = vcmp.ge.f32.partialorder %v8578_v51, 1.8  ;;  %v2603_v56 = vmul.f32 %v2601_v43, %v2519_v23  ;;  %v2607_v39 = vmul.f32 %v2605_v40, %v8773_v1  ;;  %v2642_v31 = vmul.f32 %v2640_v47, %v8775_v26 }
0x161b   :  { %v5985_v30 = vsel %vm2331_vm6, 1.0, %v10002_v53  ;;  %v2646_v29 = vmul.f32 %v2644_v18, %v8778_v8  ;;  %v5987_v27 = vsel %vm2337_vm13, 1.0, %v10002_v53  ;;  %vm2343_vm14 = vcmp.ge.f32.partialorder %v8578_v51, 2.2 }
0x161c   :  { %v2361_v16 = vsub.f32 %v8644_v12, %v5981_v62  ;;  %v2609_v11 = vadd.f32 %v2607_v39, %v2603_v56  ;;  %v5989_v3 = vsel %vm2343_vm14, 1.0, %v10002_v53  ;;  %v2363_v4 = vsub.f32 %v5981_v62, %v5983_v55 }
0x161d   :  { %v2365_v60 = vsub.f32 %v5983_v55, %v5985_v30  ;;  %v2648_v6 = vadd.f32 %v2646_v29, %v2642_v31  ;;  %v2367_v22 = vsub.f32 %v5985_v30, %v5987_v27  ;;  %v2369_v21 = vsub.f32 %v5987_v27, %v5989_v3 }
0x161e   :  { %v8792_v7 = vadd.f32 0.2, %v8578_v51  ;;  %v8795_v10 = vsub.f32 0.6, %v8578_v51  ;;  %v6003_v14 = vadd.f32 -0.2, %v8578_v51 }
0x161f   :  { %v2461_v43 = vsub.f32 1.0, %v8578_v51  ;;  %v6007_v12 = vadd.f32 -1.0, %v8578_v51  ;;  %v7524_v40 = vpack.i.bf16 %v2648_v6, %v2609_v11  ;;  %v8802_v9 = vadd.f32 -0.6, %v8578_v51 }
0x1620   :  { %v2443_v47 = vmul.f32 2.5, %v8792_v7  ;;  %v8805_v42 = vsub.f32 1.4, %v8578_v51  ;;  %v2449_v37 = vmul.f32 2.5, %v8795_v10  ;;  %v2457_v41 = vmul.f32 2.5, %v6003_v14 }
0x1621   :  { %v2463_v15 = vmul.f32 2.5, %v2461_v43  ;;  %v2485_v18 = vmul.f32 2.5, %v6007_v12  ;;  %7525 = vrot.lane.b32.xlu1 %v7524_v40, %s7844_s19  ;;  %v2471_v62 = vmul.f32 2.5, %v8802_v9  ;;  %v2489_v56 = vsub.f32 1.8, %v8578_v51 }
0x1622   :  { %v2445_v23 = vmul.f32 %v2443_v47, %v8658_v52  ;;  %v2477_v55 = vmul.f32 2.5, %v8805_v42  ;;  %v2451_v39 = vmul.f32 %v2449_v37, %v2361_v16  ;;  %v2459_v31 = vmul.f32 %v2457_v41, %v2361_v16 }
0x1623   :  { %v2465_v30 = vmul.f32 %v2463_v15, %v2363_v4  ;;  %v2487_v29 = vmul.f32 %v2485_v18, %v2365_v60  ;;  %v2473_v27 = vmul.f32 %v2471_v62, %v2363_v4  ;;  %v2491_v3 = vmul.f32 2.5, %v2489_v56 }
0x1624   :  { %v2479_v11 = vmul.f32 %v2477_v55, %v2365_v60  ;;  %v6009_v6 = vadd.f32 -1.4, %v8578_v51  ;;  %v2453_v59 = vadd.f32 %v2451_v39, %v2445_v23  ;;  %v2503_v40 = vsub.f32 2.2, %v8578_v51 }
0x1625   :  { %v2467_v58 = vadd.f32 %v2465_v30, %v2459_v31  ;;  %v2551_v52 = vmul.f32 1.25, %v8677_v57  ;;  %v2493_v50 = vmul.f32 %v2491_v3, %v2367_v22  ;;  %v2555_v45 = vmul.f32 1.25, %v8795_v10 }
0x1626   :  { %v2481_v47 = vadd.f32 %v2479_v11, %v2473_v27  ;;  %v2499_v19 = vmul.f32 2.5, %v6009_v6  ;;  %v2505_v37 = vmul.f32 2.5, %v2503_v40  ;;  %v2561_v4 = vmul.f32 1.25, %v8792_v7 }
0x1627   :  { %v2553_v16 = vmul.f32 %v2551_v52, %v8705_v61  ;;  %v2565_v60 = vmul.f32 1.25, %v2461_v43  ;;  %v2495_v41 = vadd.f32 %v2493_v50, %v2487_v29  ;;  %v2557_v18 = vmul.f32 %v2555_v45, %v2453_v59 }
0x1628   :  { %v2501_v15 = vmul.f32 %v2499_v19, %v2367_v22  ;;  %v2571_v23 = vmul.f32 1.25, %v6003_v14  ;;  %v2507_v62 = vmul.f32 %v2505_v37, %v2369_v21  ;;  %v2563_v55 = vmul.f32 %v2561_v4, %v2453_v59  ;;  %v2206_v59 = vld [vmem:[%s9961_s4 + $0x70] sm:$0xff] }
0x1629   :  { %v2567_v39 = vmul.f32 %v2565_v60, %v2467_v58  ;;  %v2575_v31 = vmul.f32 1.25, %v8805_v42  ;;  %v8820_v30 = vadd.f32 %v2557_v18, %v2553_v16  ;;  %v2581_v11 = vmul.f32 1.25, %v8802_v9  ;;  %v2236_v18 = vld [vmem:[%s9961_s4 + $0x160] sm:$0xff] }
0x162a   :  { %v2573_v27 = vmul.f32 %v2571_v23, %v2467_v58  ;;  %v2585_v3 = vmul.f32 1.25, %v2489_v56  ;;  %v2509_v6 = vadd.f32 %v2507_v62, %v2501_v15  ;;  %v2591_v24 = vmul.f32 1.25, %v6007_v12  ;;  %v2207_v58 = vld [vmem:[%s9961_s4 + $0x78] sm:$0xff]  ;;  %v2252_v12 = vld [vmem:[%s9961_s4 + $0x1e0] sm:$0xff] }
0x162b   :  { %v8823_v61 = vadd.f32 %v2567_v39, %v2563_v55  ;;  %v2577_v52 = vmul.f32 %v2575_v31, %v2481_v47  ;;  %v2583_v50 = vmul.f32 %v2581_v11, %v2481_v47  ;;  %v2595_v45 = vmul.f32 1.25, %v2503_v40  ;;  %v2254_v55 = vld [vmem:[%s9961_s4 + $0x1f0] sm:$0xff] }
0x162c   :  { %v2587_v19 = vmul.f32 %v2585_v3, %v2495_v41  ;;  %v2641_v22 = vmul.f32 0.8333333, %v8677_v57  ;;  %v2593_v29 = vmul.f32 %v2591_v24, %v2495_v41  ;;  %v2645_v37 = vmul.f32 0.8333333, %v2461_v43  ;;  %v2253_v57 = vld [vmem:[%s9961_s4 + $0x1e8] sm:$0xff]  ;;  %v2255_v3 = vld [vmem:[%s9961_s4 + $0x1f8] sm:$0xff] }
0x162d   :  { %v8832_v21 = vadd.f32 %v2577_v52, %v2573_v27  ;;  %v2661_v16 = vmul.f32 0.8333333, %v6003_v14  ;;  %v2597_v4 = vmul.f32 %v2595_v45, %v2509_v6  ;;  %v2665_v15 = vmul.f32 0.8333333, %v2489_v56  ;;  %v2237_v24 = vld [vmem:[%s9961_s4 + $0x168] sm:$0xff]  ;;  %v2256_v14 = vld [vmem:[%s9961_s4 + $0x200] sm:$0xff] }
0x162e   :  { %v2589_v47 = vadd.f32 %v2587_v19, %v2583_v50  ;;  %v2643_v60 = vmul.f32 %v2641_v22, %v8820_v30  ;;  %v2647_v43 = vmul.f32 %v2645_v37, %v8823_v61  ;;  %v2671_v23 = vmul.f32 0.8333333, %v8802_v9  ;;  %v2257_v56 = vld [vmem:[%s9961_s4 + $0x208] sm:$0xff]  ;;  %v2238_v9 = vld [vmem:[%s9961_s4 + $0x170] sm:$0xff] }
0x162f   :  { %v2663_v41 = vmul.f32 %v2661_v16, %v8832_v21  ;;  %v2675_v62 = vmul.f32 0.8333333, %v2503_v40  ;;  %v2599_v39 = vadd.f32 %v2597_v4, %v2593_v29  ;;  %v7151_v27 = vpack.c.bf16 %v2207_v58, %v2206_v59  ;;  %v2239_v40 = vld [vmem:[%s9961_s4 + $0x178] sm:$0xff] }
0x1630   :  { %v2667_v31 = vmul.f32 %v2665_v15, %v2589_v47  ;;  %v7177_v11 = vpack.c.bf16 %v2253_v57, %v2252_v12  ;;  %v2649_v6 = vadd.f32 %v2647_v43, %v2643_v60  ;;  %v2673_v52 = vmul.f32 %v2671_v23, %v2589_v47 }
0x1631   :  { %v7179_v50 = vpack.c.bf16 %v2237_v24, %v2236_v18  ;;  %v2677_v45 = vmul.f32 %v2675_v62, %v2599_v39  ;;  %7152 = vmatpush3.bf16.msra.mxu0 %v7151_v27  ;;  %v8868_v22 = vpack.c.bf16 %v2257_v56, %v2256_v14  ;;  %v7181_v59 = vpack.c.bf16 %v2255_v3, %v2254_v55 }
0x1632   :  { %v2669_v19 = vadd.f32 %v2667_v31, %v2663_v41  ;;  %7178 = vmatprep.subr.bf16.mxu1 %v7177_v11  ;;  %v7183_v58 = vpack.c.bf16 %v2239_v40, %v2238_v9  ;;  %v2611_v16 = vmul.f32 0.8333333, %v8743_v49  ;;  %v2615_v12 = vmul.f32 0.8333333, %v8674_v54 }
0x1633   :  { %7180 = vmatpush3.bf16.msra.mxu1 %v7179_v50  ;;  %v8870_v29 = vadd.f32 %v2677_v45, %v2673_v52  ;;  %7186 = vmatprep.subr.bf16.mxu0 %v8868_v22  ;;  %v2650_v57 = vmul.f32 0.8333333, %v8747_v25  ;;  %v2654_v4 = vmul.f32 0.8333333, %v8699_v2  ;;  %v2634_v49 = vmul.f32 0.8333333, %v8750_v35 }
0x1634   :  { %v7529_v37 = vpack.i.bf16 %v2649_v6, %v2669_v19  ;;  %7182 = vmatprep.subr.bf16.mxu1 %v7181_v59  ;;  %v2613_v47 = vmul.f32 %v2611_v16, %v8773_v1  ;;  %v2617_v60 = vmul.f32 %v2615_v12, %v8720_v48  ;;  %vm2342_vm15 = vcmp.ge.f32.partialorder %v8568_v44, 2.2  ;;  %v2258_v59 = vld [vmem:[%s9961_s4 + $0x210] sm:$0xff] }
0x1635   :  { %v2652_v15 = vmul.f32 %v2650_v57, %v8778_v8  ;;  %v2656_v18 = vmul.f32 %v2654_v4, %v8729_v38  ;;  %v5988_v25 = vsel %vm2342_vm15, 1.0, %v10002_v53  ;;  %v6008_v24 = vadd.f32 -1.4, %v8568_v44  ;;  %v2260_v57 = vld [vmem:[%s9961_s4 + $0x220] sm:$0xff] }
0x1636   :  { %7530 = vrot.lane.b32.xlu1 %v7529_v37, %s7844_s19  ;;  %v8884_v54 = vadd.f32 %v2617_v60, %v2613_v47  ;;  %v8891_v2 = vmul.f32 %v2634_v49, %v8775_v26  ;;  %v2368_v48 = vsub.f32 %v8655_v0, %v5988_v25  ;;  %v2502_v38 = vsub.f32 2.2, %v8568_v44  ;;  %v2261_v47 = vld [vmem:[%s9961_s4 + $0x228] sm:$0xff] }
0x1637   :  { %7184 = vmatpush3.bf16.msra.mxu1 %v7183_v58  ;;  %v8888_v1 = vadd.f32 %v2656_v18, %v2652_v15  ;;  %v2498_v8 = vmul.f32 2.5, %v6008_v24  ;;  %v2590_v35 = vmul.f32 1.25, %v8702_v63  ;;  %v2670_v14 = vmul.f32 0.8333333, %v8696_v13  ;;  %v2259_v58 = vld [vmem:[%s9961_s4 + $0x218] sm:$0xff]  ;;  %v2262_v15 = vld [vmem:[%s9961_s4 + $0x230] sm:$0xff] }
0x1638   :  { %v2651_v43 = vmul.f32 0.8333333, %v8792_v7  ;;  %v2655_v41 = vmul.f32 0.8333333, %v8805_v42  ;;  %v2504_v62 = vmul.f32 2.5, %v2502_v38  ;;  %v2594_v42 = vmul.f32 1.25, %v2502_v38 }
0x1639   :  { %v2500_v23 = vmul.f32 %v2498_v8, %v8664_v28  ;;  %v2592_v56 = vmul.f32 %v2590_v35, %v8718_v20  ;;  %v2672_v26 = vmul.f32 %v2670_v14, %v8734_v46  ;;  %v2631_v63 = vmul.f32 0.8333333, %v8671_v33  ;;  %v2263_v18 = vld [vmem:[%s9961_s4 + $0x238] sm:$0xff] }
0x163a   :  { %v2653_v0 = vmul.f32 %v2651_v43, %v8823_v61  ;;  %v2657_v55 = vmul.f32 %v2655_v41, %v8832_v21  ;;  %v2506_v39 = vmul.f32 %v2504_v62, %v2368_v48  ;;  %v2635_v13 = vmul.f32 0.8333333, %v8795_v10  ;;  %v10003_v14 = vld [vmem:[#allocation12_spill] sm:$0xff]  ;;  %v10004_v41 = vld [vmem:[#allocation13_spill] sm:$0xff] }
0x163b   :  { %v2633_v28 = vmul.f32 %v2631_v63, %v8723_v5  ;;  %v2674_v61 = vmul.f32 0.8333333, %v2502_v38  ;;  %v2264_v21 = vsub.f32 0.0, %v8568_v44  ;;  %v2610_v6 = vmul.f32 0.8333333, %v8595_v17 }
0x163c   :  { %v8906_v31 = vadd.f32 %v2657_v55, %v2653_v0  ;;  %v2508_v7 = vadd.f32 %v2506_v39, %v2500_v23  ;;  %v2637_v27 = vmul.f32 %v2635_v13, %v8820_v30  ;;  %v2614_v5 = vmul.f32 0.8333333, %v8604_v32 }
0x163d   :  { %v2266_v33 = vmul.f32 1.442695, %v2264_v21  ;;  %v2612_v30 = vmul.f32 %v2610_v6, %v8620_v34  ;;  %v2265_v32 = vsub.f32 0.0, %v8578_v51  ;;  %v7189_v12 = vpack.c.bf16 %v2259_v58, %v2258_v59 }
0x163e   :  { %v2596_v20 = vmul.f32 %v2594_v42, %v2508_v7  ;;  %v8910_v11 = vadd.f32 %v2637_v27, %v2633_v28  ;;  %v2616_v52 = vmul.f32 %v2614_v5, %v8622_v36  ;;  %v7193_v60 = vpack.c.bf16 %v2261_v47, %v2260_v57  ;;  %v8972_v47 = vld [vmem:[%s9960_s3 + $0x98] sm:$0xff] }
0x163f   :  { %7717 = vpow2.f32 %v2266_v33  ;;  %v2268_v4 = vmul.f32 1.442695, %v2265_v32  ;;  %v7197_v49 = vpack.c.bf16 %v2263_v18, %v2262_v15  ;;  %v2630_v43 = vmul.f32 0.8333333, %v10003_v14  ;;  %v6014_v18 = vld [vmem:[%s9960_s3 + $0x90] sm:$0xff]  ;;  %v9012_v14 = vld [vmem:[%s9960_s3 + $0xd8] sm:$0xff] }
0x1640   :  { %v2598_v46 = vadd.f32 %v2596_v20, %v2592_v56  ;;  %v2618_v45 = vadd.f32 %v2616_v52, %v2612_v30 }
0x1641   :  { %v2632_v23 = vmul.f32 %v2630_v43, %v10004_v41 }
0x1642   :  { %v2676_v3 = vmul.f32 %v2674_v61, %v2598_v46 }
0x1643   :  { %v2638_v39 = vadd.f32 %v8891_v2, %v2632_v23  ;;  %v9019_v23 = vld [vmem:[%s9960_s3 + $0xe8] sm:$0xff] }
0x1644   :  { %v2678_v9 = vadd.f32 %v2676_v3, %v2672_v26 }
0x1649   :  { %v7718_v10 = vpop.eup %7717 }
0x164a   :  { %v2270_v40 = vadd.f32 1.0, %v7718_v10 }
0x164c   :  { %7719 = vrcp.f32 %v2270_v40 }
0x164d   :  { %7721 = vpow2.f32 %v2268_v4  ;;  %v6012_v4 = vld [vmem:[%s9960_s3 + $0x80] sm:$0xff] }
0x1656   :  { %v7720_v50 = vpop.eup %7719 }
0x1657   :  { %v2274_v17 = vmul.f32 %v7720_v50, %v8568_v44  ;;  %v7722_v25 = vpop.eup %7721 }
0x1658   :  { %v2271_v24 = vadd.f32 1.0, %v7722_v25  ;;  %v8992_v25 = vld [vmem:[%s9960_s3 + $0xb8] sm:$0xff] }
0x165a   :  { %7723 = vrcp.f32 %v2271_v24  ;;  %v7203_v24 = vpack.c.bf16 %v6014_v18, %v6012_v4 }
0x1664   :  { %v7724_v62 = vpop.eup %7723 }
0x1665   :  { %v2275_v55 = vmul.f32 %v7724_v62, %v8578_v51  ;;  %v9024_v62 = vld [vmem:[%s9960_s3 + $0xf8] sm:$0xff] }
0x166d   :  { %v7516_v19 = vpop.permute.xlu1 %7515 }
0x166e   :  { %v7518_v37 = vunpack.i.h.bf16 %v7516_v19  ;;  %v7517_v16 = vunpack.i.l.bf16 %v7516_v19 }
0x1670   :  { %v2714_v34 = vsel %vm255_vm2, %v2618_v45, %v7517_v16  ;;  %v2712_v36 = vsel %vm255_vm2, %v2274_v17, %v7518_v37 }
0x1671   :  { %2790 = vmatprep.mubr.f32.mxu0 %v2714_v34 }
0x1672   :  { %2791 = vmatmul.mubr.f32.vlgmr.msra.gmra.mrb[20].mxu0 %v2712_v36 }
0x1673   :  { %7188 = vmatpush3.bf16.msra.mxu0 %v8868_v22 }
0x1674   :  { %7190 = vmatprep.subr.bf16.mxu0 %v7189_v12 }
0x1677   :  { %7192 = vmatpush3.bf16.msra.mxu0 %v7189_v12 }
0x1678   :  { %7194 = vmatprep.subr.bf16.mxu0 %v7193_v60 }
0x167b   :  { %7196 = vmatpush3.bf16.msra.mxu0 %v7193_v60 }
0x167c   :  { %7198 = vmatprep.subr.bf16.mxu0 %v7197_v49 }
0x167f   :  { %7200 = vmatpush3.bf16.msra.mxu0 %v7197_v49  ;;  %v8987_v49 = vld [vmem:[%s9960_s3 + $0xa8] sm:$0xff] }
0x1685   :  { %v7521_v22 = vpop.permute.xlu0 %7520 }
0x1686   :  { %v7523_v48 = vunpack.i.h.bf16 %v7521_v22  ;;  %v7522_v8 = vunpack.i.l.bf16 %v7521_v22  ;;  %v7614_v22 = vpack.i.bf16 %v8992_v25, %v8987_v49 }
0x1688   :  { %v2715_v38 = vsel %vm255_vm2, %v8884_v54, %v7522_v8  ;;  %v2718_v35 = vsel %vm255_vm2, %v8888_v1, %v7523_v48  ;;  %v7205_v48 = vpack.c.bf16 %v8992_v25, %v8987_v49  ;;  %v6016_v8 = vld [vmem:[%s9960_s3 + $0xa0] sm:$0xff] }
0x1689   :  { %2795 = vmatprep.mubr.f32.mxu0 %v2715_v38  ;;  %2865 = vmatprep.mubr.f32.mxu1 %v2718_v35  ;;  %v6018_v38 = vld [vmem:[%s9960_s3 + $0xb0] sm:$0xff]  ;;  %v9007_v35 = vld [vmem:[%s9960_s3 + $0xc8] sm:$0xff] }
0x168a   :  { %v7207_v43 = vpack.c.bf16 %v6018_v38, %v6016_v8  ;;  %v7619_v41 = vpack.i.bf16 %v9012_v14, %v9007_v35 }
0x1693   :  { %v7526_v56 = vpop.permute.xlu1 %7525 }
0x1694   :  { %v7528_v26 = vunpack.i.h.bf16 %v7526_v56  ;;  %v7527_v0 = vunpack.i.l.bf16 %v7526_v56  ;;  %v7209_v56 = vpack.c.bf16 %v9012_v14, %v9007_v35 }
0x1696   :  { %v2713_v63 = vsel %vm255_vm2, %v2275_v55, %v7527_v0  ;;  %v2716_v54 = vsel %vm255_vm2, %v2638_v39, %v7528_v26  ;;  %v6020_v26 = vld [vmem:[%s9960_s3 + $0xc0] sm:$0xff]  ;;  %v6022_v0 = vld [vmem:[%s9960_s3 + $0xd0] sm:$0xff]  ;;  %v7624_v55 = vpack.i.bf16 %v9024_v62, %v9019_v23 }
0x1697   :  { %2796 = vmatmul.mubr.f32.gmra.mrb[22].mxu0 %v2713_v63  ;;  %2866 = vmatmul.mubr.f32.vlgmr.msra.gmra.mrb[22].mxu1 %v2716_v54  ;;  %v7211_v39 = vpack.c.bf16 %v6022_v0, %v6020_v26  ;;  %v7213_v63 = vpack.c.bf16 %v9024_v62, %v9019_v23  ;;  %v6024_v54 = vld [vmem:[%s9960_s3 + $0xe0] sm:$0xff] }
0x1698   :  { %6780 = vmatprep.mubr.msk.f32.mxu0 %vm255_vm2, %v2678_v9 }
0x169b   :  { %6781 = vmatmul.mubr.msk.f32.vlgmr.msra.gmra.mrb[24].mxu0 %vm255_vm2, %v8870_v29 }
0x16a8   :  { %v7531_v1 = vpop.permute.xlu1 %7530 }
0x16a9   :  { %v7533_v13 = vunpack.i.h.bf16 %v7531_v1  ;;  %v7532_v7 = vunpack.i.l.bf16 %v7531_v1  ;;  %v6026_v1 = vld [vmem:[%s9960_s3 + $0xf0] sm:$0xff] }
0x16ab   :  { %v2719_v42 = vsel %vm255_vm2, %v8906_v31, %v7532_v7  ;;  %v2717_v2 = vsel %vm255_vm2, %v8910_v11, %v7533_v13  ;;  %v7215_v13 = vpack.c.bf16 %v6026_v1, %v6024_v54  ;;  %v7813_v7 = vld [vmem:[%s9962_s5 + $0x8] sm:$0xff] }
0x16ac   :  { %2870 = vmatprep.mubr.f32.mxu1 %v2719_v42  ;;  %v10005_v42 = vld [vmem:[#allocation5_spill] sm:$0xff]  ;;  %v10011_v1 = vld [vmem:[#allocation10_spill] sm:$0xff] }
0x16ad   :  { %2871 = vmatmul.mubr.f32.gmra.mrb[24].mxu1 %v2717_v2  ;;  %v10006_v2 = vsub.s32 5, %v10005_v42 }
0x16ae   :  { %3078 = vmatprep.mubr.f32.mxu1 %v10002_v53 }
0x1745   :  { %v6344_v28 = vpop.f32.mrb[20].mxu0 }
0x1746   :  { %v6345_v27 = vpop.f32.mrb[21].mxu0 }
0x1747   :  { %v6346_v20 = vadd.f32 %v6345_v27, %v6344_v28  ;;  %v3100_v28 = vrot.slane %v7813_v7, %v10006_v2 }
0x176a   :  { %v6347_v46 = vpop.f32.mrb[22].mxu0  ;;  %v6382_v61 = vpop.f32.mrb[22].mxu1 }
0x176b   :  { %v6348_v3 = vpop.f32.mrb[23].mxu0  ;;  %v6383_v29 = vpop.f32.mrb[23].mxu1 }
0x176c   :  { %v6349_v21 = vadd.f32 %v6348_v3, %v6347_v46  ;;  %v6384_v9 = vadd.f32 %v6383_v29, %v6382_v61  ;;  %v9985_v61 = vsub.s32 2, %v10005_v42  ;;  %v9984_v3 = vsub.s32 3, %v10005_v42 }
0x176e   :  { %v6782_v33 = vpop.f32.mrb[24].mxu0  ;;  %v2868_v10 = vadd.f32 %v6384_v9, %v6346_v20  ;;  %v2982_v29 = vrot.slane %v7813_v7, %v9985_v61  ;;  %v2988_v9 = vrot.slane %v7813_v7, %v9984_v3 }
0x176f   :  { %v2942_v40 = vpop.f32.mrb[25].mxu0 }
0x1770   :  { %v2943_v31 = vadd.f32 %v2942_v40, %v2868_v10 }
0x1772   :  { %v2951_v6 = vadd.f32 %v2943_v31, %v8568_v44 }
0x1774   :  { %v2953_v11 = vsel %vm255_vm2, %v2951_v6, 0.0 }
0x1775   :  { %2954 = vadd.xlane.f32.xlu0 %v2953_v11 }
0x1780   :  { %v6385_v5 = vpop.f32.mrb[24].mxu1 }
0x1781   :  { %v6386_v30 = vpop.f32.mrb[25].mxu1 }
0x1782   :  { %v6387_v52 = vadd.f32 %v6386_v30, %v6385_v5 }
0x1784   :  { %v2873_v50 = vadd.f32 %v6387_v52, %v6349_v21 }
0x1786   :  { %v2948_v19 = vadd.f32 %v6782_v33, %v2873_v50 }
0x1788   :  { %v2952_v45 = vadd.f32 %v2948_v19, %v8578_v51  ;;  %v8967_v51 = vld [vmem:[%s9960_s3 + $0x88] sm:$0xff]  ;;  %v10007_v19 = vsub.s32 4, %v10005_v42 }
0x1789   :  { %v7609_v60 = vpack.i.bf16 %v8972_v47, %v8967_v51  ;;  %v7201_v15 = vpack.c.bf16 %v8972_v47, %v8967_v51 }
0x178a   :  { %v2956_v59 = vsel %vm255_vm2, %v2952_v45, 0.0 }
0x178b   :  { %2957 = vadd.xlane.f32.xlu1 %v2956_v59  ;;  %7202 = vmatprep.subr.bf16.mxu1 %v7201_v15 }
0x178c   :  { %7204 = vmatpush1.bf16.msra.mxu1 %v7203_v24 }
0x178d   :  { %7206 = vmatprep.subr.bf16.mxu1 %v7205_v48 }
0x1790   :  { %7208 = vmatpush1.bf16.msra.mxu1 %v7207_v43 }
0x1791   :  { %7210 = vmatprep.subr.bf16.mxu1 %v7209_v56 }
0x1794   :  { %7212 = vmatpush1.bf16.msra.mxu1 %v7211_v39  ;;  %v10010_v39 = vld [vmem:[#allocation9_spill] sm:$0xff] }
0x1795   :  { %7214 = vmatprep.subr.bf16.mxu1 %v7213_v63 }
0x1798   :  { %7216 = vmatpush1.bf16.msra.mxu1 %v7215_v13 }
0x179c   :  { %3102 = vrot.lane.b32.xlu1 %v3100_v28, %s7844_s19 }
0x1802   :  { %v2955_v58 = vpop.xlane.xlu0 %2954 }
0x1803   :  { %v2959_v37 = vmul.f32 0.015625, %v2955_v58 }
0x1805   :  { %v2961_v16 = vsub.f32 %v2951_v6, %v2959_v37 }
0x1807   :  { %v2963_v17 = vmul.f32 %v2961_v16, %v2961_v16 }
0x1809   :  { %v2965_v32 = vsel %vm255_vm2, %v2963_v17, 0.0  ;;  %v10008_v17 = vsub.s32 6, %v10005_v42 }
0x180a   :  { %2966 = vadd.xlane.f32.xlu0 %v2965_v32 }
0x180b   :  { %v3110_v32 = vrot.slane %v7813_v7, %v10008_v17 }
0x1818   :  { %v2958_v44 = vpop.xlane.xlu1 %2957 }
0x1819   :  { %v2960_v34 = vmul.f32 0.015625, %v2958_v44 }
0x181b   :  { %v2962_v36 = vsub.f32 %v2952_v45, %v2960_v34  ;;  %v3094_v45 = vrot.slane %v7813_v7, %v10007_v19 }
0x181d   :  { %v2964_v12 = vmul.f32 %v2962_v36, %v2962_v36 }
0x181f   :  { %v2968_v57 = vsel %vm255_vm2, %v2964_v12, 0.0 }
0x1820   :  { %2969 = vadd.xlane.f32.xlu0 %v2968_v57 }
0x1897   :  { %v2967_v27 = vpop.xlane.xlu0 %2966 }
0x1898   :  { %v2971_v20 = vmul.f32 0.015625, %v2967_v27 }
0x189a   :  { %v2973_v46 = vadd.f32 1e-05, %v2971_v20 }
0x189c   :  { %7725 = vrsqrt.f32 %v2973_v46 }
0x18a6   :  { %v7726_v21 = vpop.eup %7725 }
0x18a7   :  { %v2977_v33 = vmul.f32 %v7726_v21, %v2961_v16  ;;  %v3103_v16 = vpop.permute.xlu1 %3102 }
0x18a9   :  { %v2983_v10 = vmul.f32 %v2982_v29, %v2977_v33 }
0x18ab   :  { %v9056_v40 = vadd.f32 %v2988_v9, %v2983_v10 }
0x18ad   :  { %v2970_v31 = vpop.xlane.xlu0 %2969  ;;  %6028 = vmatmul.mubr.msk.f32.vlgmr.msra.gmra.mrb[26].mxu1 %vm255_vm2, %v9056_v40 }
0x18ae   :  { %v2972_v6 = vmul.f32 0.015625, %v2970_v31  ;;  %3084 = vmatprep.mubr.f32.mxu1 %v10002_v53 }
0x18b0   :  { %v2974_v11 = vadd.f32 1e-05, %v2972_v6 }
0x18b2   :  { %7727 = vrsqrt.f32 %v2974_v11 }
0x18bc   :  { %v7728_v5 = vpop.eup %7727 }
0x18bd   :  { %v2978_v30 = vmul.f32 %v7728_v5, %v2962_v36 }
0x18bf   :  { %v2984_v52 = vmul.f32 %v2982_v29, %v2978_v30 }
0x18c1   :  { %v9061_v50 = vadd.f32 %v2988_v9, %v2984_v52 }
0x18c3   :  { %6029 = vmatmul.mubr.msk.f32.gmra.mrb[28].mxu1 %vm255_vm2, %v9061_v50 }
0x1980   :  { %v3080_v59 = vpop.f32.mrb[26].mxu1 }
0x1981   :  { %v9067_v58 = vadd.f32 %v3094_v45, %v3080_v59  ;;  %v3082_v37 = vpop.f32.mrb[27].mxu1  ;;  %v3105_v34 = vadd.f32 %v3103_v16, %v3080_v59 }
0x1982   :  { %v3111_v4 = vadd.f32 %v3110_v32, %v3082_v37 }
0x1983   :  { %6787 = vmatprep.mubr.msk.f32.mxu0 %vm367_vm3, %v9067_v58 }
0x1996   :  { %v3086_v44 = vpop.f32.mrb[28].mxu1 }
0x1997   :  { %v9073_v36 = vadd.f32 %v3094_v45, %v3086_v44  ;;  %v3106_v12 = vadd.f32 %v3103_v16, %v3086_v44  ;;  %v3088_v57 = vpop.f32.mrb[29].mxu1 }
0x1998   :  { %v3112_v15 = vadd.f32 %v3110_v32, %v3088_v57 }
0x1999   :  { %v9075_v18 = vpack.i.bf16 %v3106_v12, %v3105_v34 }
0x199a   :  { %v7223_v24 = vpack.c.bf16 %v3112_v15, %v3111_v4  ;;  %v9077_v48 = vpack.i.bf16 %v3112_v15, %v3111_v4 }
0x199b   :  { %7535 = vrot.lane.b32.xlu0 %v9075_v18, %s7844_s19 }
0x1a0d   :  { %v7536_v8 = vpop.permute.xlu0 %7535 }
0x1a0e   :  { %v7538_v38 = vunpack.i.h.bf16 %v7536_v8  ;;  %v7537_v43 = vunpack.i.l.bf16 %v7536_v8 }
0x1a10   :  { %v7217_v56 = vpack.c.bf16 %v7538_v38, %v7537_v43 }
0x1a12   :  { %7219 = vmatprep.subr.msk.bf16.mxu0 %vm8110_vm4, %v7217_v56 }
0x1a13   :  { %7222 = vmatpush3.bf16.xpose.msk.msra.mxu0 %vm8110_vm4, %v7217_v56 }
0x1a14   :  { %7224 = vmatprep.subr.bf16.mxu0 %v7223_v24 }
0x1a1a   :  { %6788 = vmatmul.mubr.msk.f32.vlgmr.msra.gmra.mrb[26].mxu0 %vm367_vm3, %v9073_v36 }
0x1a1b   :  { %7226 = vmatpush3.bf16.msra.mxu0 %v7223_v24 }
0x1aed   :  { %v6789_v0 = vpop.f32.mrb[26].mxu0 }
0x1aee   :  { %v3201_v63 = vadd.f32 %v6789_v0, %v10010_v39  ;;  %v3195_v54 = vpop.f32.mrb[27].mxu0 }
0x1aef   :  { %v3196_v13 = vadd.f32 %v3195_v54, %v10011_v1 }
0x1af0   :  { %v3207_v7 = vsel %vm453_vm7, %v3201_v63, -inf }
0x1af1   :  { %3208 = vmax.xlane.f32.xlu0 %v3207_v7  ;;  %v3204_v2 = vsel %vm453_vm7, %v3196_v13, -inf }
0x1af2   :  { %3205 = vmax.xlane.f32.xlu1 %v3204_v2 }
0x1b03   :  { %7540 = vrot.lane.b32.xlu1 %v9075_v18, %s7846_s20 }
0x1b07   :  { %7545 = vrot.lane.b32.xlu1 %v9075_v18, %s7847_s21 }
0x1b7e   :  { %v3209_v28 = vpop.xlane.xlu0 %3208 }
0x1b7f   :  { %v3211_v27 = vsub.f32 %v3201_v63, %v3209_v28  ;;  %v3206_v20 = vpop.xlane.xlu1 %3205 }
0x1b80   :  { %v3210_v46 = vsub.f32 %v3196_v13, %v3206_v20 }
0x1b81   :  { %v3214_v29 = vmul.f32 1.442695, %v3211_v27 }
0x1b82   :  { %v3212_v21 = vmul.f32 1.442695, %v3210_v46 }
0x1b83   :  { %7729 = vpow2.f32 %v3214_v29  ;;  %v7541_v9 = vpop.permute.xlu1 %7540 }
0x1b84   :  { %7731 = vpow2.f32 %v3212_v21  ;;  %v7543_v33 = vunpack.i.h.bf16 %v7541_v9  ;;  %v7542_v10 = vunpack.i.l.bf16 %v7541_v9 }
0x1b86   :  { %v7227_v31 = vpack.c.bf16 %v7543_v33, %v7542_v10 }
0x1b87   :  { %v7546_v52 = vpop.permute.xlu1 %7545 }
0x1b88   :  { %7229 = vmatprep.subr.msk.bf16.mxu0 %vm8110_vm4, %v7227_v31  ;;  %v7548_v16 = vunpack.i.h.bf16 %v7546_v52  ;;  %v7547_v17 = vunpack.i.l.bf16 %v7546_v52 }
0x1b8a   :  { %v7237_v34 = vpack.c.bf16 %v7548_v16, %v7547_v17 }
0x1b8d   :  { %v7730_v6 = vpop.eup %7729 }
0x1b8e   :  { %v7732_v11 = vpop.eup %7731  ;;  %v3219_v5 = vsel %vm453_vm7, %v7730_v6, 0.0 }
0x1b8f   :  { %3220 = vadd.xlane.f32.xlu0 %v3219_v5  ;;  %v3216_v30 = vsel %vm453_vm7, %v7732_v11, 0.0 }
0x1b90   :  { %3217 = vadd.xlane.f32.xlu1 %v3216_v30 }
0x1ba1   :  { %3309 = vrot.lane.b32.xlu1 %v9073_v36, %s7848_s22 }
0x1ba5   :  { %3307 = vrot.lane.b32.xlu0 %v9067_v58, %s7848_s22  ;;  %3511 = vrot.lane.b32.xlu1 %v9073_v36, %s7849_s23 }
0x1ba9   :  { %3509 = vrot.lane.b32.xlu0 %v9067_v58, %s7849_s23 }
0x1c1c   :  { %v3221_v19 = vpop.xlane.xlu0 %3220 }
0x1c1d   :  { %7733 = vrcp.f32 %v3221_v19  ;;  %v3218_v45 = vpop.xlane.xlu1 %3217 }
0x1c1e   :  { %7735 = vrcp.f32 %v3218_v45 }
0x1c20   :  { %v3308_v12 = vpop.permute.xlu0 %3307 }
0x1c21   :  { %v3310_v57 = vpop.permute.xlu1 %3309 }
0x1c24   :  { %v3510_v4 = vpop.permute.xlu0 %3509 }
0x1c25   :  { %v3512_v15 = vpop.permute.xlu1 %3511 }
0x1c27   :  { %v7734_v59 = vpop.eup %7733 }
0x1c28   :  { %v7736_v37 = vpop.eup %7735  ;;  %v3225_v44 = vmul.f32 %v7734_v59, %v7730_v6 }
0x1c29   :  { %v3224_v32 = vmul.f32 %v7736_v37, %v7732_v11 }
0x1c2b   :  { %6794 = vmatprep.mubr.msk.f32.mxu0 %vm453_vm7, %v3224_v32 }
0x1c2c   :  { %6795 = vmatmul.mubr.msk.f32.vlgmr.msra.gmra.mrb[28].mxu0 %vm453_vm7, %v3225_v44 }
0x1c2d   :  { %7232 = vmatpush3.bf16.xpose.msk.msra.mxu0 %vm8110_vm4, %v7227_v31  ;;  %6801 = vmatprep.mubr.msk.f32.mxu0 %vm367_vm3, %v3308_v12 }
0x1c2e   :  { %7239 = vmatprep.subr.msk.bf16.mxu0 %vm8110_vm4, %v7237_v34 }
0x1c34   :  { %6802 = vmatmul.mubr.msk.f32.vlgmr.msra.gmra.mrb[30].mxu0 %vm367_vm3, %v3310_v57 }
0x1c35   :  { %7242 = vmatpush3.bf16.xpose.msk.msra.mxu0 %vm8110_vm4, %v7237_v34  ;;  %6815 = vmatprep.mubr.msk.f32.mxu0 %vm367_vm3, %v3510_v4 }
0x1c3c   :  { %6816 = vmatmul.mubr.msk.f32.vlgmr.msra.gmra.mrb[32].mxu0 %vm367_vm3, %v3512_v15 }
0x1cff   :  { %v9119_v24 = vpop.f32.mrb[28].mxu0 }
0x1d00   :  { %v9121_v8 = vpop.f32.mrb[29].mxu0 }
0x1d07   :  { %v6803_v38 = vpop.f32.mrb[30].mxu0 }
0x1d08   :  { %v3395_v43 = vadd.f32 %v6803_v38, %v10010_v39  ;;  %v3389_v56 = vpop.f32.mrb[31].mxu0 }
0x1d09   :  { %v3390_v0 = vadd.f32 %v3389_v56, %v10011_v1 }
0x1d0a   :  { %v3401_v63 = vsel %vm453_vm7, %v3395_v43, -inf }
0x1d0b   :  { %3402 = vmax.xlane.f32.xlu1 %v3401_v63  ;;  %v3398_v54 = vsel %vm453_vm7, %v3390_v0, -inf }
0x1d0c   :  { %3399 = vmax.xlane.f32.xlu0 %v3398_v54 }
0x1d0f   :  { %v6817_v13 = vpop.f32.mrb[32].mxu0 }
0x1d10   :  { %v3591_v7 = vpop.f32.mrb[33].mxu0  ;;  %v3597_v28 = vadd.f32 %v6817_v13, %v10010_v39 }
0x1d11   :  { %v3592_v2 = vadd.f32 %v3591_v7, %v10011_v1 }
0x1d12   :  { %v3603_v20 = vsel %vm453_vm7, %v3597_v28, -inf }
0x1d13   :  { %v3600_v27 = vsel %vm453_vm7, %v3592_v2, -inf }
0x1d14   :  { %3601 = vmax.xlane.f32.xlu0 %v3600_v27 }
0x1d18   :  { %3604 = vmax.xlane.f32.xlu0 %v3603_v20 }
0x1d1c   :  { %7550 = vrot.lane.b32.xlu1 %v9077_v48, %s7848_s22 }
0x1d98   :  { %v3403_v46 = vpop.xlane.xlu1 %3402 }
0x1d99   :  { %v3405_v29 = vsub.f32 %v3395_v43, %v3403_v46  ;;  %v3400_v21 = vpop.xlane.xlu0 %3399 }
0x1d9a   :  { %v3404_v9 = vsub.f32 %v3390_v0, %v3400_v21 }
0x1d9b   :  { %v3408_v33 = vmul.f32 1.442695, %v3405_v29 }
0x1d9c   :  { %v3406_v10 = vmul.f32 1.442695, %v3404_v9  ;;  %v7551_v31 = vpop.permute.xlu1 %7550 }
0x1d9d   :  { %7737 = vpow2.f32 %v3408_v33  ;;  %v7553_v6 = vunpack.i.h.bf16 %v7551_v31  ;;  %v7552_v11 = vunpack.i.l.bf16 %v7551_v31 }
0x1d9e   :  { %7739 = vpow2.f32 %v3406_v10 }
0x1d9f   :  { %v7233_v5 = vpack.c.bf16 %v7553_v6, %v7552_v11 }
0x1da1   :  { %7234 = vmatprep.subr.bf16.mxu1 %v7233_v5  ;;  %v3602_v30 = vpop.xlane.xlu0 %3601 }
0x1da2   :  { %7236 = vmatpush3.bf16.msra.mxu1 %v7233_v5  ;;  %v3606_v34 = vsub.f32 %v3592_v2, %v3602_v30 }
0x1da4   :  { %v3608_v12 = vmul.f32 1.442695, %v3606_v34 }
0x1da5   :  { %v3605_v52 = vpop.xlane.xlu0 %3604 }
0x1da6   :  { %v3607_v19 = vsub.f32 %v3597_v28, %v3605_v52 }
0x1da7   :  { %v7738_v45 = vpop.eup %7737 }
0x1da8   :  { %v7740_v59 = vpop.eup %7739  ;;  %v3610_v37 = vmul.f32 1.442695, %v3607_v19  ;;  %v3413_v16 = vsel %vm453_vm7, %v7738_v45, 0.0 }
0x1da9   :  { %3414 = vadd.xlane.f32.xlu0 %v3413_v16  ;;  %v3410_v17 = vsel %vm453_vm7, %v7740_v59, 0.0 }
0x1daa   :  { %7741 = vpow2.f32 %v3610_v37  ;;  %3411 = vadd.xlane.f32.xlu1 %v3410_v17 }
0x1dab   :  { %7743 = vpow2.f32 %v3608_v12 }
0x1db4   :  { %v7742_v32 = vpop.eup %7741 }
0x1db5   :  { %v3615_v44 = vsel %vm453_vm7, %v7742_v32, 0.0  ;;  %v7744_v57 = vpop.eup %7743 }
0x1db6   :  { %3616 = vadd.xlane.f32.xlu0 %v3615_v44  ;;  %v3612_v4 = vsel %vm453_vm7, %v7744_v57, 0.0 }
0x1dbb   :  { %7560 = vrot.lane.b32.xlu1 %v9075_v18, %s7850_s24 }
0x1dcc   :  { %7555 = vrot.lane.b32.xlu0 %v9077_v48, %s7849_s23 }
0x1dd0   :  { %3711 = vrot.lane.b32.xlu0 %v9073_v36, %s7851_s25 }
0x1ddf   :  { %3613 = vadd.xlane.f32.xlu1 %v3612_v4 }
0x1df0   :  { %3709 = vrot.lane.b32.xlu1 %v9067_v58, %s7851_s25 }
0x1e36   :  { %v3415_v15 = vpop.xlane.xlu0 %3414 }
0x1e37   :  { %7745 = vrcp.f32 %v3415_v15  ;;  %v3412_v38 = vpop.xlane.xlu1 %3411 }
0x1e38   :  { %7747 = vrcp.f32 %v3412_v38 }
0x1e3b   :  { %v7561_v13 = vpop.permute.xlu1 %7560 }
0x1e3c   :  { %v7563_v2 = vunpack.i.h.bf16 %v7561_v13  ;;  %v7562_v28 = vunpack.i.l.bf16 %v7561_v13 }
0x1e3e   :  { %v7247_v29 = vpack.c.bf16 %v7563_v2, %v7562_v28 }
0x1e41   :  { %v7746_v43 = vpop.eup %7745 }
0x1e42   :  { %v7748_v56 = vpop.eup %7747  ;;  %v3419_v54 = vmul.f32 %v7746_v43, %v7738_v45 }
0x1e43   :  { %v3617_v0 = vpop.xlane.xlu0 %3616  ;;  %v3418_v63 = vmul.f32 %v7748_v56, %v7740_v59 }
0x1e44   :  { %7749 = vrcp.f32 %v3617_v0 }
0x1e45   :  { %6808 = vmatprep.mubr.msk.f32.mxu1 %vm453_vm7, %v3418_v63 }
0x1e46   :  { %6809 = vmatmul.mubr.msk.f32.vlgmr.msra.gmra.mrb[30].mxu1 %vm453_vm7, %v3419_v54 }
0x1e47   :  { %v7556_v7 = vpop.permute.xlu0 %7555 }
0x1e48   :  { %v7558_v27 = vunpack.i.h.bf16 %v7556_v7  ;;  %v7557_v20 = vunpack.i.l.bf16 %v7556_v7 }
0x1e4a   :  { %v7243_v46 = vpack.c.bf16 %v7558_v27, %v7557_v20 }
0x1e4b   :  { %v3712_v11 = vpop.permute.xlu0 %3711 }
0x1e4c   :  { %7244 = vmatprep.subr.bf16.mxu1 %v7243_v46 }
0x1e4d   :  { %7246 = vmatpush3.bf16.msra.mxu1 %v7243_v46 }
0x1e4e   :  { %7249 = vmatprep.subr.msk.bf16.mxu1 %vm8110_vm4, %v7247_v29  ;;  %v7750_v9 = vpop.eup %7749 }
0x1e4f   :  { %v3621_v31 = vmul.f32 %v7750_v9, %v7742_v32 }
0x1e6c   :  { %v3614_v21 = vpop.xlane.xlu1 %3613 }
0x1e6d   :  { %7751 = vrcp.f32 %v3614_v21 }
0x1e70   :  { %v3710_v6 = vpop.permute.xlu1 %3709 }
0x1e77   :  { %v7752_v33 = vpop.eup %7751 }
0x1e78   :  { %v3620_v10 = vmul.f32 %v7752_v33, %v7744_v57 }
0x1e7a   :  { %6822 = vmatprep.mubr.msk.f32.mxu1 %vm453_vm7, %v3620_v10 }
0x1e7b   :  { %6823 = vmatmul.mubr.msk.f32.vlgmr.msra.gmra.mrb[32].mxu1 %vm453_vm7, %v3621_v31 }
0x1e7c   :  { %7252 = vmatpush3.bf16.xpose.msk.msra.mxu1 %vm8110_vm4, %v7247_v29  ;;  %6829 = vmatprep.mubr.msk.f32.mxu1 %vm367_vm3, %v3710_v6 }
0x1e83   :  { %6830 = vmatmul.mubr.msk.f32.vlgmr.msra.gmra.mrb[34].mxu1 %vm367_vm3, %v3712_v11 }
0x1f19   :  { %v9155_v5 = vpop.f32.mrb[30].mxu1 }
0x1f1a   :  { %v9157_v30 = vpop.f32.mrb[31].mxu1 }
0x1f4e   :  { %v9159_v52 = vpop.f32.mrb[32].mxu1 }
0x1f4f   :  { %v9161_v19 = vpop.f32.mrb[33].mxu1 }
0x1f56   :  { %v6831_v45 = vpop.f32.mrb[34].mxu1 }
0x1f57   :  { %v3797_v59 = vadd.f32 %v6831_v45, %v10010_v39  ;;  %v3791_v37 = vpop.f32.mrb[35].mxu1 }
0x1f58   :  { %v3792_v16 = vadd.f32 %v3791_v37, %v10011_v1 }
0x1f59   :  { %v3803_v17 = vsel %vm453_vm7, %v3797_v59, -inf }
0x1f5a   :  { %3804 = vmax.xlane.f32.xlu0 %v3803_v17  ;;  %v3800_v32 = vsel %vm453_vm7, %v3792_v16, -inf }
0x1f5b   :  { %3801 = vmax.xlane.f32.xlu1 %v3800_v32 }
0x1fe7   :  { %v3805_v44 = vpop.xlane.xlu0 %3804 }
0x1fe8   :  { %v3807_v34 = vsub.f32 %v3797_v59, %v3805_v44  ;;  %v3802_v12 = vpop.xlane.xlu1 %3801 }
0x1fe9   :  { %v3806_v57 = vsub.f32 %v3792_v16, %v3802_v12 }
0x1fea   :  { %v3810_v4 = vmul.f32 1.442695, %v3807_v34 }
0x1feb   :  { %v3808_v15 = vmul.f32 1.442695, %v3806_v57 }
0x1fec   :  { %7753 = vpow2.f32 %v3810_v4 }
0x1fed   :  { %7755 = vpow2.f32 %v3808_v15 }
0x1ff6   :  { %v7754_v38 = vpop.eup %7753 }
0x1ff7   :  { %v7756_v43 = vpop.eup %7755  ;;  %v3815_v56 = vsel %vm453_vm7, %v7754_v38, 0.0 }
0x1ff8   :  { %3816 = vadd.xlane.f32.xlu1 %v3815_v56  ;;  %v3812_v0 = vsel %vm453_vm7, %v7756_v43, 0.0 }
0x1ff9   :  { %3813 = vadd.xlane.f32.xlu0 %v3812_v0 }
0x2009   :  { %7570 = vrot.lane.b32.xlu1 %v9075_v18, %s7852_s26 }
0x200d   :  { %3909 = vrot.lane.b32.xlu1 %v9067_v58, %s7853_s27 }
0x200f   :  { %7565 = vrot.lane.b32.xlu0 %v9077_v48, %s7851_s25 }
0x2013   :  { %3911 = vrot.lane.b32.xlu0 %v9073_v36, %s7853_s27 }
0x2085   :  { %v3817_v63 = vpop.xlane.xlu1 %3816 }
0x2086   :  { %7757 = vrcp.f32 %v3817_v63  ;;  %v3814_v54 = vpop.xlane.xlu0 %3813 }
0x2087   :  { %7759 = vrcp.f32 %v3814_v54 }
0x2089   :  { %v7571_v13 = vpop.permute.xlu1 %7570 }
0x208a   :  { %v7566_v7 = vpop.permute.xlu0 %7565  ;;  %v7573_v2 = vunpack.i.h.bf16 %v7571_v13  ;;  %v7572_v28 = vunpack.i.l.bf16 %v7571_v13 }
0x208b   :  { %v7568_v27 = vunpack.i.h.bf16 %v7566_v7  ;;  %v7567_v20 = vunpack.i.l.bf16 %v7566_v7 }
0x208c   :  { %v7257_v29 = vpack.c.bf16 %v7573_v2, %v7572_v28 }
0x208d   :  { %v7253_v46 = vpack.c.bf16 %v7568_v27, %v7567_v20  ;;  %v3910_v31 = vpop.permute.xlu1 %3909 }
0x208e   :  { %v3912_v6 = vpop.permute.xlu0 %3911 }
0x208f   :  { %7254 = vmatprep.subr.bf16.mxu0 %v7253_v46 }
0x2090   :  { %v7758_v21 = vpop.eup %7757  ;;  %7256 = vmatpush3.bf16.msra.mxu0 %v7253_v46 }
0x2091   :  { %v7760_v9 = vpop.eup %7759  ;;  %7259 = vmatprep.subr.msk.bf16.mxu0 %vm8110_vm4, %v7257_v29  ;;  %v3821_v10 = vmul.f32 %v7758_v21, %v7754_v38 }
0x2092   :  { %v3820_v33 = vmul.f32 %v7760_v9, %v7756_v43 }
0x2094   :  { %6836 = vmatprep.mubr.msk.f32.mxu0 %vm453_vm7, %v3820_v33 }
0x2095   :  { %6837 = vmatmul.mubr.msk.f32.vlgmr.msra.gmra.mrb[34].mxu0 %vm453_vm7, %v3821_v10 }
0x2096   :  { %6843 = vmatprep.mubr.msk.f32.mxu0 %vm367_vm3, %v3910_v31 }
0x2099   :  { %7262 = vmatpush3.bf16.xpose.msk.msra.mxu0 %vm8110_vm4, %v7257_v29 }
0x20a0   :  { %6844 = vmatmul.mubr.msk.f32.vlgmr.msra.gmra.mrb[36].mxu0 %vm367_vm3, %v3912_v6 }
0x2168   :  { %v9185_v11 = vpop.f32.mrb[34].mxu0 }
0x2169   :  { %v9187_v45 = vpop.f32.mrb[35].mxu0 }
0x2173   :  { %v6845_v59 = vpop.f32.mrb[36].mxu0 }
0x2174   :  { %v3997_v37 = vadd.f32 %v6845_v59, %v10010_v39  ;;  %v3991_v16 = vpop.f32.mrb[37].mxu0 }
0x2175   :  { %v3992_v17 = vadd.f32 %v3991_v16, %v10011_v1 }
0x2176   :  { %v4003_v32 = vsel %vm453_vm7, %v3997_v37, -inf }
0x2177   :  { %4004 = vmax.xlane.f32.xlu0 %v4003_v32  ;;  %v4000_v44 = vsel %vm453_vm7, %v3992_v17, -inf }
0x2178   :  { %4001 = vmax.xlane.f32.xlu1 %v4000_v44 }
0x2204   :  { %v4005_v34 = vpop.xlane.xlu0 %4004 }
0x2205   :  { %v4007_v12 = vsub.f32 %v3997_v37, %v4005_v34  ;;  %v4002_v57 = vpop.xlane.xlu1 %4001 }
0x2206   :  { %v4006_v4 = vsub.f32 %v3992_v17, %v4002_v57 }
0x2207   :  { %v4010_v15 = vmul.f32 1.442695, %v4007_v12 }
0x2208   :  { %v4008_v38 = vmul.f32 1.442695, %v4006_v4 }
0x2209   :  { %7761 = vpow2.f32 %v4010_v15 }
0x220a   :  { %7763 = vpow2.f32 %v4008_v38 }
0x2213   :  { %v7762_v43 = vpop.eup %7761 }
0x2214   :  { %v7764_v56 = vpop.eup %7763  ;;  %v4015_v0 = vsel %vm453_vm7, %v7762_v43, 0.0 }
0x2215   :  { %4016 = vadd.xlane.f32.xlu1 %v4015_v0  ;;  %v4012_v63 = vsel %vm453_vm7, %v7764_v56, 0.0 }
0x2216   :  { %4013 = vadd.xlane.f32.xlu0 %v4012_v63 }
0x2226   :  { %7580 = vrot.lane.b32.xlu1 %v9075_v18, %s7854_s28 }
0x222a   :  { %4109 = vrot.lane.b32.xlu1 %v9067_v58, %s7855_s29 }
0x222c   :  { %7575 = vrot.lane.b32.xlu0 %v9077_v48, %s7853_s27 }
0x2230   :  { %4111 = vrot.lane.b32.xlu0 %v9073_v36, %s7855_s29 }
0x22a2   :  { %v4017_v54 = vpop.xlane.xlu1 %4016 }
0x22a3   :  { %7765 = vrcp.f32 %v4017_v54  ;;  %v4014_v13 = vpop.xlane.xlu0 %4013 }
0x22a4   :  { %7767 = vrcp.f32 %v4014_v13 }
0x22a6   :  { %v7581_v7 = vpop.permute.xlu1 %7580 }
0x22a7   :  { %v7576_v2 = vpop.permute.xlu0 %7575  ;;  %v7583_v28 = vunpack.i.h.bf16 %v7581_v7  ;;  %v7582_v27 = vunpack.i.l.bf16 %v7581_v7 }
0x22a8   :  { %v7578_v20 = vunpack.i.h.bf16 %v7576_v2  ;;  %v7577_v46 = vunpack.i.l.bf16 %v7576_v2 }
0x22a9   :  { %v7267_v21 = vpack.c.bf16 %v7583_v28, %v7582_v27 }
0x22aa   :  { %v7263_v29 = vpack.c.bf16 %v7578_v20, %v7577_v46  ;;  %v4110_v6 = vpop.permute.xlu1 %4109 }
0x22ab   :  { %v4112_v59 = vpop.permute.xlu0 %4111 }
0x22ac   :  { %7264 = vmatprep.subr.bf16.mxu1 %v7263_v29 }
0x22ad   :  { %v7766_v9 = vpop.eup %7765  ;;  %7266 = vmatpush3.bf16.msra.mxu1 %v7263_v29 }
0x22ae   :  { %v7768_v33 = vpop.eup %7767  ;;  %7269 = vmatprep.subr.msk.bf16.mxu1 %vm8110_vm4, %v7267_v21  ;;  %v4021_v31 = vmul.f32 %v7766_v9, %v7762_v43 }
0x22af   :  { %v4020_v10 = vmul.f32 %v7768_v33, %v7764_v56 }
0x22b1   :  { %6850 = vmatprep.mubr.msk.f32.mxu1 %vm453_vm7, %v4020_v10 }
0x22b2   :  { %6851 = vmatmul.mubr.msk.f32.vlgmr.msra.gmra.mrb[36].mxu1 %vm453_vm7, %v4021_v31 }
0x22b3   :  { %6857 = vmatprep.mubr.msk.f32.mxu1 %vm367_vm3, %v4110_v6 }
0x22b6   :  { %7272 = vmatpush3.bf16.xpose.msk.msra.mxu1 %vm8110_vm4, %v7267_v21 }
0x22bd   :  { %6858 = vmatmul.mubr.msk.f32.vlgmr.msra.gmra.mrb[38].mxu1 %vm367_vm3, %v4112_v59 }
0x2385   :  { %v9211_v37 = vpop.f32.mrb[36].mxu1 }
0x2386   :  { %v9213_v16 = vpop.f32.mrb[37].mxu1 }
0x2390   :  { %v6859_v17 = vpop.f32.mrb[38].mxu1 }
0x2391   :  { %v4197_v32 = vadd.f32 %v6859_v17, %v10010_v39  ;;  %v4191_v44 = vpop.f32.mrb[39].mxu1 }
0x2392   :  { %v4192_v34 = vadd.f32 %v4191_v44, %v10011_v1 }
0x2393   :  { %v4203_v12 = vsel %vm453_vm7, %v4197_v32, -inf }
0x2394   :  { %4204 = vmax.xlane.f32.xlu0 %v4203_v12  ;;  %v4200_v57 = vsel %vm453_vm7, %v4192_v34, -inf }
0x2395   :  { %4201 = vmax.xlane.f32.xlu1 %v4200_v57 }
0x2421   :  { %v4205_v4 = vpop.xlane.xlu0 %4204 }
0x2422   :  { %v4207_v15 = vsub.f32 %v4197_v32, %v4205_v4  ;;  %v4202_v38 = vpop.xlane.xlu1 %4201 }
0x2423   :  { %v4206_v43 = vsub.f32 %v4192_v34, %v4202_v38 }
0x2424   :  { %v4210_v56 = vmul.f32 1.442695, %v4207_v15 }
0x2425   :  { %v4208_v0 = vmul.f32 1.442695, %v4206_v43 }
0x2426   :  { %7769 = vpow2.f32 %v4210_v56 }
0x2427   :  { %7771 = vpow2.f32 %v4208_v0 }
0x2430   :  { %v7770_v63 = vpop.eup %7769 }
0x2431   :  { %v7772_v54 = vpop.eup %7771  ;;  %v4215_v13 = vsel %vm453_vm7, %v7770_v63, 0.0 }
0x2432   :  { %4216 = vadd.xlane.f32.xlu1 %v4215_v13  ;;  %v4212_v7 = vsel %vm453_vm7, %v7772_v54, 0.0 }
0x2433   :  { %4213 = vadd.xlane.f32.xlu0 %v4212_v7 }
0x2443   :  { %7590 = vrot.lane.b32.xlu1 %v9075_v18, %s7856_s30 }
0x2447   :  { %4309 = vrot.lane.b32.xlu1 %v9067_v58, %s7857_s7 }
0x2449   :  { %7585 = vrot.lane.b32.xlu0 %v9077_v48, %s7855_s29 }
0x244d   :  { %4311 = vrot.lane.b32.xlu0 %v9073_v36, %s7857_s7 }
0x24bf   :  { %v4217_v2 = vpop.xlane.xlu1 %4216 }
0x24c0   :  { %7773 = vrcp.f32 %v4217_v2  ;;  %v4214_v28 = vpop.xlane.xlu0 %4213 }
0x24c1   :  { %7775 = vrcp.f32 %v4214_v28 }
0x24c3   :  { %v7591_v27 = vpop.permute.xlu1 %7590 }
0x24c4   :  { %v7586_v20 = vpop.permute.xlu0 %7585  ;;  %v7593_v46 = vunpack.i.h.bf16 %v7591_v27  ;;  %v7592_v29 = vunpack.i.l.bf16 %v7591_v27 }
0x24c5   :  { %v7588_v21 = vunpack.i.h.bf16 %v7586_v20  ;;  %v7587_v9 = vunpack.i.l.bf16 %v7586_v20 }
0x24c6   :  { %v7277_v10 = vpack.c.bf16 %v7593_v46, %v7592_v29 }
0x24c7   :  { %v7273_v33 = vpack.c.bf16 %v7588_v21, %v7587_v9  ;;  %v4310_v32 = vpop.permute.xlu1 %4309 }
0x24c8   :  { %v4312_v44 = vpop.permute.xlu0 %4311 }
0x24c9   :  { %7274 = vmatprep.subr.bf16.mxu0 %v7273_v33 }
0x24ca   :  { %v7774_v31 = vpop.eup %7773  ;;  %7276 = vmatpush3.bf16.msra.mxu0 %v7273_v33 }
0x24cb   :  { %v7776_v6 = vpop.eup %7775  ;;  %7279 = vmatprep.subr.msk.bf16.mxu0 %vm8110_vm4, %v7277_v10  ;;  %v4221_v17 = vmul.f32 %v7774_v31, %v7770_v63 }
0x24cc   :  { %v4220_v59 = vmul.f32 %v7776_v6, %v7772_v54 }
0x24ce   :  { %6864 = vmatprep.mubr.msk.f32.mxu0 %vm453_vm7, %v4220_v59 }
0x24cf   :  { %6865 = vmatmul.mubr.msk.f32.vlgmr.msra.gmra.mrb[38].mxu0 %vm453_vm7, %v4221_v17 }
0x24d0   :  { %6871 = vmatprep.mubr.msk.f32.mxu0 %vm367_vm3, %v4310_v32 }
0x24d3   :  { %7282 = vmatpush3.bf16.xpose.msk.msra.mxu0 %vm8110_vm4, %v7277_v10 }
0x24da   :  { %6872 = vmatmul.mubr.msk.f32.vlgmr.msra.gmra.mrb[40].mxu0 %vm367_vm3, %v4312_v44 }
0x25a2   :  { %v9237_v34 = vpop.f32.mrb[38].mxu0 }
0x25a3   :  { %v9239_v12 = vpop.f32.mrb[39].mxu0 }
0x25ad   :  { %v6873_v57 = vpop.f32.mrb[40].mxu0 }
0x25ae   :  { %v4397_v4 = vadd.f32 %v6873_v57, %v10010_v39  ;;  %v4391_v15 = vpop.f32.mrb[41].mxu0 }
0x25af   :  { %v4392_v38 = vadd.f32 %v4391_v15, %v10011_v1 }
0x25b0   :  { %v4403_v43 = vsel %vm453_vm7, %v4397_v4, -inf }
0x25b1   :  { %4404 = vmax.xlane.f32.xlu0 %v4403_v43  ;;  %v4400_v56 = vsel %vm453_vm7, %v4392_v38, -inf }
0x25b2   :  { %4401 = vmax.xlane.f32.xlu1 %v4400_v56 }
0x263e   :  { %v4405_v0 = vpop.xlane.xlu0 %4404 }
0x263f   :  { %v4407_v63 = vsub.f32 %v4397_v4, %v4405_v0  ;;  %v4402_v54 = vpop.xlane.xlu1 %4401 }
0x2640   :  { %v4406_v13 = vsub.f32 %v4392_v38, %v4402_v54 }
0x2641   :  { %v4410_v7 = vmul.f32 1.442695, %v4407_v63 }
0x2642   :  { %v4408_v2 = vmul.f32 1.442695, %v4406_v13 }
0x2643   :  { %7777 = vpow2.f32 %v4410_v7 }
0x2644   :  { %7779 = vpow2.f32 %v4408_v2 }
0x264d   :  { %v7778_v28 = vpop.eup %7777 }
0x264e   :  { %v7780_v27 = vpop.eup %7779  ;;  %v4415_v20 = vsel %vm453_vm7, %v7778_v28, 0.0 }
0x264f   :  { %4416 = vadd.xlane.f32.xlu1 %v4415_v20  ;;  %v4412_v46 = vsel %vm453_vm7, %v7780_v27, 0.0 }
0x2650   :  { %4413 = vadd.xlane.f32.xlu0 %v4412_v46 }
0x2660   :  { %7600 = vrot.lane.b32.xlu1 %v9075_v18, %s7858_s8 }
0x2664   :  { %4509 = vrot.lane.b32.xlu1 %v9067_v58, %s7859_s9 }
0x2666   :  { %7595 = vrot.lane.b32.xlu0 %v9077_v48, %s7857_s7 }
0x266a   :  { %4511 = vrot.lane.b32.xlu0 %v9073_v36, %s7859_s9 }
0x26dc   :  { %v4417_v29 = vpop.xlane.xlu1 %4416 }
0x26dd   :  { %7781 = vrcp.f32 %v4417_v29  ;;  %v4414_v21 = vpop.xlane.xlu0 %4413 }
0x26de   :  { %7783 = vrcp.f32 %v4414_v21 }
0x26e0   :  { %v7601_v9 = vpop.permute.xlu1 %7600 }
0x26e1   :  { %v7596_v33 = vpop.permute.xlu0 %7595  ;;  %v7603_v10 = vunpack.i.h.bf16 %v7601_v9  ;;  %v7602_v31 = vunpack.i.l.bf16 %v7601_v9 }
0x26e2   :  { %v7598_v6 = vunpack.i.h.bf16 %v7596_v33  ;;  %v7597_v59 = vunpack.i.l.bf16 %v7596_v33 }
0x26e3   :  { %v7287_v17 = vpack.c.bf16 %v7603_v10, %v7602_v31 }
0x26e4   :  { %v7283_v18 = vpack.c.bf16 %v7598_v6, %v7597_v59  ;;  %v4510_v57 = vpop.permute.xlu1 %4509 }
0x26e5   :  { %v4512_v4 = vpop.permute.xlu0 %4511 }
0x26e6   :  { %7284 = vmatprep.subr.bf16.mxu1 %v7283_v18 }
0x26e7   :  { %v7782_v58 = vpop.eup %7781  ;;  %7286 = vmatpush3.bf16.msra.mxu1 %v7283_v18 }
0x26e8   :  { %v7784_v32 = vpop.eup %7783  ;;  %7289 = vmatprep.subr.msk.bf16.mxu1 %vm8110_vm4, %v7287_v17  ;;  %v4421_v44 = vmul.f32 %v7782_v58, %v7778_v28 }
0x26e9   :  { %v4420_v36 = vmul.f32 %v7784_v32, %v7780_v27 }
0x26eb   :  { %6878 = vmatprep.mubr.msk.f32.mxu1 %vm453_vm7, %v4420_v36 }
0x26ec   :  { %6879 = vmatmul.mubr.msk.f32.vlgmr.msra.gmra.mrb[40].mxu1 %vm453_vm7, %v4421_v44 }
0x26ed   :  { %6885 = vmatprep.mubr.msk.f32.mxu1 %vm367_vm3, %v4510_v57 }
0x26f0   :  { %7292 = vmatpush3.bf16.xpose.msk.msra.mxu1 %vm8110_vm4, %v7287_v17 }
0x26f7   :  { %6886 = vmatmul.mubr.msk.f32.vlgmr.msra.gmra.mrb[42].mxu1 %vm367_vm3, %v4512_v4 }
0x27bf   :  { %v6880_v15 = vpop.f32.mrb[40].mxu1 }
0x27c0   :  { %v4500_v38 = vpop.f32.mrb[41].mxu1 }
0x27ca   :  { %v6887_v43 = vpop.f32.mrb[42].mxu1 }
0x27cb   :  { %v4597_v56 = vadd.f32 %v6887_v43, %v10010_v39  ;;  %v4591_v0 = vpop.f32.mrb[43].mxu1 }
0x27cc   :  { %v4592_v63 = vadd.f32 %v4591_v0, %v10011_v1 }
0x27cd   :  { %v4603_v54 = vsel %vm453_vm7, %v4597_v56, -inf }
0x27ce   :  { %4604 = vmax.xlane.f32.xlu0 %v4603_v54  ;;  %v4600_v13 = vsel %vm453_vm7, %v4592_v63, -inf }
0x27cf   :  { %4601 = vmax.xlane.f32.xlu1 %v4600_v13 }
0x285b   :  { %v4605_v7 = vpop.xlane.xlu0 %4604 }
0x285c   :  { %v4607_v26 = vsub.f32 %v4597_v56, %v4605_v7  ;;  %v4602_v2 = vpop.xlane.xlu1 %4601 }
0x285d   :  { %v4606_v28 = vsub.f32 %v4592_v63, %v4602_v2 }
0x285e   :  { %v4610_v27 = vmul.f32 1.442695, %v4607_v26 }
0x285f   :  { %v4608_v20 = vmul.f32 1.442695, %v4606_v28 }
0x2860   :  { %7785 = vpow2.f32 %v4610_v27 }
0x2861   :  { %7787 = vpow2.f32 %v4608_v20 }
0x286a   :  { %v7786_v46 = vpop.eup %7785 }
0x286b   :  { %v7788_v29 = vpop.eup %7787  ;;  %v4615_v39 = vsel %vm453_vm7, %v7786_v46, 0.0 }
0x286c   :  { %4616 = vadd.xlane.f32.xlu1 %v4615_v39  ;;  %v4612_v1 = vsel %vm453_vm7, %v7788_v29, 0.0  ;;  %v7814_v39 = vld [vmem:[%s9962_s5 + $0x8] sm:$0xff] }
0x286d   :  { %4613 = vadd.xlane.f32.xlu0 %v4612_v1  ;;  %v10012_v1 = vsub.s32 7, %v10005_v42 }
0x287d   :  { %7610 = vrot.lane.b32.xlu1 %v7609_v60, %s7844_s19 }
0x2881   :  { %7615 = vrot.lane.b32.xlu1 %v7614_v22, %s7844_s19 }
0x2883   :  { %7605 = vrot.lane.b32.xlu0 %v9077_v48, %s7859_s9 }
0x2885   :  { %4711 = vrot.lane.b32.xlu1 %v9157_v30, %s7858_s8 }
0x2887   :  { %7620 = vrot.lane.b32.xlu0 %v7619_v41, %s7844_s19 }
0x2889   :  { %4719 = vrot.lane.b32.xlu1 %v9161_v19, %s7856_s30 }
0x288b   :  { %4713 = vrot.lane.b32.xlu0 %v9155_v5, %s7858_s8 }
0x288d   :  { %4727 = vrot.lane.b32.xlu1 %v9187_v45, %s7854_s28 }
0x288f   :  { %4721 = vrot.lane.b32.xlu0 %v9159_v52, %s7856_s30 }
0x2891   :  { %4729 = vrot.lane.b32.xlu1 %v9185_v11, %s7854_s28 }
0x2893   :  { %7625 = vrot.lane.b32.xlu0 %v7624_v55, %s7844_s19 }
0x2895   :  { %4737 = vrot.lane.b32.xlu1 %v9211_v37, %s7852_s26 }
0x2897   :  { %4735 = vrot.lane.b32.xlu0 %v9213_v16, %s7852_s26 }
0x2899   :  { %4745 = vrot.lane.b32.xlu1 %v9237_v34, %s7850_s24 }
0x289b   :  { %4743 = vrot.lane.b32.xlu0 %v9239_v12, %s7850_s24 }
0x289d   :  { %4753 = vrot.lane.b32.xlu1 %v6880_v15, %s7847_s21 }
0x289f   :  { %4751 = vrot.lane.b32.xlu0 %v4500_v38, %s7847_s21 }
0x28f9   :  { %v4617_v51 = vpop.xlane.xlu1 %4616 }
0x28fa   :  { %7789 = vrcp.f32 %v4617_v51  ;;  %v4614_v47 = vpop.xlane.xlu0 %4613  ;;  %v4782_v51 = vrot.slane %v7814_v39, %v10012_v1  ;;  %v6087_v1 = vld [vmem:[%s9961_s4 + $0x278] sm:$0xff] }
0x28fb   :  { %7791 = vrcp.f32 %v4614_v47 }
0x28fd   :  { %v7611_v60 = vpop.permute.xlu1 %7610 }
0x28fe   :  { %v7613_v49 = vunpack.i.h.bf16 %v7611_v60  ;;  %v7612_v25 = vunpack.i.l.bf16 %v7611_v60  ;;  %v7606_v22 = vpop.permute.xlu0 %7605 }
0x28ff   :  { %v7608_v35 = vunpack.i.h.bf16 %v7606_v22  ;;  %v7607_v14 = vunpack.i.l.bf16 %v7606_v22 }
0x2900   :  { %v7297_v41 = vpack.c.bf16 %v7613_v49, %v7612_v25 }
0x2901   :  { %v7293_v23 = vpack.c.bf16 %v7608_v35, %v7607_v14  ;;  %v7616_v62 = vpop.permute.xlu1 %7615 }
0x2902   :  { %v7621_v55 = vpop.permute.xlu0 %7620  ;;  %v7618_v48 = vunpack.i.h.bf16 %v7616_v62  ;;  %v7617_v5 = vunpack.i.l.bf16 %v7616_v62 }
0x2903   :  { %7294 = vmatprep.subr.bf16.mxu0 %v7293_v23  ;;  %v7623_v19 = vunpack.i.h.bf16 %v7621_v55  ;;  %v7622_v34 = vunpack.i.l.bf16 %v7621_v55 }
0x2904   :  { %v7790_v30 = vpop.eup %7789  ;;  %7296 = vmatpush3.bf16.msra.mxu0 %v7293_v23  ;;  %v7301_v16 = vpack.c.bf16 %v7618_v48, %v7617_v5 }
0x2905   :  { %v7792_v52 = vpop.eup %7791  ;;  %7298 = vmatprep.subr.bf16.mxu0 %v7297_v41  ;;  %v4621_v37 = vmul.f32 %v7790_v30, %v7786_v46  ;;  %v7305_v9 = vpack.c.bf16 %v7623_v19, %v7622_v34  ;;  %v4712_v17 = vpop.permute.xlu1 %4711  ;;  %v6081_v34 = vld [vmem:[%s9961_s4 + $0x248] sm:$0xff] }
0x2906   :  { %v4714_v11 = vpop.permute.xlu0 %4713  ;;  %v4620_v45 = vmul.f32 %v7792_v52, %v7788_v29  ;;  %v4765_v38 = vsel %vm367_vm3, %v9121_v8, %v4712_v17  ;;  %v6083_v17 = vld [vmem:[%s9961_s4 + $0x258] sm:$0xff] }
0x2907   :  { %v4766_v12 = vsel %vm367_vm3, %v9119_v24, %v4714_v11  ;;  %v6096_v11 = vld [vmem:[%s9961_s4 + $0x2c0] sm:$0xff] }
0x2908   :  { %6892 = vmatprep.mubr.msk.f32.mxu0 %vm453_vm7, %v4620_v45  ;;  %v6097_v45 = vld [vmem:[%s9961_s4 + $0x2c8] sm:$0xff] }
0x2909   :  { %6893 = vmatmul.mubr.msk.f32.vlgmr.msra.gmra.mrb[42].mxu0 %vm453_vm7, %v4621_v37  ;;  %v4720_v58 = vpop.permute.xlu1 %4719  ;;  %v6080_v37 = vld [vmem:[%s9961_s4 + $0x240] sm:$0xff] }
0x290a   :  { %v4722_v21 = vpop.permute.xlu0 %4721  ;;  %7300 = vmatpush3.bf16.msra.mxu0 %v7297_v41  ;;  %v4767_v56 = vsel %vm453_vm7, %v4765_v38, %v4720_v58  ;;  %v6100_v38 = vld [vmem:[%s9961_s4 + $0x2e0] sm:$0xff] }
0x290b   :  { %v4768_v33 = vsel %vm453_vm7, %v4766_v12, %v4722_v21  ;;  %7302 = vmatprep.subr.bf16.mxu0 %v7301_v16  ;;  %v6128_v12 = vld [vmem:[%s9961_s4 + $0x3c0] sm:$0xff]  ;;  %v6129_v21 = vld [vmem:[%s9961_s4 + $0x3c8] sm:$0xff] }
0x290d   :  { %v4728_v32 = vpop.permute.xlu1 %4727 }
0x290e   :  { %v7626_v10 = vpop.permute.xlu0 %7625  ;;  %7304 = vmatpush3.bf16.msra.mxu0 %v7301_v16  ;;  %v4769_v63 = vsel %vm2019_vm8, %v4767_v56, %v4728_v32  ;;  %v7313_v16 = vpack.c.bf16 %v6097_v45, %v6096_v11  ;;  %v6106_v11 = vld [vmem:[%s9961_s4 + $0x310] sm:$0xff]  ;;  %v6107_v45 = vld [vmem:[%s9961_s4 + $0x318] sm:$0xff] }
0x290f   :  { %v7628_v31 = vunpack.i.h.bf16 %v7626_v10  ;;  %v7627_v6 = vunpack.i.l.bf16 %v7626_v10  ;;  %7306 = vmatprep.subr.bf16.mxu0 %v7305_v9  ;;  %v6112_v10 = vld [vmem:[%s9961_s4 + $0x340] sm:$0xff] }
0x2910   :  { %7314 = vmatprep.subr.bf16.mxu1 %v7313_v16  ;;  %v6139_v16 = vld [vmem:[%s9961_s4 + $0x418] sm:$0xff] }
0x2911   :  { %v7309_v59 = vpack.c.bf16 %v7628_v31, %v7627_v6  ;;  %v4730_v36 = vpop.permute.xlu1 %4729  ;;  %v6113_v31 = vld [vmem:[%s9961_s4 + $0x348] sm:$0xff]  ;;  %v6098_v6 = vld [vmem:[%s9961_s4 + $0x2d0] sm:$0xff] }
0x2912   :  { %7308 = vmatpush3.bf16.msra.mxu0 %v7305_v9  ;;  %v4736_v57 = vpop.permute.xlu0 %4735  ;;  %v4770_v54 = vsel %vm2019_vm8, %v4768_v33, %v4730_v36  ;;  %v7315_v9 = vpack.c.bf16 %v6081_v34, %v6080_v37  ;;  %v7345_v33 = vpack.c.bf16 %v6129_v21, %v6128_v12  ;;  %v6130_v36 = vld [vmem:[%s9961_s4 + $0x3d0] sm:$0xff] }
0x2913   :  { %7310 = vmatprep.subr.bf16.mxu0 %v7309_v59  ;;  %v4771_v13 = vsel %vm2022_vm9, %v4769_v63, %v4736_v57  ;;  %v6114_v57 = vld [vmem:[%s9961_s4 + $0x350] sm:$0xff]  ;;  %v6084_v63 = vld [vmem:[%s9961_s4 + $0x260] sm:$0xff] }
0x2914   :  { %7316 = vmatpush3.bf16.msra.mxu1 %v7315_v9  ;;  %v6138_v37 = vld [vmem:[%s9961_s4 + $0x410] sm:$0xff]  ;;  %v7333_v9 = vpack.c.bf16 %v6107_v45, %v6106_v11 }
0x2915   :  { %v4738_v44 = vpop.permute.xlu1 %4737 }
0x2916   :  { %7312 = vmatpush3.bf16.msra.mxu0 %v7309_v59  ;;  %v4744_v15 = vpop.permute.xlu0 %4743  ;;  %v4772_v7 = vsel %vm2022_vm9, %v4770_v54, %v4738_v44  ;;  %v7347_v59 = vpack.c.bf16 %v6113_v31, %v6112_v10  ;;  %v6131_v44 = vld [vmem:[%s9961_s4 + $0x3d8] sm:$0xff]  ;;  %v6085_v54 = vld [vmem:[%s9961_s4 + $0x268] sm:$0xff]  ;;  %v6122_v31 = vld [vmem:[%s9961_s4 + $0x390] sm:$0xff] }
0x2917   :  { %v4773_v26 = vsel %vm2025_vm10, %v4771_v13, %v4744_v15  ;;  %7346 = vmatprep.subr.bf16.mxu0 %v7345_v33  ;;  %v6115_v15 = vld [vmem:[%s9961_s4 + $0x358] sm:$0xff]  ;;  %v6132_v13 = vld [vmem:[%s9961_s4 + $0x3e0] sm:$0xff]  ;;  %v6090_v33 = vld [vmem:[%s9961_s4 + $0x290] sm:$0xff] }
0x2918   :  { %v7351_v56 = vpack.c.bf16 %v6115_v15, %v6114_v57  ;;  %v6091_v10 = vld [vmem:[%s9961_s4 + $0x298] sm:$0xff] }
0x2919   :  { %v4746_v4 = vpop.permute.xlu1 %4745 }
0x291a   :  { %v4752_v0 = vpop.permute.xlu0 %4751  ;;  %v4774_v28 = vsel %vm2025_vm10, %v4772_v7, %v4746_v4  ;;  %v7349_v4 = vpack.c.bf16 %v6131_v44, %v6130_v36  ;;  %v6133_v7 = vld [vmem:[%s9961_s4 + $0x3e8] sm:$0xff]  ;;  %v7335_v44 = vpack.c.bf16 %v6091_v10, %v6090_v33 }
0x291b   :  { %v4775_v27 = vsel %vm2028_vm11, %v4773_v26, %v4752_v0  ;;  %v6116_v26 = vld [vmem:[%s9961_s4 + $0x360] sm:$0xff] }
0x291d   :  { %v4754_v43 = vpop.permute.xlu1 %4753 }
0x291e   :  { %v4776_v20 = vsel %vm2028_vm11, %v4774_v28, %v4754_v43  ;;  %v6101_v43 = vld [vmem:[%s9961_s4 + $0x2e8] sm:$0xff]  ;;  %v7323_v28 = vpack.c.bf16 %v6085_v54, %v6084_v63 }
0x291f   :  { %v7321_v0 = vpack.c.bf16 %v6101_v43, %v6100_v38  ;;  %v6092_v38 = vld [vmem:[%s9961_s4 + $0x2a0] sm:$0xff]  ;;  %v6093_v43 = vld [vmem:[%s9961_s4 + $0x2a8] sm:$0xff] }
0x2920   :  { %v6125_v54 = vld [vmem:[%s9961_s4 + $0x3a8] sm:$0xff] }
0x29dc   :  { %v6894_v24 = vpop.f32.mrb[42].mxu0 }
0x29dd   :  { %4761 = vrot.lane.b32.xlu1 %v6894_v24, %s7846_s20  ;;  %v4700_v18 = vpop.f32.mrb[43].mxu0  ;;  %v6099_v24 = vld [vmem:[%s9961_s4 + $0x2d8] sm:$0xff] }
0x29de   :  { %4759 = vrot.lane.b32.xlu0 %v4700_v18, %s7846_s20  ;;  %v6082_v18 = vld [vmem:[%s9961_s4 + $0x250] sm:$0xff]  ;;  %v7317_v58 = vpack.c.bf16 %v6099_v24, %v6098_v6  ;;  %v6123_v24 = vld [vmem:[%s9961_s4 + $0x398] sm:$0xff] }
0x29df   :  { %v7319_v32 = vpack.c.bf16 %v6083_v17, %v6082_v18  ;;  %v6108_v18 = vld [vmem:[%s9961_s4 + $0x320] sm:$0xff]  ;;  %v6109_v17 = vld [vmem:[%s9961_s4 + $0x328] sm:$0xff] }
0x29e0   :  { %7318 = vmatprep.subr.bf16.mxu1 %v7317_v58  ;;  %v6140_v58 = vld [vmem:[%s9961_s4 + $0x420] sm:$0xff]  ;;  %v7337_v15 = vpack.c.bf16 %v6109_v17, %v6108_v18 }
0x29e1   :  { %7320 = vmatpush3.bf16.msra.mxu1 %v7319_v32  ;;  %v6141_v32 = vld [vmem:[%s9961_s4 + $0x428] sm:$0xff] }
0x29e2   :  { %7322 = vmatprep.subr.bf16.mxu1 %v7321_v0  ;;  %v7369_v63 = vpack.c.bf16 %v6141_v32, %v6140_v58 }
0x29e5   :  { %7324 = vmatpush3.bf16.msra.mxu1 %v7323_v28 }
0x2a4f   :  { %v4762_v2 = vpop.permute.xlu1 %4761 }
0x2a50   :  { %v4760_v8 = vpop.permute.xlu0 %4759  ;;  %v4778_v29 = vsel %vm2031_vm12, %v4776_v20, %v4762_v2  ;;  %v6117_v2 = vld [vmem:[%s9961_s4 + $0x368] sm:$0xff]  ;;  %v6103_v20 = vld [vmem:[%s9961_s4 + $0x2f8] sm:$0xff] }
0x2a51   :  { %v4777_v46 = vsel %vm2031_vm12, %v4775_v27, %v4760_v8  ;;  %v7353_v27 = vpack.c.bf16 %v6133_v7, %v6132_v13  ;;  %v6102_v8 = vld [vmem:[%s9961_s4 + $0x2f0] sm:$0xff]  ;;  %v6111_v7 = vld [vmem:[%s9961_s4 + $0x338] sm:$0xff] }
0x2a52   :  { %6911 = vmatprep.mubr.msk.f32.mxu0 %vm255_vm2, %v4777_v46  ;;  %v6086_v46 = vld [vmem:[%s9961_s4 + $0x270] sm:$0xff]  ;;  %v7325_v39 = vpack.c.bf16 %v6103_v20, %v6102_v8 }
0x2a53   :  { %6912 = vmatmul.mubr.msk.f32.vlgmr.msra.gmra.mrb[44].mxu0 %vm255_vm2, %v4778_v29  ;;  %v7355_v29 = vpack.c.bf16 %v6117_v2, %v6116_v26  ;;  %v6110_v13 = vld [vmem:[%s9961_s4 + $0x330] sm:$0xff]  ;;  %v7339_v2 = vpack.c.bf16 %v6093_v43, %v6092_v38 }
0x2a54   :  { %7348 = vmatpush3.bf16.msra.mxu0 %v7347_v59  ;;  %7326 = vmatprep.subr.bf16.mxu1 %v7325_v39  ;;  %v7365_v59 = vpack.c.bf16 %v6139_v16, %v6138_v37  ;;  %v26_v8 = vld [vmem:[%s9962_s5 + $0x10] sm:$0xf] }
0x2a55   :  { %7350 = vmatprep.subr.bf16.mxu0 %v7349_v4  ;;  %v7367_v4 = vpack.c.bf16 %v6123_v24, %v6122_v31  ;;  %v10013_v20 = vld [vmem:[#allocation6_spill] sm:$0xff]  ;;  %v10014_v39 = vld [vmem:[#allocation11_spill] sm:$0xff] }
0x2a58   :  { %7352 = vmatpush3.bf16.msra.mxu0 %v7351_v56  ;;  %v6124_v56 = vld [vmem:[%s9961_s4 + $0x3a0] sm:$0xff] }
0x2a59   :  { %7354 = vmatprep.subr.bf16.mxu0 %v7353_v27  ;;  %v7371_v28 = vpack.c.bf16 %v6125_v54, %v6124_v56  ;;  %v7341_v27 = vpack.c.bf16 %v6111_v7, %v6110_v13 }
0x2a5c   :  { %7356 = vmatpush3.bf16.msra.mxu0 %v7355_v29 }
0x2b26   :  { %v6913_v47 = vpop.f32.mrb[44].mxu0 }
0x2b27   :  { %v4893_v60 = vadd.f32 %v6913_v47, %v4782_v51  ;;  %v4887_v49 = vpop.f32.mrb[45].mxu0  ;;  %v6135_v47 = vld [vmem:[%s9961_s4 + $0x3f8] sm:$0xff] }
0x2b28   :  { %v4888_v25 = vadd.f32 %v4887_v49, %v4782_v51  ;;  %v6134_v51 = vld [vmem:[%s9961_s4 + $0x3f0] sm:$0xff] }
0x2b29   :  { %v4897_v22 = vadd.f32 %v4893_v60, %v9061_v50  ;;  %v7357_v60 = vpack.c.bf16 %v6135_v47, %v6134_v51  ;;  %v6118_v49 = vld [vmem:[%s9961_s4 + $0x370] sm:$0xff] }
0x2b2a   :  { %v4896_v35 = vadd.f32 %v4888_v25, %v9056_v40  ;;  %v6119_v25 = vld [vmem:[%s9961_s4 + $0x378] sm:$0xff] }
0x2b2b   :  { %v4901_v14 = vsel %vm255_vm2, %v4897_v22, 0.0  ;;  %7358 = vmatprep.subr.bf16.mxu0 %v7357_v60 }
0x2b2c   :  { %4902 = vadd.xlane.f32.xlu1 %v4901_v14  ;;  %v4898_v41 = vsel %vm255_vm2, %v4896_v35, 0.0  ;;  %v7327_v14 = vpack.c.bf16 %v6087_v1, %v6086_v46  ;;  %v4927_v46 = vrot.slane %v26_v8, %v10013_v20  ;;  %v9529_v1 = vrot.slane %v26_v8, %v10014_v39 }
0x2b2d   :  { %4899 = vadd.xlane.f32.xlu0 %v4898_v41  ;;  %v6136_v41 = vld [vmem:[%s9961_s4 + $0x400] sm:$0xff] }
0x2b2e   :  { %7328 = vmatpush3.bf16.msra.mxu1 %v7327_v14 }
0x2bb9   :  { %v4903_v23 = vpop.xlane.xlu1 %4902 }
0x2bba   :  { %v4905_v62 = vmul.f32 0.015625, %v4903_v23  ;;  %v4900_v55 = vpop.xlane.xlu0 %4899  ;;  %v6137_v23 = vld [vmem:[%s9961_s4 + $0x408] sm:$0xff] }
0x2bbb   :  { %v4904_v48 = vmul.f32 0.015625, %v4900_v55 }
0x2bbc   :  { %v9340_v5 = vsub.f32 %v4897_v22, %v4905_v62  ;;  %v6104_v22 = vld [vmem:[%s9961_s4 + $0x300] sm:$0xff]  ;;  %v7359_v62 = vpack.c.bf16 %v6119_v25, %v6118_v49 }
0x2bbd   :  { %v9342_v30 = vsub.f32 %v4896_v35, %v4904_v48  ;;  %v6105_v35 = vld [vmem:[%s9961_s4 + $0x308] sm:$0xff]  ;;  %v6088_v48 = vld [vmem:[%s9961_s4 + $0x280] sm:$0xff] }
0x2bbe   :  { %v4909_v40 = vmul.f32 %v9340_v5, %v9340_v5  ;;  %v7329_v55 = vpack.c.bf16 %v6105_v35, %v6104_v22  ;;  %7360 = vmatpush3.bf16.msra.mxu0 %v7359_v62 }
0x2bbf   :  { %v4908_v52 = vmul.f32 %v9342_v30, %v9342_v30 }
0x2bc0   :  { %v4913_v19 = vsel %vm255_vm2, %v4909_v40, 0.0  ;;  %v7361_v40 = vpack.c.bf16 %v6137_v23, %v6136_v41  ;;  %7330 = vmatprep.subr.bf16.mxu1 %v7329_v55 }
0x2bc1   :  { %v4910_v50 = vsel %vm255_vm2, %v4908_v52, 0.0  ;;  %v6089_v52 = vld [vmem:[%s9961_s4 + $0x288] sm:$0xff] }
0x2bc2   :  { %4911 = vadd.xlane.f32.xlu0 %v4910_v50  ;;  %v6120_v50 = vld [vmem:[%s9961_s4 + $0x380] sm:$0xff]  ;;  %v7331_v34 = vpack.c.bf16 %v6089_v52, %v6088_v48  ;;  %7362 = vmatprep.subr.bf16.mxu0 %v7361_v40 }
0x2bc4   :  { %7332 = vmatpush3.bf16.msra.mxu1 %v7331_v34 }
0x2bc5   :  { %7334 = vmatprep.subr.bf16.mxu1 %v7333_v9 }
0x2bc6   :  { %4914 = vadd.xlane.f32.xlu0 %v4913_v19  ;;  %v6121_v19 = vld [vmem:[%s9961_s4 + $0x388] sm:$0xff] }
0x2bc7   :  { %v7363_v21 = vpack.c.bf16 %v6121_v19, %v6120_v50 }
0x2bc8   :  { %7336 = vmatpush3.bf16.msra.mxu1 %v7335_v44 }
0x2bc9   :  { %7364 = vmatpush3.bf16.msra.mxu0 %v7363_v21  ;;  %7338 = vmatprep.subr.bf16.mxu1 %v7337_v15 }
0x2bca   :  { %7366 = vmatprep.subr.bf16.mxu0 %v7365_v59 }
0x2bcc   :  { %7340 = vmatpush3.bf16.msra.mxu1 %v7339_v2 }
0x2bcd   :  { %7368 = vmatpush3.bf16.msra.mxu0 %v7367_v4  ;;  %7342 = vmatprep.subr.bf16.mxu1 %v7341_v27 }
0x2bce   :  { %7370 = vmatprep.subr.bf16.mxu0 %v7369_v63 }
0x2bd1   :  { %7372 = vmatpush3.bf16.msra.mxu0 %v7371_v28 }
0x2c4f   :  { %v4912_v12 = vpop.xlane.xlu0 %4911 }
0x2c50   :  { %v4916_v6 = vmul.f32 0.015625, %v4912_v12 }
0x2c52   :  { %v4918_v36 = vadd.f32 1e-05, %v4916_v6 }
0x2c53   :  { %v4915_v57 = vpop.xlane.xlu0 %4914 }
0x2c54   :  { %7793 = vrsqrt.f32 %v4918_v36  ;;  %v4917_v0 = vmul.f32 0.015625, %v4915_v57 }
0x2c56   :  { %v4919_v26 = vadd.f32 1e-05, %v4917_v0 }
0x2c58   :  { %7795 = vrsqrt.f32 %v4919_v26 }
0x2c5e   :  { %v7794_v29 = vpop.eup %7793 }
0x2c5f   :  { %v4922_v51 = vmul.f32 %v7794_v29, %v9342_v30 }
0x2c61   :  { %v4928_v47 = vmul.f32 %v4927_v46, %v4922_v51 }
0x2c62   :  { %v7796_v60 = vpop.eup %7795 }
0x2c63   :  { %v9533_v49 = vadd.f32 %v9529_v1, %v4928_v47  ;;  %v4923_v25 = vmul.f32 %v7796_v60, %v9340_v5 }
0x2c65   :  { %vm5045_vm3 = vcmp.ge.f32.partialorder %v9533_v49, -0.6  ;;  %vm5051_vm4 = vcmp.ge.f32.partialorder %v9533_v49, -0.2  ;;  %vm5057_vm8 = vcmp.ge.f32.partialorder %v9533_v49, 0.2  ;;  %v9548_v5 = vmul.f32 %v4927_v46, %v4923_v25 }
0x2c66   :  { %v9540_v22 = vsel %vm5045_vm3, 1.0, %v10002_v53  ;;  %v6162_v35 = vsel %vm5051_vm4, 1.0, %v10002_v53  ;;  %v6164_v30 = vsel %vm5057_vm8, 1.0, %v10002_v53  ;;  %vm5063_vm9 = vcmp.ge.f32.partialorder %v9533_v49, 0.6 }
0x2c67   :  { %v6166_v14 = vsel %vm5063_vm9, 1.0, %v10002_v53  ;;  %vm5069_vm10 = vcmp.ge.f32.partialorder %v9533_v49, 1.0  ;;  %vm5075_vm11 = vcmp.ge.f32.partialorder %v9533_v49, 1.4  ;;  %vm5081_vm12 = vcmp.ge.f32.partialorder %v9533_v49, 1.8 }
0x2c68   :  { %v6168_v41 = vsel %vm5069_vm10, 1.0, %v10002_v53  ;;  %v6170_v23 = vsel %vm5075_vm11, 1.0, %v10002_v53  ;;  %v9554_v62 = vsel %vm5081_vm12, 1.0, %v10002_v53  ;;  %v9557_v55 = vsub.f32 %v9540_v22, %v6162_v35 }
0x2c69   :  { %v5103_v48 = vsub.f32 %v6162_v35, %v6164_v30  ;;  %v5105_v52 = vsub.f32 %v6164_v30, %v6166_v14  ;;  %v5107_v50 = vsub.f32 %v6166_v14, %v6168_v41  ;;  %v5109_v40 = vsub.f32 %v6168_v41, %v6170_v23 }
0x2c6a   :  { %v6184_v19 = vadd.f32 0.6, %v9533_v49  ;;  %v9561_v11 = vsub.f32 0.2, %v9533_v49  ;;  %v9564_v45 = vsub.f32 %v6170_v23, %v9554_v62  ;;  %v9567_v37 = vadd.f32 0.2, %v9533_v49 }
0x2c6b   :  { %v9570_v16 = vsub.f32 0.6, %v9533_v49  ;;  %v6188_v34 = vadd.f32 -0.2, %v9533_v49  ;;  %v5205_v9 = vsub.f32 1.0, %v9533_v49  ;;  %v9589_v43 = vadd.f32 -1.0, %v9533_v49 }
0x2c6c   :  { %v5173_v12 = vmul.f32 2.5, %v6184_v19  ;;  %v5179_v21 = vmul.f32 2.5, %v9561_v11  ;;  %v9576_v33 = vadd.f32 -0.6, %v9533_v49  ;;  %v5187_v10 = vmul.f32 2.5, %v9567_v37 }
0x2c6d   :  { %v5193_v31 = vmul.f32 2.5, %v9570_v16  ;;  %v5201_v6 = vmul.f32 2.5, %v6188_v34  ;;  %v9581_v59 = vsub.f32 1.4, %v9533_v49  ;;  %v5207_v17 = vmul.f32 2.5, %v5205_v9  ;;  %10016 = vst [vmem:[#allocation13_spill] sm:$0xff] %v9589_v43 }
0x2c6e   :  { %10015 = vst [vmem:[#allocation12_spill] sm:$0xff] %v9576_v33  ;;  %v5175_v24 = vmul.f32 %v5173_v12, %v9557_v55  ;;  %v5181_v18 = vmul.f32 %v5179_v21, %v5103_v48  ;;  %v5215_v58 = vmul.f32 2.5, %v9576_v33  ;;  %v5189_v32 = vmul.f32 %v5187_v10, %v5103_v48 }
0x2c6f   :  { %v5195_v36 = vmul.f32 %v5193_v31, %v5105_v52  ;;  %v5203_v44 = vmul.f32 %v5201_v6, %v5105_v52  ;;  %v5221_v57 = vmul.f32 2.5, %v9581_v59  ;;  %v5209_v15 = vmul.f32 %v5207_v17, %v5107_v50 }
0x2c70   :  { %v9586_v4 = vadd.f32 %v5181_v18, %v5175_v24  ;;  %v5217_v38 = vmul.f32 %v5215_v58, %v5107_v50  ;;  %v5233_v63 = vsub.f32 1.8, %v9533_v49  ;;  %v5295_v54 = vmul.f32 1.25, %v6184_v19 }
0x2c71   :  { %v5197_v56 = vadd.f32 %v5195_v36, %v5189_v32  ;;  %v5223_v0 = vmul.f32 %v5221_v57, %v5109_v40  ;;  %v5211_v13 = vadd.f32 %v5209_v15, %v5203_v44  ;;  %v5229_v7 = vmul.f32 2.5, %v9589_v43 }
0x2c72   :  { %v5299_v26 = vmul.f32 1.25, %v9570_v16  ;;  %v5305_v2 = vmul.f32 1.25, %v9567_v37  ;;  %v5235_v27 = vmul.f32 2.5, %v5233_v63  ;;  %v5297_v8 = vmul.f32 %v5295_v54, %v9586_v4 }
0x2c73   :  { %v5225_v28 = vadd.f32 %v5223_v0, %v5217_v38  ;;  %v5309_v20 = vmul.f32 1.25, %v5205_v9  ;;  %v5231_v46 = vmul.f32 %v5229_v7, %v5109_v40  ;;  %v5315_v47 = vmul.f32 1.25, %v6188_v34 }
0x2c74   :  { %v5301_v29 = vmul.f32 %v5299_v26, %v5197_v56  ;;  %v5307_v51 = vmul.f32 %v5305_v2, %v5197_v56  ;;  %v5237_v60 = vmul.f32 %v5235_v27, %v9564_v45  ;;  %v5319_v35 = vmul.f32 1.25, %v9581_v59 }
0x2c75   :  { %v5311_v25 = vmul.f32 %v5309_v20, %v5211_v13  ;;  %v5325_v30 = vmul.f32 1.25, %v9576_v33  ;;  %v5317_v41 = vmul.f32 %v5315_v47, %v5211_v13  ;;  %v5329_v23 = vmul.f32 1.25, %v5233_v63 }
0x2c76   :  { %v9599_v14 = vadd.f32 %v5301_v29, %v5297_v8  ;;  %v5385_v48 = vmul.f32 0.8333333, %v6184_v19  ;;  %v9601_v52 = vadd.f32 %v5237_v60, %v5231_v46  ;;  %v5321_v40 = vmul.f32 %v5319_v35, %v5225_v28 }
0x2c77   :  { %v9603_v50 = vadd.f32 %v5311_v25, %v5307_v51  ;;  %v5327_v12 = vmul.f32 %v5325_v30, %v5225_v28  ;;  %v5389_v10 = vmul.f32 0.8333333, %v5205_v9  ;;  %v5405_v31 = vmul.f32 0.8333333, %v6188_v34 }
0x2c78   :  { %10017 = vst [vmem:[#allocation7_spill] sm:$0xff] %v9601_v52  ;;  %v5387_v21 = vmul.f32 %v5385_v48, %v9599_v14  ;;  %v5409_v6 = vmul.f32 0.8333333, %v5233_v63  ;;  %v9606_v24 = vadd.f32 %v5321_v40, %v5317_v41  ;;  %v5331_v18 = vmul.f32 %v5329_v23, %v9601_v52 }
0x2c79   :  { %vm5021_vm0 = vcmp.ge.f32.partialorder %v9533_v49, -2.2  ;;  %vm5027_vm1 = vcmp.ge.f32.partialorder %v9533_v49, -1.8  ;;  %v5391_v19 = vmul.f32 %v5389_v10, %v9603_v50  ;;  %vm5033_vm5 = vcmp.ge.f32.partialorder %v9533_v49, -1.4 }
0x2c7a   :  { %v6152_v17 = vsel %vm5021_vm0, 1.0, %v10002_v53  ;;  %v6154_v58 = vsel %vm5027_vm1, 1.0, %v10002_v53  ;;  %v9615_v32 = vadd.f32 %v5331_v18, %v5327_v12  ;;  %v5407_v34 = vmul.f32 %v5405_v31, %v9606_v24 }
0x2c7b   :  { %v6156_v9 = vsel %vm5033_vm5, 1.0, %v10002_v53  ;;  %vm5039_vm6 = vcmp.ge.f32.partialorder %v9533_v49, -1.0  ;;  %v5393_v36 = vadd.f32 %v5391_v19, %v5387_v21  ;;  %v5093_v57 = vsub.f32 %v6152_v17, %v6154_v58 }
0x2c7c   :  { %10018 = vst [vmem:[#allocation9_spill] sm:$0xff] %v9615_v32  ;;  %v6158_v44 = vsel %vm5039_vm6, 1.0, %v10002_v53  ;;  %v5095_v15 = vsub.f32 %v6154_v58, %v6156_v9  ;;  %v5411_v38 = vmul.f32 %v5409_v6, %v9615_v32  ;;  %v6176_v63 = vadd.f32 2.2, %v9533_v49 }
0x2c7d   :  { %v5097_v56 = vsub.f32 %v6156_v9, %v6158_v44  ;;  %v5099_v0 = vsub.f32 %v6158_v44, %v9540_v22  ;;  %v5121_v54 = vsub.f32 -1.4, %v9533_v49  ;;  %v9626_v13 = vadd.f32 1.8, %v9533_v49 }
0x2c7e   :  { %v5135_v7 = vsub.f32 -1.0, %v9533_v49  ;;  %v9630_v26 = vadd.f32 1.0, %v9533_v49  ;;  %v5413_v2 = vadd.f32 %v5411_v38, %v5407_v34  ;;  %v5117_v28 = vmul.f32 2.5, %v6176_v63 }
0x2c7f   :  { %v6180_v27 = vadd.f32 1.4, %v9533_v49  ;;  %v5149_v8 = vsub.f32 -0.6, %v9533_v49  ;;  %v5123_v20 = vmul.f32 2.5, %v5121_v54  ;;  %v5131_v22 = vmul.f32 2.5, %v9626_v13 }
0x2c80   :  { %v5137_v46 = vmul.f32 2.5, %v5135_v7  ;;  %v5159_v29 = vmul.f32 2.5, %v9630_v26  ;;  %v7634_v51 = vpack.i.bf16 %v5393_v36, %v5413_v2  ;;  %v5119_v47 = vmul.f32 %v5117_v28, %v5093_v57 }
0x2c81   :  { %v5145_v60 = vmul.f32 2.5, %v6180_v27  ;;  %v5151_v25 = vmul.f32 2.5, %v5149_v8  ;;  %v9638_v35 = vadd.f32 %v9529_v1, %v9548_v5  ;;  %v5125_v30 = vmul.f32 %v5123_v20, %v5095_v15 }
0x2c82   :  { %v5133_v41 = vmul.f32 %v5131_v22, %v5095_v15  ;;  %v5139_v23 = vmul.f32 %v5137_v46, %v5097_v56  ;;  %7635 = vrot.lane.b32.xlu0 %v7634_v51, %s7844_s19  ;;  %v9642_v12 = vsub.f32 -0.2, %v9533_v49  ;;  %v5255_v21 = vmul.f32 1.25, %v6176_v63 }
0x2c83   :  { %v5147_v48 = vmul.f32 %v5145_v60, %v5097_v56  ;;  %v5153_v40 = vmul.f32 %v5151_v25, %v5099_v0  ;;  %v5127_v10 = vadd.f32 %v5125_v30, %v5119_v47  ;;  %v5259_v6 = vmul.f32 1.25, %v5135_v7 }
0x2c84   :  { %v5141_v31 = vadd.f32 %v5139_v23, %v5133_v41  ;;  %v5265_v18 = vmul.f32 1.25, %v9626_v13  ;;  %v5161_v17 = vmul.f32 %v5159_v29, %v5099_v0  ;;  %v5165_v1 = vmul.f32 2.5, %v9642_v12 }
0x2c85   :  { %v5155_v19 = vadd.f32 %v5153_v40, %v5147_v48  ;;  %v5269_v5 = vmul.f32 1.25, %v5149_v8  ;;  %v5257_v58 = vmul.f32 %v5255_v21, %v5127_v10  ;;  %v5275_v36 = vmul.f32 1.25, %v6180_v27 }
0x2c86   :  { %v5261_v34 = vmul.f32 %v5259_v6, %v5141_v31  ;;  %v5267_v9 = vmul.f32 %v5265_v18, %v5141_v31  ;;  %v5167_v44 = vmul.f32 %v5165_v1, %v9557_v55  ;;  %v5279_v15 = vmul.f32 1.25, %v9642_v12 }
0x2c87   :  { %v5271_v57 = vmul.f32 %v5269_v5, %v5155_v19  ;;  %v5277_v56 = vmul.f32 %v5275_v36, %v5155_v19  ;;  %v5289_v54 = vmul.f32 1.25, %v9561_v11  ;;  %v5345_v7 = vmul.f32 0.8333333, %v6176_v63  ;;  %v6094_v19 = vld [vmem:[%s9961_s4 + $0x2b0] sm:$0xff] }
0x2c88   :  { %v5263_v38 = vadd.f32 %v5261_v34, %v5257_v58  ;;  %v5169_v2 = vadd.f32 %v5167_v44, %v5161_v17  ;;  %v5285_v0 = vmul.f32 1.25, %v9630_v26  ;;  %v5349_v20 = vmul.f32 0.8333333, %v5149_v8  ;;  %v6095_v17 = vld [vmem:[%s9961_s4 + $0x2b8] sm:$0xff] }
0x2c89   :  { %v9649_v28 = vadd.f32 %v5271_v57, %v5267_v9  ;;  %v5291_v22 = vmul.f32 %v5289_v54, %v9586_v4  ;;  %vm5034_vm13 = vcmp.ge.f32.partialorder %v9638_v35, -1.4  ;;  %vm5040_vm14 = vcmp.ge.f32.partialorder %v9638_v35, -1.0 }
0x2c8a   :  { %v5347_v46 = vmul.f32 %v5345_v7, %v5263_v38  ;;  %v5281_v55 = vmul.f32 %v5279_v15, %v5169_v2  ;;  %v5287_v29 = vmul.f32 %v5285_v0, %v5169_v2  ;;  %v5365_v47 = vmul.f32 0.8333333, %v6180_v27 }
0x2c8b   :  { %v5351_v51 = vmul.f32 %v5349_v20, %v9649_v28  ;;  %v5369_v63 = vmul.f32 0.8333333, %v9561_v11  ;;  %vm5046_vm15 = vcmp.ge.f32.partialorder %v9638_v35, -0.6  ;;  %v9663_v4 = vsel %vm5034_vm13, 1.0, %v10002_v53 }
0x2c8c   :  { %v9658_v60 = vadd.f32 %v5281_v55, %v5277_v56  ;;  %v9660_v25 = vadd.f32 %v5291_v22, %v5287_v29  ;;  %vm5052_vm3 = vcmp.ge.f32.partialorder %v9638_v35, -0.2  ;;  %v6159_v8 = vsel %vm5040_vm14, 1.0, %v10002_v53 }
0x2c8d   :  { %vm5058_vm4 = vcmp.ge.f32.partialorder %v9638_v35, 0.2  ;;  %vm5064_vm8 = vcmp.ge.f32.partialorder %v9638_v35, 0.6  ;;  %vm5070_vm9 = vcmp.ge.f32.partialorder %v9638_v35, 1.0  ;;  %v5353_v11 = vadd.f32 %v5351_v51, %v5347_v46 }
0x2c8e   :  { %v5367_v27 = vmul.f32 %v5365_v47, %v9658_v60  ;;  %v5371_v30 = vmul.f32 %v5369_v63, %v9660_v25  ;;  %v6161_v41 = vsel %vm5046_vm15, 1.0, %v10002_v53  ;;  %v6163_v23 = vsel %vm5052_vm3, 1.0, %v10002_v53 }
0x2c8f   :  { %v6165_v48 = vsel %vm5058_vm4, 1.0, %v10002_v53  ;;  %v6167_v40 = vsel %vm5064_vm8, 1.0, %v10002_v53  ;;  %vm5076_vm10 = vcmp.ge.f32.partialorder %v9638_v35, 1.4  ;;  %v6169_v10 = vsel %vm5070_vm9, 1.0, %v10002_v53 }
0x2c90   :  { %v5373_v21 = vadd.f32 %v5371_v30, %v5367_v27  ;;  %v6171_v31 = vsel %vm5076_vm10, 1.0, %v10002_v53  ;;  %vm5082_vm11 = vcmp.ge.f32.partialorder %v9638_v35, 1.8  ;;  %v9681_v6 = vsub.f32 %v9663_v4, %v6159_v8 }
0x2c91   :  { %v5100_v18 = vsub.f32 %v6159_v8, %v6161_v41  ;;  %v5102_v5 = vsub.f32 %v6161_v41, %v6163_v23  ;;  %v9689_v58 = vsub.f32 %v6163_v23, %v6165_v48  ;;  %v9691_v34 = vsub.f32 %v6165_v48, %v6167_v40 }
0x2c92   :  { %v7629_v1 = vpack.i.bf16 %v5353_v11, %v5373_v21  ;;  %v5108_v9 = vsub.f32 %v6167_v40, %v6169_v10  ;;  %v9694_v36 = vadd.f32 1.4, %v9638_v35  ;;  %v9697_v44 = vsub.f32 -0.6, %v9638_v35 }
0x2c93   :  { %v9700_v57 = vadd.f32 1.0, %v9638_v35  ;;  %v9704_v15 = vsub.f32 -0.2, %v9638_v35  ;;  %v9707_v38 = vadd.f32 0.6, %v9638_v35  ;;  %v7343_v54 = vpack.c.bf16 %v6095_v17, %v6094_v19 }
0x2c94   :  { %7630 = vrot.lane.b32.xlu1 %v7629_v1, %s7844_s19  ;;  %v9710_v56 = vsub.f32 0.2, %v9638_v35  ;;  %v5146_v7 = vmul.f32 2.5, %v9694_v36  ;;  %v5152_v2 = vmul.f32 2.5, %v9697_v44  ;;  %v6189_v20 = vadd.f32 -0.2, %v9638_v35 }
0x2c95   :  { %v5160_v0 = vmul.f32 2.5, %v9700_v57  ;;  %v5166_v22 = vmul.f32 2.5, %v9704_v15  ;;  %v5174_v46 = vmul.f32 2.5, %v9707_v38  ;;  %v9720_v29 = vsub.f32 1.0, %v9638_v35  ;;  %7344 = vmatpush3.bf16.msra.mxu1 %v7343_v54 }
0x2c96   :  { %v5180_v55 = vmul.f32 2.5, %v9710_v56  ;;  %v9725_v51 = vsel %vm5082_vm11, 1.0, %v10002_v53  ;;  %v5148_v47 = vmul.f32 %v5146_v7, %v9681_v6  ;;  %v5154_v63 = vmul.f32 %v5152_v2, %v5100_v18 }
0x2c97   :  { %v5202_v8 = vmul.f32 2.5, %v6189_v20  ;;  %v5110_v11 = vsub.f32 %v6169_v10, %v6171_v31  ;;  %v5162_v27 = vmul.f32 %v5160_v0, %v5100_v18  ;;  %v5168_v30 = vmul.f32 %v5166_v22, %v5102_v5 }
0x2c98   :  { %v5208_v41 = vmul.f32 2.5, %v9720_v29  ;;  %v5176_v23 = vmul.f32 %v5174_v46, %v5102_v5  ;;  %v5182_v48 = vmul.f32 %v5180_v55, %v9689_v58  ;;  %v6191_v40 = vadd.f32 -0.6, %v9638_v35 }
0x2c99   :  { %v9732_v21 = vsub.f32 1.4, %v9638_v35  ;;  %v9734_v19 = vadd.f32 %v5154_v63, %v5148_v47  ;;  %v5204_v17 = vmul.f32 %v5202_v8, %v9691_v34  ;;  %v6193_v54 = vadd.f32 -1.0, %v9638_v35 }
0x2c9a   :  { %v5210_v1 = vmul.f32 %v5208_v41, %v5108_v9  ;;  %v9739_v10 = vsub.f32 %v6171_v31, %v9725_v51  ;;  %v5216_v18 = vmul.f32 2.5, %v6191_v40  ;;  %v5234_v7 = vsub.f32 1.8, %v9638_v35 }
0x2c9b   :  { %v5222_v5 = vmul.f32 2.5, %v9732_v21  ;;  %vm5088_vm12 = vcmp.ge.f32.partialorder %v9638_v35, 2.2  ;;  %v5170_v2 = vadd.f32 %v5168_v30, %v5162_v27  ;;  %v5230_v0 = vmul.f32 2.5, %v6193_v54 }
0x2c9c   :  { %v5276_v22 = vmul.f32 1.25, %v9694_v36  ;;  %v9745_v46 = vadd.f32 %v5182_v48, %v5176_v23  ;;  %v5218_v55 = vmul.f32 %v5216_v18, %v5108_v9  ;;  %v5236_v63 = vmul.f32 2.5, %v5234_v7 }
0x2c9d   :  { %v5224_v47 = vmul.f32 %v5222_v5, %v5110_v11  ;;  %v9747_v8 = vadd.f32 %v5210_v1, %v5204_v17  ;;  %v5232_v31 = vmul.f32 %v5230_v0, %v5110_v11  ;;  %v5280_v3 = vmul.f32 1.25, %v9704_v15 }
0x2c9e   :  { %v5278_v41 = vmul.f32 %v5276_v22, %v9734_v19  ;;  %v9752_v61 = vsel %vm5088_vm12, 1.0, %v10002_v53  ;;  %v5238_v27 = vmul.f32 %v5236_v63, %v9739_v10  ;;  %v5286_v30 = vmul.f32 1.25, %v9700_v57 }
0x2c9f   :  { %v5226_v39 = vadd.f32 %v5224_v47, %v5218_v55  ;;  %v9757_v23 = vadd.f32 -1.4, %v9638_v35  ;;  %v5282_v9 = vmul.f32 %v5280_v3, %v5170_v2  ;;  %v5290_v48 = vmul.f32 1.25, %v9710_v56 }
0x2ca0   :  { %v5316_v17 = vmul.f32 1.25, %v6189_v20  ;;  %v5240_v11 = vadd.f32 %v5238_v27, %v5232_v31  ;;  %v5288_v1 = vmul.f32 %v5286_v30, %v5170_v2  ;;  %v5320_v18 = vmul.f32 1.25, %v9732_v21 }
0x2ca1   :  { %v5326_v5 = vmul.f32 1.25, %v6191_v40  ;;  %v9761_v0 = vadd.f32 %v5282_v9, %v5278_v41  ;;  %v5292_v22 = vmul.f32 %v5290_v48, %v9745_v46  ;;  %v5330_v47 = vmul.f32 1.25, %v5234_v7 }
0x2ca2   :  { %v5318_v55 = vmul.f32 %v5316_v17, %v9747_v8  ;;  %v5322_v63 = vmul.f32 %v5320_v18, %v5226_v39  ;;  %v5336_v32 = vmul.f32 1.25, %v6193_v54  ;;  %v5366_v3 = vmul.f32 0.8333333, %v9694_v36 }
0x2ca3   :  { %v5328_v42 = vmul.f32 %v5326_v5, %v5226_v39  ;;  %v9766_v33 = vadd.f32 %v5292_v22, %v5288_v1  ;;  %v5332_v52 = vmul.f32 %v5330_v47, %v5240_v11  ;;  %v5370_v2 = vmul.f32 0.8333333, %v9710_v56 }
0x2ca4   :  { %v5406_v31 = vmul.f32 0.8333333, %v6189_v20  ;;  %v9769_v27 = vadd.f32 %v5322_v63, %v5318_v55  ;;  %v9771_v41 = vmul.f32 %v5336_v32, %v5240_v11  ;;  %v5368_v30 = vmul.f32 %v5366_v3, %v9761_v0 }
0x2ca5   :  { %v5410_v9 = vmul.f32 0.8333333, %v5234_v7  ;;  %v5334_v48 = vadd.f32 %v5332_v52, %v5328_v42  ;;  %v5372_v17 = vmul.f32 %v5370_v2, %v9766_v33  ;;  %v5416_v39 = vmul.f32 0.8333333, %v6191_v40 }
0x2ca6   :  { %vm5022_vm0 = vcmp.ge.f32.partialorder %v9638_v35, -2.2  ;;  %v5408_v36 = vmul.f32 %v5406_v31, %v9769_v27  ;;  %vm5028_vm1 = vcmp.ge.f32.partialorder %v9638_v35, -1.8  ;;  %v6177_v56 = vadd.f32 2.2, %v9638_v35 }
0x2ca7   :  { %v6153_v54 = vsel %vm5022_vm0, 1.0, %v10002_v53  ;;  %v5374_v20 = vadd.f32 %v5372_v17, %v5368_v30  ;;  %v5412_v32 = vmul.f32 %v5410_v9, %v5334_v48  ;;  %v9780_v11 = vmul.f32 %v5416_v39, %v5334_v48 }
0x2ca8   :  { %v6155_v7 = vsel %vm5028_vm1, 1.0, %v10002_v53  ;;  %v5118_v40 = vmul.f32 2.5, %v6177_v56  ;;  %v5122_v1 = vsub.f32 -1.4, %v9638_v35  ;;  %v9786_v5 = vadd.f32 1.8, %v9638_v35 }
0x2ca9   :  { %v5094_v42 = vsub.f32 %v6153_v54, %v6155_v7  ;;  %v5096_v52 = vsub.f32 %v6155_v7, %v9663_v4  ;;  %v5414_v18 = vadd.f32 %v5412_v32, %v5408_v36  ;;  %v5136_v22 = vsub.f32 -1.0, %v9638_v35 }
0x2caa   :  { %v9790_v55 = vadd.f32 0.2, %v9638_v35  ;;  %v5124_v63 = vmul.f32 2.5, %v5122_v1  ;;  %v9793_v3 = vsub.f32 0.6, %v9638_v35  ;;  %v5256_v2 = vmul.f32 1.25, %v6177_v56 }
0x2cab   :  { %v5120_v47 = vmul.f32 %v5118_v40, %v5094_v42  ;;  %v7639_v31 = vpack.i.bf16 %v5414_v18, %v5374_v20  ;;  %v5132_v4 = vmul.f32 2.5, %v9786_v5  ;;  %v5138_v30 = vmul.f32 2.5, %v5136_v22 }
0x2cac   :  { %v5188_v9 = vmul.f32 2.5, %v9790_v55  ;;  %v5126_v48 = vmul.f32 %v5124_v63, %v5096_v52  ;;  %v5194_v17 = vmul.f32 2.5, %v9793_v3  ;;  %v5260_v39 = vmul.f32 1.25, %v5136_v22 }
0x2cad   :  { %v5266_v36 = vmul.f32 1.25, %v9786_v5  ;;  %7640 = vrot.lane.b32.xlu1 %v7639_v31, %s7844_s19  ;;  %v5134_v54 = vmul.f32 %v5132_v4, %v5096_v52  ;;  %v5140_v32 = vmul.f32 %v5138_v30, %v9681_v6  ;;  %v5270_v20 = vmul.f32 1.25, %v9697_v44  ;;  %v6142_v6 = vld [vmem:[%s9961_s4 + $0x430] sm:$0xff]  ;;  %v6143_v4 = vld [vmem:[%s9961_s4 + $0x438] sm:$0xff] }
0x2cae   :  { %v5190_v7 = vmul.f32 %v5188_v9, %v9689_v58  ;;  %v5128_v42 = vadd.f32 %v5126_v48, %v5120_v47  ;;  %v5196_v40 = vmul.f32 %v5194_v17, %v9691_v34  ;;  %v5296_v1 = vmul.f32 1.25, %v9707_v38  ;;  %v6127_v30 = vld [vmem:[%s9961_s4 + $0x3b8] sm:$0xff] }
0x2caf   :  { %v5300_v18 = vmul.f32 1.25, %v9793_v3  ;;  %v5142_v63 = vadd.f32 %v5140_v32, %v5134_v54  ;;  %v5272_v22 = vmul.f32 %v5270_v20, %v9734_v19  ;;  %v5306_v43 = vmul.f32 1.25, %v9790_v55  ;;  %v6126_v19 = vld [vmem:[%s9961_s4 + $0x3b0] sm:$0xff]  ;;  %v6145_v20 = vld [vmem:[%s9961_s4 + $0x448] sm:$0xff] }
0x2cb0   :  { %v5310_v52 = vmul.f32 1.25, %v9720_v29  ;;  %v5198_v58 = vadd.f32 %v5196_v40, %v5190_v7  ;;  %v5258_v31 = vmul.f32 %v5256_v2, %v5128_v42  ;;  %v5298_v47 = vmul.f32 %v5296_v1, %v9745_v46  ;;  %v6144_v7 = vld [vmem:[%s9961_s4 + $0x440] sm:$0xff] }
0x2cb1   :  { %v5346_v34 = vmul.f32 0.8333333, %v6177_v56  ;;  %v5262_v9 = vmul.f32 %v5260_v39, %v5142_v63  ;;  %v5268_v48 = vmul.f32 %v5266_v36, %v5142_v63  ;;  %v5350_v2 = vmul.f32 0.8333333, %v9697_v44 }
0x2cb2   :  { %v5312_v17 = vmul.f32 %v5310_v52, %v9747_v8  ;;  %v5302_v46 = vmul.f32 %v5300_v18, %v5198_v58  ;;  %v5308_v56 = vmul.f32 %v5306_v43, %v5198_v58  ;;  %v5386_v54 = vmul.f32 0.8333333, %v9707_v38 }
0x2cb3   :  { %v5390_v32 = vmul.f32 0.8333333, %v9720_v29  ;;  %v5264_v39 = vadd.f32 %v5262_v9, %v5258_v31  ;;  %v5274_v36 = vadd.f32 %v5272_v22, %v5268_v48  ;;  %v7373_v42 = vpack.c.bf16 %v6143_v4, %v6142_v6 }
0x2cb4   :  { %v7375_v8 = vpack.c.bf16 %v6127_v30, %v6126_v19  ;;  %v5304_v40 = vadd.f32 %v5302_v46, %v5298_v47  ;;  %v5314_v44 = vadd.f32 %v5312_v17, %v5308_v56  ;;  %v5355_v43 = vmul.f32 0.8333333, %v9626_v13 }
0x2cb5   :  { %v5359_v38 = vmul.f32 0.8333333, %v9642_v12  ;;  %v5348_v1 = vmul.f32 %v5346_v34, %v5264_v39  ;;  %v5352_v29 = vmul.f32 %v5350_v2, %v5274_v36  ;;  %7374 = vmatprep.subr.bf16.mxu0 %v7373_v42  ;;  %v9834_v18 = vpack.c.bf16 %v6145_v20, %v6144_v7 }
0x2cb6   :  { %v5395_v63 = vmul.f32 0.8333333, %v9567_v37  ;;  %v5388_v52 = vmul.f32 %v5386_v54, %v5304_v40  ;;  %v5392_v58 = vmul.f32 %v5390_v32, %v5314_v44  ;;  %7376 = vmatpush3.bf16.msra.mxu0 %v7375_v8  ;;  %v5357_v22 = vmul.f32 %v5355_v43, %v9649_v28 }
0x2cb7   :  { %v5361_v6 = vmul.f32 %v5359_v38, %v9658_v60  ;;  %v5248_v31 = vsub.f32 2.2, %v9638_v35  ;;  %v5354_v47 = vadd.f32 %v5352_v29, %v5348_v1  ;;  %7378 = vmatprep.subr.bf16.mxu1 %v9834_v18  ;;  %v5399_v12 = vmul.f32 0.8333333, %v9581_v59  ;;  %6940 = vmatprep.subr.mxu0 %v10002_v53 }
0x2cb8   :  { %v5397_v13 = vmul.f32 %v5395_v63, %v9603_v50  ;;  %v5394_v34 = vadd.f32 %v5392_v58, %v5388_v52  ;;  %v5375_v4 = vmul.f32 0.8333333, %v9630_v26  ;;  %v5356_v28 = vmul.f32 0.8333333, %v9786_v5 }
0x2cb9   :  { %v5363_v37 = vadd.f32 %v5361_v6, %v5357_v22  ;;  %v5401_v19 = vmul.f32 %v5399_v12, %v9606_v24  ;;  %v5360_v60 = vmul.f32 0.8333333, %v9704_v15  ;;  %v5114_v30 = vsub.f32 %v9725_v51, %v9752_v61  ;;  %v6148_v12 = vld [vmem:[%s9961_s4 + $0x460] sm:$0xff] }
0x2cba   :  { %v5244_v9 = vmul.f32 2.5, %v9757_v23  ;;  %v7644_v50 = vpack.i.bf16 %v5394_v34, %v5354_v47  ;;  %v5377_v59 = vmul.f32 %v5375_v4, %v9660_v25  ;;  %v5250_v48 = vmul.f32 2.5, %v5248_v31  ;;  %v6149_v34 = vld [vmem:[%s9961_s4 + $0x468] sm:$0xff] }
0x2cbb   :  { %v5403_v17 = vadd.f32 %v5401_v19, %v5397_v13  ;;  %v5358_v2 = vmul.f32 %v5356_v28, %v5274_v36  ;;  %v5362_v46 = vmul.f32 %v5360_v60, %v9761_v0  ;;  %v5396_v24 = vmul.f32 0.8333333, %v9790_v55  ;;  %v6150_v19 = vld [vmem:[%s9961_s4 + $0x470] sm:$0xff]  ;;  %v6151_v28 = vld [vmem:[%s9961_s4 + $0x478] sm:$0xff] }
0x2cbc   :  { %7645 = vrot.lane.b32.xlu1 %v7644_v50, %s7844_s19  ;;  %v5400_v26 = vmul.f32 0.8333333, %v9732_v21  ;;  %v5376_v61 = vmul.f32 0.8333333, %v9700_v57  ;;  %v5380_v51 = vmul.f32 0.8333333, %v9793_v3  ;;  %v5246_v5 = vmul.f32 %v5244_v9, %v9739_v10 }
0x2cbd   :  { %v9856_v15 = vadd.f32 %v5362_v46, %v5358_v2  ;;  %v5398_v23 = vmul.f32 %v5396_v24, %v5314_v44  ;;  %v5252_v56 = vmul.f32 %v5250_v48, %v5114_v30  ;;  %v5340_v7 = vmul.f32 1.25, %v5248_v31 }
0x2cbe   :  { %v5402_v25 = vmul.f32 %v5400_v26, %v9769_v27  ;;  %v5378_v0 = vmul.f32 %v5376_v61, %v9766_v33  ;;  %v5382_v54 = vmul.f32 %v5380_v51, %v5304_v40  ;;  %v5420_v39 = vmul.f32 0.8333333, %v5248_v31 }
0x2cbf   :  { %v5254_v21 = vadd.f32 %v5252_v56, %v5246_v5  ;;  %v5009_v10 = vsub.f32 0.0, %v9533_v49  ;;  %v5379_v33 = vmul.f32 0.8333333, %v9570_v16  ;;  %v6146_v16 = vld [vmem:[%s9961_s4 + $0x450] sm:$0xff]  ;;  %v5010_v13 = vsub.f32 0.0, %v9638_v35 }
0x2cc0   :  { %v9863_v32 = vadd.f32 %v5402_v25, %v5398_v23  ;;  %v9865_v55 = vadd.f32 %v5382_v54, %v5378_v0  ;;  %v7385_v4 = vpack.c.bf16 %v6149_v34, %v6148_v12  ;;  %v7389_v60 = vpack.c.bf16 %v6151_v28, %v6150_v19  ;;  %v10020_v54 = vld [vmem:[#allocation7_spill] sm:$0xff] }
0x2cc1   :  { %v5342_v20 = vmul.f32 %v5340_v7, %v5254_v21  ;;  %v5011_v27 = vmul.f32 1.442695, %v5009_v10  ;;  %v5381_v42 = vmul.f32 %v5379_v33, %v9599_v14  ;;  %v6147_v14 = vld [vmem:[%s9961_s4 + $0x458] sm:$0xff]  ;;  %vm5087_vm5 = vcmp.ge.f32.partialorder %v9533_v49, 2.2  ;;  %v10022_v10 = vld [vmem:[#allocation9_spill] sm:$0xff] }
0x2cc2   :  { %v7381_v47 = vpack.c.bf16 %v6147_v14, %v6146_v16  ;;  %v5247_v30 = vsub.f32 2.2, %v9533_v49  ;;  %v6174_v9 = vsel %vm5087_vm5, 1.0, %v10002_v53  ;;  %vm7861_vm6 = vmmov 0  }
0x2cc3   :  { %v5344_v57 = vadd.f32 %v5342_v20, %v9771_v41  ;;  %7797 = vpow2.f32 %v5011_v27  ;;  %v5383_v38 = vadd.f32 %v5381_v42, %v5377_v59  ;;  %v5113_v50 = vsub.f32 %v9554_v62, %v6174_v9  ;;  %v10019_v62 = vld [vmem:[#allocation13_spill] sm:$0xff]  ;;  %v10021_v20 = vld [vmem:[#allocation12_spill] sm:$0xff] }
0x2cc4   :  { %v5249_v48 = vmul.f32 2.5, %v5247_v30  ;;  %v5335_v56 = vmul.f32 1.25, %v10019_v62  ;;  %v5339_v0 = vmul.f32 1.25, %v5247_v30  ;;  %vm5894_vm14 = vcmask 9216  }
0x2cc5   :  { %v5422_v3 = vmul.f32 %v5420_v39, %v5344_v57  ;;  %v5415_v57 = vmul.f32 0.8333333, %v10021_v20  ;;  %v5419_v39 = vmul.f32 0.8333333, %v5247_v30 }
0x2cc6   :  { %v5251_v46 = vmul.f32 %v5249_v48, %v5113_v50 }
0x2cc7   :  { %v9869_v36 = vadd.f32 %v5422_v3, %v9780_v11  ;;  %v5417_v27 = vmul.f32 %v5415_v57, %v10022_v10 }
0x2ccd   :  { %v7798_v8 = vpop.eup %7797 }
0x2cce   :  { %v5015_v1 = vadd.f32 1.0, %v7798_v8 }
0x2cd0   :  { %7799 = vrcp.f32 %v5015_v1 }
0x2cda   :  { %v7800_v11 = vpop.eup %7799 }
0x2cdb   :  { %v5019_v22 = vmul.f32 %v7800_v11, %v9533_v49 }
0x2cf4   :  { %v7636_v40 = vpop.permute.xlu0 %7635 }
0x2cf5   :  { %v7638_v44 = vunpack.i.h.bf16 %v7636_v40  ;;  %v7637_v43 = vunpack.i.l.bf16 %v7636_v40 }
0x2cf7   :  { %v5463_v41 = vsel %vm255_vm2, %v5403_v17, %v7637_v43  ;;  %v5461_v29 = vsel %vm255_vm2, %v5383_v38, %v7638_v44 }
0x2cf8   :  { %5610 = vmatprep.mubr.f32.mxu0 %v5463_v41 }
0x2cf9   :  { %5611 = vmatmul.mubr.f32.vlgmr.msra.gmra.mrb[46].mxu0 %v5461_v29 }
0x2d06   :  { %v7631_v63 = vpop.permute.xlu1 %7630 }
0x2d07   :  { %v7633_v52 = vunpack.i.h.bf16 %v7631_v63  ;;  %v7632_v58 = vunpack.i.l.bf16 %v7631_v63 }
0x2d09   :  { %v5459_v6 = vsel %vm255_vm2, %v5363_v37, %v7632_v58  ;;  %v5457_v31 = vsel %vm255_vm2, %v5019_v22, %v7633_v52  ;;  %v5013_v37 = vmul.f32 1.442695, %v5010_v13 }
0x2d0a   :  { %5535 = vmatprep.mubr.f32.mxu1 %v5459_v6 }
0x2d0b   :  { %5536 = vmatmul.mubr.f32.vlgmr.msra.gmra.mrb[44].mxu1 %v5457_v31  ;;  %7801 = vpow2.f32 %v5013_v37 }
0x2d0c   :  { %7380 = vmatpush3.bf16.msra.mxu1 %v9834_v18  ;;  %v6194_v18 = vadd.f32 -1.4, %v9533_v49 }
0x2d0d   :  { %7382 = vmatprep.subr.bf16.mxu1 %v7381_v47 }
0x2d0e   :  { %v5243_v59 = vmul.f32 2.5, %v6194_v18 }
0x2d10   :  { %7384 = vmatpush3.bf16.msra.mxu1 %v7381_v47  ;;  %v5245_v2 = vmul.f32 %v5243_v59, %v9564_v45  ;;  %v5337_v45 = vmul.f32 %v5335_v56, %v10020_v54  ;;  %v7816_v56 = vld [vmem:[%s9962_s5 + $0x10] sm:$0xf] }
0x2d11   :  { %7386 = vmatprep.subr.bf16.mxu1 %v7385_v4 }
0x2d12   :  { %v5253_v23 = vadd.f32 %v5251_v46, %v5245_v2  ;;  %v7815_v2 = vld [vmem:[%s9962_s5] sm:$0xff]  ;;  %s7862_s5 = smov [#allocation2]  }
0x2d13   :  { %v5818_v46 = vrot.slane %v7815_v2, 2  ;;  %s5902_s16 = sshll.u32 %s7862_s5, 4  ;;  %s5903_s16 = int_to_ptr.vmem [resolvable:$true] %s5902_s16 }
0x2d14   :  { %7388 = vmatpush3.bf16.msra.mxu1 %v7385_v4  ;;  %v5341_v21 = vmul.f32 %v5339_v0, %v5253_v23  ;;  %v10023_v0 = vld [vmem:[#allocation5_spill] sm:$0xff]  ;;  %s7817_s0 = scalar_lea.vmem %s5903_s16, 32  ;;  %p7822_p1 = scmp.lt.s32.totalorder %s5903_s16, %s5903_s16 }
0x2d15   :  { %7390 = vmatprep.subr.bf16.mxu1 %v7389_v60  ;;  %v7802_v17 = vpop.eup %7801  ;;  %6941 = vmatpush3.xpose.msk.msra.mxu0 %vm255_vm2, %v5818_v46  ;;  %v10024_v54 = vsub.s32 2, %v10023_v0  ;;  %v10025_v57 = vsub.s32 3, %v10023_v0  ;;  %p7818_p0 = scmp.ne.s32.totalorder %s5903_s16, %s7817_s0  ;;  %p7823_p2 = scmp.lt.s32.totalorder %s7817_s0, %s7817_s0 }
0x2d16   :  { %v5016_v24 = vadd.f32 1.0, %v7802_v17  ;;  %v5343_v7 = vadd.f32 %v5341_v21, %v5337_v45 }
0x2d17   :  { %v5727_v45 = vrot.slane %v7816_v56, %v10024_v54  ;;  %p7824_p3 = por %p7823_p2, %p7822_p1 }
0x2d18   :  { %7392 = vmatpush3.bf16.msra.mxu1 %v7389_v60  ;;  %7803 = vrcp.f32 %v5016_v24 }
0x2d19   :  { %p7825_p4 = pnand %p7824_p3, %p7818_p0 }
0x2d1f   :  { %v7641_v26 = vpop.permute.xlu1 %7640 }
0x2d20   :  { %v7643_v61 = vunpack.i.h.bf16 %v7641_v26  ;;  %v7642_v51 = vunpack.i.l.bf16 %v7641_v26 }
0x2d22   :  { %v5460_v25 = vsel %vm255_vm2, %v9856_v15, %v7642_v51  ;;  %v5464_v5 = vsel %vm255_vm2, %v9863_v32, %v7643_v61  ;;  %v7804_v3 = vpop.eup %7803  ;;  %v5421_v15 = vmul.f32 %v5419_v39, %v5343_v7  ;;  %v5733_v39 = vrot.slane %v7816_v56, %v10025_v57 }
0x2d23   :  { %5540 = vmatprep.mubr.f32.mxu1 %v5460_v25  ;;  %5615 = vmatprep.mubr.f32.mxu0 %v5464_v5  ;;  %v5020_v8 = vmul.f32 %v7804_v3, %v9638_v35  ;;  %v10026_v3 = vld [vmem:[#allocation8_spill] sm:$0xff] }
0x2d24   :  { %v5423_v43 = vadd.f32 %v5421_v15, %v5417_v27  ;;  %vm5736_vm13 = vcmp.eq.s32.totalorder %v10026_v3, %v10023_v0 }
0x2d2e   :  { %v7646_v33 = vpop.permute.xlu1 %7645 }
0x2d2f   :  { %v7648_v42 = vunpack.i.h.bf16 %v7646_v33  ;;  %v7647_v32 = vunpack.i.l.bf16 %v7646_v33  ;;  %v6198_v33 = vsel %vm5736_vm13, 1.0, %v10002_v53 }
0x2d31   :  { %v5458_v40 = vsel %vm255_vm2, %v5020_v8, %v7647_v32  ;;  %v5462_v44 = vsel %vm255_vm2, %v9865_v55, %v7648_v42  ;;  %v5739_v32 = vmul.f32 0.125, %v6198_v33 }
0x2d32   :  { %5541 = vmatmul.mubr.f32.gmra.mrb[46].mxu1 %v5458_v40  ;;  %5616 = vmatmul.mubr.f32.gmra.mrb[48].mxu0 %v5462_v44  ;;  %v10027_v44 = vld [vmem:[#allocation11_spill] sm:$0xff] }
0x2d33   :  { %6930 = vmatprep.mubr.msk.f32.mxu1 %vm255_vm2, %v5423_v43  ;;  %6942 = vmatprep.mubr.msk.f32.mxu0 %vm7861_vm6, %v10002_v53  ;;  %v5816_v43 = vrot.slane %v7815_v2, %v10027_v44 }
0x2d36   :  { %6931 = vmatmul.mubr.msk.f32.vlgmr.msra.gmra.mrb[48].mxu1 %vm255_vm2, %v9869_v36 }
0x2d37   :  { %6937 = vmatprep.mubr.msk.f32.mxu1 %vm7861_vm6, %v10002_v53 }
0x2dcc   :  { %v6542_v38 = vpop.f32.mrb[46].mxu0 }
0x2dcd   :  { %v6543_v1 = vpop.f32.mrb[47].mxu0 }
0x2dce   :  { %v6544_v41 = vadd.f32 %v6543_v1, %v6542_v38 }
0x2dde   :  { %v6504_v29 = vpop.f32.mrb[44].mxu1 }
0x2ddf   :  { %v6505_v11 = vpop.f32.mrb[45].mxu1 }
0x2de0   :  { %v6506_v63 = vadd.f32 %v6505_v11, %v6504_v29 }
0x2de2   :  { %v5613_v16 = vadd.f32 %v6544_v41, %v6506_v63 }
0x2e05   :  { %v6507_v14 = vpop.f32.mrb[46].mxu1  ;;  %v6545_v52 = vpop.f32.mrb[48].mxu0 }
0x2e06   :  { %v6508_v58 = vpop.f32.mrb[47].mxu1  ;;  %v6546_v22 = vpop.f32.mrb[49].mxu0 }
0x2e07   :  { %v6509_v55 = vadd.f32 %v6508_v58, %v6507_v14  ;;  %v6547_v6 = vadd.f32 %v6546_v22, %v6545_v52 }
0x2e09   :  { %v5618_v31 = vadd.f32 %v6547_v6, %v6509_v55  ;;  %v6932_v47 = vpop.f32.mrb[48].mxu1 }
0x2e0a   :  { %v5687_v13 = vpop.f32.mrb[49].mxu1 }
0x2e0b   :  { %v5693_v12 = vadd.f32 %v6932_v47, %v5618_v31  ;;  %v5688_v34 = vadd.f32 %v5687_v13, %v5613_v16 }
0x2e0d   :  { %v5697_v36 = vadd.f32 %v5693_v12, %v9638_v35  ;;  %v5696_v4 = vadd.f32 %v5688_v34, %v9533_v49  ;;  %v7860_v49 = vmov 0.0|0.0  }
0x2e0e   :  { %7393 = vmatprep.subr.bf16.mxu1 %v7860_v49 }
0x2e0f   :  { %v5701_v37 = vsel %vm255_vm2, %v5697_v36, 0.0  ;;  %v5698_v19 = vsel %vm255_vm2, %v5696_v4, 0.0 }
0x2e10   :  { %5702 = vadd.xlane.f32.xlu1 %v5701_v37  ;;  %5699 = vadd.xlane.f32.xlu0 %v5698_v19 }
0x2e9d   :  { %v5703_v28 = vpop.xlane.xlu1 %5702  ;;  %v5700_v60 = vpop.xlane.xlu0 %5699 }
0x2e9e   :  { %v5705_v18 = vmul.f32 0.015625, %v5703_v28  ;;  %v5704_v30 = vmul.f32 0.015625, %v5700_v60 }
0x2ea0   :  { %v5707_v9 = vsub.f32 %v5697_v36, %v5705_v18  ;;  %v5706_v50 = vsub.f32 %v5696_v4, %v5704_v30 }
0x2ea2   :  { %v5708_v59 = vmul.f32 %v5706_v50, %v5706_v50  ;;  %v5709_v17 = vmul.f32 %v5707_v9, %v5707_v9 }
0x2ea4   :  { %v5710_v48 = vsel %vm255_vm2, %v5708_v59, 0.0  ;;  %v5713_v35 = vsel %vm255_vm2, %v5709_v17, 0.0 }
0x2ea5   :  { %5711 = vadd.xlane.f32.xlu0 %v5710_v48 }
0x2ea9   :  { %5714 = vadd.xlane.f32.xlu0 %v5713_v35 }
0x2f32   :  { %v5712_v24 = vpop.xlane.xlu0 %5711 }
0x2f33   :  { %v5716_v26 = vmul.f32 0.015625, %v5712_v24 }
0x2f35   :  { %v5718_v61 = vadd.f32 1e-05, %v5716_v26 }
0x2f36   :  { %v5715_v51 = vpop.xlane.xlu0 %5714 }
0x2f37   :  { %7805 = vrsqrt.f32 %v5718_v61  ;;  %v5717_v23 = vmul.f32 0.015625, %v5715_v51 }
0x2f39   :  { %v5719_v25 = vadd.f32 1e-05, %v5717_v23 }
0x2f3b   :  { %7807 = vrsqrt.f32 %v5719_v25 }
0x2f41   :  { %v7806_v5 = vpop.eup %7805 }
0x2f42   :  { %v5722_v62 = vmul.f32 %v7806_v5, %v5706_v50 }
0x2f44   :  { %v5728_v20 = vmul.f32 %v5727_v45, %v5722_v62 }
0x2f45   :  { %v7808_v21 = vpop.eup %7807 }
0x2f46   :  { %v5723_v7 = vmul.f32 %v7808_v21, %v5707_v9  ;;  %v5734_v27 = vadd.f32 %v5733_v39, %v5728_v20 }
0x2f48   :  { %v5729_v10 = vmul.f32 %v5727_v45, %v5723_v7 }
0x2f4a   :  { %v5735_v15 = vadd.f32 %v5733_v39, %v5729_v10 }
0x2f4c   :  { %v7394_v42 = vpack.c.bf16 %v5735_v15, %v5734_v27 }
0x2f4e   :  { %7395 = vmatpush3.bf16.msra.mxu1 %v7394_v42 }
0x2f51   :  { %6938 = vmatmul.mubr.msk.f32.vlgmr.msra.gmra.mrb[50].mxu1 %vm453_vm7, %v5739_v32 }
0x3024   :  { %v5809_v8 = vpop.f32.mrb[50].mxu1 }
0x3025   :  { %v6939_v40 = vpop.f32.mrb[51].mxu1  ;;  %6943 = vmatmul.mubr.msk.f32.vlgmr.msra.gmra.mrb[50].mxu0 %vm255_vm2, %v5809_v8 }
0x30f8   :  { %v5890_v38 = vpop.f32.mrb[50].mxu0 }
0x30f9   :  { %v5891_v1 = vadd.f32 %v5890_v38, %v5816_v43  ;;  %v6944_v41 = vpop.f32.mrb[51].mxu0 }
0x30fb   :  { %5895 = vst.msk [vmem:[#allocation2] sm:$0x3] %vm5894_vm14, %v5891_v1 }
0x30fc   :  { %7828 = shalt.err (!%p7825_p4)
}
0x30fd   :  { %s7829_s10 = scalar_lea.hbm %s9963_s6, 32 }
0x30fe   :  { %p7830_p5 = scmp.ne.s32.totalorder %s9963_s6, %s7829_s10  ;;  %p7833_p6 = scmp.lt.u32.totalorder %s7829_s10, %s9963_s6 }
0x3100   :  { %p7835_p7 = pnand %p7833_p6, %p7830_p5 }
0x3102   :  { %7838 = shalt.err (!%p7835_p7)
}
0x3103   :  { %5905 = dma.vmem_to_hbm [thread:$0]  %s5903_s16, 32, %s9963_s6, [#allocation3]  }
0x3104   :  { %7839 = dma.done.wait [#allocation3], 32  }
0x3105   :  { %7840 = vsyncadd [#allocation3], 4294967264 }
0x3106   :  { %5909 = vsyncpa [#allocation3], 1 }

</bundles_post_ra>
